<compile_context>
chip_gen: v5e
topology: v5e:2x2
jax: 0.10.0
libtpu: 0.0.40
codegen_flags: <defaults>
</compile_context>

<pallas_src>
import jax
import jax.numpy as jnp
from jax import lax
from jax.experimental import pallas as pl
from jax.experimental.pallas import tpu as pltpu  # imported for TPU-specific params if needed

# ----------------------------- config ----------------------------------------
C = 4              # backbone feature channels
P = 4              # ROIAlign output resolution (P x P)
H = 32             # fc6 / fc7 representation size (feature_extractor.out_channels)
K = 8              # num foreground classes (cls / det streams)
K1 = K + 1         # refinement streams include background
B4 = 4 * K1        # bbox regression width per refinement stream (36)
N_REF = 3
R = 256            # number of proposals (single image) -- batched per review
FLAT = C * P * P   # flattened pooled dim (torch .view order: C, P, P) = 64
XPAD = 128         # fc6 input padded to one full lane tile
LANES = 256        # lane-dense width of fused head / packed output

# head / packed-output lane layout (shared offsets => no lane shifts in-kernel)
CLS_L = 0                       # cls logits / probs        [0, 8)
REF_L = CLS_L + K               # 3 refinement streams      [8, 35)
CLS_BLK = REF_L + N_REF * K1    # class-softmax block end   35
DET_L = 40                      # det logits / probs        [40, 48)
BBOX_L = DET_L + K              # bbox logits (3 x 36)      [48, 156)
BBOX_E = BBOX_L + N_REF * B4    # 156
FEAT_O = 160                    # roi_feats passthrough     [160, 192)
FINAL_O = 248                   # WSDDN final score         [248, 256)

# bf16 weight-slab row offsets (all multiples of the bf16 sublane tile of 16)
W6_ROW = 0
W7_ROW = XPAD                   # 128
WH_ROW = XPAD + H               # 160
WROWS = XPAD + 2 * H            # 192

# f32 aux-slab (biases) row offsets (8-aligned)
B6_ROW = 0
B7_ROW = 8
BH_ROW = 16
AROWS = 24


# ----------------------- Pallas kernel (hot path) -----------------------------
def weak_head_kernel(x_ref, w_ref, aux_ref, o_ref):
    f32 = jnp.float32
    x = x_ref[...]                                       # [R, XPAD] bf16 (pre-cast)

    # static slices of the bf16 weight slab / f32 bias slab (zero-cost views)
    w6 = w_ref[W6_ROW:W6_ROW + XPAD, 0:H]                # [128, 32] bf16
    w7 = w_ref[W7_ROW:W7_ROW + H, 0:H]                   # [32, 32]  bf16
    wh = w_ref[WH_ROW:WH_ROW + H, :]                     # [32, 256] bf16
    b6 = aux_ref[B6_ROW:B6_ROW + 1, 0:H]                 # [1, 32]   f32
    b7 = aux_ref[B7_ROW:B7_ROW + 1, 0:H]                 # [1, 32]   f32
    bh = aux_ref[BH_ROW:BH_ROW + 1, :]                   # [1, 256]  f32

    # feature_extractor: fc6 -> relu -> fc7 -> relu (bf16 MXU, f32 accumulation)
    h = jnp.maximum(jnp.dot(x, w6, preferred_element_type=f32) + b6, 0.0)
    feat = jnp.maximum(
        jnp.dot(h.astype(jnp.bfloat16), w7, preferred_element_type=f32) + b7, 0.0)

    # ONE fused head matmul: cls | 3x ref | det | 3x bbox | identity(feat) columns
    head = jnp.dot(feat.astype(jnp.bfloat16), wh, preferred_element_type=f32) + bh  # [R, 256]

    lane = lax.broadcasted_iota(jnp.int32, (1, LANES), 1)
    cls_mask = lane < CLS_BLK
    det_mask = (lane >= DET_L) & (lane < DET_L + K)

    # ---- fused class-axis softmaxes (cls + 3 refinement streams) ----
    # one masked row-max, one exp; per-segment sums + broadcast-back via two
    # tiny one-hot matmuls on the (otherwise idle) MXU.
    masked = jnp.where(cls_mask, head, f32(-1e30))
    m = jnp.max(masked, axis=1, keepdims=True)            # [R, 1]
    e = jnp.exp(masked - m)                               # exactly 0 outside class lanes

    def seg_onehot(shape, seg_dim, lane_dim):
        s = lax.broadcasted_iota(jnp.int32, shape, seg_dim)
        l = lax.broadcasted_iota(jnp.int32, shape, lane_dim)
        lo = jnp.where(s == 0, 0, K1 * s - 1)              # segment starts 0, 8, 17, 26
        hi = K1 * s + K                                    # segment ends   8, 17, 26, 35
        return ((l >= lo) & (l < hi)).astype(f32)

    seg_gather = seg_onehot((LANES, N_REF + 1), 1, 0)      # [256, 4] one-hot
    seg_scatter = seg_onehot((N_REF + 1, LANES), 0, 1)     # [4, 256] one-hot

    seg_sums = jnp.dot(e, seg_gather,
                       precision=lax.Precision.HIGHEST,
                       preferred_element_type=f32)         # [R, 4] per-segment sums
    inv_seg = pl.reciprocal(jnp.maximum(seg_sums, 1e-30), approx=False)
    inv_full = jnp.dot(inv_seg, seg_scatter,
                       precision=lax.Precision.HIGHEST,
                       preferred_element_type=f32)         # [R, 256] (0 off the class lanes)
    cls_probs = e * inv_full                               # probs at class lanes, 0 elsewhere

    # ---- detection-stream softmax over proposals (axis 0), full width so it
    # stays lane-aligned with the head layout ----
    dm = jnp.max(head, axis=0, keepdims=True)
    de = jnp.exp(head - dm)
    det_probs = de * pl.reciprocal(jnp.sum(de, axis=0, keepdims=True), approx=False)

    # lane-aligned assembly: cls/ref probs, det probs, bbox logits and the
    # feat passthrough all keep their head lane offsets -> pure selects.
    composed = jnp.where(cls_mask, cls_probs, jnp.where(det_mask, det_probs, head))

    # HEUR == 'WSDDN': final score = cls_prob * det_prob (placed in the tail lanes)
    final = cls_probs[:, CLS_L:CLS_L + K] * det_probs[:, DET_L:DET_L + K]   # [R, 8]

    # single lane-dense [R, 256] store
    o_ref[...] = jnp.concatenate([composed[:, 0:FINAL_O], final], axis=1)


def run_weak_head(x_pad_bf16, w_slab, aux_slab):
    """x_pad_bf16: [R, XPAD] bf16; w_slab: [WROWS, LANES] bf16; aux_slab: [AROWS, LANES] f32."""
    r = x_pad_bf16.shape[0]
    # No grid / BlockSpecs: everything (<1.5 MiB) is VMEM-resident, one DMA per array.
    # TODO(synk): for >>256 proposals, add a grid over R-blocks ("parallel" for v7x)
    # with a two-pass scheme for the cross-block det-stream softmax.
    return pl.pallas_call(
        weak_head_kernel,
        out_shape=jax.ShapeDtypeStruct((r, LANES), jnp.float32),
    )(x_pad_bf16, w_slab, aux_slab)


# --------------------------- parameter packing --------------------------------
def pack_params(params):
    """Pack all 12 weight/bias tensors into a bf16 weight slab + f32 bias slab (done once)."""
    (w6, b6, w7, b7, wc, bc, wd, bd, wr, br, wb, bb) = params

    wh = jnp.zeros((H, LANES), jnp.float32)
    bh = jnp.zeros((1, LANES), jnp.float32)
    wh = wh.at[:, CLS_L:CLS_L + K].set(wc)
    bh = bh.at[:, CLS_L:CLS_L + K].set(bc)
    wh = wh.at[:, DET_L:DET_L + K].set(wd)
    bh = bh.at[:, DET_L:DET_L + K].set(bd)
    for i in range(N_REF):
        wh = wh.at[:, REF_L + i * K1:REF_L + (i + 1) * K1].set(wr[i])
        bh = bh.at[:, REF_L + i * K1:REF_L + (i + 1) * K1].set(br[i])
        wh = wh.at[:, BBOX_L + i * B4:BBOX_L + (i + 1) * B4].set(wb[i])
        bh = bh.at[:, BBOX_L + i * B4:BBOX_L + (i + 1) * B4].set(bb[i])
    # identity columns: roi_feats ride through the fused head matmul for free
    wh = wh.at[:, FEAT_O:FEAT_O + H].set(jnp.eye(H, dtype=jnp.float32))

    w_slab = jnp.zeros((WROWS, LANES), jnp.float32)
    w_slab = w_slab.at[W6_ROW:W6_ROW + FLAT, 0:H].set(w6)     # rows FLAT:XPAD stay zero (x pad)
    w_slab = w_slab.at[W7_ROW:W7_ROW + H, 0:H].set(w7)
    w_slab = w_slab.at[WH_ROW:WH_ROW + H, :].set(wh)
    w_slab = w_slab.astype(jnp.bfloat16)                      # pre-cast offline

    aux = jnp.zeros((AROWS, LANES), jnp.float32)
    aux = aux.at[B6_ROW:B6_ROW + 1, 0:H].set(b6)
    aux = aux.at[B7_ROW:B7_ROW + 1, 0:H].set(b7)
    aux = aux.at[BH_ROW:BH_ROW + 1, :].set(bh)
    return w_slab, aux


# ----------------------- ROI pooling glue (plain JAX) --------------------------
# Gather-free ROIAlign (single center sample per bin): bilinear "tent" weights
# along each axis turn the resampling into two dense einsums (MXU-friendly).
# TODO(synk): exact torchvision/wetectron ROIAlign (sampling_ratio, aligned=-0.5
# offset) and multi-image batching are not reproduced here.
def roi_align_single_image(feat_chw, boxes, out_size, spatial_scale=1.0):
    _, Hf, Wf = feat_chw.shape
    x1 = boxes[:, 0] * spatial_scale
    y1 = boxes[:, 1] * spatial_scale
    x2 = boxes[:, 2] * spatial_scale
    y2 = boxes[:, 3] * spatial_scale
    bw = jnp.maximum(x2 - x1, 1.0)
    bh = jnp.maximum(y2 - y1, 1.0)
    bins = (jnp.arange(out_size, dtype=jnp.float32) + 0.5) / out_size        # [P]
    ys = jnp.clip(y1[:, None] + bins[None, :] * bh[:, None], 0.0, Hf - 1.0)  # [R, P]
    xs = jnp.clip(x1[:, None] + bins[None, :] * bw[:, None], 0.0, Wf - 1.0)  # [R, P]
    wy = jnp.maximum(0.0, 1.0 - jnp.abs(ys[:, :, None] - jnp.arange(Hf, dtype=jnp.float32)))
    wx = jnp.maximum(0.0, 1.0 - jnp.abs(xs[:, :, None] - jnp.arange(Wf, dtype=jnp.float32)))
    t = jnp.einsum('rph,chw->rcpw', wy, feat_chw)        # [R, C, P, Wf]
    pooled = jnp.einsum('rcpw,rqw->rcpq', t, wx)         # [R, C, P, P]
    return pooled


# ------------------------------ full forward -----------------------------------
@jax.jit
def roi_weak_reg_head_forward(features_nchw, boxes, w_slab, aux_slab):
    r = boxes.shape[0]
    pooled = roi_align_single_image(features_nchw[0], boxes, P)   # [R, C, P, P]
    x_flat = pooled.reshape(r, FLAT)                              # == torch x.view(R, -1)
    x_pad = jnp.pad(x_flat, ((0, 0), (0, XPAD - FLAT))).astype(jnp.bfloat16)

    packed = run_weak_head(x_pad, w_slab, aux_slab)               # [R, LANES]

    roi_feats = packed[:, FEAT_O:FEAT_O + H]
    cls_prob = packed[:, CLS_L:CLS_L + K]
    det_prob = packed[:, DET_L:DET_L + K]
    final_score = packed[:, FINAL_O:FINAL_O + K]                  # HEUR == 'WSDDN'
    ref_scores = jnp.stack(
        [packed[:, REF_L + i * K1:REF_L + (i + 1) * K1] for i in range(N_REF)], axis=0)
    ref_bbox = jnp.stack(
        [packed[:, BBOX_L + i * B4:BBOX_L + (i + 1) * B4] for i in range(N_REF)], axis=0)

    # TODO(synk): weak_roi_box_post_processor / strong_post_processor (per-class NMS
    # + box decoding) and training-only branches (Sim_Net, CDB, loss evaluator,
    # roi_sampler) have no clean Pallas equivalent; returning scores.
    return roi_feats, final_score, cls_prob, det_prob, ref_scores, ref_bbox


# ------------------------------ param init -------------------------------------
def init_params(key):
    ks = jax.random.split(key, 6)
    s = 0.01
    w6 = jax.random.normal(ks[0], (FLAT, H), jnp.float32) * s
    b6 = jnp.zeros((1, H), jnp.float32)
    w7 = jax.random.normal(ks[1], (H, H), jnp.float32) * s
    b7 = jnp.zeros((1, H), jnp.float32)
    wc = jax.random.normal(ks[2], (H, K), jnp.float32) * s
    bc = jnp.zeros((1, K), jnp.float32)
    wd = jax.random.normal(ks[3], (H, K), jnp.float32) * s
    bd = jnp.zeros((1, K), jnp.float32)
    wr = jax.random.normal(ks[4], (N_REF, H, K1), jnp.float32) * s
    br = jnp.zeros((N_REF, 1, K1), jnp.float32)
    wb = jax.random.normal(ks[5], (N_REF, H, B4), jnp.float32) * 0.001
    bb = jnp.zeros((N_REF, 1, B4), jnp.float32)
    return (w6, b6, w7, b7, wc, bc, wd, bd, wr, br, wb, bb)


if __name__ == "__main__":
    key = jax.random.PRNGKey(0)
    k_feat, k_box, k_param = jax.random.split(key, 3)

    # features: NCHW, single image, 16x16 spatial
    features = jax.random.normal(k_feat, (1, C, 16, 16), jnp.float32)

    # proposals: R boxes (x1, y1, x2, y2) inside the 16x16 map
    kx, ky, kw, kh = jax.random.split(k_box, 4)
    x1 = jax.random.uniform(kx, (R,), minval=0.0, maxval=10.0)
    y1 = jax.random.uniform(ky, (R,), minval=0.0, maxval=10.0)
    w = jax.random.uniform(kw, (R,), minval=2.0, maxval=6.0)
    h = jax.random.uniform(kh, (R,), minval=2.0, maxval=6.0)
    boxes = jnp.stack([x1, y1, jnp.minimum(x1 + w, 15.0),
                       jnp.minimum(y1 + h, 15.0)], axis=1)

    params = init_params(k_param)
    w_slab, aux_slab = pack_params(params)                # packed once, offline
    w_slab = jax.block_until_ready(w_slab)
    aux_slab = jax.block_until_ready(aux_slab)

    outs = roi_weak_reg_head_forward(features, boxes, w_slab, aux_slab)
    outs = jax.tree_util.tree_map(jax.block_until_ready, outs)

    roi_feats, final_score, cls_prob, det_prob, ref_scores, ref_bbox = outs
    assert roi_feats.shape == (R, H)
    assert final_score.shape == (R, K)
    assert cls_prob.shape == (R, K)
    assert det_prob.shape == (R, K)
    assert ref_scores.shape == (N_REF, R, K1)
    assert ref_bbox.shape == (N_REF, R, B4)
    # sanity: softmax normalizations and the WSDDN product hold
    assert jnp.allclose(jnp.sum(cls_prob, axis=1), 1.0, atol=2e-2)
    assert jnp.allclose(jnp.sum(ref_scores, axis=2), 1.0, atol=2e-2)
    assert jnp.allclose(jnp.sum(det_prob, axis=0), 1.0, atol=1e-3)
    assert jnp.allclose(final_score, cls_prob * det_prob, atol=1e-6)
    assert bool(jnp.all(roi_feats >= 0.0))

    print("KERNEL_OK")
</pallas_src>

<mosaic_0001>
module attributes {stable_mosaic.version = 11 : i64} {
  func.func @weak_head_kernel(%arg0: memref<256x128xbf16, #tpu.memory_space<vmem>>, %arg1: memref<192x256xbf16, #tpu.memory_space<vmem>>, %arg2: memref<24x256xf32, #tpu.memory_space<vmem>>, %arg3: memref<256x256xf32, #tpu.memory_space<vmem>>) attributes {dimension_semantics = [], scalar_prefetch = 0 : i64, scratch_operands = 0 : i64, tpu.core_type = #tpu.core_type<tc>} {
    %c0 = arith.constant 0 : index
    %c0_0 = arith.constant 0 : index
    %0 = vector.load %arg0[%c0, %c0_0] : memref<256x128xbf16, #tpu.memory_space<vmem>>, vector<256x128xbf16>
    %c0_1 = arith.constant 0 : index
    %c0_2 = arith.constant 0 : index
    %1 = vector.load %arg1[%c0_1, %c0_2] : memref<192x256xbf16, #tpu.memory_space<vmem>>, vector<128x32xbf16>
    %c128 = arith.constant 128 : index
    %c0_3 = arith.constant 0 : index
    %2 = vector.load %arg1[%c128, %c0_3] : memref<192x256xbf16, #tpu.memory_space<vmem>>, vector<32x32xbf16>
    %c160 = arith.constant 160 : index
    %c0_4 = arith.constant 0 : index
    %3 = vector.load %arg1[%c160, %c0_4] : memref<192x256xbf16, #tpu.memory_space<vmem>>, vector<32x256xbf16>
    %c0_5 = arith.constant 0 : index
    %c0_6 = arith.constant 0 : index
    %4 = vector.load %arg2[%c0_5, %c0_6] : memref<24x256xf32, #tpu.memory_space<vmem>>, vector<1x32xf32>
    %c8 = arith.constant 8 : index
    %c0_7 = arith.constant 0 : index
    %5 = vector.load %arg2[%c8, %c0_7] : memref<24x256xf32, #tpu.memory_space<vmem>>, vector<1x32xf32>
    %c16 = arith.constant 16 : index
    %c0_8 = arith.constant 0 : index
    %6 = vector.load %arg2[%c16, %c0_8] : memref<24x256xf32, #tpu.memory_space<vmem>>, vector<1x256xf32>
    %cst = arith.constant dense<0.000000e+00> : vector<256x32xf32>
    %7 = tpu.matmul %0, %1, %cst {dimension_numbers = #tpu.dot_dimension_numbers<[1], [0], [0], [1], [0, 0, 1, 1], [], []>} : vector<256x128xbf16>, vector<128x32xbf16>, vector<256x32xf32> -> vector<256x32xf32>
    %8 = vector.broadcast %4 : vector<1x32xf32> to vector<256x32xf32>
    %9 = arith.addf %7, %8 : vector<256x32xf32>
    %cst_9 = arith.constant 0.000000e+00 : f32
    %10 = vector.broadcast %cst_9 : f32 to vector<256x32xf32>
    %11 = arith.maximumf %9, %10 : vector<256x32xf32>
    %12 = arith.truncf %11 : vector<256x32xf32> to vector<256x32xbf16>
    %cst_10 = arith.constant dense<0.000000e+00> : vector<256x32xf32>
    %13 = tpu.matmul %12, %2, %cst_10 {dimension_numbers = #tpu.dot_dimension_numbers<[1], [0], [0], [1], [0, 0, 1, 1], [], []>} : vector<256x32xbf16>, vector<32x32xbf16>, vector<256x32xf32> -> vector<256x32xf32>
    %14 = vector.broadcast %5 : vector<1x32xf32> to vector<256x32xf32>
    %15 = arith.addf %13, %14 : vector<256x32xf32>
    %cst_11 = arith.constant 0.000000e+00 : f32
    %16 = vector.broadcast %cst_11 : f32 to vector<256x32xf32>
    %17 = arith.maximumf %15, %16 : vector<256x32xf32>
    %18 = arith.truncf %17 : vector<256x32xf32> to vector<256x32xbf16>
    %cst_12 = arith.constant dense<0.000000e+00> : vector<256x256xf32>
    %19 = tpu.matmul %18, %3, %cst_12 {dimension_numbers = #tpu.dot_dimension_numbers<[1], [0], [0], [1], [0, 0, 1, 1], [], []>} : vector<256x32xbf16>, vector<32x256xbf16>, vector<256x256xf32> -> vector<256x256xf32>
    %20 = vector.broadcast %6 : vector<1x256xf32> to vector<256x256xf32>
    %21 = arith.addf %19, %20 : vector<256x256xf32>
    %22 = tpu.iota {dimensions = array<i32: 1>} : vector<1x256xi32>
    %c35_i32 = arith.constant 35 : i32
    %23 = vector.broadcast %c35_i32 : i32 to vector<1x256xi32>
    %24 = arith.cmpi slt, %22, %23 : vector<1x256xi32>
    %c40_i32 = arith.constant 40 : i32
    %25 = vector.broadcast %c40_i32 : i32 to vector<1x256xi32>
    %26 = arith.cmpi sge, %22, %25 : vector<1x256xi32>
    %c48_i32 = arith.constant 48 : i32
    %27 = vector.broadcast %c48_i32 : i32 to vector<1x256xi32>
    %28 = arith.cmpi slt, %22, %27 : vector<1x256xi32>
    %29 = arith.andi %26, %28 : vector<1x256xi1>
    %cst_13 = arith.constant -1.000000e+30 : f32
    %30 = vector.shape_cast %24 : vector<1x256xi1> to vector<1x256xi1>
    %31 = vector.broadcast %30 : vector<1x256xi1> to vector<256x256xi1>
    %32 = vector.broadcast %cst_13 : f32 to vector<256x256xf32>
    %33 = arith.select %31, %21, %32 : vector<256x256xi1>, vector<256x256xf32>
    %cst_14 = arith.constant dense<0xFF800000> : vector<256xf32>
    %34 = vector.multi_reduction <maximumf>, %33, %cst_14 [1] : vector<256x256xf32> to vector<256xf32>
    %35 = vector.shape_cast %34 : vector<256xf32> to vector<256x1xf32>
    %36 = vector.broadcast %35 : vector<256x1xf32> to vector<256x256xf32>
    %37 = arith.subf %33, %36 : vector<256x256xf32>
    %38 = math.exp %37 : vector<256x256xf32>
    %39 = tpu.iota {dimensions = array<i32: 1>} : vector<256x4xi32>
    %40 = tpu.iota {dimensions = array<i32: 0>} : vector<256x4xi32>
    %c0_i32 = arith.constant 0 : i32
    %41 = vector.broadcast %c0_i32 : i32 to vector<256x4xi32>
    %42 = arith.cmpi eq, %39, %41 : vector<256x4xi32>
    %c9_i32 = arith.constant 9 : i32
    %43 = vector.broadcast %c9_i32 : i32 to vector<256x4xi32>
    %44 = arith.muli %43, %39 : vector<256x4xi32>
    %c1_i32 = arith.constant 1 : i32
    %45 = vector.broadcast %c1_i32 : i32 to vector<256x4xi32>
    %46 = arith.subi %44, %45 : vector<256x4xi32>
    %c0_i32_15 = arith.constant 0 : i32
    %47 = vector.broadcast %c0_i32_15 : i32 to vector<256x4xi32>
    %48 = arith.select %42, %47, %46 : vector<256x4xi1>, vector<256x4xi32>
    %c9_i32_16 = arith.constant 9 : i32
    %49 = vector.broadcast %c9_i32_16 : i32 to vector<256x4xi32>
    %50 = arith.muli %49, %39 : vector<256x4xi32>
    %c8_i32 = arith.constant 8 : i32
    %51 = vector.broadcast %c8_i32 : i32 to vector<256x4xi32>
    %52 = arith.addi %50, %51 : vector<256x4xi32>
    %53 = arith.cmpi sge, %40, %48 : vector<256x4xi32>
    %54 = arith.cmpi slt, %40, %52 : vector<256x4xi32>
    %55 = arith.andi %53, %54 : vector<256x4xi1>
    %56 = arith.extui %55 : vector<256x4xi1> to vector<256x4xi32>
    %57 = arith.sitofp %56 : vector<256x4xi32> to vector<256x4xf32>
    %58 = tpu.iota {dimensions = array<i32: 0>} : vector<4x256xi32>
    %59 = tpu.iota {dimensions = array<i32: 1>} : vector<4x256xi32>
    %c0_i32_17 = arith.constant 0 : i32
    %60 = vector.broadcast %c0_i32_17 : i32 to vector<4x256xi32>
    %61 = arith.cmpi eq, %58, %60 : vector<4x256xi32>
    %c9_i32_18 = arith.constant 9 : i32
    %62 = vector.broadcast %c9_i32_18 : i32 to vector<4x256xi32>
    %63 = arith.muli %62, %58 : vector<4x256xi32>
    %c1_i32_19 = arith.constant 1 : i32
    %64 = vector.broadcast %c1_i32_19 : i32 to vector<4x256xi32>
    %65 = arith.subi %63, %64 : vector<4x256xi32>
    %c0_i32_20 = arith.constant 0 : i32
    %66 = vector.broadcast %c0_i32_20 : i32 to vector<4x256xi32>
    %67 = arith.select %61, %66, %65 : vector<4x256xi1>, vector<4x256xi32>
    %c9_i32_21 = arith.constant 9 : i32
    %68 = vector.broadcast %c9_i32_21 : i32 to vector<4x256xi32>
    %69 = arith.muli %68, %58 : vector<4x256xi32>
    %c8_i32_22 = arith.constant 8 : i32
    %70 = vector.broadcast %c8_i32_22 : i32 to vector<4x256xi32>
    %71 = arith.addi %69, %70 : vector<4x256xi32>
    %72 = arith.cmpi sge, %59, %67 : vector<4x256xi32>
    %73 = arith.cmpi slt, %59, %71 : vector<4x256xi32>
    %74 = arith.andi %72, %73 : vector<4x256xi1>
    %75 = arith.extui %74 : vector<4x256xi1> to vector<4x256xi32>
    %76 = arith.sitofp %75 : vector<4x256xi32> to vector<4x256xf32>
    %cst_23 = arith.constant dense<0.000000e+00> : vector<256x4xf32>
    %77 = tpu.matmul %38, %57, %cst_23 {dimension_numbers = #tpu.dot_dimension_numbers<[1], [0], [0], [1], [0, 0, 1, 1], [], []>, precision = #tpu.contract_precision<fp32>} : vector<256x256xf32>, vector<256x4xf32>, vector<256x4xf32> -> vector<256x4xf32>
    %cst_24 = arith.constant 1.000000e-30 : f32
    %78 = vector.broadcast %cst_24 : f32 to vector<256x4xf32>
    %79 = arith.maximumf %77, %78 : vector<256x4xf32>
    %80 = tpu.reciprocal %79 : vector<256x4xf32> -> vector<256x4xf32>
    %cst_25 = arith.constant dense<0.000000e+00> : vector<256x256xf32>
    %81 = tpu.matmul %80, %76, %cst_25 {dimension_numbers = #tpu.dot_dimension_numbers<[1], [0], [0], [1], [0, 0, 1, 1], [], []>, precision = #tpu.contract_precision<fp32>} : vector<256x4xf32>, vector<4x256xf32>, vector<256x256xf32> -> vector<256x256xf32>
    %82 = arith.mulf %38, %81 : vector<256x256xf32>
    %cst_26 = arith.constant dense<0xFF800000> : vector<256xf32>
    %83 = vector.multi_reduction <maximumf>, %21, %cst_26 [0] : vector<256x256xf32> to vector<256xf32>
    %84 = vector.shape_cast %83 : vector<256xf32> to vector<1x256xf32>
    %85 = vector.broadcast %84 : vector<1x256xf32> to vector<256x256xf32>
    %86 = arith.subf %21, %85 : vector<256x256xf32>
    %87 = math.exp %86 : vector<256x256xf32>
    %cst_27 = arith.constant dense<0.000000e+00> : vector<256xf32>
    %88 = vector.multi_reduction <add>, %87, %cst_27 [0] : vector<256x256xf32> to vector<256xf32>
    %89 = vector.shape_cast %88 : vector<256xf32> to vector<1x256xf32>
    %90 = tpu.reciprocal %89 : vector<1x256xf32> -> vector<1x256xf32>
    %91 = vector.broadcast %90 : vector<1x256xf32> to vector<256x256xf32>
    %92 = arith.mulf %87, %91 : vector<256x256xf32>
    %93 = vector.shape_cast %29 : vector<1x256xi1> to vector<1x256xi1>
    %94 = vector.broadcast %93 : vector<1x256xi1> to vector<256x256xi1>
    %95 = arith.select %94, %92, %21 : vector<256x256xi1>, vector<256x256xf32>
    %96 = vector.shape_cast %24 : vector<1x256xi1> to vector<1x256xi1>
    %97 = vector.broadcast %96 : vector<1x256xi1> to vector<256x256xi1>
    %98 = arith.select %97, %82, %95 : vector<256x256xi1>, vector<256x256xf32>
    %99 = vector.extract_strided_slice %82 {offsets = [0, 0], sizes = [256, 8], strides = [1, 1]} : vector<256x256xf32> to vector<256x8xf32>
    %100 = vector.extract_strided_slice %92 {offsets = [0, 40], sizes = [256, 8], strides = [1, 1]} : vector<256x256xf32> to vector<256x8xf32>
    %101 = arith.mulf %99, %100 : vector<256x8xf32>
    %102 = vector.extract_strided_slice %98 {offsets = [0, 0], sizes = [256, 248], strides = [1, 1]} : vector<256x256xf32> to vector<256x248xf32>
    %103 = tpu.concatenate %102, %101 in 1 : vector<256x248xf32>, vector<256x8xf32> -> vector<256x256xf32>
    %c0_28 = arith.constant 0 : index
    %c0_29 = arith.constant 0 : index
    %104 = vector.load %arg3[%c0_28, %c0_29] : memref<256x256xf32, #tpu.memory_space<vmem>>, vector<256x256xf32>
    tpu.vector_store %arg3[%c0_28, %c0_29], %103 {strides = array<i32>} : memref<256x256xf32, #tpu.memory_space<vmem>>, vector<256x256xf32>,
    return
  }
}

</mosaic_0001>

<bundles_post_ra>
// kernel: roi_weak_reg_head_forward.1
= control target key start
LH: loop header
LB: loop body
LE: loop exit
PB: predicated region body
PF: predicated region fallthrough
CT: control target
= control target key end

     0   :  { %vm368_vm0 = vcmask 261120   ;;  %s8438_s23 = smov 88   ;;  %s8439_s26 = smov 120   ;;  %s14574_s1 = inlined_call_operand.vmem [shape: bf16[192,256], index: 1, kind: input, shape index: {}]   ;;  %s14575_s0 = inlined_call_operand.vmem [shape: bf16[256,128], index: 0, kind: input, shape index: {}]   ;;  %s14576_s2 = inlined_call_operand.vmem [shape: f32[24,256], index: 2, kind: input, shape index: {}]   ;;  %s14577_s3 = inlined_call_operand.vmem [shape: f32[256,256], index: 3, kind: output, shape index: {}]  }
   0x1   :  { %v7899_v0 = vld [vmem:[%s14574_s1 + $0x70] sm:$0xf]  ;;  %v8134_v1 = vld [vmem:[%s14574_s1 + $0x74] sm:$0xf0]  ;;  %v7895_v2 = vld [vmem:[%s14574_s1 + $0x60] sm:$0xf] }
   0x2   :  { %v7900_v3 = vor.u32 %v8134_v1, %v7899_v0  ;;  %v8133_v4 = vld [vmem:[%s14574_s1 + $0x64] sm:$0xf0]  ;;  %v7891_v6 = vld [vmem:[%s14574_s1 + $0x50] sm:$0xf]  ;;  %v8132_v7 = vld [vmem:[%s14574_s1 + $0x54] sm:$0xf0] }
   0x3   :  { %v7896_v5 = vor.u32 %v8133_v4, %v7895_v2  ;;  %v7892_v8 = vor.u32 %v8132_v7, %v7891_v6  ;;  %v7887_v9 = vld [vmem:[%s14574_s1 + $0x40] sm:$0xf]  ;;  %v8131_v10 = vld [vmem:[%s14574_s1 + $0x44] sm:$0xf0]  ;;  %v7883_v12 = vld [vmem:[%s14574_s1 + $0x30] sm:$0xf] }
   0x4   :  { %219 = vmatpush.bf16.msra.mxu0 %v7900_v3  ;;  %v7888_v11 = vor.u32 %v8131_v10, %v7887_v9  ;;  %v8130_v13 = vld [vmem:[%s14574_s1 + $0x34] sm:$0xf0]  ;;  %v7879_v15 = vld [vmem:[%s14574_s1 + $0x20] sm:$0xf]  ;;  %v8129_v16 = vld [vmem:[%s14574_s1 + $0x24] sm:$0xf0] }
   0x5   :  { %v7884_v14 = vor.u32 %v8130_v13, %v7883_v12  ;;  %v7880_v17 = vor.u32 %v8129_v16, %v7879_v15  ;;  %v7875_v18 = vld [vmem:[%s14574_s1 + $0x10] sm:$0xf]  ;;  %v8128_v19 = vld [vmem:[%s14574_s1 + $0x14] sm:$0xf0]  ;;  %v7871_v21 = vld [vmem:[%s14574_s1] sm:$0xf] }
   0x6   :  { %v7876_v20 = vor.u32 %v8128_v19, %v7875_v18  ;;  %v8127_v22 = vld [vmem:[%s14574_s1 + $0x4] sm:$0xf0]  ;;  %v8111_v24 = vld [vmem:[%s14575_s0] sm:$0xff]  ;;  %v8113_v26 = vld [vmem:[%s14575_s0 + $0x10] sm:$0xff] }
   0x7   :  { %v7872_v23 = vor.u32 %v8127_v22, %v7871_v21  ;;  %v8112_v25 = vld [vmem:[%s14575_s0 + $0x8] sm:$0xff]  ;;  %v8114_v27 = vld [vmem:[%s14575_s0 + $0x18] sm:$0xff]  ;;  %v8115_v28 = vld [vmem:[%s14575_s0 + $0x20] sm:$0xff] }
   0x8   :  { %220 = vmatpush.bf16.msra.mxu0 %v7896_v5  ;;  %v8116_v29 = vld [vmem:[%s14575_s0 + $0x28] sm:$0xff]  ;;  %v8117_v30 = vld [vmem:[%s14575_s0 + $0x30] sm:$0xff]  ;;  %v8136_v32 = vld [vmem:[%s14574_s1 + $0x94] sm:$0xf0] }
   0x9   :  { %v7907_v31 = vld [vmem:[%s14574_s1 + $0x90] sm:$0xf]  ;;  %v7903_v34 = vld [vmem:[%s14574_s1 + $0x80] sm:$0xf]  ;;  %v8135_v35 = vld [vmem:[%s14574_s1 + $0x84] sm:$0xf0] }
   0xa   :  { %v7908_v33 = vor.u32 %v8136_v32, %v7907_v31  ;;  %v7904_v36 = vor.u32 %v8135_v35, %v7903_v34  ;;  %v8118_v37 = vld [vmem:[%s14575_s0 + $0x38] sm:$0xff]  ;;  %v8119_v38 = vld [vmem:[%s14575_s0 + $0x40] sm:$0xff]  ;;  %v8120_v47 = vld [vmem:[%s14575_s0 + $0x48] sm:$0xff] }
   0xb   :  { %v8550_v40 = vld [vmem:[%s14576_s2] ss:$0 sm:$0xff]  ;;  %v8121_v55 = vld [vmem:[%s14575_s0 + $0x50] sm:$0xff]  ;;  %v8122_v63 = vld [vmem:[%s14575_s0 + $0x58] sm:$0xff] }
   0xc   :  { %221 = vmatpush.bf16.msra.mxu0 %v7892_v8  ;;  %423 = vmatpush.bf16.msra.mxu1 %v7908_v33  ;;  %v8123_v7 = vld [vmem:[%s14575_s0 + $0x60] sm:$0xff]  ;;  %v8124_v15 = vld [vmem:[%s14575_s0 + $0x68] sm:$0xff]  ;;  %v8126_v31 = vld [vmem:[%s14575_s0 + $0x78] sm:$0xff] }
   0xd   :  { %v7935_v33 = vld [vmem:[%s14574_s1 + $0xb0] sm:$0xf]  ;;  %v8140_v34 = vld [vmem:[%s14574_s1 + $0xb4] sm:$0xf0]  ;;  %v8139_v35 = vld [vmem:[%s14574_s1 + $0xb4] sm:$0xf] }
  0x10   :  { %222 = vmatpush.bf16.msra.mxu0 %v7888_v11  ;;  %424 = vmatpush.bf16.msra.mxu1 %v7904_v36  ;;  %v7936_v36 = vor.u32 %v8140_v34, %v7935_v33 }
  0x12   :  { %633 = vmatpush.bf16.msra.mxu2 %v7936_v36 }
  0x14   :  { %223 = vmatpush.bf16.msra.mxu0 %v7884_v14 }
  0x18   :  { %224 = vmatpush.bf16.msra.mxu0 %v7880_v17 }
  0x1c   :  { %225 = vmatpush.bf16.msra.mxu0 %v7876_v20 }
  0x20   :  { %226 = vmatpush.bf16.msra.mxu0 %v7872_v23  ;;  %v8125_v23 = vld [vmem:[%s14575_s0 + $0x70] sm:$0xff] }
  0x23   :  { %227 = vmatmul.bf16.vlgmr.msra.gmra.mxu0 %v8111_v24 }
  0x33   :  { %232 = vmatmul.bf16.gmra.mxu0 %v8112_v25 }
  0x43   :  { %237 = vmatmul.bf16.gmra.mxu0 %v8113_v26 }
  0x53   :  { %242 = vmatmul.bf16.gmra.mxu0 %v8114_v27 }
  0x63   :  { %247 = vmatmul.bf16.gmra.mxu0 %v8115_v28 }
  0x73   :  { %252 = vmatmul.bf16.gmra.mxu0 %v8116_v29 }
  0x83   :  { %257 = vmatmul.bf16.gmra.mxu0 %v8117_v30 }
  0x93   :  { %262 = vmatmul.bf16.gmra.mxu0 %v8118_v37  ;;  %v7937_v37 = vld [vmem:[%s14574_s1 + $0xb8] sm:$0xf0] }
  0xa0   :  { %v228_v39 = vpop.f32.mrf.mxu0 }
  0xa1   :  { %v229_v41 = vadd.f32 %v228_v39, %v8550_v40  ;;  %v7927_v39 = vld [vmem:[%s14574_s1 + $0xa0] sm:$0xf] }
  0xa3   :  { %267 = vmatmul.bf16.gmra.mxu0 %v8119_v38  ;;  %v308_v44 = vmax.f32 %v229_v41, 0.0  ;;  %v7940_v38 = vor.u32 %v8139_v35, %v7937_v37  ;;  %v8138_v41 = vld [vmem:[%s14574_s1 + $0xa4] sm:$0xf0] }
  0xa5   :  { %722 = vmatpush.bf16.msra.mxu3 %v7940_v38 }
  0xa8   :  { %v230_v42 = vpop.f32.mrf.mxu0 }
  0xa9   :  { %v231_v43 = vadd.f32 %v230_v42, %v8550_v40  ;;  %v8137_v42 = vld [vmem:[%s14574_s1 + $0xa4] sm:$0xf] }
  0xab   :  { %v309_v45 = vmax.f32 %v231_v43, 0.0  ;;  %v7928_v43 = vor.u32 %v8138_v41, %v7927_v39 }
  0xad   :  { %v340_v46 = vpack.c.bf16 %v309_v45, %v308_v44  ;;  %v7929_v44 = vld [vmem:[%s14574_s1 + $0xa8] sm:$0xf0]  ;;  %634 = vmatpush.bf16.msra.mxu2 %v7928_v43 }
  0xaf   :  { %7909 = vmatmul.msk.bf16.vlgmr.msra.gmra.mxu1 %vm368_vm0, %v340_v46  ;;  %v7932_v46 = vor.u32 %v8137_v42, %v7929_v44 }
  0xb0   :  { %v233_v48 = vpop.f32.mrf.mxu0 }
  0xb1   :  { %v234_v49 = vadd.f32 %v233_v48, %v8550_v40  ;;  %723 = vmatpush.bf16.msra.mxu3 %v7932_v46 }
  0xb3   :  { %272 = vmatmul.bf16.gmra.mxu0 %v8120_v47  ;;  %v310_v52 = vmax.f32 %v234_v49, 0.0 }
  0xb8   :  { %v235_v50 = vpop.f32.mrf.mxu0 }
  0xb9   :  { %v236_v51 = vadd.f32 %v235_v50, %v8550_v40 }
  0xbb   :  { %v311_v53 = vmax.f32 %v236_v51, 0.0 }
  0xbd   :  { %v341_v54 = vpack.c.bf16 %v311_v53, %v310_v52 }
  0xbf   :  { %7910 = vmatmul.msk.bf16.gmra.mxu1 %vm368_vm0, %v341_v54  ;;  %v805_v54 = vlaneseq }
  0xc0   :  { %v238_v56 = vpop.f32.mrf.mxu0 }
  0xc1   :  { %v239_v57 = vadd.f32 %v238_v56, %v8550_v40 }
  0xc3   :  { %277 = vmatmul.bf16.gmra.mxu0 %v8121_v55  ;;  %v312_v60 = vmax.f32 %v239_v57, 0.0  ;;  %v8623_v57 = vshrl.u32 %v805_v54, 7 }
  0xc5   :  { %15144 = vst [vmem:[#allocation2_spill] sm:$0xff] %v8623_v57  ;;  %v1186_v42 = vadd.s32 104, %v8623_v57 }
  0xc8   :  { %v240_v58 = vpop.f32.mrf.mxu0 }
  0xc9   :  { %v241_v59 = vadd.f32 %v240_v58, %v8550_v40  ;;  %v8625_v58 = vand.u32 127, %v805_v54 }
  0xcb   :  { %v313_v61 = vmax.f32 %v241_v59, 0.0  ;;  %15145 = vst [vmem:[#allocation3_spill] sm:$0xff] %v8625_v58  ;;  %vm1205_vm1 = vcmp.eq.s32.totalorder %v8625_v58, 0 }
  0xcd   :  { %v342_v62 = vpack.c.bf16 %v313_v61, %v312_v60 }
  0xcf   :  { %7911 = vmatmul.msk.bf16.gmra.mxu1 %vm368_vm0, %v342_v62  ;;  %v1188_v62 = vadd.s32 120, %v8623_v57 }
  0xd0   :  { %v243_v0 = vpop.f32.mrf.mxu0 }
  0xd1   :  { %v244_v1 = vadd.f32 %v243_v0, %v8550_v40 }
  0xd3   :  { %282 = vmatmul.bf16.gmra.mxu0 %v8122_v63  ;;  %v314_v4 = vmax.f32 %v244_v1, 0.0  ;;  %v1206_v63 = vmul.u32 9, %v8625_v58 }
  0xd5   :  { %v7973_v1 = vadd.s32 4294967295, %v1206_v63 }
  0xd8   :  { %v245_v2 = vpop.f32.mrf.mxu0 }
  0xd9   :  { %v246_v3 = vadd.f32 %v245_v2, %v8550_v40  ;;  %v8630_v2 = vadd.s32 8, %v1206_v63 }
  0xdb   :  { %v315_v5 = vmax.f32 %v246_v3, 0.0  ;;  %v8636_v3 = vld [vmem:[%s14576_s2 + $0x10] ss:$0 sm:$0xff]  ;;  %vm1257_vm2 = vcmp.lt.s32.totalorder %v1188_v62, %v8630_v2  ;;  %vm1255_vm9 = vcmp.lt.s32.totalorder %v1186_v42, %v8630_v2 }
  0xdd   :  { %v343_v6 = vpack.c.bf16 %v315_v5, %v314_v4  ;;  %v8638_v5 = vsel %vm1205_vm1, 0, %v7973_v1  ;;  %v1185_v1 = vadd.s32 96, %v8623_v57 }
  0xde   :  { %vm1225_vm3 = vcmp.ge.s32.totalorder %v1188_v62, %v8638_v5  ;;  %vm1223_vm8 = vcmp.ge.s32.totalorder %v1186_v42, %v8638_v5 }
  0xdf   :  { %7912 = vmatmul.msk.bf16.gmra.mxu1 %vm368_vm0, %v343_v6  ;;  %vm8642_vm4 = vmand %vm1225_vm3, %vm1257_vm2  ;;  %vm1222_vm11 = vcmp.ge.s32.totalorder %v1185_v1, %v8638_v5  ;;  %vm1254_vm12 = vcmp.lt.s32.totalorder %v1185_v1, %v8630_v2 }
  0xe0   :  { %v248_v8 = vpop.f32.mrf.mxu0  ;;  %vm8699_vm10 = vmand %vm1223_vm8, %vm1255_vm9 }
  0xe1   :  { %v249_v9 = vadd.f32 %v248_v8, %v8550_v40  ;;  %v14593_v8 = vmov 0.0   ;;  %vm8729_vm13 = vmand %vm1222_vm11, %vm1254_vm12 }
  0xe3   :  { %287 = vmatmul.bf16.gmra.mxu0 %v8123_v7  ;;  %v316_v12 = vmax.f32 %v249_v9, 0.0  ;;  %v7989_v9 = vsel %vm8642_vm4, 1.0, %v14593_v8 }
  0xe8   :  { %v250_v10 = vpop.f32.mrf.mxu0 }
  0xe9   :  { %v251_v11 = vadd.f32 %v250_v10, %v8550_v40  ;;  %v14591_v10 = vmov 1.0  }
  0xea   :  { %8009 = vmatpush.msk.msrb.mxu1 %vm8642_vm4, %v14591_v10  ;;  %8025 = vmatpush.msk.msrb.mxu0 %vm8642_vm4, %v14591_v10 }
  0xeb   :  { %v317_v13 = vmax.f32 %v251_v11, 0.0 }
  0xed   :  { %v344_v14 = vpack.c.bf16 %v317_v13, %v316_v12  ;;  %v8656_v12 = vsub.f32 %v7989_v9, %v7989_v9 }
  0xef   :  { %7913 = vmatmul.msk.bf16.gmra.mxu1 %vm368_vm0, %v344_v14  ;;  %v14590_v14 = vand.u32 4294901760, %v8656_v12  ;;  %1901 = vmatpush.msrb.mxu3 %v8656_v12 }
  0xf0   :  { %v253_v16 = vpop.f32.mrf.mxu0 }
  0xf1   :  { %v254_v17 = vadd.f32 %v253_v16, %v8550_v40 }
  0xf3   :  { %292 = vmatmul.bf16.gmra.mxu0 %v8124_v15  ;;  %v318_v20 = vmax.f32 %v254_v17, 0.0 }
  0xf8   :  { %v255_v18 = vpop.f32.mrf.mxu0 }
  0xf9   :  { %v256_v19 = vadd.f32 %v255_v18, %v8550_v40  ;;  %v1187_v18 = vadd.s32 112, %v8623_v57 }
  0xfb   :  { %v319_v21 = vmax.f32 %v256_v19, 0.0  ;;  %vm1224_vm5 = vcmp.ge.s32.totalorder %v1187_v18, %v8638_v5  ;;  %vm1256_vm6 = vcmp.lt.s32.totalorder %v1187_v18, %v8630_v2 }
  0xfc   :  { %vm8669_vm7 = vmand %vm1224_vm5, %vm1256_vm6 }
  0xfd   :  { %v345_v22 = vpack.c.bf16 %v319_v21, %v318_v20  ;;  %v1677_v20 = vsub.f32 %v8656_v12, %v14590_v14  ;;  %8010 = vmatpush.msk.msrb.mxu1 %vm8669_vm7, %v14591_v10  ;;  %8026 = vmatpush.msk.msrb.mxu0 %vm8669_vm7, %v14591_v10 }
  0xff   :  { %7914 = vmatmul.msk.bf16.gmra.mxu1 %vm368_vm0, %v345_v22  ;;  %8027 = vmatpush.msk.msrb.mxu0 %vm8699_vm10, %v14591_v10 }
 0x100   :  { %v258_v24 = vpop.f32.mrf.mxu0  ;;  %8011 = vmatpush.msk.msrb.mxu1 %vm8699_vm10, %v14591_v10 }
 0x101   :  { %v259_v25 = vadd.f32 %v258_v24, %v8550_v40  ;;  %8028 = vmatpush.msk.msrb.mxu0 %vm8729_vm13, %v14591_v10 }
 0x102   :  { %8012 = vmatpush.msk.msrb.mxu1 %vm8729_vm13, %v14591_v10 }
 0x103   :  { %297 = vmatmul.bf16.gmra.mxu0 %v8125_v23  ;;  %v320_v28 = vmax.f32 %v259_v25, 0.0  ;;  %v1678_v23 = vand.u32 4294901760, %v1677_v20 }
 0x105   :  { %1679 = vmatpush.msrb.mxu2 %v1678_v23 }
 0x108   :  { %v260_v26 = vpop.f32.mrf.mxu0 }
 0x109   :  { %v261_v27 = vadd.f32 %v260_v26, %v8550_v40 }
 0x10b   :  { %v321_v29 = vmax.f32 %v261_v27, 0.0  ;;  %v7988_v27 = vsel %vm8669_vm7, 1.0, %v14593_v8 }
 0x10d   :  { %v346_v30 = vpack.c.bf16 %v321_v29, %v320_v28  ;;  %v8678_v29 = vsub.f32 %v7988_v27, %v7988_v27 }
 0x10f   :  { %7915 = vmatmul.msk.bf16.gmra.mxu1 %vm368_vm0, %v346_v30  ;;  %1904 = vmatpush.msrb.mxu3 %v8678_v29 }
 0x110   :  { %v263_v32 = vpop.f32.mrf.mxu0 }
 0x111   :  { %v264_v45 = vadd.f32 %v263_v32, %v8550_v40 }
 0x113   :  { %302 = vmatmul.bf16.gmra.mxu0 %v8126_v31  ;;  %v322_v49 = vmax.f32 %v264_v45, 0.0  ;;  %v14589_v31 = vand.u32 4294901760, %v8678_v29 }
 0x115   :  { %v1683_v33 = vsub.f32 %v8678_v29, %v14589_v31 }
 0x117   :  { %v1684_v34 = vand.u32 4294901760, %v1683_v33  ;;  %v1184_v33 = vadd.s32 88, %v8623_v57 }
 0x118   :  { %v265_v47 = vpop.f32.mrf.mxu0 }
 0x119   :  { %v266_v48 = vadd.f32 %v265_v47, %v8550_v40  ;;  %1685 = vmatpush.msrb.mxu2 %v1684_v34  ;;  %vm1221_vm14 = vcmp.ge.s32.totalorder %v1184_v33, %v8638_v5  ;;  %vm1253_vm15 = vcmp.lt.s32.totalorder %v1184_v33, %v8630_v2 }
 0x11a   :  { %vm8759_vm1 = vmand %vm1221_vm14, %vm1253_vm15 }
 0x11b   :  { %v323_v50 = vmax.f32 %v266_v48, 0.0  ;;  %8013 = vmatpush.msk.msrb.mxu1 %vm8759_vm1, %v14591_v10  ;;  %8029 = vmatpush.msk.msrb.mxu0 %vm8759_vm1, %v14591_v10 }
 0x11d   :  { %v347_v51 = vpack.c.bf16 %v323_v50, %v322_v49  ;;  %v7987_v49 = vsel %vm8699_vm10, 1.0, %v14593_v8 }
 0x11f   :  { %7916 = vmatmul.msk.bf16.gmra.mxu1 %vm368_vm0, %v347_v51  ;;  %v8708_v51 = vsub.f32 %v7987_v49, %v7987_v49 }
 0x120   :  { %v268_v52 = vpop.f32.mrf.mxu0 }
 0x121   :  { %v269_v53 = vadd.f32 %v268_v52, %v8550_v40  ;;  %1907 = vmatpush.msrb.mxu3 %v8708_v51 }
 0x123   :  { %v324_v59 = vmax.f32 %v269_v53, 0.0  ;;  %v14588_v53 = vand.u32 4294901760, %v8708_v51 }
 0x128   :  { %v270_v55 = vpop.f32.mrf.mxu0 }
 0x129   :  { %v271_v56 = vadd.f32 %v270_v55, %v8550_v40  ;;  %v1689_v55 = vsub.f32 %v8708_v51, %v14588_v53 }
 0x12b   :  { %v325_v60 = vmax.f32 %v271_v56, 0.0  ;;  %v1690_v56 = vand.u32 4294901760, %v1689_v55 }
 0x12c   :  { %v426_v61 = vpop.f32.mrf.mxu1 }
 0x12d   :  { %v348_v0 = vpack.c.bf16 %v325_v60, %v324_v59  ;;  %v427_v7 = vadd.f32 %v426_v61, %v8636_v3  ;;  %1691 = vmatpush.msrb.mxu2 %v1690_v56 }
 0x12f   :  { %7917 = vmatmul.msk.bf16.gmra.mxu1 %vm368_vm0, %v348_v0  ;;  %v506_v15 = vmax.f32 %v427_v7, 0.0 }
 0x130   :  { %v273_v4 = vpop.f32.mrf.mxu0 }
 0x131   :  { %v274_v16 = vadd.f32 %v273_v4, %v8550_v40 }
 0x133   :  { %v326_v25 = vmax.f32 %v274_v16, 0.0  ;;  %v7986_v16 = vsel %vm8729_vm13, 1.0, %v14593_v8 }
 0x134   :  { %v428_v11 = vpop.f32.mrf.mxu1  ;;  %v8738_v18 = vsub.f32 %v7986_v16, %v7986_v16 }
 0x135   :  { %v429_v13 = vadd.f32 %v428_v11, %v8636_v3 }
 0x136   :  { %v14585_v20 = vand.u32 4294901760, %v8738_v18  ;;  %1910 = vmatpush.msrb.mxu3 %v8738_v18 }
 0x137   :  { %v507_v17 = vmax.f32 %v429_v13, 0.0 }
 0x138   :  { %v275_v19 = vpop.f32.mrf.mxu0 }
 0x139   :  { %v276_v21 = vadd.f32 %v275_v19, %v8550_v40  ;;  %v538_v22 = vpack.c.bf16 %v507_v17, %v506_v15 }
 0x13b   :  { %v327_v26 = vmax.f32 %v276_v21, 0.0  ;;  %7941 = vmatmul.msk.bf16.vlgmr.msra.gmra.mxu2 %vm368_vm0, %v538_v22  ;;  %7957 = vmatmul.msk.bf16.vlgmr.msra.gmra.mxu3 %vm368_vm0, %v538_v22  ;;  %v1695_v22 = vsub.f32 %v8738_v18, %v14585_v20 }
 0x13c   :  { %v431_v28 = vpop.f32.mrf.mxu1 }
 0x13d   :  { %v349_v30 = vpack.c.bf16 %v327_v26, %v326_v25  ;;  %v432_v35 = vadd.f32 %v431_v28, %v8636_v3  ;;  %v1696_v23 = vand.u32 4294901760, %v1695_v22 }
 0x13f   :  { %7918 = vmatmul.msk.bf16.gmra.mxu1 %vm368_vm0, %v349_v30  ;;  %v508_v38 = vmax.f32 %v432_v35, 0.0  ;;  %1697 = vmatpush.msrb.mxu2 %v1696_v23 }
 0x140   :  { %v278_v32 = vpop.f32.mrf.mxu0 }
 0x141   :  { %v279_v39 = vadd.f32 %v278_v32, %v8550_v40 }
 0x143   :  { %v328_v47 = vmax.f32 %v279_v39, 0.0 }
 0x144   :  { %v433_v36 = vpop.f32.mrf.mxu1 }
 0x145   :  { %v434_v37 = vadd.f32 %v433_v36, %v8636_v3 }
 0x147   :  { %v509_v41 = vmax.f32 %v434_v37, 0.0 }
 0x148   :  { %v280_v43 = vpop.f32.mrf.mxu0 }
 0x149   :  { %v281_v44 = vadd.f32 %v280_v43, %v8550_v40  ;;  %v539_v45 = vpack.c.bf16 %v509_v41, %v508_v38  ;;  %v7985_v41 = vsel %vm8759_vm1, 1.0, %v14593_v8 }
 0x14a   :  { %v8768_v43 = vsub.f32 %v7985_v41, %v7985_v41 }
 0x14b   :  { %v329_v48 = vmax.f32 %v281_v44, 0.0  ;;  %7942 = vmatmul.msk.bf16.gmra.mxu2 %vm368_vm0, %v539_v45  ;;  %7958 = vmatmul.msk.bf16.gmra.mxu3 %vm368_vm0, %v539_v45 }
 0x14c   :  { %v436_v50 = vpop.f32.mrf.mxu1  ;;  %v14584_v45 = vand.u32 4294901760, %v8768_v43  ;;  %1913 = vmatpush.msrb.mxu3 %v8768_v43 }
 0x14d   :  { %v350_v52 = vpack.c.bf16 %v329_v48, %v328_v47  ;;  %v437_v59 = vadd.f32 %v436_v50, %v8636_v3 }
 0x14e   :  { %v1701_v48 = vsub.f32 %v8768_v43, %v14584_v45 }
 0x14f   :  { %7919 = vmatmul.msk.bf16.gmra.mxu1 %vm368_vm0, %v350_v52  ;;  %v510_v62 = vmax.f32 %v437_v59, 0.0 }
 0x150   :  { %v283_v54 = vpop.f32.mrf.mxu0  ;;  %v1702_v49 = vand.u32 4294901760, %v1701_v48 }
 0x151   :  { %v284_v63 = vadd.f32 %v283_v54, %v8550_v40 }
 0x152   :  { %1703 = vmatpush.msrb.mxu2 %v1702_v49 }
 0x153   :  { %v330_v13 = vmax.f32 %v284_v63, 0.0 }
 0x154   :  { %v438_v60 = vpop.f32.mrf.mxu1 }
 0x155   :  { %v439_v61 = vadd.f32 %v438_v60, %v8636_v3  ;;  %v1183_v60 = vadd.s32 80, %v8623_v57 }
 0x157   :  { %v511_v0 = vmax.f32 %v439_v61, 0.0  ;;  %vm1220_vm2 = vcmp.ge.s32.totalorder %v1183_v60, %v8638_v5  ;;  %vm1252_vm3 = vcmp.lt.s32.totalorder %v1183_v60, %v8630_v2 }
 0x158   :  { %v285_v4 = vpop.f32.mrf.mxu0  ;;  %vm8789_vm5 = vmand %vm1220_vm2, %vm1252_vm3 }
 0x159   :  { %v286_v7 = vadd.f32 %v285_v4, %v8550_v40  ;;  %v540_v9 = vpack.c.bf16 %v511_v0, %v510_v62  ;;  %8014 = vmatpush.msk.msrb.mxu1 %vm8789_vm5, %v14591_v10  ;;  %8030 = vmatpush.msk.msrb.mxu0 %vm8789_vm5, %v14591_v10  ;;  %v1204_v0 = vadd.s32 248, %v8623_v57 }
 0x15b   :  { %v331_v15 = vmax.f32 %v286_v7, 0.0  ;;  %7943 = vmatmul.msk.bf16.gmra.mxu2 %vm368_vm0, %v540_v9  ;;  %7959 = vmatmul.msk.bf16.gmra.mxu3 %vm368_vm0, %v540_v9  ;;  %v7984_v7 = vsel %vm8789_vm5, 1.0, %v14593_v8 }
 0x15c   :  { %v441_v17 = vpop.f32.mrf.mxu1 }
 0x15d   :  { %v351_v19 = vpack.c.bf16 %v331_v15, %v330_v13  ;;  %v442_v25 = vadd.f32 %v441_v17, %v8636_v3  ;;  %v8798_v13 = vsub.f32 %v7984_v7, %v7984_v7 }
 0x15f   :  { %7920 = vmatmul.msk.bf16.gmra.mxu1 %vm368_vm0, %v351_v19  ;;  %v512_v28 = vmax.f32 %v442_v25, 0.0  ;;  %v14583_v16 = vand.u32 4294901760, %v8798_v13  ;;  %1916 = vmatpush.msrb.mxu3 %v8798_v13 }
 0x160   :  { %v288_v21 = vpop.f32.mrf.mxu0 }
 0x161   :  { %v289_v30 = vadd.f32 %v288_v21, %v8550_v40  ;;  %v1707_v19 = vsub.f32 %v8798_v13, %v14583_v16 }
 0x163   :  { %v332_v38 = vmax.f32 %v289_v30, 0.0  ;;  %v1708_v21 = vand.u32 4294901760, %v1707_v19  ;;  %v1182_v30 = vadd.s32 72, %v8623_v57 }
 0x164   :  { %v443_v26 = vpop.f32.mrf.mxu1 }
 0x165   :  { %v444_v27 = vadd.f32 %v443_v26, %v8636_v3  ;;  %1709 = vmatpush.msrb.mxu2 %v1708_v21  ;;  %vm1219_vm6 = vcmp.ge.s32.totalorder %v1182_v30, %v8638_v5  ;;  %vm1251_vm8 = vcmp.lt.s32.totalorder %v1182_v30, %v8630_v2 }
 0x166   :  { %vm8819_vm9 = vmand %vm1219_vm6, %vm1251_vm8 }
 0x167   :  { %v513_v32 = vmax.f32 %v444_v27, 0.0  ;;  %8015 = vmatpush.msk.msrb.mxu1 %vm8819_vm9, %v14591_v10  ;;  %8031 = vmatpush.msk.msrb.mxu0 %vm8819_vm9, %v14591_v10 }
 0x168   :  { %v290_v34 = vpop.f32.mrf.mxu0 }
 0x169   :  { %v291_v35 = vadd.f32 %v290_v34, %v8550_v40  ;;  %v541_v36 = vpack.c.bf16 %v513_v32, %v512_v28 }
 0x16b   :  { %v333_v39 = vmax.f32 %v291_v35, 0.0  ;;  %7944 = vmatmul.msk.bf16.gmra.mxu2 %vm368_vm0, %v541_v36  ;;  %7960 = vmatmul.msk.bf16.gmra.mxu3 %vm368_vm0, %v541_v36 }
 0x16c   :  { %v446_v42 = vpop.f32.mrf.mxu1 }
 0x16d   :  { %v352_v44 = vpack.c.bf16 %v333_v39, %v332_v38  ;;  %v447_v50 = vadd.f32 %v446_v42, %v8636_v3  ;;  %v7983_v39 = vsel %vm8819_vm9, 1.0, %v14593_v8 }
 0x16e   :  { %v8828_v42 = vsub.f32 %v7983_v39, %v7983_v39 }
 0x16f   :  { %7921 = vmatmul.msk.bf16.gmra.mxu1 %vm368_vm0, %v352_v44  ;;  %v514_v55 = vmax.f32 %v447_v50, 0.0 }
 0x170   :  { %v293_v47 = vpop.f32.mrf.mxu0  ;;  %1919 = vmatpush.msrb.mxu3 %v8828_v42  ;;  %v15214_v6 = vand.u32 4294901760, %v8828_v42 }
 0x171   :  { %v294_v56 = vadd.f32 %v293_v47, %v8550_v40  ;;  %v14582_v47 = vand.u32 4294901760, %v8828_v42 }
 0x173   :  { %v334_v1 = vmax.f32 %v294_v56, 0.0  ;;  %v1713_v49 = vsub.f32 %v8828_v42, %v14582_v47 }
 0x174   :  { %v448_v52 = vpop.f32.mrf.mxu1 }
 0x175   :  { %v449_v54 = vadd.f32 %v448_v52, %v8636_v3  ;;  %v1714_v50 = vand.u32 4294901760, %v1713_v49 }
 0x177   :  { %v515_v59 = vmax.f32 %v449_v54, 0.0  ;;  %1715 = vmatpush.msrb.mxu2 %v1714_v50 }
 0x178   :  { %v295_v61 = vpop.f32.mrf.mxu0 }
 0x179   :  { %v296_v62 = vadd.f32 %v295_v61, %v8550_v40  ;;  %v542_v63 = vpack.c.bf16 %v515_v59, %v514_v55  ;;  %v1181_v61 = vadd.s32 64, %v8623_v57 }
 0x17b   :  { %v335_v4 = vmax.f32 %v296_v62, 0.0  ;;  %7945 = vmatmul.msk.bf16.gmra.mxu2 %vm368_vm0, %v542_v63  ;;  %7961 = vmatmul.msk.bf16.gmra.mxu3 %vm368_vm0, %v542_v63  ;;  %vm1218_vm11 = vcmp.ge.s32.totalorder %v1181_v61, %v8638_v5  ;;  %vm1250_vm12 = vcmp.lt.s32.totalorder %v1181_v61, %v8630_v2 }
 0x17c   :  { %v451_v9 = vpop.f32.mrf.mxu1  ;;  %vm8849_vm14 = vmand %vm1218_vm11, %vm1250_vm12  ;;  %vm14824_vm12 = vcmp.lt.s32.totalorder %v8625_v58, 35 }
 0x17d   :  { %v353_v15 = vpack.c.bf16 %v335_v4, %v334_v1  ;;  %v452_v22 = vadd.f32 %v451_v9, %v8636_v3  ;;  %8016 = vmatpush.msk.msrb.mxu1 %vm8849_vm14, %v14591_v10  ;;  %8032 = vmatpush.msk.msrb.mxu0 %vm8849_vm14, %v14591_v10  ;;  %v15225_v4 = vmov 0 }
 0x17f   :  { %7922 = vmatmul.msk.bf16.gmra.mxu1 %vm368_vm0, %v353_v15  ;;  %v516_v26 = vmax.f32 %v452_v22, 0.0  ;;  %v7982_v15 = vsel %vm8849_vm14, 1.0, %v14593_v8 }
 0x180   :  { %v298_v17 = vpop.f32.mrf.mxu0 }
 0x181   :  { %v299_v27 = vadd.f32 %v298_v17, %v8550_v40  ;;  %v8858_v17 = vsub.f32 %v7982_v15, %v7982_v15 }
 0x183   :  { %v336_v36 = vmax.f32 %v299_v27, 0.0  ;;  %v14581_v21 = vand.u32 4294901760, %v8858_v17  ;;  %1922 = vmatpush.msrb.mxu3 %v8858_v17  ;;  %v15215_v24 = vand.u32 4294901760, %v8858_v17 }
 0x184   :  { %v453_v23 = vpop.f32.mrf.mxu1 }
 0x185   :  { %v454_v25 = vadd.f32 %v453_v23, %v8636_v3  ;;  %v1719_v22 = vsub.f32 %v8858_v17, %v14581_v21 }
 0x187   :  { %v517_v28 = vmax.f32 %v454_v25, 0.0  ;;  %v1720_v23 = vand.u32 4294901760, %v1719_v22 }
 0x188   :  { %v300_v32 = vpop.f32.mrf.mxu0 }
 0x189   :  { %v301_v33 = vadd.f32 %v300_v32, %v8550_v40  ;;  %v543_v34 = vpack.c.bf16 %v517_v28, %v516_v26  ;;  %1721 = vmatpush.msrb.mxu2 %v1720_v23  ;;  %v1180_v32 = vadd.s32 56, %v8623_v57 }
 0x18b   :  { %v337_v38 = vmax.f32 %v301_v33, 0.0  ;;  %7946 = vmatmul.msk.bf16.gmra.mxu2 %vm368_vm0, %v543_v34  ;;  %7962 = vmatmul.msk.bf16.gmra.mxu3 %vm368_vm0, %v543_v34  ;;  %vm1217_vm15 = vcmp.ge.s32.totalorder %v1180_v32, %v8638_v5  ;;  %vm1249_vm2 = vcmp.lt.s32.totalorder %v1180_v32, %v8630_v2 }
 0x18c   :  { %v456_v41 = vpop.f32.mrf.mxu1  ;;  %vm8877_vm3 = vmand %vm1217_vm15, %vm1249_vm2 }
 0x18d   :  { %v354_v44 = vpack.c.bf16 %v337_v38, %v336_v36  ;;  %v457_v52 = vadd.f32 %v456_v41, %v8636_v3  ;;  %v7981_v36 = vsel %vm8877_vm3, 1.0, %v14593_v8  ;;  %8017 = vmatpush.msk.msrb.mxu1 %vm8877_vm3, %v14591_v10  ;;  %8033 = vmatpush.msk.msrb.mxu0 %vm8877_vm3, %v14591_v10 }
 0x18e   :  { %v8886_v39 = vsub.f32 %v7981_v36, %v7981_v36 }
 0x18f   :  { %7923 = vmatmul.msk.bf16.gmra.mxu1 %vm368_vm0, %v354_v44  ;;  %v518_v56 = vmax.f32 %v457_v52, 0.0 }
 0x190   :  { %v303_v48 = vpop.f32.mrf.mxu0  ;;  %v14580_v41 = vand.u32 4294901760, %v8886_v39  ;;  %1925 = vmatpush.msrb.mxu3 %v8886_v39 }
 0x191   :  { %v304_v59 = vadd.f32 %v303_v48, %v8550_v40 }
 0x192   :  { %v1725_v44 = vsub.f32 %v8886_v39, %v14580_v41 }
 0x193   :  { %v338_v7 = vmax.f32 %v304_v59, 0.0 }
 0x194   :  { %v458_v54 = vpop.f32.mrf.mxu1  ;;  %v1726_v48 = vand.u32 4294901760, %v1725_v44 }
 0x195   :  { %v459_v55 = vadd.f32 %v458_v54, %v8636_v3 }
 0x196   :  { %1727 = vmatpush.msrb.mxu2 %v1726_v48 }
 0x197   :  { %v519_v60 = vmax.f32 %v459_v55, 0.0 }
 0x198   :  { %v305_v62 = vpop.f32.mrf.mxu0 }
 0x199   :  { %v306_v63 = vadd.f32 %v305_v62, %v8550_v40  ;;  %v544_v1 = vpack.c.bf16 %v519_v60, %v518_v56  ;;  %v7804_v56 = vld [vmem:[%s14576_s2 + $0x20] ss:$8 sm:$0x3]  ;;  %v1179_v60 = vadd.s32 48, %v8623_v57 }
 0x19a   :  { %v8905_v61 = vperm.slane %v7804_v56, 0 }
 0x19b   :  { %v339_v9 = vmax.f32 %v306_v63, 0.0  ;;  %7947 = vmatmul.msk.bf16.gmra.mxu2 %vm368_vm0, %v544_v1  ;;  %7963 = vmatmul.msk.bf16.gmra.mxu3 %vm368_vm0, %v544_v1  ;;  %vm1216_vm6 = vcmp.ge.s32.totalorder %v1179_v60, %v8638_v5  ;;  %vm1248_vm8 = vcmp.lt.s32.totalorder %v1179_v60, %v8630_v2 }
 0x19c   :  { %v461_v40 = vpop.f32.mrf.mxu1  ;;  %vm8911_vm11 = vmand %vm1216_vm6, %vm1248_vm8 }
 0x19d   :  { %v355_v19 = vpack.c.bf16 %v339_v9, %v338_v7  ;;  %v462_v25 = vadd.f32 %v461_v40, %v8636_v3  ;;  %v7980_v1 = vsel %vm8911_vm11, 1.0, %v14593_v8  ;;  %8018 = vmatpush.msk.msrb.mxu1 %vm8911_vm11, %v14591_v10  ;;  %8034 = vmatpush.msk.msrb.mxu0 %vm8911_vm11, %v14591_v10 }
 0x19e   :  { %v8927_v15 = vsub.f32 %v7980_v1, %v7980_v1 }
 0x19f   :  { %7924 = vmatmul.msk.bf16.gmra.mxu1 %vm368_vm0, %v355_v19  ;;  %v520_v28 = vmax.f32 %v462_v25, 0.0 }
 0x1a0   :  { %v14579_v19 = vand.u32 4294901760, %v8927_v15  ;;  %1928 = vmatpush.msrb.mxu3 %v8927_v15  ;;  %v15219_v17 = vand.u32 4294901760, %v8927_v15 }
 0x1a2   :  { %v1731_v25 = vsub.f32 %v8927_v15, %v14579_v19 }
 0x1a4   :  { %v463_v26 = vpop.f32.mrf.mxu1 }
 0x1a5   :  { %v464_v27 = vadd.f32 %v463_v26, %v8636_v3 }
 0x1a7   :  { %v521_v30 = vmax.f32 %v464_v27, 0.0 }
 0x1a9   :  { %v545_v33 = vpack.c.bf16 %v521_v30, %v520_v28  ;;  %v1732_v28 = vand.u32 4294901760, %v1731_v25 }
 0x1ab   :  { %7948 = vmatmul.msk.bf16.gmra.mxu2 %vm368_vm0, %v545_v33  ;;  %7964 = vmatmul.msk.bf16.gmra.mxu3 %vm368_vm0, %v545_v33 }
 0x1ac   :  { %v466_v38 = vpop.f32.mrf.mxu1  ;;  %1733 = vmatpush.msrb.mxu2 %v1732_v28 }
 0x1ad   :  { %v467_v49 = vadd.f32 %v466_v38, %v8636_v3 }
 0x1af   :  { %v522_v54 = vmax.f32 %v467_v49, 0.0 }
 0x1b4   :  { %v468_v50 = vpop.f32.mrf.mxu1 }
 0x1b5   :  { %v469_v52 = vadd.f32 %v468_v50, %v8636_v3  ;;  %v1178_v50 = vadd.s32 40, %v8623_v57 }
 0x1b7   :  { %v523_v55 = vmax.f32 %v469_v52, 0.0  ;;  %vm1215_vm15 = vcmp.ge.s32.totalorder %v1178_v50, %v8638_v5  ;;  %vm1247_vm2 = vcmp.lt.s32.totalorder %v1178_v50, %v8630_v2 }
 0x1b8   :  { %vm8961_vm6 = vmand %vm1215_vm15, %vm1247_vm2 }
 0x1b9   :  { %v546_v59 = vpack.c.bf16 %v523_v55, %v522_v54  ;;  %v7979_v56 = vsel %vm8961_vm6, 1.0, %v14593_v8  ;;  %8019 = vmatpush.msk.msrb.mxu1 %vm8961_vm6, %v14591_v10  ;;  %8035 = vmatpush.msk.msrb.mxu0 %vm8961_vm6, %v14591_v10 }
 0x1bb   :  { %7949 = vmatmul.msk.bf16.gmra.mxu2 %vm368_vm0, %v546_v59  ;;  %7965 = vmatmul.msk.bf16.gmra.mxu3 %vm368_vm0, %v546_v59 }
 0x1bc   :  { %v471_v62 = vpop.f32.mrf.mxu1 }
 0x1bd   :  { %v472_v26 = vadd.f32 %v471_v62, %v8636_v3  ;;  %v8976_v62 = vsub.f32 %v7979_v56, %v7979_v56 }
 0x1be   :  { %v636_v7 = vpop.f32.mrf.mxu2  ;;  %v8925_v9 = vpop.f32.mrf.mxu3 }
 0x1bf   :  { %15166 = vst [vmem:[#allocation4_spill] sm:$0xff] %v8925_v9  ;;  %v8930_v40 = vadd.f32 %v636_v7, %v8905_v61  ;;  %v524_v36 = vmax.f32 %v472_v26, 0.0  ;;  %v14578_v7 = vand.u32 4294901760, %v8976_v62  ;;  %1931 = vmatpush.msrb.mxu3 %v8976_v62 }
 0x1c1   :  { %15167 = vst [vmem:[#allocation5_spill] sm:$0xff] %v8930_v40  ;;  %v8937_v22 = vsel %vm14824_vm12, %v8930_v40, -1e+30  ;;  %v1737_v26 = vsub.f32 %v8976_v62, %v14578_v7 }
 0x1c2   :  { %v884_v23 = vmax.f32 %v8937_v22, -1e+30 }
 0x1c4   :  { %v473_v27 = vpop.f32.mrf.mxu1  ;;  %885 = vmax.xlane.f32.xlu0 %v884_v23 }
 0x1c5   :  { %v474_v30 = vadd.f32 %v473_v27, %v8636_v3 }
 0x1c6   :  { %v638_v32 = vpop.f32.mrf.mxu2  ;;  %v8945_v33 = vpop.f32.mrf.mxu3 }
 0x1c7   :  { %15168 = vst [vmem:[#allocation6_spill] sm:$0xff] %v8945_v33  ;;  %v525_v38 = vmax.f32 %v474_v30, 0.0  ;;  %v8948_v44 = vadd.f32 %v638_v32, %v8905_v61  ;;  %v1738_v30 = vand.u32 4294901760, %v1737_v26 }
 0x1c9   :  { %15169 = vst [vmem:[#allocation7_spill] sm:$0xff] %v8948_v44  ;;  %v547_v48 = vpack.c.bf16 %v525_v38, %v524_v36  ;;  %v8953_v49 = vsel %vm14824_vm12, %v8948_v44, -1e+30  ;;  %1739 = vmatpush.msrb.mxu2 %v1738_v30 }
 0x1ca   :  { %v887_v52 = vmax.f32 %v8953_v49, -1e+30 }
 0x1cb   :  { %7950 = vmatmul.msk.bf16.gmra.mxu2 %vm368_vm0, %v547_v48  ;;  %7966 = vmatmul.msk.bf16.gmra.mxu3 %vm368_vm0, %v547_v48 }
 0x1cc   :  { %v476_v54 = vpop.f32.mrf.mxu1  ;;  %888 = vmax.xlane.f32.xlu0 %v887_v52 }
 0x1cd   :  { %v477_v27 = vadd.f32 %v476_v54, %v8636_v3  ;;  %v1177_v54 = vadd.s32 32, %v8623_v57 }
 0x1ce   :  { %v641_v59 = vpop.f32.mrf.mxu2  ;;  %v8974_v60 = vpop.f32.mrf.mxu3 }
 0x1cf   :  { %15172 = vst [vmem:[#allocation8_spill] sm:$0xff] %v8974_v60  ;;  %v8979_v1 = vadd.f32 %v641_v59, %v8905_v61  ;;  %v526_v48 = vmax.f32 %v477_v27, 0.0  ;;  %vm1214_vm8 = vcmp.ge.s32.totalorder %v1177_v54, %v8638_v5  ;;  %vm1246_vm15 = vcmp.lt.s32.totalorder %v1177_v54, %v8630_v2 }
 0x1d0   :  { %vm9010_vm2 = vmand %vm1214_vm8, %vm1246_vm15  ;;  %v15176_v27 = vmov 0 }
 0x1d1   :  { %15173 = vst [vmem:[#allocation9_spill] sm:$0xff] %v8979_v1  ;;  %v8986_v23 = vsel %vm14824_vm12, %v8979_v1, -1e+30  ;;  %v15177_v27 = vsel %vm9010_vm2, 4294967295, %v15176_v27  ;;  %8020 = vmatpush.msk.msrb.mxu1 %vm9010_vm2, %v14591_v10  ;;  %8036 = vmatpush.msk.msrb.mxu0 %vm9010_vm2, %v14591_v10 }
 0x1d2   :  { %v890_v25 = vmax.f32 %v8986_v23, -1e+30 }
 0x1d4   :  { %v478_v28 = vpop.f32.mrf.mxu1  ;;  %891 = vmax.xlane.f32.xlu1 %v890_v25 }
 0x1d5   :  { %v479_v32 = vadd.f32 %v478_v28, %v8636_v3  ;;  %v7978_v28 = vsel %vm9010_vm2, 1.0, %v14593_v8 }
 0x1d6   :  { %v643_v36 = vpop.f32.mrf.mxu2  ;;  %v8994_v38 = vpop.f32.mrf.mxu3 }
 0x1d7   :  { %15174 = vst [vmem:[#allocation10_spill] sm:$0xff] %v8994_v38  ;;  %v527_v50 = vmax.f32 %v479_v32, 0.0  ;;  %v8997_v52 = vadd.f32 %v643_v36, %v8905_v61  ;;  %v9025_v36 = vsub.f32 %v7978_v28, %v7978_v28 }
 0x1d9   :  { %15175 = vst [vmem:[#allocation11_spill] sm:$0xff] %v8997_v52  ;;  %v548_v56 = vpack.c.bf16 %v527_v50, %v526_v48  ;;  %v9002_v59 = vsel %vm14824_vm12, %v8997_v52, -1e+30  ;;  %v14586_v50 = vand.u32 4294901760, %v9025_v36  ;;  %1934 = vmatpush.msrb.mxu3 %v9025_v36 }
 0x1da   :  { %v893_v25 = vmax.f32 %v9002_v59, -1e+30 }
 0x1db   :  { %7951 = vmatmul.msk.bf16.gmra.mxu2 %vm368_vm0, %v548_v56  ;;  %7967 = vmatmul.msk.bf16.gmra.mxu3 %vm368_vm0, %v548_v56 }
 0x1dc   :  { %v481_v26 = vpop.f32.mrf.mxu1  ;;  %894 = vmax.xlane.f32.xlu1 %v893_v25  ;;  %v1743_v25 = vsub.f32 %v9025_v36, %v14586_v50 }
 0x1dd   :  { %v482_v28 = vadd.f32 %v481_v26, %v8636_v3  ;;  %v1176_v26 = vadd.s32 24, %v8623_v57 }
 0x1de   :  { %v646_v30 = vpop.f32.mrf.mxu2  ;;  %v9023_v32 = vpop.f32.mrf.mxu3 }
 0x1df   :  { %15178 = vst [vmem:[#allocation12_spill] sm:$0xff] %v9023_v32  ;;  %v9028_v48 = vadd.f32 %v646_v30, %v8905_v61  ;;  %v1744_v30 = vand.u32 4294901760, %v1743_v25  ;;  %v528_v47 = vmax.f32 %v482_v28, 0.0  ;;  %vm1213_vm8 = vcmp.ge.s32.totalorder %v1176_v26, %v8638_v5 }
 0x1e0   :  { %vm1245_vm15 = vcmp.lt.s32.totalorder %v1176_v26, %v8630_v2 }
 0x1e1   :  { %15179 = vst [vmem:[#allocation13_spill] sm:$0xff] %v9028_v48  ;;  %v9035_v56 = vsel %vm14824_vm12, %v9028_v48, -1e+30  ;;  %1745 = vmatpush.msrb.mxu2 %v1744_v30  ;;  %vm9059_vm2 = vmand %vm1213_vm8, %vm1245_vm15 }
 0x1e2   :  { %v896_v54 = vmax.f32 %v9035_v56, -1e+30  ;;  %8021 = vmatpush.msk.msrb.mxu1 %vm9059_vm2, %v14591_v10  ;;  %8037 = vmatpush.msk.msrb.mxu0 %vm9059_vm2, %v14591_v10 }
 0x1e4   :  { %v483_v7 = vpop.f32.mrf.mxu1  ;;  %897 = vmax.xlane.f32.xlu2 %v896_v54 }
 0x1e5   :  { %v484_v19 = vadd.f32 %v483_v7, %v8636_v3 }
 0x1e6   :  { %v648_v41 = vpop.f32.mrf.mxu2  ;;  %v9043_v21 = vpop.f32.mrf.mxu3 }
 0x1e7   :  { %15180 = vst [vmem:[#allocation14_spill] sm:$0xff] %v9043_v21  ;;  %v529_v16 = vmax.f32 %v484_v19, 0.0  ;;  %v9046_v45 = vadd.f32 %v648_v41, %v8905_v61 }
 0x1e9   :  { %15181 = vst [vmem:[#allocation15_spill] sm:$0xff] %v9046_v45  ;;  %v549_v20 = vpack.c.bf16 %v529_v16, %v528_v47  ;;  %v9051_v50 = vsel %vm14824_vm12, %v9046_v45, -1e+30  ;;  %v15182_v16 = vmov 0  ;;  %v7977_v47 = vsel %vm9059_vm2, 1.0, %v14593_v8 }
 0x1ea   :  { %v899_v54 = vmax.f32 %v9051_v50, -1e+30  ;;  %v15183_v16 = vsel %vm9059_vm2, 4294967295, %v15182_v16  ;;  %v9074_v7 = vsub.f32 %v7977_v47, %v7977_v47 }
 0x1eb   :  { %7952 = vmatmul.msk.bf16.gmra.mxu2 %vm368_vm0, %v549_v20  ;;  %7968 = vmatmul.msk.bf16.gmra.mxu3 %vm368_vm0, %v549_v20 }
 0x1ec   :  { %v486_v41 = vpop.f32.mrf.mxu1  ;;  %900 = vmax.xlane.f32.xlu2 %v899_v54  ;;  %v14595_v28 = vand.u32 4294901760, %v9074_v7  ;;  %1937 = vmatpush.msrb.mxu3 %v9074_v7 }
 0x1ed   :  { %v487_v47 = vadd.f32 %v486_v41, %v8636_v3  ;;  %v1175_v41 = vadd.s32 16, %v8623_v57 }
 0x1ee   :  { %v651_v20 = vpop.f32.mrf.mxu2  ;;  %v9072_v19 = vpop.f32.mrf.mxu3  ;;  %v1749_v54 = vsub.f32 %v9074_v7, %v14595_v28 }
 0x1ef   :  { %15184 = vst [vmem:[#allocation16_spill] sm:$0xff] %v9072_v19  ;;  %v9077_v25 = vadd.f32 %v651_v20, %v8905_v61  ;;  %v530_v8 = vmax.f32 %v487_v47, 0.0  ;;  %vm1212_vm8 = vcmp.ge.s32.totalorder %v1175_v41, %v8638_v5  ;;  %vm1244_vm15 = vcmp.lt.s32.totalorder %v1175_v41, %v8630_v2 }
 0x1f0   :  { %v1750_v20 = vand.u32 4294901760, %v1749_v54  ;;  %vm9108_vm2 = vmand %vm1212_vm8, %vm1244_vm15 }
 0x1f1   :  { %15185 = vst [vmem:[#allocation17_spill] sm:$0xff] %v9077_v25  ;;  %v9084_v30 = vsel %vm14824_vm12, %v9077_v25, -1e+30 }
 0x1f2   :  { %v902_v26 = vmax.f32 %v9084_v30, -1e+30  ;;  %1751 = vmatpush.msrb.mxu2 %v1750_v20 }
 0x1f4   :  { %v488_v53 = vpop.f32.mrf.mxu1  ;;  %903 = vmax.xlane.f32.xlu0 %v902_v26 }
 0x1f5   :  { %v489_v31 = vadd.f32 %v488_v53, %v8636_v3 }
 0x1f6   :  { %v653_v14 = vpop.f32.mrf.mxu2  ;;  %v9092_v10 = vpop.f32.mrf.mxu3 }
 0x1f7   :  { %15186 = vst [vmem:[#allocation18_spill] sm:$0xff] %v9092_v10  ;;  %v531_v21 = vmax.f32 %v489_v31, 0.0  ;;  %v9095_v32 = vadd.f32 %v653_v14, %v8905_v61  ;;  %v15190_v31 = vmov 0.0  }
 0x1f8   :  { %v7976_v53 = vsel %vm9108_vm2, 1.0, %v15190_v31 }
 0x1f9   :  { %15187 = vst [vmem:[#allocation19_spill] sm:$0xff] %v9095_v32  ;;  %v550_v19 = vpack.c.bf16 %v531_v21, %v530_v8  ;;  %v9100_v28 = vsel %vm14824_vm12, %v9095_v32, -1e+30  ;;  %v15188_v8 = vmov 0  ;;  %v15191_v21 = vmov 1.0  }
 0x1fa   :  { %v905_v26 = vmax.f32 %v9100_v28, -1e+30  ;;  %v15189_v8 = vsel %vm9108_vm2, 4294967295, %v15188_v8  ;;  %8022 = vmatpush.msk.msrb.mxu1 %vm9108_vm2, %v15191_v21  ;;  %8038 = vmatpush.msk.msrb.mxu0 %vm9108_vm2, %v15191_v21  ;;  %v9123_v47 = vsub.f32 %v7976_v53, %v7976_v53 }
 0x1fb   :  { %7953 = vmatmul.msk.bf16.gmra.mxu2 %vm368_vm0, %v550_v19  ;;  %7969 = vmatmul.msk.bf16.gmra.mxu3 %vm368_vm0, %v550_v19 }
 0x1fc   :  { %v491_v14 = vpop.f32.mrf.mxu1  ;;  %906 = vmax.xlane.f32.xlu1 %v905_v26  ;;  %v14605_v41 = vand.u32 4294901760, %v9123_v47  ;;  %1940 = vmatpush.msrb.mxu3 %v9123_v47 }
 0x1fd   :  { %v492_v53 = vadd.f32 %v491_v14, %v8636_v3 }
 0x1fe   :  { %v656_v19 = vpop.f32.mrf.mxu2  ;;  %v9121_v54 = vpop.f32.mrf.mxu3 }
 0x1ff   :  { %15192 = vst [vmem:[#allocation20_spill] sm:$0xff] %v9121_v54  ;;  %v9126_v20 = vadd.f32 %v656_v19, %v8905_v61  ;;  %v1755_v54 = vsub.f32 %v9123_v47, %v14605_v41  ;;  %v532_v32 = vmax.f32 %v492_v53, 0.0 }
 0x201   :  { %15193 = vst [vmem:[#allocation21_spill] sm:$0xff] %v9126_v20  ;;  %v9133_v26 = vsel %vm14824_vm12, %v9126_v20, -1e+30  ;;  %v1756_v19 = vand.u32 4294901760, %v1755_v54 }
 0x202   :  { %v908_v10 = vmax.f32 %v9133_v26, -1e+30 }
 0x203   :  { %1757 = vmatpush.msrb.mxu2 %v1756_v19 }
 0x204   :  { %v493_v60 = vpop.f32.mrf.mxu1  ;;  %909 = vmax.xlane.f32.xlu2 %v908_v10  ;;  %v1174_v10 = vadd.s32 8, %v8623_v57 }
 0x205   :  { %v494_v33 = vadd.f32 %v493_v60, %v8636_v3  ;;  %v15196_v60 = vmov 0 }
 0x206   :  { %v658_v38 = vpop.f32.mrf.mxu2  ;;  %v9141_v9 = vpop.f32.mrf.mxu3  ;;  %vm1211_vm8 = vcmp.ge.s32.totalorder %v1174_v10, %v8638_v5  ;;  %vm1243_vm15 = vcmp.lt.s32.totalorder %v1174_v10, %v8630_v2 }
 0x207   :  { %15194 = vst [vmem:[#allocation22_spill] sm:$0xff] %v9141_v9  ;;  %v533_v20 = vmax.f32 %v494_v33, 0.0  ;;  %v9144_v25 = vadd.f32 %v658_v38, %v8905_v61  ;;  %vm9157_vm2 = vmand %vm1211_vm8, %vm1243_vm15  ;;  %vm1210_vm8 = vcmp.ge.s32.totalorder %v8623_v57, %v8638_v5  ;;  %vm1242_vm15 = vcmp.lt.s32.totalorder %v8623_v57, %v8630_v2 }
 0x208   :  { %v15197_v60 = vsel %vm9157_vm2, 4294967295, %v15196_v60  ;;  %v7975_v38 = vsel %vm9157_vm2, 1.0, %v15190_v31  ;;  %8023 = vmatpush.msk.msrb.mxu1 %vm9157_vm2, %v15191_v21  ;;  %8039 = vmatpush.msk.msrb.mxu0 %vm9157_vm2, %v15191_v21  ;;  %vm9207_vm2 = vmand %vm1210_vm8, %vm1242_vm15 }
 0x209   :  { %15195 = vst [vmem:[#allocation23_spill] sm:$0xff] %v9144_v25  ;;  %v551_v45 = vpack.c.bf16 %v533_v20, %v532_v32  ;;  %v9149_v41 = vsel %vm14824_vm12, %v9144_v25, -1e+30  ;;  %v9172_v54 = vsub.f32 %v7975_v38, %v7975_v38 }
 0x20a   :  { %v911_v14 = vmax.f32 %v9149_v41, -1e+30  ;;  %8024 = vmatpush.msk.msrb.mxu1 %vm9207_vm2, %v15191_v21  ;;  %8040 = vmatpush.msk.msrb.mxu0 %vm9207_vm2, %v15191_v21 }
 0x20b   :  { %7954 = vmatmul.msk.bf16.gmra.mxu2 %vm368_vm0, %v551_v45  ;;  %7970 = vmatmul.msk.bf16.gmra.mxu3 %vm368_vm0, %v551_v45  ;;  %v14619_v53 = vand.u32 4294901760, %v9172_v54 }
 0x20c   :  { %v496_v33 = vpop.f32.mrf.mxu1  ;;  %912 = vmax.xlane.f32.xlu0 %v911_v14  ;;  %1943 = vmatpush.msrb.mxu3 %v9172_v54 }
 0x20d   :  { %v1761_v14 = vsub.f32 %v9172_v54, %v14619_v53  ;;  %v497_v38 = vadd.f32 %v496_v33, %v8636_v3 }
 0x20e   :  { %v661_v45 = vpop.f32.mrf.mxu2  ;;  %v9170_v32 = vpop.f32.mrf.mxu3 }
 0x20f   :  { %15198 = vst [vmem:[#allocation24_spill] sm:$0xff] %v9170_v32  ;;  %v9175_v20 = vadd.f32 %v661_v45, %v8905_v61  ;;  %v1762_v45 = vand.u32 4294901760, %v1761_v14  ;;  %v534_v44 = vmax.f32 %v497_v38, 0.0 }
 0x211   :  { %15199 = vst [vmem:[#allocation25_spill] sm:$0xff] %v9175_v20  ;;  %v9182_v19 = vsel %vm14824_vm12, %v9175_v20, -1e+30  ;;  %1763 = vmatpush.msrb.mxu2 %v1762_v45  ;;  %v15207_v45 = vand.u32 4294901760, %v8678_v29  ;;  %v15209_v29 = vand.u32 4294901760, %v8738_v18 }
 0x212   :  { %v914_v10 = vmax.f32 %v9182_v19, -1e+30 }
 0x214   :  { %v498_v32 = vpop.f32.mrf.mxu1  ;;  %915 = vmax.xlane.f32.xlu1 %v914_v10 }
 0x215   :  { %v499_v9 = vadd.f32 %v498_v32, %v8636_v3 }
 0x216   :  { %v663_v25 = vpop.f32.mrf.mxu2  ;;  %v9190_v48 = vpop.f32.mrf.mxu3 }
 0x217   :  { %15200 = vst [vmem:[#allocation26_spill] sm:$0xff] %v9190_v48  ;;  %v535_v20 = vmax.f32 %v499_v9, 0.0  ;;  %v9193_v52 = vadd.f32 %v663_v25, %v8905_v61  ;;  %v7974_v25 = vsel %vm9207_vm2, 1.0, %v15190_v31 }
 0x218   :  { %v9217_v32 = vsub.f32 %v7974_v25, %v7974_v25  ;;  %v15208_v25 = vand.u32 4294901760, %v8708_v51 }
 0x219   :  { %15201 = vst [vmem:[#allocation27_spill] sm:$0xff] %v9193_v52  ;;  %v552_v40 = vpack.c.bf16 %v535_v20, %v534_v44  ;;  %v9198_v53 = vsel %vm14824_vm12, %v9193_v52, -1e+30 }
 0x21a   :  { %v917_v33 = vmax.f32 %v9198_v53, -1e+30  ;;  %v14623_v38 = vand.u32 4294901760, %v9217_v32  ;;  %1946 = vmatpush.msrb.mxu3 %v9217_v32  ;;  %v15232_v63 = vand.u32 4294901760, %v9217_v32 }
 0x21b   :  { %7955 = vmatmul.msk.bf16.gmra.mxu2 %vm368_vm0, %v552_v40  ;;  %7971 = vmatmul.msk.bf16.gmra.mxu3 %vm368_vm0, %v552_v40  ;;  %v15204_v40 = vand.u32 4294901760, %v8656_v12 }
 0x21c   :  { %v501_v44 = vpop.f32.mrf.mxu1  ;;  %918 = vmax.xlane.f32.xlu2 %v917_v33  ;;  %v1767_v12 = vsub.f32 %v9217_v32, %v14623_v38 }
 0x21d   :  { %2336 = vmatpush.msra.mxu1 %v15204_v40 }
 0x21e   :  { %v666_v20 = vpop.f32.mrf.mxu2  ;;  %v9224_v10 = vpop.f32.mrf.mxu3  ;;  %v1768_v48 = vand.u32 4294901760, %v1767_v12  ;;  %v15213_v12 = vand.u32 4294901760, %v8798_v13 }
 0x21f   :  { %15205 = vst [vmem:[#allocation28_spill] sm:$0xff] %v9224_v10  ;;  %v9227_v14 = vadd.f32 %v666_v20, %v8905_v61  ;;  %2340 = vmatpush.msra.mxu1 %v15207_v45  ;;  %v502_v20 = vadd.f32 %v501_v44, %v8636_v3 }
 0x220   :  { %1769 = vmatpush.msrb.mxu2 %v1768_v48 }
 0x221   :  { %15206 = vst [vmem:[#allocation29_spill] sm:$0xff] %v9227_v14  ;;  %v9236_v33 = vsel %vm14824_vm12, %v9227_v14, -1e+30  ;;  %2344 = vmatpush.msra.mxu1 %v15208_v25  ;;  %v15210_v14 = vand.u32 4294901760, %v8768_v43  ;;  %v536_v51 = vmax.f32 %v502_v20, 0.0 }
 0x222   :  { %v920_v40 = vmax.f32 %v9236_v33, -1e+30  ;;  %8041 = vmatpush.msk.msra.mxu2 %vm8642_vm4, %v15191_v21  ;;  %vm1273_vm4 = vcmp.lt.s32.totalorder %v1204_v0, %v8630_v2 }
 0x223   :  { %2348 = vmatpush.msra.mxu1 %v15209_v29 }
 0x224   :  { %v503_v45 = vpop.f32.mrf.mxu1  ;;  %921 = vmax.xlane.f32.xlu0 %v920_v40  ;;  %8042 = vmatpush.msk.msra.mxu2 %vm8669_vm7, %v15191_v21  ;;  %v15229_v40 = vand.u32 4294901760, %v9123_v47 }
 0x225   :  { %v504_v10 = vadd.f32 %v503_v45, %v8636_v3  ;;  %2352 = vmatpush.msra.mxu1 %v15210_v14  ;;  %v15221_v14 = vand.u32 4294901760, %v9025_v36  ;;  %v15228_v36 = vand.u32 4294901760, %v9074_v7 }
 0x226   :  { %v668_v38 = vpop.f32.mrf.mxu2  ;;  %v9250_v52 = vpop.f32.mrf.mxu3  ;;  %8043 = vmatpush.msk.msra.mxu2 %vm8699_vm10, %v15191_v21  ;;  %vm15231_vm10 = vnez %v15177_v27 }
 0x227   :  { %15211 = vst [vmem:[#allocation30_spill] sm:$0xff] %v9250_v52  ;;  %v537_v44 = vmax.f32 %v504_v10, 0.0  ;;  %v9256_v18 = vadd.f32 %v668_v38, %v8905_v61  ;;  %2356 = vmatpush.msra.mxu1 %v15213_v12  ;;  %v15218_v10 = vand.u32 4294901760, %v8886_v39  ;;  %v15220_v39 = vand.u32 4294901760, %v8976_v62 }
 0x228   :  { %8044 = vmatpush.msk.msra.mxu2 %vm8729_vm13, %v15191_v21  ;;  %vm15234_vm13 = vnez %v15183_v16  ;;  %v1201_v52 = vadd.s32 224, %v8623_v57 }
 0x229   :  { %15212 = vst [vmem:[#allocation31_spill] sm:$0xff] %v9256_v18  ;;  %v553_v3 = vpack.c.bf16 %v537_v44, %v536_v51  ;;  %v9266_v43 = vsel %vm14824_vm12, %v9256_v18, -1e+30  ;;  %2360 = vmatpush.msra.mxu1 %v15214_v6 }
 0x22a   :  { %v923_v48 = vmax.f32 %v9266_v43, -1e+30  ;;  %8045 = vmatpush.msk.msra.mxu2 %vm8759_vm1, %v15191_v21  ;;  %vm15237_vm1 = vnez %v15189_v8  ;;  %v1203_v8 = vadd.s32 240, %v8623_v57  ;;  %vm1238_vm8 = vcmp.ge.s32.totalorder %v1201_v52, %v8638_v5 }
 0x22b   :  { %7956 = vmatmul.msk.bf16.gmra.mxu2 %vm368_vm0, %v553_v3  ;;  %7972 = vmatmul.msk.bf16.gmra.mxu3 %vm368_vm0, %v553_v3  ;;  %vm1241_vm0 = vcmp.ge.s32.totalorder %v1204_v0, %v8638_v5  ;;  %vm1270_vm15 = vcmp.lt.s32.totalorder %v1201_v52, %v8630_v2 }
 0x22c   :  { %924 = vmax.xlane.f32.xlu1 %v923_v48  ;;  %2364 = vmatpush.msra.mxu1 %v15215_v24  ;;  %vm9325_vm7 = vmand %vm1241_vm0, %vm1273_vm4  ;;  %v15244_v48 = vmov 0 }
 0x22d   :  { %8046 = vmatpush.msk.msra.mxu2 %vm8789_vm5, %v15191_v21  ;;  %v15226_v4 = vsel %vm9325_vm7, 4294967295, %v15225_v4  ;;  %8057 = vmatpush.msk.msra.mxu3 %vm9325_vm7, %v15191_v21  ;;  %vm15239_vm5 = vnez %v15197_v60  ;;  %vm9543_vm0 = vmand %vm1238_vm8, %vm1270_vm15 }
 0x22e   :  { %v671_v13 = vpop.f32.mrf.mxu2  ;;  %v9281_v42 = vpop.f32.mrf.mxu3  ;;  %2368 = vmatpush.msra.mxu1 %v15218_v10  ;;  %15227 = vst [vmem:[#allocation37_spill] sm:$0xff] %v15226_v4 }
 0x22f   :  { %15216 = vst [vmem:[#allocation32_spill] sm:$0xff] %v9281_v42  ;;  %v9287_v46 = vadd.f32 %v671_v13, %v8905_v61  ;;  %8047 = vmatpush.msk.msra.mxu2 %vm8819_vm9, %v15191_v21  ;;  %vm1240_vm9 = vcmp.ge.s32.totalorder %v1203_v8, %v8638_v5 }
 0x230   :  { %2372 = vmatpush.msra.mxu1 %v15219_v17 }
 0x231   :  { %15217 = vst [vmem:[#allocation33_spill] sm:$0xff] %v9287_v46  ;;  %v9297_v11 = vsel %vm14824_vm12, %v9287_v46, -1e+30  ;;  %8048 = vmatpush.msk.msra.mxu2 %vm8849_vm14, %v15191_v21  ;;  %vm1272_vm14 = vcmp.lt.s32.totalorder %v1203_v8, %v8630_v2 }
 0x232   :  { %v926_v37 = vmax.f32 %v9297_v11, -1e+30  ;;  %2376 = vmatpush.msra.mxu1 %v15220_v39 }
 0x233   :  { %8049 = vmatpush.msk.msra.mxu2 %vm8877_vm3, %v15191_v21  ;;  %vm9405_vm3 = vmand %vm1240_vm9, %vm1272_vm14 }
 0x234   :  { %927 = vmax.xlane.f32.xlu2 %v926_v37  ;;  %2380 = vmatpush.msra.mxu1 %v15221_v14  ;;  %v15245_v48 = vsel %vm9405_vm3, 4294967295, %v15244_v48  ;;  %v8005_v14 = vsel %vm9325_vm7, 1.0, %v15190_v31 }
 0x235   :  { %8050 = vmatpush.msk.msra.mxu2 %vm8911_vm11, %v15191_v21  ;;  %15246 = vst [vmem:[#allocation46_spill] sm:$0xff] %v15245_v48  ;;  %8058 = vmatpush.msk.msra.mxu3 %vm9405_vm3, %v15191_v21 }
 0x236   :  { %v673_v15 = vpop.f32.mrf.mxu2  ;;  %v9313_v38 = vpop.f32.mrf.mxu3  ;;  %2384 = vmatpush.msra.mxu1 %v15228_v36  ;;  %v9434_v36 = vsub.f32 %v8005_v14, %v8005_v14 }
 0x237   :  { %15222 = vst [vmem:[#allocation34_spill] sm:$0xff] %v9313_v38  ;;  %v9321_v35 = vadd.f32 %v673_v15, %v8905_v61  ;;  %v9323_v62 = vpop.xlane.xlu0 %885  ;;  %8051 = vmatpush.msk.msra.mxu2 %vm8961_vm6, %v15191_v21 }
 0x238   :  { %15224 = vst [vmem:[#allocation36_spill] sm:$0xff] %v9323_v62  ;;  %v980_v25 = vsub.f32 %v8937_v22, %v9323_v62  ;;  %2388 = vmatpush.msra.mxu1 %v15229_v40  ;;  %v15230_v22 = vand.u32 4294901760, %v9172_v54 }
 0x239   :  { %15223 = vst [vmem:[#allocation35_spill] sm:$0xff] %v9321_v35  ;;  %v9342_v34 = vsel %vm14824_vm12, %v9321_v35, -1e+30  ;;  %8052 = vmatpush.msk.msra.mxu2 %vm15231_vm10, %v15191_v21 }
 0x23a   :  { %v1044_v7 = vmul.f32 1.442695, %v980_v25  ;;  %v929_v20 = vmax.f32 %v9342_v34, -1e+30  ;;  %2392 = vmatpush.msra.mxu1 %v15230_v22  ;;  %15249 = vst [vmem:[#allocation49_spill] sm:$0xff] %v9434_v36 }
 0x23b   :  { %8053 = vmatpush.msk.msra.mxu2 %vm15234_vm13, %v15191_v21 }
 0x23c   :  { %8177 = vpow2.f32 %v1044_v7  ;;  %930 = vmax.xlane.f32.xlu0 %v929_v20  ;;  %2396 = vmatpush.msra.mxu1 %v15232_v63  ;;  %v14626_v63 = vand.u32 4294901760, %v9434_v36 }
 0x23d   :  { %8054 = vmatpush.msk.msra.mxu2 %vm15237_vm1, %v15191_v21 }
 0x23e   :  { %v676_v47 = vpop.f32.mrf.mxu2  ;;  %v9357_v29 = vpop.f32.mrf.mxu3 }
 0x23f   :  { %15233 = vst [vmem:[#allocation38_spill] sm:$0xff] %v9357_v29  ;;  %v9363_v55 = vadd.f32 %v676_v47, %v8905_v61  ;;  %v9365_v54 = vpop.xlane.xlu0 %888  ;;  %8055 = vmatpush.msk.msra.mxu2 %vm15239_vm5, %v15191_v21 }
 0x240   :  { %15236 = vst [vmem:[#allocation40_spill] sm:$0xff] %v9365_v54  ;;  %v982_v45 = vsub.f32 %v8953_v49, %v9365_v54 }
 0x241   :  { %15235 = vst [vmem:[#allocation39_spill] sm:$0xff] %v9363_v55  ;;  %v9375_v27 = vsel %vm14824_vm12, %v9363_v55, -1e+30  ;;  %8056 = vmatpush.msk.msra.mxu2 %vm9207_vm2, %v15191_v21 }
 0x242   :  { %v9377_v32 = vpop.eup %8177  ;;  %v1048_v16 = vmul.f32 1.442695, %v982_v45  ;;  %v932_v51 = vmax.f32 %v9375_v27, -1e+30 }
 0x243   :  { %15238 = vst [vmem:[#allocation41_spill] sm:$0xff] %v9377_v32  ;;  %v9384_v49 = vand.u32 4294901760, %v9377_v32 }
 0x244   :  { %8179 = vpow2.f32 %v1048_v16  ;;  %933 = vmax.xlane.f32.xlu1 %v932_v51  ;;  %v2979_v51 = vsub.f32 %v9434_v36, %v14626_v63 }
 0x245   :  { %15240 = vst [vmem:[#allocation42_spill] sm:$0xff] %v9384_v49  ;;  %1771 = vmatmul.f32.vlgmr.msrb.gmra.mxu2 %v9384_v49  ;;  %v1418_v44 = vsub.f32 %v9377_v32, %v9384_v49 }
 0x246   :  { %v678_v12 = vpop.f32.mrf.mxu2  ;;  %v9393_v3 = vpop.f32.mrf.mxu3  ;;  %8073 = vmatpush.msk.msrb.mxu2 %vm9325_vm7, %v15191_v21 }
 0x247   :  { %15241 = vst [vmem:[#allocation43_spill] sm:$0xff] %v9393_v3  ;;  %v9401_v60 = vadd.f32 %v678_v12, %v8905_v61  ;;  %v9403_v9 = vpop.xlane.xlu1 %891  ;;  %1949 = vmatmul.f32.vlgmr.msrb.gmra.mxu3 %v1418_v44  ;;  %v1419_v6 = vand.u32 4294901760, %v1418_v44 }
 0x248   :  { %15243 = vst [vmem:[#allocation45_spill] sm:$0xff] %v9403_v9  ;;  %v984_v24 = vsub.f32 %v8986_v23, %v9403_v9  ;;  %8074 = vmatpush.msk.msrb.mxu2 %vm9405_vm3, %v15191_v21  ;;  %v15321_v9 = vld [vmem:[#allocation11_spill] sm:$0xff] }
 0x249   :  { %15242 = vst [vmem:[#allocation44_spill] sm:$0xff] %v9401_v60  ;;  %2143 = vmatmul.f32.vlgmr.msrb.gmra.mxu0 %v1419_v6  ;;  %v9420_v13 = vsel %vm14824_vm12, %v9401_v60, -1e+30  ;;  %v1420_v10 = vsub.f32 %v1418_v44, %v1419_v6 }
 0x24a   :  { %v9422_v17 = vpop.eup %8179  ;;  %v1052_v37 = vmul.f32 1.442695, %v984_v24  ;;  %v935_v23 = vmax.f32 %v9420_v13, -1e+30 }
 0x24b   :  { %15247 = vst [vmem:[#allocation47_spill] sm:$0xff] %v9422_v17  ;;  %v1421_v39 = vand.u32 4294901760, %v1420_v10  ;;  %v9426_v0 = vand.u32 4294901760, %v9422_v17  ;;  %v1202_v10 = vadd.s32 232, %v8623_v57 }
 0x24c   :  { %8181 = vpow2.f32 %v1052_v37  ;;  %936 = vmax.xlane.f32.xlu2 %v935_v23 }
 0x24d   :  { %15248 = vst [vmem:[#allocation48_spill] sm:$0xff] %v9426_v0  ;;  %1422 = vmatmul.f32.vlgmr.msrb.gmra.mxu1 %v1421_v39  ;;  %1775 = vmatmul.f32.gmra.mxu2 %v9426_v0  ;;  %v1426_v15 = vsub.f32 %v9422_v17, %v9426_v0  ;;  %vm1239_vm11 = vcmp.ge.s32.totalorder %v1202_v10, %v8638_v5 }
 0x24e   :  { %v681_v25 = vpop.f32.mrf.mxu2  ;;  %v9436_v40 = vpop.f32.mrf.mxu3  ;;  %3203 = vmatpush.msrb.mxu1 %v9434_v36  ;;  %vm1271_vm6 = vcmp.lt.s32.totalorder %v1202_v10, %v8630_v2  ;;  %v8004_v10 = vsel %vm9405_vm3, 1.0, %v15190_v31 }
 0x24f   :  { %15250 = vst [vmem:[#allocation50_spill] sm:$0xff] %v9436_v40  ;;  %v9439_v7 = vadd.f32 %v681_v25, %v8905_v61  ;;  %v9441_v20 = vpop.xlane.xlu1 %894  ;;  %1954 = vmatmul.f32.gmra.mxu3 %v1426_v15  ;;  %v1427_v22 = vand.u32 4294901760, %v1426_v15  ;;  %vm9474_vm2 = vmand %vm1239_vm11, %vm1271_vm6 }
 0x250   :  { %15252 = vst [vmem:[#allocation52_spill] sm:$0xff] %v9441_v20  ;;  %v986_v47 = vsub.f32 %v9002_v59, %v9441_v20  ;;  %v2980_v59 = vand.u32 4294901760, %v2979_v51  ;;  %8059 = vmatpush.msk.msra.mxu3 %vm9474_vm2, %v15191_v21  ;;  %8075 = vmatpush.msk.msrb.mxu2 %vm9474_vm2, %v15191_v21 }
 0x251   :  { %15251 = vst [vmem:[#allocation51_spill] sm:$0xff] %v9439_v7  ;;  %2149 = vmatmul.f32.gmra.mxu0 %v1427_v22  ;;  %v9450_v45 = vsel %vm14824_vm12, %v9439_v7, -1e+30  ;;  %v1428_v16 = vsub.f32 %v1426_v15, %v1427_v22  ;;  %v15258_v22 = vmov 0 }
 0x252   :  { %v9455_v8 = vpop.eup %8181  ;;  %v1056_v44 = vmul.f32 1.442695, %v986_v47  ;;  %v938_v12 = vmax.f32 %v9450_v45, -1e+30  ;;  %2981 = vmatpush.msra.mxu0 %v2980_v59  ;;  %v15259_v22 = vsel %vm9474_vm2, 4294967295, %v15258_v22  ;;  %8060 = vmatpush.msk.msra.mxu3 %vm9543_vm0, %v15191_v21 }
 0x253   :  { %15253 = vst [vmem:[#allocation53_spill] sm:$0xff] %v9455_v8  ;;  %v1429_v6 = vand.u32 4294901760, %v1428_v16  ;;  %v9459_v24 = vand.u32 4294901760, %v9455_v8  ;;  %8076 = vmatpush.msk.msrb.mxu2 %vm9543_vm0, %v15191_v21 }
 0x254   :  { %8183 = vpow2.f32 %v1056_v44  ;;  %939 = vmax.xlane.f32.xlu0 %v938_v12  ;;  %15260 = vst [vmem:[#allocation58_spill] sm:$0xff] %v15259_v22 }
 0x255   :  { %15254 = vst [vmem:[#allocation54_spill] sm:$0xff] %v9459_v24  ;;  %1430 = vmatmul.f32.gmra.mxu1 %v1429_v6  ;;  %1779 = vmatmul.f32.gmra.mxu2 %v9459_v24  ;;  %v1434_v37 = vsub.f32 %v9455_v8, %v9459_v24 }
 0x256   :  { %v683_v23 = vpop.f32.mrf.mxu2  ;;  %v9465_v39 = vpop.f32.mrf.mxu3 }
 0x257   :  { %15255 = vst [vmem:[#allocation55_spill] sm:$0xff] %v9465_v39  ;;  %v9470_v14 = vadd.f32 %v683_v23, %v8905_v61  ;;  %v9472_v15 = vpop.xlane.xlu2 %897  ;;  %1959 = vmatmul.f32.gmra.mxu3 %v1434_v37  ;;  %v1435_v25 = vand.u32 4294901760, %v1434_v37  ;;  %v9503_v23 = vsub.f32 %v8004_v10, %v8004_v10 }
 0x258   :  { %15257 = vst [vmem:[#allocation57_spill] sm:$0xff] %v9472_v15  ;;  %v988_v47 = vsub.f32 %v9035_v56, %v9472_v15 }
 0x259   :  { %15256 = vst [vmem:[#allocation56_spill] sm:$0xff] %v9470_v14  ;;  %2155 = vmatmul.f32.gmra.mxu0 %v1435_v25  ;;  %v9489_v16 = vsel %vm14824_vm12, %v9470_v14, -1e+30  ;;  %v1436_v51 = vsub.f32 %v1434_v37, %v1435_v25  ;;  %v14627_v63 = vand.u32 4294901760, %v9503_v23  ;;  %3206 = vmatpush.msrb.mxu1 %v9503_v23 }
 0x25a   :  { %v9491_v44 = vpop.eup %8183  ;;  %v1060_v12 = vmul.f32 1.442695, %v988_v47  ;;  %v941_v56 = vmax.f32 %v9489_v16, -1e+30  ;;  %15263 = vst [vmem:[#allocation61_spill] sm:$0xff] %v9503_v23 }
 0x25b   :  { %15261 = vst [vmem:[#allocation59_spill] sm:$0xff] %v9491_v44  ;;  %v1437_v6 = vand.u32 4294901760, %v1436_v51  ;;  %v9495_v59 = vand.u32 4294901760, %v9491_v44 }
 0x25c   :  { %8185 = vpow2.f32 %v1060_v12  ;;  %942 = vmax.xlane.f32.xlu1 %v941_v56 }
 0x25d   :  { %15262 = vst [vmem:[#allocation60_spill] sm:$0xff] %v9495_v59  ;;  %1438 = vmatmul.f32.gmra.mxu1 %v1437_v6  ;;  %1783 = vmatmul.f32.gmra.mxu2 %v9495_v59  ;;  %v1442_v37 = vsub.f32 %v9491_v44, %v9495_v59  ;;  %v1200_v59 = vadd.s32 216, %v8623_v57 }
 0x25e   :  { %v686_v25 = vpop.f32.mrf.mxu2  ;;  %v9505_v47 = vpop.f32.mrf.mxu3 }
 0x25f   :  { %15264 = vst [vmem:[#allocation62_spill] sm:$0xff] %v9505_v47  ;;  %v9508_v51 = vadd.f32 %v686_v25, %v8905_v61  ;;  %v9510_v12 = vpop.xlane.xlu2 %900  ;;  %1964 = vmatmul.f32.gmra.mxu3 %v1442_v37  ;;  %v1443_v56 = vand.u32 4294901760, %v1442_v37  ;;  %v2985_v25 = vsub.f32 %v9503_v23, %v14627_v63  ;;  %vm1237_vm4 = vcmp.ge.s32.totalorder %v1200_v59, %v8638_v5  ;;  %v15332_v23 = vld [vmem:[#allocation21_spill] sm:$0xff] }
 0x260   :  { %15266 = vst [vmem:[#allocation64_spill] sm:$0xff] %v9510_v12  ;;  %v990_v6 = vsub.f32 %v9051_v50, %v9510_v12  ;;  %vm1269_vm10 = vcmp.lt.s32.totalorder %v1200_v59, %v8630_v2 }
 0x261   :  { %15265 = vst [vmem:[#allocation63_spill] sm:$0xff] %v9508_v51  ;;  %2161 = vmatmul.f32.gmra.mxu0 %v1443_v56  ;;  %v9519_v10 = vsel %vm14824_vm12, %v9508_v51, -1e+30  ;;  %v1444_v47 = vsub.f32 %v1442_v37, %v1443_v56  ;;  %v2986_v50 = vand.u32 4294901760, %v2985_v25  ;;  %vm9610_vm13 = vmand %vm1237_vm4, %vm1269_vm10 }
 0x262   :  { %v9524_v39 = vpop.eup %8185  ;;  %v1064_v3 = vmul.f32 1.442695, %v990_v6  ;;  %v944_v29 = vmax.f32 %v9519_v10, -1e+30  ;;  %8061 = vmatpush.msk.msra.mxu3 %vm9610_vm13, %v15191_v21  ;;  %8077 = vmatpush.msk.msrb.mxu2 %vm9610_vm13, %v15191_v21 }
 0x263   :  { %15267 = vst [vmem:[#allocation65_spill] sm:$0xff] %v9524_v39  ;;  %v1445_v40 = vand.u32 4294901760, %v1444_v47  ;;  %v9528_v42 = vand.u32 4294901760, %v9524_v39  ;;  %2987 = vmatpush.msra.mxu0 %v2986_v50 }
 0x264   :  { %8187 = vpow2.f32 %v1064_v3  ;;  %945 = vmax.xlane.f32.xlu2 %v944_v29 }
 0x265   :  { %15268 = vst [vmem:[#allocation66_spill] sm:$0xff] %v9528_v42  ;;  %1446 = vmatmul.f32.gmra.mxu1 %v1445_v40  ;;  %1787 = vmatmul.f32.gmra.mxu2 %v9528_v42  ;;  %v1450_v37 = vsub.f32 %v9524_v39, %v9528_v42  ;;  %v15272_v40 = vmov 0  ;;  %v8003_v39 = vsel %vm9474_vm2, 1.0, %v15190_v31 }
 0x266   :  { %v688_v56 = vpop.f32.mrf.mxu2  ;;  %v9534_v63 = vpop.f32.mrf.mxu3  ;;  %v15273_v40 = vsel %vm9543_vm0, 4294967295, %v15272_v40 }
 0x267   :  { %15269 = vst [vmem:[#allocation67_spill] sm:$0xff] %v9534_v63  ;;  %v9539_v47 = vadd.f32 %v688_v56, %v8905_v61  ;;  %1969 = vmatmul.f32.gmra.mxu3 %v1450_v37  ;;  %v9541_v29 = vpop.xlane.xlu0 %903  ;;  %v1451_v3 = vand.u32 4294901760, %v1450_v37 }
 0x268   :  { %15271 = vst [vmem:[#allocation69_spill] sm:$0xff] %v9541_v29  ;;  %v992_v6 = vsub.f32 %v9084_v30, %v9541_v29 }
 0x269   :  { %15270 = vst [vmem:[#allocation68_spill] sm:$0xff] %v9539_v47  ;;  %2167 = vmatmul.f32.gmra.mxu0 %v1451_v3  ;;  %v9558_v52 = vsel %vm14824_vm12, %v9539_v47, -1e+30  ;;  %v1452_v25 = vsub.f32 %v1450_v37, %v1451_v3  ;;  %v9572_v3 = vsub.f32 %v8003_v39, %v8003_v39 }
 0x26a   :  { %15274 = vst [vmem:[#allocation70_spill] sm:$0xff] %v15273_v40  ;;  %v9560_v50 = vpop.eup %8187  ;;  %v1068_v56 = vmul.f32 1.442695, %v992_v6  ;;  %v947_v30 = vmax.f32 %v9558_v52, -1e+30  ;;  %v15324_v40 = vld [vmem:[#allocation13_spill] sm:$0xff] }
 0x26b   :  { %15275 = vst [vmem:[#allocation71_spill] sm:$0xff] %v9560_v50  ;;  %v1453_v63 = vand.u32 4294901760, %v1452_v25  ;;  %v9564_v38 = vand.u32 4294901760, %v9560_v50  ;;  %3209 = vmatpush.msrb.mxu1 %v9572_v3 }
 0x26c   :  { %8189 = vpow2.f32 %v1068_v56  ;;  %948 = vmax.xlane.f32.xlu0 %v947_v30  ;;  %15277 = vst [vmem:[#allocation73_spill] sm:$0xff] %v9572_v3  ;;  %v14640_v30 = vand.u32 4294901760, %v9572_v3 }
 0x26d   :  { %15276 = vst [vmem:[#allocation72_spill] sm:$0xff] %v9564_v38  ;;  %1454 = vmatmul.f32.gmra.mxu1 %v1453_v63  ;;  %1791 = vmatmul.f32.gmra.mxu2 %v9564_v38  ;;  %v1458_v37 = vsub.f32 %v9560_v50, %v9564_v38 }
 0x26e   :  { %v691_v6 = vpop.f32.mrf.mxu2  ;;  %v9581_v63 = vpop.f32.mrf.mxu3  ;;  %v2991_v50 = vsub.f32 %v9572_v3, %v14640_v30 }
 0x26f   :  { %v9575_v25 = vadd.f32 %v691_v6, %v8905_v61  ;;  %v9577_v44 = vpop.xlane.xlu1 %906  ;;  %1974 = vmatmul.f32.gmra.mxu3 %v1458_v37  ;;  %v1459_v56 = vand.u32 4294901760, %v1458_v37  ;;  %15280 = vst [vmem:[#allocation76_spill] sm:$0xff] %v9581_v63 }
 0x270   :  { %15279 = vst [vmem:[#allocation75_spill] sm:$0xff] %v9577_v44  ;;  %v994_v8 = vsub.f32 %v9100_v28, %v9577_v44  ;;  %v2992_v28 = vand.u32 4294901760, %v2991_v50 }
 0x271   :  { %15278 = vst [vmem:[#allocation74_spill] sm:$0xff] %v9575_v25  ;;  %2173 = vmatmul.f32.gmra.mxu0 %v1459_v56  ;;  %v9588_v39 = vsel %vm14824_vm12, %v9575_v25, -1e+30  ;;  %v1460_v6 = vsub.f32 %v1458_v37, %v1459_v56 }
 0x272   :  { %v9593_v17 = vpop.eup %8189  ;;  %v1072_v32 = vmul.f32 1.442695, %v994_v8  ;;  %v950_v38 = vmax.f32 %v9588_v39, -1e+30  ;;  %2993 = vmatpush.msra.mxu0 %v2992_v28 }
 0x273   :  { %15281 = vst [vmem:[#allocation77_spill] sm:$0xff] %v9593_v17  ;;  %v1461_v63 = vand.u32 4294901760, %v1460_v6  ;;  %v9597_v42 = vand.u32 4294901760, %v9593_v17 }
 0x274   :  { %8191 = vpow2.f32 %v1072_v32  ;;  %951 = vmax.xlane.f32.xlu1 %v950_v38  ;;  %v15285_v32 = vmov 0 }
 0x275   :  { %15282 = vst [vmem:[#allocation78_spill] sm:$0xff] %v9597_v42  ;;  %1462 = vmatmul.f32.gmra.mxu1 %v1461_v63  ;;  %1795 = vmatmul.f32.gmra.mxu2 %v9597_v42  ;;  %v1466_v37 = vsub.f32 %v9593_v17, %v9597_v42  ;;  %v15286_v32 = vsel %vm9610_vm13, 4294967295, %v15285_v32 }
 0x276   :  { %v693_v56 = vpop.f32.mrf.mxu2  ;;  %15287 = vst [vmem:[#allocation81_spill] sm:$0xff] %v15286_v32 }
 0x277   :  { %v9606_v8 = vadd.f32 %v693_v56, %v8905_v61  ;;  %v9608_v50 = vpop.xlane.xlu2 %909  ;;  %1979 = vmatmul.f32.gmra.mxu3 %v1466_v37  ;;  %v1467_v38 = vand.u32 4294901760, %v1466_v37  ;;  %v9629_v56 = vpop.f32.mrf.mxu3 }
 0x278   :  { %15284 = vst [vmem:[#allocation80_spill] sm:$0xff] %v9608_v50  ;;  %v996_v63 = vsub.f32 %v9133_v26, %v9608_v50  ;;  %v8002_v50 = vsel %vm9543_vm0, 1.0, %v15190_v31 }
 0x279   :  { %15283 = vst [vmem:[#allocation79_spill] sm:$0xff] %v9606_v8  ;;  %2179 = vmatmul.f32.gmra.mxu0 %v1467_v38  ;;  %v9625_v59 = vsel %vm14824_vm12, %v9606_v8, -1e+30  ;;  %v1468_v6 = vsub.f32 %v1466_v37, %v1467_v38  ;;  %v9641_v38 = vsub.f32 %v8002_v50, %v8002_v50 }
 0x27a   :  { %v9627_v28 = vpop.eup %8191  ;;  %15289 = vst [vmem:[#allocation83_spill] sm:$0xff] %v9629_v56  ;;  %v1076_v26 = vmul.f32 1.442695, %v996_v63  ;;  %v953_v30 = vmax.f32 %v9625_v59, -1e+30 }
 0x27b   :  { %15288 = vst [vmem:[#allocation82_spill] sm:$0xff] %v9627_v28  ;;  %v1469_v17 = vand.u32 4294901760, %v1468_v6  ;;  %v9633_v42 = vand.u32 4294901760, %v9627_v28  ;;  %3212 = vmatpush.msrb.mxu1 %v9641_v38 }
 0x27c   :  { %8193 = vpow2.f32 %v1076_v26  ;;  %954 = vmax.xlane.f32.xlu2 %v953_v30  ;;  %15291 = vst [vmem:[#allocation85_spill] sm:$0xff] %v9641_v38  ;;  %v14655_v26 = vand.u32 4294901760, %v9641_v38 }
 0x27d   :  { %15290 = vst [vmem:[#allocation84_spill] sm:$0xff] %v9633_v42  ;;  %1470 = vmatmul.f32.gmra.mxu1 %v1469_v17  ;;  %1799 = vmatmul.f32.gmra.mxu2 %v9633_v42  ;;  %v1474_v37 = vsub.f32 %v9627_v28, %v9633_v42 }
 0x27e   :  { %v696_v63 = vpop.f32.mrf.mxu2 }
 0x27f   :  { %v9644_v6 = vadd.f32 %v696_v63, %v8905_v61  ;;  %1984 = vmatmul.f32.gmra.mxu3 %v1474_v37  ;;  %v9646_v56 = vpop.xlane.xlu0 %912  ;;  %v1475_v30 = vand.u32 4294901760, %v1474_v37  ;;  %v2997_v63 = vsub.f32 %v9641_v38, %v14655_v26  ;;  %v15328_v38 = vld [vmem:[#allocation17_spill] sm:$0xff] }
 0x280   :  { %15293 = vst [vmem:[#allocation87_spill] sm:$0xff] %v9646_v56  ;;  %v998_v17 = vsub.f32 %v9149_v41, %v9646_v56  ;;  %v9666_v56 = vpop.f32.mrf.mxu3 }
 0x281   :  { %15292 = vst [vmem:[#allocation86_spill] sm:$0xff] %v9644_v6  ;;  %2185 = vmatmul.f32.gmra.mxu0 %v1475_v30  ;;  %v9655_v50 = vsel %vm14824_vm12, %v9644_v6, -1e+30  ;;  %v1476_v28 = vsub.f32 %v1474_v37, %v1475_v30  ;;  %v2998_v41 = vand.u32 4294901760, %v2997_v63  ;;  %v1199_v37 = vadd.s32 208, %v8623_v57 }
 0x282   :  { %v9660_v42 = vpop.eup %8193  ;;  %v1080_v44 = vmul.f32 1.442695, %v998_v17  ;;  %v956_v24 = vmax.f32 %v9655_v50, -1e+30  ;;  %15296 = vst [vmem:[#allocation90_spill] sm:$0xff] %v9666_v56 }
 0x283   :  { %15294 = vst [vmem:[#allocation88_spill] sm:$0xff] %v9660_v42  ;;  %v1477_v29 = vand.u32 4294901760, %v1476_v28  ;;  %v9664_v0 = vand.u32 4294901760, %v9660_v42  ;;  %2999 = vmatpush.msra.mxu0 %v2998_v41  ;;  %vm1236_vm1 = vcmp.ge.s32.totalorder %v1199_v37, %v8638_v5  ;;  %vm1268_vm5 = vcmp.lt.s32.totalorder %v1199_v37, %v8630_v2 }
 0x284   :  { %8195 = vpow2.f32 %v1080_v44  ;;  %957 = vmax.xlane.f32.xlu0 %v956_v24  ;;  %vm9679_vm9 = vmand %vm1236_vm1, %vm1268_vm5  ;;  %v15299_v44 = vmov 0 }
 0x285   :  { %15295 = vst [vmem:[#allocation89_spill] sm:$0xff] %v9664_v0  ;;  %1478 = vmatmul.f32.gmra.mxu1 %v1477_v29  ;;  %1803 = vmatmul.f32.gmra.mxu2 %v9664_v0  ;;  %v1482_v30 = vsub.f32 %v9660_v42, %v9664_v0  ;;  %v15300_v44 = vsel %vm9679_vm9, 4294967295, %v15299_v44  ;;  %v8001_v0 = vsel %vm9610_vm13, 1.0, %v15190_v31  ;;  %v8000_v32 = vsel %vm9679_vm9, 1.0, %v15190_v31 }
 0x286   :  { %v698_v17 = vpop.f32.mrf.mxu2  ;;  %15301 = vst [vmem:[#allocation93_spill] sm:$0xff] %v15300_v44  ;;  %8062 = vmatpush.msk.msra.mxu3 %vm9679_vm9, %v15191_v21  ;;  %8078 = vmatpush.msk.msrb.mxu2 %vm9679_vm9, %v15191_v21 }
 0x287   :  { %v9675_v28 = vadd.f32 %v698_v17, %v8905_v61  ;;  %v9677_v63 = vpop.xlane.xlu1 %915  ;;  %1989 = vmatmul.f32.gmra.mxu3 %v1482_v30  ;;  %v1483_v24 = vand.u32 4294901760, %v1482_v30 }
 0x288   :  { %15298 = vst [vmem:[#allocation92_spill] sm:$0xff] %v9677_v63  ;;  %v1000_v29 = vsub.f32 %v9182_v19, %v9677_v63 }
 0x289   :  { %15297 = vst [vmem:[#allocation91_spill] sm:$0xff] %v9675_v28  ;;  %2191 = vmatmul.f32.gmra.mxu0 %v1483_v24  ;;  %v9694_v41 = vsel %vm14824_vm12, %v9675_v28, -1e+30  ;;  %v1484_v37 = vsub.f32 %v1482_v30, %v1483_v24  ;;  %v9708_v24 = vsub.f32 %v8001_v0, %v8001_v0 }
 0x28a   :  { %v9696_v17 = vpop.eup %8195  ;;  %v1084_v26 = vmul.f32 1.442695, %v1000_v29  ;;  %v959_v19 = vmax.f32 %v9694_v41, -1e+30  ;;  %v9710_v29 = vpop.f32.mrf.mxu3 }
 0x28b   :  { %15302 = vst [vmem:[#allocation94_spill] sm:$0xff] %v9696_v17  ;;  %v1485_v56 = vand.u32 4294901760, %v1484_v37  ;;  %v9700_v42 = vand.u32 4294901760, %v9696_v17  ;;  %v14669_v12 = vand.u32 4294901760, %v9708_v24  ;;  %3215 = vmatpush.msrb.mxu1 %v9708_v24 }
 0x28c   :  { %8197 = vpow2.f32 %v1084_v26  ;;  %960 = vmax.xlane.f32.xlu1 %v959_v19  ;;  %15304 = vst [vmem:[#allocation96_spill] sm:$0xff] %v9708_v24 }
 0x28d   :  { %15303 = vst [vmem:[#allocation95_spill] sm:$0xff] %v9700_v42  ;;  %1486 = vmatmul.f32.gmra.mxu1 %v1485_v56  ;;  %1807 = vmatmul.f32.gmra.mxu2 %v9700_v42  ;;  %v1490_v30 = vsub.f32 %v9696_v17, %v9700_v42 }
 0x28e   :  { %15305 = vst [vmem:[#allocation97_spill] sm:$0xff] %v9710_v29  ;;  %v701_v37 = vpop.f32.mrf.mxu2 }
 0x28f   :  { %v9713_v63 = vadd.f32 %v701_v37, %v8905_v61  ;;  %v9715_v26 = vpop.xlane.xlu2 %918  ;;  %1994 = vmatmul.f32.gmra.mxu3 %v1490_v30  ;;  %v1491_v19 = vand.u32 4294901760, %v1490_v30  ;;  %v3003_v37 = vsub.f32 %v9708_v24, %v14669_v12 }
 0x290   :  { %15307 = vst [vmem:[#allocation99_spill] sm:$0xff] %v9715_v26  ;;  %v1002_v56 = vsub.f32 %v9198_v53, %v9715_v26  ;;  %v1198_v26 = vadd.s32 200, %v8623_v57 }
 0x291   :  { %15306 = vst [vmem:[#allocation98_spill] sm:$0xff] %v9713_v63  ;;  %2197 = vmatmul.f32.gmra.mxu0 %v1491_v19  ;;  %v9724_v0 = vsel %vm14824_vm12, %v9713_v63, -1e+30  ;;  %v1492_v29 = vsub.f32 %v1490_v30, %v1491_v19  ;;  %v3004_v53 = vand.u32 4294901760, %v3003_v37 }
 0x292   :  { %15308 = vst [vmem:[#allocation100_spill] sm:$0xff] %v9724_v0  ;;  %v9729_v17 = vpop.eup %8197  ;;  %v1088_v42 = vmul.f32 1.442695, %v1002_v56  ;;  %v962_v49 = vmax.f32 %v9724_v0, -1e+30  ;;  %vm1235_vm14 = vcmp.ge.s32.totalorder %v1198_v26, %v8638_v5  ;;  %vm1267_vm11 = vcmp.lt.s32.totalorder %v1198_v26, %v8630_v2  ;;  %v9750_v56 = vpop.f32.mrf.mxu3 }
 0x293   :  { %15309 = vst [vmem:[#allocation101_spill] sm:$0xff] %v9729_v17  ;;  %v1493_v15 = vand.u32 4294901760, %v1492_v29  ;;  %v9733_v20 = vand.u32 4294901760, %v9729_v17  ;;  %3005 = vmatpush.msra.mxu0 %v3004_v53  ;;  %vm9746_vm6 = vmand %vm1235_vm14, %vm1267_vm11 }
 0x294   :  { %8199 = vpow2.f32 %v1088_v42  ;;  %963 = vmax.xlane.f32.xlu2 %v962_v49  ;;  %15316 = vst [vmem:[#allocation106_spill] sm:$0xff] %v9750_v56  ;;  %8063 = vmatpush.msk.msra.mxu3 %vm9746_vm6, %v15191_v21 }
 0x295   :  { %15310 = vst [vmem:[#allocation102_spill] sm:$0xff] %v9733_v20  ;;  %1494 = vmatmul.f32.gmra.mxu1 %v1493_v15  ;;  %1811 = vmatmul.f32.gmra.mxu2 %v9733_v20  ;;  %v1498_v30 = vsub.f32 %v9729_v17, %v9733_v20  ;;  %v15313_v15 = vmov 0  ;;  %v15320_v20 = vld [vmem:[#allocation5_spill] sm:$0xff] }
 0x296   :  { %v703_v19 = vpop.f32.mrf.mxu2  ;;  %v15314_v15 = vsel %vm9746_vm6, 4294967295, %v15313_v15  ;;  %8079 = vmatpush.msk.msrb.mxu2 %vm9746_vm6, %v15191_v21 }
 0x297   :  { %v9742_v29 = vadd.f32 %v703_v19, %v8905_v61  ;;  %1999 = vmatmul.f32.gmra.mxu3 %v1498_v30  ;;  %v9744_v42 = vpop.xlane.xlu0 %921  ;;  %v1499_v49 = vand.u32 4294901760, %v1498_v30  ;;  %15315 = vst [vmem:[#allocation105_spill] sm:$0xff] %v15314_v15  ;;  %v15428_v15 = vmov 0 }
 0x298   :  { %15312 = vst [vmem:[#allocation104_spill] sm:$0xff] %v9744_v42  ;;  %v1004_v37 = vsub.f32 %v9236_v33, %v9744_v42  ;;  %v6851_v42 = vmax.f32 %v15320_v20, %v8979_v1 }
 0x299   :  { %15311 = vst [vmem:[#allocation103_spill] sm:$0xff] %v9742_v29  ;;  %2203 = vmatmul.f32.gmra.mxu0 %v1499_v49  ;;  %v9763_v26 = vsel %vm14824_vm12, %v9742_v29, -1e+30  ;;  %v1500_v53 = vsub.f32 %v1498_v30, %v1499_v49  ;;  %v15322_v30 = vld [vmem:[#allocation7_spill] sm:$0xff] }
 0x29a   :  { %15317 = vst [vmem:[#allocation107_spill] sm:$0xff] %v9763_v26  ;;  %v9765_v19 = vpop.eup %8199  ;;  %v1092_v12 = vmul.f32 1.442695, %v1004_v37  ;;  %v965_v33 = vmax.f32 %v9763_v26, -1e+30  ;;  %v6852_v49 = vmax.f32 %v15322_v30, %v15321_v9  ;;  %v6853_v24 = vmax.f32 %v6851_v42, %v15324_v40  ;;  %v15329_v42 = vld [vmem:[#allocation19_spill] sm:$0xff]  ;;  %v9807_v36 = vpop.f32.mrf.mxu3 }
 0x29b   :  { %15318 = vst [vmem:[#allocation108_spill] sm:$0xff] %v9765_v19  ;;  %v1501_v56 = vand.u32 4294901760, %v1500_v53  ;;  %v9769_v17 = vand.u32 4294901760, %v9765_v19  ;;  %v9781_v53 = vsub.f32 %v8000_v32, %v8000_v32 }
 0x29c   :  { %8201 = vpow2.f32 %v1092_v12  ;;  %966 = vmax.xlane.f32.xlu0 %v965_v33  ;;  %v15325_v12 = vld [vmem:[#allocation15_spill] sm:$0xff]  ;;  %15333 = vst [vmem:[#allocation115_spill] sm:$0xff] %v9807_v36 }
 0x29d   :  { %15319 = vst [vmem:[#allocation109_spill] sm:$0xff] %v9769_v17  ;;  %1502 = vmatmul.f32.gmra.mxu1 %v1501_v56  ;;  %1815 = vmatmul.f32.gmra.mxu2 %v9769_v17  ;;  %v1506_v37 = vsub.f32 %v9765_v19, %v9769_v17  ;;  %v6854_v33 = vmax.f32 %v6852_v49, %v15325_v12  ;;  %v14701_v56 = vand.u32 4294901760, %v9781_v53 }
 0x29e   :  { %15323 = vst [vmem:[#allocation110_spill] sm:$0xff] %v9781_v53  ;;  %v706_v22 = vpop.f32.mrf.mxu2  ;;  %3218 = vmatpush.msrb.mxu1 %v9781_v53  ;;  %v6855_v19 = vmax.f32 %v6853_v24, %v15328_v38 }
 0x29f   :  { %v9786_v48 = vadd.f32 %v706_v22, %v8905_v61  ;;  %v9788_v44 = vpop.xlane.xlu1 %924  ;;  %2004 = vmatmul.f32.gmra.mxu3 %v1506_v37  ;;  %v1507_v54 = vand.u32 4294901760, %v1506_v37  ;;  %v6856_v17 = vmax.f32 %v6854_v33, %v15329_v42  ;;  %v3009_v4 = vsub.f32 %v9781_v53, %v14701_v56  ;;  %v15337_v56 = vld [vmem:[#allocation27_spill] sm:$0xff] }
 0x2a0   :  { %15327 = vst [vmem:[#allocation112_spill] sm:$0xff] %v9788_v44  ;;  %v1006_v32 = vsub.f32 %v9266_v43, %v9788_v44  ;;  %v6857_v24 = vmax.f32 %v6855_v19, %v15332_v23  ;;  %v15334_v44 = vld [vmem:[#allocation23_spill] sm:$0xff] }
 0x2a1   :  { %15326 = vst [vmem:[#allocation111_spill] sm:$0xff] %v9786_v48  ;;  %2209 = vmatmul.f32.gmra.mxu0 %v1507_v54  ;;  %v9799_v22 = vsel %vm14824_vm12, %v9786_v48, -1e+30  ;;  %v1508_v49 = vsub.f32 %v1506_v37, %v1507_v54  ;;  %v6858_v62 = vmax.f32 %v6856_v17, %v15334_v44  ;;  %v3010_v54 = vand.u32 4294901760, %v3009_v4  ;;  %v15336_v37 = vld [vmem:[#allocation25_spill] sm:$0xff] }
 0x2a2   :  { %15330 = vst [vmem:[#allocation113_spill] sm:$0xff] %v9799_v22  ;;  %v9804_v3 = vpop.eup %8201  ;;  %v1096_v43 = vmul.f32 1.442695, %v1006_v32  ;;  %v968_v33 = vmax.f32 %v9799_v22, -1e+30  ;;  %v6859_v21 = vmax.f32 %v6857_v24, %v15336_v37  ;;  %v15338_v32 = vld [vmem:[#allocation29_spill] sm:$0xff] }
 0x2a3   :  { %15331 = vst [vmem:[#allocation114_spill] sm:$0xff] %v9804_v3  ;;  %v1509_v26 = vand.u32 4294901760, %v1508_v49  ;;  %v9812_v0 = vand.u32 4294901760, %v9804_v3  ;;  %v6860_v53 = vmax.f32 %v6858_v62, %v15337_v56  ;;  %3011 = vmatpush.msra.mxu0 %v3010_v54 }
 0x2a4   :  { %8203 = vpow2.f32 %v1096_v43  ;;  %969 = vmax.xlane.f32.xlu1 %v968_v33  ;;  %v6861_v36 = vmax.f32 %v6859_v21, %v15338_v32 }
 0x2a5   :  { %15335 = vst [vmem:[#allocation116_spill] sm:$0xff] %v9812_v0  ;;  %1510 = vmatmul.f32.gmra.mxu1 %v1509_v26  ;;  %1819 = vmatmul.f32.gmra.mxu2 %v9812_v0  ;;  %v1514_v19 = vsub.f32 %v9804_v3, %v9812_v0  ;;  %v6862_v49 = vmax.f32 %v6860_v53, %v9256_v18 }
 0x2a6   :  { %v708_v17 = vpop.f32.mrf.mxu2  ;;  %v6863_v62 = vmax.f32 %v6861_v36, %v9287_v46 }
 0x2a7   :  { %v9822_v4 = vadd.f32 %v708_v17, %v8905_v61  ;;  %v9824_v24 = vpop.xlane.xlu2 %927  ;;  %2009 = vmatmul.f32.gmra.mxu3 %v1514_v19  ;;  %v1515_v43 = vand.u32 4294901760, %v1514_v19  ;;  %v6864_v33 = vmax.f32 %v6862_v49, %v9321_v35 }
 0x2a8   :  { %15340 = vst [vmem:[#allocation118_spill] sm:$0xff] %v9824_v24  ;;  %v1008_v26 = vsub.f32 %v9297_v11, %v9824_v24  ;;  %v6865_v17 = vmax.f32 %v6863_v62, %v9363_v55  ;;  %v9844_v24 = vpop.f32.mrf.mxu3 }
 0x2a9   :  { %15339 = vst [vmem:[#allocation117_spill] sm:$0xff] %v9822_v4  ;;  %2215 = vmatmul.f32.gmra.mxu0 %v1515_v43  ;;  %v9833_v21 = vsel %vm14824_vm12, %v9822_v4, -1e+30  ;;  %v1516_v53 = vsub.f32 %v1514_v19, %v1515_v43  ;;  %v6866_v36 = vmax.f32 %v6864_v33, %v9401_v60 }
 0x2aa   :  { %15341 = vst [vmem:[#allocation119_spill] sm:$0xff] %v9833_v21  ;;  %v9835_v54 = vpop.eup %8203  ;;  %v1100_v3 = vmul.f32 1.442695, %v1008_v26  ;;  %v971_v0 = vmax.f32 %v9833_v21, -1e+30  ;;  %v6867_v49 = vmax.f32 %v6865_v17, %v9439_v7 }
 0x2ab   :  { %15342 = vst [vmem:[#allocation120_spill] sm:$0xff] %v9835_v54  ;;  %v1517_v22 = vand.u32 4294901760, %v1516_v53  ;;  %v9841_v11 = vand.u32 4294901760, %v9835_v54  ;;  %v6868_v19 = vmax.f32 %v6866_v36, %v9470_v14 }
 0x2ac   :  { %15344 = vst [vmem:[#allocation122_spill] sm:$0xff] %v9844_v24  ;;  %8205 = vpow2.f32 %v1100_v3  ;;  %972 = vmax.xlane.f32.xlu2 %v971_v0  ;;  %v6869_v62 = vmax.f32 %v6867_v49, %v9508_v51 }
 0x2ad   :  { %15343 = vst [vmem:[#allocation121_spill] sm:$0xff] %v9841_v11  ;;  %1518 = vmatmul.f32.gmra.mxu1 %v1517_v22  ;;  %1823 = vmatmul.f32.gmra.mxu2 %v9841_v11  ;;  %v1522_v43 = vsub.f32 %v9835_v54, %v9841_v11  ;;  %v6870_v33 = vmax.f32 %v6868_v19, %v9539_v47 }
 0x2ae   :  { %v711_v26 = vpop.f32.mrf.mxu2  ;;  %v6871_v0 = vmax.f32 %v6869_v62, %v9575_v25 }
 0x2af   :  { %v9853_v53 = vadd.f32 %v711_v26, %v8905_v61  ;;  %2014 = vmatmul.f32.gmra.mxu3 %v1522_v43  ;;  %v9855_v17 = vpop.xlane.xlu0 %930  ;;  %v1523_v3 = vand.u32 4294901760, %v1522_v43  ;;  %v6872_v36 = vmax.f32 %v6870_v33, %v9606_v8 }
 0x2b0   :  { %15346 = vst [vmem:[#allocation124_spill] sm:$0xff] %v9855_v17  ;;  %v1010_v22 = vsub.f32 %v9342_v34, %v9855_v17  ;;  %v6873_v24 = vmax.f32 %v6871_v0, %v9644_v6 }
 0x2b1   :  { %15345 = vst [vmem:[#allocation123_spill] sm:$0xff] %v9853_v53  ;;  %2221 = vmatmul.f32.gmra.mxu0 %v1523_v3  ;;  %v9864_v49 = vsel %vm14824_vm12, %v9853_v53, -1e+30  ;;  %v1524_v19 = vsub.f32 %v1522_v43, %v1523_v3  ;;  %v6874_v62 = vmax.f32 %v6872_v36, %v9675_v28  ;;  %v9877_v43 = vpop.f32.mrf.mxu3 }
 0x2b2   :  { %15347 = vst [vmem:[#allocation125_spill] sm:$0xff] %v9864_v49  ;;  %v9866_v26 = vpop.eup %8205  ;;  %v974_v54 = vmax.f32 %v9864_v49, -1e+30  ;;  %v1104_v11 = vmul.f32 1.442695, %v1010_v22  ;;  %v6875_v33 = vmax.f32 %v6873_v24, %v9713_v63 }
 0x2b3   :  { %15348 = vst [vmem:[#allocation126_spill] sm:$0xff] %v9866_v26  ;;  %v1525_v21 = vand.u32 4294901760, %v1524_v19  ;;  %v9872_v34 = vand.u32 4294901760, %v9866_v26  ;;  %v6876_v17 = vmax.f32 %v6874_v62, %v9742_v29 }
 0x2b4   :  { %975 = vmax.xlane.f32.xlu0 %v974_v54  ;;  %15350 = vst [vmem:[#allocation128_spill] sm:$0xff] %v9877_v43  ;;  %v6877_v0 = vmax.f32 %v6875_v33, %v9786_v48  ;;  %8207 = vpow2.f32 %v1104_v11 }
 0x2b5   :  { %15349 = vst [vmem:[#allocation127_spill] sm:$0xff] %v9872_v34  ;;  %1526 = vmatmul.f32.gmra.mxu1 %v1525_v21  ;;  %1827 = vmatmul.f32.gmra.mxu2 %v9872_v34  ;;  %v6878_v36 = vmax.f32 %v6876_v17, %v9822_v4  ;;  %v1530_v21 = vsub.f32 %v9866_v26, %v9872_v34 }
 0x2b6   :  { %v713_v3 = vpop.f32.mrf.mxu2  ;;  %v6879_v54 = vmax.f32 %v6877_v0, %v9853_v53 }
 0x2b7   :  { %v9882_v22 = vadd.f32 %v713_v3, %v8905_v61  ;;  %v9888_v62 = vpop.xlane.xlu1 %933  ;;  %2019 = vmatmul.f32.gmra.mxu3 %v1530_v21  ;;  %v1531_v43 = vand.u32 4294901760, %v1530_v21 }
 0x2b8   :  { %15352 = vst [vmem:[#allocation130_spill] sm:$0xff] %v9888_v62  ;;  %v1012_v11 = vsub.f32 %v9375_v27, %v9888_v62 }
 0x2b9   :  { %15351 = vst [vmem:[#allocation129_spill] sm:$0xff] %v9882_v22  ;;  %v6880_v24 = vmax.f32 %v6878_v36, %v9882_v22  ;;  %2227 = vmatmul.f32.gmra.mxu0 %v1531_v43  ;;  %v9897_v61 = vsel %vm14824_vm12, %v9882_v22, -1e+30  ;;  %v1532_v17 = vsub.f32 %v1530_v21, %v1531_v43 }
 0x2ba   :  { %v9890_v49 = vpop.eup %8207  ;;  %v1108_v0 = vmul.f32 1.442695, %v1012_v11  ;;  %v977_v36 = vmax.f32 %v9897_v61, -1e+30 }
 0x2bb   :  { %v6881_v19 = vmax.f32 %v6879_v54, %v6880_v24  ;;  %15353 = vst [vmem:[#allocation131_spill] sm:$0xff] %v9890_v49  ;;  %v9900_v54 = vpop.f32.mrf.mxu3  ;;  %v1533_v24 = vand.u32 4294901760, %v1532_v17  ;;  %v9903_v26 = vand.u32 4294901760, %v9890_v49 }
 0x2bc   :  { %15354 = vst [vmem:[#allocation132_spill] sm:$0xff] %v9900_v54  ;;  %8209 = vpow2.f32 %v1108_v0  ;;  %978 = vmax.xlane.f32.xlu1 %v977_v36 }
 0x2bd   :  { %v6882_v33 = vrot.slane %v6881_v19, 4  ;;  %15355 = vst [vmem:[#allocation133_spill] sm:$0xff] %v9903_v26  ;;  %1534 = vmatmul.f32.gmra.mxu1 %v1533_v24  ;;  %1831 = vmatmul.f32.gmra.mxu2 %v9903_v26  ;;  %v1538_v27 = vsub.f32 %v9890_v49, %v9903_v26 }
 0x2bf   :  { %v6883_v3 = vmax.f32 %v6881_v19, %v6882_v33  ;;  %2024 = vmatmul.f32.gmra.mxu3 %v1538_v27  ;;  %v1539_v21 = vand.u32 4294901760, %v1538_v27  ;;  %v9917_v24 = vpop.xlane.xlu2 %936 }
 0x2c0   :  { %15359 = vst [vmem:[#allocation137_spill] sm:$0xff] %v9917_v24 }
 0x2c1   :  { %v6884_v34 = vrot.slane %v6883_v3, 2  ;;  %2233 = vmatmul.f32.gmra.mxu0 %v1539_v21  ;;  %v1540_v33 = vsub.f32 %v1538_v27, %v1539_v21  ;;  %v1014_v21 = vsub.f32 %v9420_v13, %v9917_v24 }
 0x2c2   :  { %v9908_v11 = vpop.eup %8209 }
 0x2c3   :  { %v6885_v43 = vmax.f32 %v6883_v3, %v6884_v34  ;;  %15356 = vst [vmem:[#allocation134_spill] sm:$0xff] %v9908_v11  ;;  %v1541_v17 = vand.u32 4294901760, %v1540_v33  ;;  %v9911_v54 = vand.u32 4294901760, %v9908_v11  ;;  %v9915_v36 = vpop.f32.mrf.mxu3  ;;  %v1112_v49 = vmul.f32 1.442695, %v1014_v21 }
 0x2c4   :  { %15358 = vst [vmem:[#allocation136_spill] sm:$0xff] %v9915_v36 }
 0x2c5   :  { %v6886_v19 = vrot.slane %v6885_v43, 1  ;;  %15357 = vst [vmem:[#allocation135_spill] sm:$0xff] %v9911_v54  ;;  %1542 = vmatmul.f32.gmra.mxu1 %v1541_v17  ;;  %1835 = vmatmul.f32.gmra.mxu2 %v9911_v54 }
 0x2c6   :  { %v9920_v34 = vpop.f32.mrf.mxu0 }
 0x2c7   :  { %v9913_v0 = vmax.f32 %v6885_v43, %v6886_v19  ;;  %15360 = vst [vmem:[#allocation138_spill] sm:$0xff] %v9920_v34 }
 0x2c8   :  { %v9932_v33 = vpop.f32.mrf.mxu2 }
 0x2c9   :  { %v6925_v3 = vsub.f32 %v15320_v20, %v9913_v0  ;;  %v6927_v27 = vsub.f32 %v15322_v30, %v9913_v0  ;;  %v6929_v43 = vsub.f32 %v8979_v1, %v9913_v0  ;;  %v6931_v19 = vsub.f32 %v15321_v9, %v9913_v0  ;;  %15361 = vst [vmem:[#allocation139_spill] sm:$0xff] %v9932_v33 }
 0x2ca   :  { %v6933_v20 = vsub.f32 %v15324_v40, %v9913_v0  ;;  %v9936_v26 = vpop.f32.mrf.mxu1  ;;  %v6935_v13 = vsub.f32 %v15325_v12, %v9913_v0 }
 0x2cb   :  { %v6989_v17 = vmul.f32 1.442695, %v6925_v3  ;;  %v6993_v36 = vmul.f32 1.442695, %v6927_v27  ;;  %v6997_v34 = vmul.f32 1.442695, %v6929_v43  ;;  %v9938_v30 = vpop.f32.mrf.mxu3  ;;  %v6937_v3 = vsub.f32 %v15328_v38, %v9913_v0 }
 0x2cc   :  { %15362 = vst [vmem:[#allocation140_spill] sm:$0xff] %v9936_v26  ;;  %v7001_v1 = vmul.f32 1.442695, %v6931_v19  ;;  %v7005_v27 = vmul.f32 1.442695, %v6933_v20  ;;  %v6939_v43 = vsub.f32 %v15329_v42, %v9913_v0  ;;  %v6943_v42 = vsub.f32 %v15334_v44, %v9913_v0 }
 0x2cd   :  { %15363 = vst [vmem:[#allocation141_spill] sm:$0xff] %v9938_v30  ;;  %8211 = vpow2.f32 %v6989_v17  ;;  %v7009_v40 = vmul.f32 1.442695, %v6935_v13 }
 0x2ce   :  { %8213 = vpow2.f32 %v6993_v36  ;;  %v9944_v21 = vpop.f32.mrf.mxu0  ;;  %v7013_v36 = vmul.f32 1.442695, %v6937_v3  ;;  %v7017_v38 = vmul.f32 1.442695, %v6939_v43  ;;  %v6945_v3 = vsub.f32 %v15336_v37, %v9913_v0 }
 0x2cf   :  { %8215 = vpow2.f32 %v1112_v49  ;;  %15364 = vst [vmem:[#allocation142_spill] sm:$0xff] %v9944_v21  ;;  %v6941_v49 = vsub.f32 %v15332_v23, %v9913_v0  ;;  %v15519_v23 = vld [vmem:[#allocation61_spill] sm:$0xff] }
 0x2d0   :  { %8217 = vpow2.f32 %v6997_v34  ;;  %v9948_v9 = vpop.f32.mrf.mxu2  ;;  %v7029_v24 = vmul.f32 1.442695, %v6945_v3 }
 0x2d1   :  { %8219 = vpow2.f32 %v7001_v1  ;;  %15365 = vst [vmem:[#allocation143_spill] sm:$0xff] %v9948_v9  ;;  %v7021_v9 = vmul.f32 1.442695, %v6941_v49 }
 0x2d2   :  { %8221 = vpow2.f32 %v7005_v27  ;;  %v9956_v34 = vpop.f32.mrf.mxu1  ;;  %v1546_v27 = vsub.f32 %v9908_v11, %v9911_v54  ;;  %v6947_v11 = vsub.f32 %v15337_v56, %v9913_v0 }
 0x2d3   :  { %v9950_v17 = vpop.eup %8211  ;;  %15366 = vst [vmem:[#allocation144_spill] sm:$0xff] %v9956_v34  ;;  %v9958_v20 = vpop.f32.mrf.mxu3  ;;  %8223 = vpow2.f32 %v7009_v40 }
 0x2d4   :  { %v9952_v12 = vpop.eup %8213  ;;  %15367 = vst [vmem:[#allocation145_spill] sm:$0xff] %v9958_v20  ;;  %8225 = vpow2.f32 %v7013_v36  ;;  %2029 = vmatmul.f32.gmra.mxu3 %v1546_v27  ;;  %v1547_v34 = vand.u32 4294901760, %v1546_v27 }
 0x2d5   :  { %v9960_v19 = vpop.eup %8215  ;;  %v7117_v1 = vadd.f32 %v9952_v12, %v9950_v17  ;;  %8227 = vpow2.f32 %v7017_v38 }
 0x2d6   :  { %15368 = vst [vmem:[#allocation146_spill] sm:$0xff] %v9960_v19  ;;  %v9964_v13 = vpop.eup %8217  ;;  %v9976_v30 = vand.u32 4294901760, %v9960_v19  ;;  %v9978_v33 = vpop.f32.mrf.mxu0  ;;  %2239 = vmatmul.f32.gmra.mxu0 %v1547_v34  ;;  %v1548_v54 = vsub.f32 %v1546_v27, %v1547_v34  ;;  %8229 = vpow2.f32 %v7021_v9 }
 0x2d7   :  { %v7118_v21 = vadd.f32 %v9964_v13, %v7117_v1  ;;  %v9973_v20 = vpop.eup %8219  ;;  %15370 = vst [vmem:[#allocation148_spill] sm:$0xff] %v9978_v33  ;;  %v7025_v1 = vmul.f32 1.442695, %v6943_v42 }
 0x2d8   :  { %15369 = vst [vmem:[#allocation147_spill] sm:$0xff] %v9976_v30  ;;  %v9981_v43 = vpop.eup %8221  ;;  %1839 = vmatmul.f32.gmra.mxu2 %v9976_v30  ;;  %v9986_v49 = vpop.f32.mrf.mxu2  ;;  %v1554_v33 = vsub.f32 %v9960_v19, %v9976_v30  ;;  %v1549_v38 = vand.u32 4294901760, %v1548_v54  ;;  %v7033_v19 = vmul.f32 1.442695, %v6947_v11  ;;  %v6953_v54 = vsub.f32 %v9287_v46, %v9913_v0 }
 0x2d9   :  { %v7119_v40 = vadd.f32 %v9973_v20, %v7118_v21  ;;  %15371 = vst [vmem:[#allocation149_spill] sm:$0xff] %v9986_v49  ;;  %v9991_v26 = vpop.eup %8223  ;;  %v6949_v21 = vsub.f32 %v15338_v32, %v9913_v0  ;;  %8231 = vpow2.f32 %v7025_v1  ;;  %v6955_v11 = vsub.f32 %v9321_v35, %v9913_v0 }
 0x2da   :  { %v9995_v42 = vpop.f32.mrf.mxu1  ;;  %v1555_v49 = vand.u32 4294901760, %v1554_v33  ;;  %v10000_v62 = vpop.eup %8225  ;;  %1550 = vmatmul.f32.gmra.mxu1 %v1549_v38  ;;  %8233 = vpow2.f32 %v7029_v24 }
 0x2db   :  { %v7120_v36 = vadd.f32 %v9981_v43, %v7119_v40  ;;  %15372 = vst [vmem:[#allocation150_spill] sm:$0xff] %v9995_v42  ;;  %v9997_v34 = vpop.f32.mrf.mxu3  ;;  %v6951_v40 = vsub.f32 %v9256_v18, %v9913_v0  ;;  %v10005_v3 = vpop.eup %8227  ;;  %8235 = vpow2.f32 %v7033_v19 }
 0x2dc   :  { %15373 = vst [vmem:[#allocation151_spill] sm:$0xff] %v9997_v34  ;;  %v1556_v9 = vsub.f32 %v1554_v33, %v1555_v49  ;;  %v7037_v34 = vmul.f32 1.442695, %v6949_v21  ;;  %2034 = vmatmul.f32.gmra.mxu3 %v1554_v33  ;;  %v10010_v42 = vpop.xlane.xlu0 %939  ;;  %v10014_v1 = vpop.eup %8229  ;;  %v6957_v21 = vsub.f32 %v9363_v55, %v9913_v0 }
 0x2dd   :  { %v7121_v27 = vadd.f32 %v9991_v26, %v7120_v36  ;;  %15374 = vst [vmem:[#allocation152_spill] sm:$0xff] %v10010_v42  ;;  %v7041_v38 = vmul.f32 1.442695, %v6951_v40  ;;  %v1016_v19 = vsub.f32 %v9450_v45, %v10010_v42  ;;  %v10038_v55 = vpop.xlane.xlu2 %945 }
 0x2de   :  { %v10012_v56 = vpop.f32.mrf.mxu0  ;;  %2245 = vmatmul.f32.gmra.mxu0 %v1555_v49  ;;  %v1557_v46 = vand.u32 4294901760, %v1556_v9  ;;  %8237 = vpow2.f32 %v7037_v34  ;;  %15380 = vst [vmem:[#allocation158_spill] sm:$0xff] %v10038_v55 }
 0x2df   :  { %v7122_v30 = vadd.f32 %v10000_v62, %v7121_v27  ;;  %15375 = vst [vmem:[#allocation153_spill] sm:$0xff] %v10012_v56  ;;  %v10018_v27 = vpop.xlane.xlu1 %942  ;;  %v7045_v56 = vmul.f32 1.442695, %v6953_v54  ;;  %8239 = vpow2.f32 %v7041_v38  ;;  %v1116_v42 = vmul.f32 1.442695, %v1016_v19 }
 0x2e0   :  { %15376 = vst [vmem:[#allocation154_spill] sm:$0xff] %v10018_v27  ;;  %v10021_v33 = vpop.f32.mrf.mxu2  ;;  %v1018_v54 = vsub.f32 %v9489_v16, %v10018_v27 }
 0x2e1   :  { %v7123_v36 = vadd.f32 %v10005_v3, %v7122_v30  ;;  %15377 = vst [vmem:[#allocation155_spill] sm:$0xff] %v10021_v33  ;;  %v10023_v30 = vpop.eup %8231  ;;  %v7049_v33 = vmul.f32 1.442695, %v6955_v11  ;;  %8241 = vpow2.f32 %v7045_v56  ;;  %v6965_v56 = vsub.f32 %v9508_v51, %v9913_v0 }
 0x2e2   :  { %v10030_v40 = vpop.f32.mrf.mxu1  ;;  %v10034_v9 = vpop.eup %8233  ;;  %1558 = vmatmul.f32.gmra.mxu1 %v1557_v46  ;;  %v1020_v46 = vsub.f32 %v9519_v10, %v10038_v55  ;;  %v1120_v19 = vmul.f32 1.442695, %v1018_v54  ;;  %v6967_v54 = vsub.f32 %v9539_v47, %v9913_v0 }
 0x2e3   :  { %v7124_v24 = vadd.f32 %v10014_v1, %v7123_v36  ;;  %15378 = vst [vmem:[#allocation156_spill] sm:$0xff] %v10030_v40  ;;  %v10032_v49 = vpop.f32.mrf.mxu3  ;;  %v6959_v36 = vsub.f32 %v9401_v60, %v9913_v0  ;;  %v10043_v45 = vpop.eup %8235  ;;  %8243 = vpow2.f32 %v7049_v33 }
 0x2e4   :  { %15379 = vst [vmem:[#allocation157_spill] sm:$0xff] %v10032_v49  ;;  %v7053_v49 = vmul.f32 1.442695, %v6957_v21  ;;  %v10050_v11 = vpop.xlane.xlu0 %948  ;;  %v10052_v38 = vpop.eup %8237 }
 0x2e5   :  { %v7125_v18 = vadd.f32 %v10023_v30, %v7124_v24  ;;  %v6961_v24 = vsub.f32 %v9439_v7, %v9913_v0  ;;  %15381 = vst [vmem:[#allocation159_spill] sm:$0xff] %v10050_v11  ;;  %v7057_v16 = vmul.f32 1.442695, %v6959_v36  ;;  %v10063_v10 = vpop.eup %8239  ;;  %v1022_v60 = vsub.f32 %v9558_v52, %v10050_v11 }
 0x2e6   :  { %8245 = vpow2.f32 %v7053_v49  ;;  %v1124_v36 = vmul.f32 1.442695, %v1020_v46 }
 0x2e7   :  { %v7126_v34 = vadd.f32 %v10034_v9, %v7125_v18  ;;  %v6963_v18 = vsub.f32 %v9470_v14, %v9913_v0  ;;  %v10056_v27 = vpop.xlane.xlu1 %951  ;;  %v7061_v55 = vmul.f32 1.442695, %v6961_v24  ;;  %8247 = vpow2.f32 %v1116_v42 }
 0x2e8   :  { %15382 = vst [vmem:[#allocation160_spill] sm:$0xff] %v10056_v27  ;;  %v1024_v14 = vsub.f32 %v9588_v39, %v10056_v27  ;;  %v10070_v51 = vpop.f32.mrf.mxu2  ;;  %8249 = vpow2.f32 %v7057_v16  ;;  %v7069_v24 = vmul.f32 1.442695, %v6965_v56  ;;  %v6969_v39 = vsub.f32 %v9575_v25, %v9913_v0 }
 0x2e9   :  { %v7127_v40 = vadd.f32 %v10043_v45, %v7126_v34  ;;  %v10061_v34 = vpop.f32.mrf.mxu0  ;;  %15384 = vst [vmem:[#allocation162_spill] sm:$0xff] %v10070_v51  ;;  %v7065_v49 = vmul.f32 1.442695, %v6963_v18  ;;  %8251 = vpow2.f32 %v1120_v19  ;;  %v6971_v56 = vsub.f32 %v9606_v8, %v9913_v0 }
 0x2ea   :  { %15383 = vst [vmem:[#allocation161_spill] sm:$0xff] %v10061_v34  ;;  %v10077_v52 = vpop.f32.mrf.mxu1  ;;  %8253 = vpow2.f32 %v7061_v55  ;;  %v1132_v16 = vmul.f32 1.442695, %v1024_v14  ;;  %v7073_v19 = vmul.f32 1.442695, %v6967_v54  ;;  %v6973_v55 = vsub.f32 %v9644_v6, %v9913_v0 }
 0x2eb   :  { %v7128_v21 = vadd.f32 %v10052_v38, %v7127_v40  ;;  %v10072_v40 = vpop.eup %8241  ;;  %15385 = vst [vmem:[#allocation163_spill] sm:$0xff] %v10077_v52  ;;  %v10079_v42 = vpop.f32.mrf.mxu3  ;;  %8255 = vpow2.f32 %v1124_v36  ;;  %v6975_v36 = vsub.f32 %v9675_v28, %v9913_v0  ;;  %v6979_v8 = vsub.f32 %v9742_v29, %v9913_v0 }
 0x2ec   :  { %15386 = vst [vmem:[#allocation164_spill] sm:$0xff] %v10079_v42  ;;  %v10081_v46 = vpop.eup %8243  ;;  %8257 = vpow2.f32 %v7065_v49 }
 0x2ed   :  { %v7129_v33 = vadd.f32 %v10063_v10, %v7128_v21  ;;  %v1128_v21 = vmul.f32 1.442695, %v1022_v60  ;;  %v10086_v18 = vpop.eup %8245  ;;  %8259 = vpow2.f32 %v7069_v24  ;;  %v7077_v60 = vmul.f32 1.442695, %v6969_v39 }
 0x2ee   :  { %v7081_v24 = vmul.f32 1.442695, %v6971_v56 }
 0x2ef   :  { %v7130_v34 = vadd.f32 %v10072_v40, %v7129_v33  ;;  %v10090_v33 = vpop.eup %8247  ;;  %8261 = vpow2.f32 %v1128_v21  ;;  %v10115_v27 = vpop.xlane.xlu2 %954 }
 0x2f0   :  { %15387 = vst [vmem:[#allocation165_spill] sm:$0xff] %v10090_v33  ;;  %v10093_v52 = vpop.eup %8249  ;;  %v10098_v14 = vand.u32 4294901760, %v10090_v33  ;;  %8263 = vpow2.f32 %v1132_v16 }
 0x2f1   :  { %v7131_v51 = vadd.f32 %v10081_v46, %v7130_v34  ;;  %15388 = vst [vmem:[#allocation166_spill] sm:$0xff] %v10093_v52  ;;  %v10100_v34 = vpop.eup %8251  ;;  %v10105_v49 = vpop.f32.mrf.mxu0  ;;  %8265 = vpow2.f32 %v7073_v19  ;;  %v7085_v19 = vmul.f32 1.442695, %v6973_v55 }
 0x2f2   :  { %15389 = vst [vmem:[#allocation167_spill] sm:$0xff] %v10098_v14  ;;  %1843 = vmatmul.f32.gmra.mxu2 %v10098_v14  ;;  %v1562_v39 = vsub.f32 %v10090_v33, %v10098_v14  ;;  %v10113_v21 = vand.u32 4294901760, %v10100_v34  ;;  %8267 = vpow2.f32 %v7077_v60  ;;  %v10138_v60 = vpop.f32.mrf.mxu1 }
 0x2f3   :  { %v7132_v42 = vadd.f32 %v10086_v18, %v7131_v51  ;;  %15390 = vst [vmem:[#allocation168_spill] sm:$0xff] %v10100_v34  ;;  %v10107_v51 = vpop.eup %8253  ;;  %v10140_v55 = vpop.f32.mrf.mxu3  ;;  %8269 = vpow2.f32 %v7081_v24  ;;  %v7097_v24 = vmul.f32 1.442695, %v6979_v8 }
 0x2f4   :  { %15391 = vst [vmem:[#allocation169_spill] sm:$0xff] %v10105_v49  ;;  %v10117_v11 = vpop.eup %8255  ;;  %v10122_v49 = vpop.f32.mrf.mxu2  ;;  %2039 = vmatmul.f32.gmra.mxu3 %v1562_v39  ;;  %v1563_v33 = vand.u32 4294901760, %v1562_v39  ;;  %v1570_v14 = vsub.f32 %v10100_v34, %v10113_v21  ;;  %v7089_v34 = vmul.f32 1.442695, %v6975_v36  ;;  %8271 = vpow2.f32 %v7085_v19 }
 0x2f5   :  { %v7133_v54 = vadd.f32 %v10093_v52, %v7132_v42  ;;  %15392 = vst [vmem:[#allocation170_spill] sm:$0xff] %v10113_v21  ;;  %v6977_v42 = vsub.f32 %v9713_v63, %v9913_v0  ;;  %v10124_v56 = vpop.eup %8257 }
 0x2f6   :  { %15393 = vst [vmem:[#allocation171_spill] sm:$0xff] %v10115_v27  ;;  %v10128_v28 = vpop.eup %8259  ;;  %2251 = vmatmul.f32.gmra.mxu0 %v1563_v33  ;;  %v1564_v6 = vsub.f32 %v1562_v39, %v1563_v33  ;;  %v1571_v52 = vand.u32 4294901760, %v1570_v14  ;;  %8273 = vpow2.f32 %v7089_v34  ;;  %v6987_v34 = vsub.f32 %v9882_v22, %v9913_v0 }
 0x2f7   :  { %15394 = vst [vmem:[#allocation172_spill] sm:$0xff] %v10117_v11  ;;  %v7134_v16 = vadd.f32 %v10107_v51, %v7133_v54  ;;  %v10134_v54 = vand.u32 4294901760, %v10117_v11  ;;  %v10142_v25 = vpop.eup %8261 }
 0x2f8   :  { %15395 = vst [vmem:[#allocation173_spill] sm:$0xff] %v10122_v49  ;;  %v1026_v49 = vsub.f32 %v9625_v59, %v10115_v27  ;;  %v10144_v29 = vpop.eup %8263  ;;  %v6983_v59 = vsub.f32 %v9822_v4, %v9913_v0 }
 0x2f9   :  { %15396 = vst [vmem:[#allocation174_spill] sm:$0xff] %v10124_v56  ;;  %v7135_v63 = vadd.f32 %v10124_v56, %v7134_v16  ;;  %v6981_v16 = vsub.f32 %v9786_v48, %v9913_v0  ;;  %v10149_v47 = vpop.eup %8265  ;;  %v1578_v33 = vsub.f32 %v10117_v11, %v10134_v54  ;;  %v10160_v48 = vand.u32 4294901760, %v10142_v25 }
 0x2fa   :  { %15397 = vst [vmem:[#allocation175_spill] sm:$0xff] %v10134_v54  ;;  %v1136_v39 = vmul.f32 1.442695, %v1026_v49  ;;  %v10156_v27 = vpop.eup %8267  ;;  %1847 = vmatmul.f32.gmra.mxu2 %v10113_v21  ;;  %v6985_v49 = vsub.f32 %v9853_v53, %v9913_v0 }
 0x2fb   :  { %15398 = vst [vmem:[#allocation176_spill] sm:$0xff] %v10138_v60  ;;  %v7136_v56 = vadd.f32 %v10128_v28, %v7135_v63  ;;  %v1565_v60 = vand.u32 4294901760, %v1564_v6  ;;  %v1572_v63 = vsub.f32 %v1570_v14, %v1571_v52  ;;  %v10166_v6 = vpop.f32.mrf.mxu0  ;;  %v7101_v19 = vmul.f32 1.442695, %v6981_v16  ;;  %v10190_v16 = vpop.f32.mrf.mxu1 }
 0x2fc   :  { %15399 = vst [vmem:[#allocation177_spill] sm:$0xff] %v10140_v55  ;;  %v7093_v55 = vmul.f32 1.442695, %v6977_v42  ;;  %v10163_v42 = vand.u32 4294901760, %v10144_v29  ;;  %2044 = vmatmul.f32.gmra.mxu3 %v1570_v14  ;;  %v1579_v21 = vand.u32 4294901760, %v1578_v33  ;;  %v10175_v4 = vpop.f32.mrf.mxu2  ;;  %v10181_v53 = vsub.f32 %v10142_v25, %v10160_v48  ;;  %v10187_v14 = vpop.xlane.xlu0 %957 }
 0x2fd   :  { %15400 = vst [vmem:[#allocation178_spill] sm:$0xff] %v10142_v25  ;;  %v7137_v36 = vadd.f32 %v10149_v47, %v7136_v56  ;;  %1566 = vmatmul.f32.gmra.mxu1 %v1565_v60  ;;  %v10168_v56 = vpop.eup %8269  ;;  %v7105_v60 = vmul.f32 1.442695, %v6983_v59  ;;  %v10192_v59 = vpop.f32.mrf.mxu3 }
 0x2fe   :  { %15401 = vst [vmem:[#allocation179_spill] sm:$0xff] %v10144_v29  ;;  %8275 = vpow2.f32 %v7093_v55  ;;  %2257 = vmatmul.f32.gmra.mxu0 %v1571_v52  ;;  %v10185_v0 = vsub.f32 %v10144_v29, %v10163_v42  ;;  %v7109_v52 = vmul.f32 1.442695, %v6985_v49  ;;  %v1028_v29 = vsub.f32 %v9655_v50, %v10187_v14 }
 0x2ff   :  { %15402 = vst [vmem:[#allocation180_spill] sm:$0xff] %v10160_v48  ;;  %v7138_v8 = vadd.f32 %v10156_v27, %v7137_v36  ;;  %8277 = vpow2.f32 %v1136_v39  ;;  %v10177_v36 = vpop.eup %8271 }
 0x300   :  { %15403 = vst [vmem:[#allocation181_spill] sm:$0xff] %v10163_v42  ;;  %8279 = vpow2.f32 %v7097_v24  ;;  %v10194_v39 = vpop.eup %8273  ;;  %v7113_v24 = vmul.f32 1.442695, %v6987_v34  ;;  %v10207_v34 = vpop.xlane.xlu1 %960 }
 0x301   :  { %15404 = vst [vmem:[#allocation182_spill] sm:$0xff] %v10166_v6  ;;  %v7139_v11 = vadd.f32 %v10168_v56, %v7138_v8  ;;  %v1573_v6 = vand.u32 4294901760, %v1572_v63  ;;  %8281 = vpow2.f32 %v7101_v19  ;;  %v1580_v8 = vsub.f32 %v1578_v33, %v1579_v21 }
 0x302   :  { %15405 = vst [vmem:[#allocation183_spill] sm:$0xff] %v10175_v4  ;;  %8283 = vpow2.f32 %v7105_v60  ;;  %1851 = vmatmul.f32.gmra.mxu2 %v10134_v54  ;;  %v1140_v60 = vmul.f32 1.442695, %v1028_v29 }
 0x303   :  { %15406 = vst [vmem:[#allocation184_spill] sm:$0xff] %v10187_v14  ;;  %v7140_v55 = vadd.f32 %v10177_v36, %v7139_v11  ;;  %v1587_v11 = vand.u32 4294901760, %v10181_v53  ;;  %8285 = vpow2.f32 %v7109_v52  ;;  %v1030_v52 = vsub.f32 %v9694_v41, %v10207_v34 }
 0x304   :  { %15407 = vst [vmem:[#allocation185_spill] sm:$0xff] %v10190_v16  ;;  %v10199_v25 = vpop.eup %8275  ;;  %2049 = vmatmul.f32.gmra.mxu3 %v1578_v33  ;;  %8287 = vpow2.f32 %v7113_v24  ;;  %v10230_v24 = vpop.f32.mrf.mxu2 }
 0x305   :  { %15408 = vst [vmem:[#allocation186_spill] sm:$0xff] %v10192_v59  ;;  %v7141_v63 = vadd.f32 %v10194_v39, %v7140_v55  ;;  %1574 = vmatmul.f32.gmra.mxu1 %v1573_v6  ;;  %v10204_v4 = vpop.eup %8277  ;;  %v1581_v6 = vand.u32 4294901760, %v1580_v8  ;;  %v10212_v55 = vpop.f32.mrf.mxu0  ;;  %v10217_v59 = vsub.f32 %v10181_v53, %v1587_v11  ;;  %8289 = vpow2.f32 %v1140_v60 }
 0x306   :  { %15409 = vst [vmem:[#allocation187_spill] sm:$0xff] %v10199_v25  ;;  %v10209_v19 = vpop.eup %8279  ;;  %2263 = vmatmul.f32.gmra.mxu0 %v1579_v21  ;;  %v10225_v33 = vand.u32 4294901760, %v10204_v4 }
 0x307   :  { %15410 = vst [vmem:[#allocation188_spill] sm:$0xff] %v10204_v4  ;;  %v7142_v49 = vadd.f32 %v10199_v25, %v7141_v63  ;;  %v10214_v16 = vpop.eup %8281  ;;  %v15414_v63 = vand.u32 4294901760, %v10185_v0  ;;  %v1589_v41 = vand.u32 4294901760, %v10217_v59  ;;  %v1196_v59 = vadd.s32 184, %v8623_v57 }
 0x308   :  { %15411 = vst [vmem:[#allocation189_spill] sm:$0xff] %v10207_v34  ;;  %v10232_v8 = vpop.eup %8283  ;;  %v10244_v34 = vmul.f32 1.442695, %v1030_v52  ;;  %v1195_v52 = vadd.s32 176, %v8623_v57 }
 0x309   :  { %v7143_v50 = vadd.f32 %v10209_v19, %v7142_v49  ;;  %15412 = vst [vmem:[#allocation190_spill] sm:$0xff] %v10212_v55  ;;  %v10222_v54 = vsub.f32 %v10185_v0, %v15414_v63  ;;  %v10235_v49 = vpop.f32.mrf.mxu1  ;;  %v10237_v55 = vpop.f32.mrf.mxu3  ;;  %vm1233_vm4 = vcmp.ge.s32.totalorder %v1196_v59, %v8638_v5  ;;  %vm1265_vm1 = vcmp.lt.s32.totalorder %v1196_v59, %v8630_v2 }
 0x30a   :  { %15413 = vst [vmem:[#allocation191_spill] sm:$0xff] %v10214_v16  ;;  %v10239_v63 = vpop.eup %8285  ;;  %1855 = vmatmul.f32.gmra.mxu2 %v10160_v48  ;;  %v10270_v48 = vpop.xlane.xlu2 %963  ;;  %vm1232_vm5 = vcmp.ge.s32.totalorder %v1195_v52, %v8638_v5  ;;  %vm1264_vm14 = vcmp.lt.s32.totalorder %v1195_v52, %v8630_v2  ;;  %vm10286_vm11 = vmand %vm1233_vm4, %vm1265_vm1  ;;  %v15438_v52 = vmov 0  ;;  %8291 = vpow2.f32 %v10244_v34 }
 0x30b   :  { %15415 = vst [vmem:[#allocation192_spill] sm:$0xff] %v10225_v33  ;;  %v7144_v29 = vadd.f32 %v10214_v16, %v7143_v50  ;;  %v10250_v60 = vpop.eup %8287  ;;  %v1194_v50 = vadd.s32 168, %v8623_v57  ;;  %v15429_v15 = vsel %vm10286_vm11, 4294967295, %v15428_v15  ;;  %vm10307_vm4 = vmand %vm1232_vm5, %vm1264_vm14 }
 0x30c   :  { %15416 = vst [vmem:[#allocation193_spill] sm:$0xff] %v10230_v24  ;;  %v10248_v24 = vsub.f32 %v10204_v4, %v10225_v33  ;;  %2054 = vmatmul.f32.gmra.mxu3 %v10181_v53  ;;  %v10264_v4 = vadd.s32 160, %v8623_v57  ;;  %v10281_v53 = vpop.eup %8289 }
 0x30d   :  { %15417 = vst [vmem:[#allocation194_spill] sm:$0xff] %v10232_v8  ;;  %v7145_v21 = vadd.f32 %v10232_v8, %v7144_v29  ;;  %1582 = vmatmul.f32.gmra.mxu1 %v1581_v6  ;;  %v7999_v6 = vsel %vm9746_vm6, 1.0, %v15190_v31  ;;  %v15433_v8 = vmov 0 }
 0x30e   :  { %15418 = vst [vmem:[#allocation195_spill] sm:$0xff] %v10235_v49  ;;  %v10258_v49 = vsub.f32 %v7999_v6, %v7999_v6  ;;  %v15423_v6 = vmov 0  ;;  %2269 = vmatmul.f32.gmra.mxu0 %v1587_v11  ;;  %v10295_v11 = vpop.f32.mrf.mxu0  ;;  %v15434_v8 = vsel %vm10307_vm4, 4294967295, %v15433_v8  ;;  %vm1230_vm5 = vcmp.ge.s32.totalorder %v10264_v4, %v8638_v5 }
 0x30f   :  { %15419 = vst [vmem:[#allocation196_spill] sm:$0xff] %v10237_v55  ;;  %v7146_v29 = vadd.f32 %v10239_v63, %v7145_v21  ;;  %v1197_v55 = vadd.s32 192, %v8623_v57  ;;  %vm1262_vm14 = vcmp.lt.s32.totalorder %v10264_v4, %v8630_v2 }
 0x310   :  { %15420 = vst [vmem:[#allocation197_spill] sm:$0xff] %v10250_v60  ;;  %v14802_v14 = vand.u32 4294901760, %v10258_v49  ;;  %3221 = vmatpush.msrb.mxu1 %v10258_v49 }
 0x311   :  { %15421 = vst [vmem:[#allocation198_spill] sm:$0xff] %v10258_v49  ;;  %v7147_v21 = vadd.f32 %v10250_v60, %v7146_v29  ;;  %vm1234_vm8 = vcmp.ge.s32.totalorder %v1197_v55, %v8638_v5  ;;  %vm1266_vm15 = vcmp.lt.s32.totalorder %v1197_v55, %v8630_v2  ;;  %v15427_v29 = vmov 1.0  }
 0x312   :  { %15422 = vst [vmem:[#allocation199_spill] sm:$0xff] %v10270_v48  ;;  %vm10272_vm10 = vmand %vm1234_vm8, %vm1266_vm15  ;;  %vm1231_vm8 = vcmp.ge.s32.totalorder %v1194_v50, %v8638_v5  ;;  %vm1263_vm15 = vcmp.lt.s32.totalorder %v1194_v50, %v8630_v2  ;;  %v3015_v22 = vsub.f32 %v10258_v49, %v14802_v14  ;;  %v7997_v50 = vsel %vm10286_vm11, 1.0, %v15190_v31  ;;  %v10330_v49 = vpop.f32.mrf.mxu2  ;;  %1859 = vmatmul.f32.gmra.mxu2 %v10163_v42 }
 0x313   :  { %v15424_v6 = vsel %vm10272_vm10, 4294967295, %v15423_v6  ;;  %15426 = vst [vmem:[#allocation201_spill] sm:$0xff] %v10281_v53  ;;  %v7148_v55 = vrot.slane %v7147_v21, 4  ;;  %8064 = vmatpush.msk.msra.mxu3 %vm10272_vm10, %v15427_v29  ;;  %v7998_v59 = vsel %vm10272_vm10, 1.0, %v15190_v31  ;;  %8080 = vmatpush.msk.msrb.mxu2 %vm10272_vm10, %v15427_v29  ;;  %vm10321_vm1 = vmand %vm1231_vm8, %vm1263_vm15  ;;  %v7996_v14 = vsel %vm10307_vm4, 1.0, %v15190_v31 }
 0x314   :  { %15425 = vst [vmem:[#allocation200_spill] sm:$0xff] %v15424_v6  ;;  %v10303_v60 = vsub.f32 %v7998_v59, %v7998_v59  ;;  %v10319_v59 = vsub.f32 %v7997_v50, %v7997_v50  ;;  %v15439_v52 = vsel %vm10321_vm1, 4294967295, %v15438_v52  ;;  %v7995_v50 = vsel %vm10321_vm1, 1.0, %v15190_v31  ;;  %2059 = vmatmul.f32.gmra.mxu3 %v10185_v0  ;;  %vm10386_vm8 = vmand %vm1230_vm5, %vm1262_vm14 }
 0x315   :  { %15430 = vst [vmem:[#allocation202_spill] sm:$0xff] %v15429_v15  ;;  %v7149_v16 = vadd.f32 %v7148_v55, %v7147_v21  ;;  %8065 = vmatpush.msk.msra.mxu3 %vm10286_vm11, %v15427_v29  ;;  %8081 = vmatpush.msk.msrb.mxu2 %vm10286_vm11, %v15427_v29  ;;  %v3016_v21 = vand.u32 4294901760, %v3015_v22  ;;  %v10348_v22 = vsub.f32 %v7995_v50, %v7995_v50  ;;  %v10362_v50 = vand.u32 4294901760, %v10281_v53  ;;  %v10372_v15 = vpop.xlane.xlu0 %966 }
 0x316   :  { %15431 = vst [vmem:[#allocation203_spill] sm:$0xff] %v10295_v11  ;;  %v15436_v11 = vld [vmem:[#allocation100_spill] sm:$0xff]  ;;  %v14809_v55 = vand.u32 4294901760, %v10303_v60  ;;  %1590 = vmatmul.f32.gmra.mxu1 %v1589_v41  ;;  %v10350_v41 = vpop.f32.mrf.mxu1  ;;  %v10414_v25 = vpop.f32.mrf.mxu0 }
 0x317   :  { %15432 = vst [vmem:[#allocation204_spill] sm:$0xff] %v10303_v60  ;;  %v1032_v6 = vsub.f32 %v15436_v11, %v10270_v48  ;;  %v10337_v11 = vsub.f32 %v7996_v14, %v7996_v14  ;;  %v7150_v48 = vrot.slane %v7149_v16, 2  ;;  %8066 = vmatpush.msk.msra.mxu3 %vm10307_vm4, %v15427_v29  ;;  %v10352_v14 = vpop.f32.mrf.mxu3  ;;  %3224 = vmatpush.msrb.mxu1 %v10303_v60 }
 0x318   :  { %15435 = vst [vmem:[#allocation205_spill] sm:$0xff] %v15434_v8  ;;  %3017 = vmatpush.msra.mxu0 %v3016_v21  ;;  %v3021_v42 = vsub.f32 %v10303_v60, %v14809_v55  ;;  %v1192_v55 = vadd.s32 152, %v8623_v57  ;;  %v1603_v21 = vand.u32 4294901760, %v10248_v24  ;;  %8082 = vmatpush.msk.msrb.mxu2 %vm10307_vm4, %v15427_v29  ;;  %v10404_v8 = vsub.f32 %v10281_v53, %v10362_v50 }
 0x319   :  { %15437 = vst [vmem:[#allocation100_spill] sm:$0xff] %v10319_v59  ;;  %8067 = vmatpush.msk.msra.mxu3 %vm10321_vm1, %v15427_v29  ;;  %3227 = vmatpush.msrb.mxu1 %v10319_v59  ;;  %v15449_v60 = vand.u32 4294901760, %v10337_v11 }
 0x31a   :  { %15440 = vst [vmem:[#allocation206_spill] sm:$0xff] %v15439_v52  ;;  %v3022_v34 = vand.u32 4294901760, %v3021_v42  ;;  %v1148_v42 = vmul.f32 1.442695, %v1032_v6  ;;  %vm1229_vm15 = vcmp.ge.s32.totalorder %v1192_v55, %v8638_v5  ;;  %vm1261_vm5 = vcmp.lt.s32.totalorder %v1192_v55, %v8630_v2  ;;  %8083 = vmatpush.msk.msrb.mxu2 %vm10321_vm1, %v15427_v29  ;;  %v10438_v55 = vpop.f32.mrf.mxu2 }
 0x31b   :  { %15441 = vst [vmem:[#allocation207_spill] sm:$0xff] %v10330_v49  ;;  %v7151_v49 = vadd.f32 %v7150_v48, %v7149_v16  ;;  %v3033_v48 = vsub.f32 %v10337_v11, %v15449_v60  ;;  %v15450_v16 = vand.u32 4294901760, %v10185_v0  ;;  %8068 = vmatpush.msk.msra.mxu3 %vm10386_vm8, %v15427_v29  ;;  %3230 = vmatpush.msrb.mxu1 %v10337_v11  ;;  %vm10424_vm14 = vmand %vm1229_vm15, %vm1261_vm5 }
 0x31c   :  { %15442 = vst [vmem:[#allocation208_spill] sm:$0xff] %v10337_v11  ;;  %3023 = vmatpush.msra.mxu0 %v3022_v34  ;;  %v10417_v34 = vpop.eup %8291  ;;  %v1604_v53 = vsub.f32 %v10248_v24, %v1603_v21  ;;  %8293 = vpow2.f32 %v1148_v42  ;;  %1863 = vmatmul.f32.gmra.mxu2 %v10225_v33  ;;  %v1611_v42 = vand.u32 4294901760, %v10404_v8 }
 0x31d   :  { %15443 = vst [vmem:[#allocation209_spill] sm:$0xff] %v10348_v22  ;;  %2275 = vmatmul.f32.gmra.mxu0 %v15450_v16  ;;  %v7152_v60 = vrot.slane %v7151_v49, 1  ;;  %v15454_v16 = vand.u32 4294901760, %v10348_v22  ;;  %v3034_v6 = vand.u32 4294901760, %v3033_v48  ;;  %3233 = vmatpush.msrb.mxu1 %v10348_v22  ;;  %v15458_v48 = vand.u32 4294901760, %v10222_v54 }
 0x31e   :  { %15444 = vst [vmem:[#allocation210_spill] sm:$0xff] %v10350_v41  ;;  %v15447_v41 = vand.u32 4294901760, %v10319_v59  ;;  %8069 = vmatpush.msk.msra.mxu3 %vm10424_vm14, %v15427_v29  ;;  %8084 = vmatpush.msk.msrb.mxu2 %vm10386_vm8, %v15427_v29 }
 0x31f   :  { %15445 = vst [vmem:[#allocation211_spill] sm:$0xff] %v10352_v14  ;;  %v3039_v4 = vsub.f32 %v10348_v22, %v15454_v16  ;;  %v10412_v16 = vadd.f32 %v7152_v60, %v7151_v49  ;;  %1598 = vmatmul.f32.gmra.mxu1 %v15458_v48  ;;  %v7994_v49 = vsel %vm10386_vm8, 1.0, %v15190_v31  ;;  %v10431_v60 = vpop.xlane.xlu1 %969  ;;  %2064 = vmatmul.f32.gmra.mxu3 %v10248_v24  ;;  %v10454_v24 = vand.u32 4294901760, %v10417_v34 }
 0x320   :  { %15446 = vst [vmem:[#allocation212_spill] sm:$0xff] %v10362_v50  ;;  %v3027_v14 = vsub.f32 %v10319_v59, %v15447_v41  ;;  %v15451_v41 = vmov 0  ;;  %v10442_v48 = vsub.f32 %v7994_v49, %v7994_v49  ;;  %v10457_v49 = vpop.xlane.xlu2 %972  ;;  %8085 = vmatpush.msk.msrb.mxu2 %vm10424_vm14, %v15427_v29  ;;  %v15471_v22 = vmov 0 }
 0x321   :  { %15448 = vst [vmem:[#allocation213_spill] sm:$0xff] %v10372_v15  ;;  %v15452_v41 = vsel %vm10386_vm8, 4294967295, %v15451_v41  ;;  %8295 = vrcp.f32 %v10412_v16  ;;  %v3040_v54 = vand.u32 4294901760, %v3039_v4  ;;  %v15467_v4 = vld [vmem:[#allocation113_spill] sm:$0xff]  ;;  %v1618_v52 = vsub.f32 %v10417_v34, %v10454_v24 }
 0x322   :  { %15453 = vst [vmem:[#allocation214_spill] sm:$0xff] %v15452_v41  ;;  %v3028_v0 = vand.u32 4294901760, %v3027_v14  ;;  %v15455_v14 = vld [vmem:[#allocation107_spill] sm:$0xff]  ;;  %v1036_v33 = vsub.f32 %v15467_v4, %v10431_v60  ;;  %3236 = vmatpush.msrb.mxu1 %v10442_v48  ;;  %v10464_v4 = vpop.eup %8293 }
 0x323   :  { %v1034_v59 = vsub.f32 %v15455_v14, %v10372_v15  ;;  %15456 = vst [vmem:[#allocation107_spill] sm:$0xff] %v10414_v25  ;;  %v15459_v14 = vmov 0  ;;  %v10444_v25 = vpop.f32.mrf.mxu1  ;;  %v10446_v15 = vpop.f32.mrf.mxu3 }
 0x324   :  { %15457 = vst [vmem:[#allocation215_spill] sm:$0xff] %v10417_v34  ;;  %3029 = vmatpush.msra.mxu0 %v3028_v0  ;;  %v15460_v14 = vsel %vm10424_vm14, 4294967295, %v15459_v14  ;;  %1867 = vmatmul.f32.gmra.mxu2 %v10362_v50 }
 0x325   :  { %15461 = vst [vmem:[#allocation216_spill] sm:$0xff] %v15460_v14  ;;  %v1152_v0 = vmul.f32 1.442695, %v1034_v59  ;;  %2281 = vmatmul.f32.gmra.mxu0 %v1603_v21  ;;  %v14826_v59 = vand.u32 4294901760, %v10442_v48 }
 0x326   :  { %15462 = vst [vmem:[#allocation217_spill] sm:$0xff] %v10431_v60  ;;  %3035 = vmatpush.msra.mxu0 %v3034_v6  ;;  %v1605_v6 = vand.u32 4294901760, %v1604_v53  ;;  %v1612_v53 = vsub.f32 %v10404_v8, %v1611_v42 }
 0x327   :  { %15463 = vst [vmem:[#allocation218_spill] sm:$0xff] %v10438_v55  ;;  %8297 = vpow2.f32 %v1152_v0  ;;  %v3045_v21 = vsub.f32 %v10442_v48, %v14826_v59  ;;  %v8296_v55 = vpop.eup %8295  ;;  %2069 = vmatmul.f32.gmra.mxu3 %v10404_v8  ;;  %v10494_v59 = vpop.f32.mrf.mxu2 }
 0x328   :  { %15464 = vst [vmem:[#allocation219_spill] sm:$0xff] %v10442_v48  ;;  %3041 = vmatpush.msra.mxu0 %v3040_v54  ;;  %v15470_v54 = vld [vmem:[#allocation119_spill] sm:$0xff]  ;;  %v7192_v41 = vmul.f32 %v8296_v55, %v10412_v16  ;;  %1606 = vmatmul.f32.gmra.mxu1 %v1605_v6  ;;  %v10489_v6 = vand.u32 4294901760, %v10464_v4 }
 0x329   :  { %15465 = vst [vmem:[#allocation220_spill] sm:$0xff] %v10444_v25  ;;  %v1156_v25 = vmul.f32 1.442695, %v1036_v33  ;;  %v1038_v60 = vsub.f32 %v15470_v54, %v10457_v49  ;;  %v3046_v0 = vand.u32 4294901760, %v3045_v21  ;;  %v10482_v33 = vpop.f32.mrf.mxu0  ;;  %v7993_v21 = vsel %vm10424_vm14, 1.0, %v15190_v31 }
 0x32a   :  { %15466 = vst [vmem:[#allocation221_spill] sm:$0xff] %v10446_v15  ;;  %v1191_v15 = vadd.s32 144, %v8623_v57  ;;  %v1613_v54 = vand.u32 4294901760, %v1612_v53  ;;  %v7200_v53 = vand.u32 2147483647, %v10412_v16 }
 0x32b   :  { %15468 = vst [vmem:[#allocation113_spill] sm:$0xff] %v10457_v49  ;;  %3047 = vmatpush.msra.mxu0 %v3046_v0  ;;  %8299 = vpow2.f32 %v1156_v25  ;;  %v1160_v34 = vmul.f32 1.442695, %v1038_v60  ;;  %v7202_v0 = vand.u32 2147483648, %v10412_v16  ;;  %v1619_v49 = vand.u32 4294901760, %v1618_v52  ;;  %v10505_v25 = vpop.f32.mrf.mxu1 }
 0x32c   :  { %15469 = vst [vmem:[#allocation222_spill] sm:$0xff] %v10464_v4  ;;  %vm1228_vm15 = vcmp.ge.s32.totalorder %v1191_v15, %v8638_v5  ;;  %vm1260_vm5 = vcmp.lt.s32.totalorder %v1191_v15, %v8630_v2  ;;  %v7193_v15 = vsub.f32 1.0, %v7192_v41  ;;  %vm7201_vm8 = vcmp.eq.f32.partialorder %v7200_v53, 8.507059e+37  ;;  %1871 = vmatmul.f32.gmra.mxu2 %v10454_v24 }
 0x32d   :  { %vm10477_vm12 = vmand %vm1228_vm15, %vm1260_vm5  ;;  %15473 = vst [vmem:[#allocation119_spill] sm:$0xff] %v10482_v33  ;;  %v10496_v33 = vsub.f32 %v7993_v21, %v7993_v21  ;;  %v10501_v8 = vpop.eup %8297  ;;  %vm7197_vm15 = vweird.f32 %v8296_v55  ;;  %2287 = vmatmul.f32.gmra.mxu0 %v1611_v42  ;;  %vm7196_vm5 = vweird.f32 %v10412_v16  ;;  %8301 = vpow2.f32 %v1160_v34 }
 0x32e   :  { %v15472_v22 = vsel %vm10477_vm12, 4294967295, %v15471_v22  ;;  %8070 = vmatpush.msk.msra.mxu3 %vm10477_vm12, %v15427_v29  ;;  %15474 = vst [vmem:[#allocation223_spill] sm:$0xff] %v10494_v59  ;;  %8086 = vmatpush.msk.msrb.mxu2 %vm10477_vm12, %v15427_v29  ;;  %v7194_v41 = vmul.f32 %v8296_v55, %v7193_v15  ;;  %v10507_v59 = vpop.f32.mrf.mxu3  ;;  %v1626_v15 = vsub.f32 %v10464_v4, %v10489_v6  ;;  %vm7198_vm14 = vmor %vm7196_vm5, %vm7197_vm15  ;;  %v10515_v42 = vand.u32 4294901760, %v10501_v8 }
 0x32f   :  { %15475 = vst [vmem:[#allocation224_spill] sm:$0xff] %v10501_v8  ;;  %v14840_v60 = vand.u32 4294901760, %v10496_v33  ;;  %3239 = vmatpush.msrb.mxu1 %v10496_v33  ;;  %v7203_v50 = vor.u32 1.1754944e-38, %v7202_v0  ;;  %v1620_v14 = vsub.f32 %v1618_v52, %v1619_v49  ;;  %2074 = vmatmul.f32.gmra.mxu3 %v1618_v52  ;;  %v10545_v53 = vpop.f32.mrf.mxu2  ;;  %vm810_vm5 = vcmp.ge.s32.totalorder %v8625_v58, 40 }
 0x330   :  { %15476 = vst [vmem:[#allocation225_spill] sm:$0xff] %v10505_v25  ;;  %v7195_v21 = vadd.f32 %v8296_v55, %v7194_v41  ;;  %1614 = vmatmul.f32.gmra.mxu1 %v1613_v54  ;;  %v1190_v41 = vadd.s32 136, %v8623_v57  ;;  %v1627_v34 = vand.u32 4294901760, %v1626_v15 }
 0x331   :  { %15477 = vst [vmem:[#allocation226_spill] sm:$0xff] %v10507_v59  ;;  %v3051_v25 = vsub.f32 %v10496_v33, %v14840_v60  ;;  %v10520_v48 = vpop.eup %8299  ;;  %v10526_v11 = vpop.f32.mrf.mxu0  ;;  %v1621_v54 = vand.u32 4294901760, %v1620_v14 }
 0x332   :  { %v7199_v59 = vsel %vm7198_vm14, %v8296_v55, %v7195_v21  ;;  %15478 = vst [vmem:[#allocation227_spill] sm:$0xff] %v10520_v48  ;;  %v10530_v55 = vsub.f32 %v10501_v8, %v10515_v42  ;;  %vm1227_vm14 = vcmp.ge.s32.totalorder %v1190_v41, %v8638_v5  ;;  %vm1259_vm15 = vcmp.lt.s32.totalorder %v1190_v41, %v8630_v2 }
 0x333   :  { %v3052_v16 = vand.u32 4294901760, %v3051_v25  ;;  %v10524_v4 = vsel %vm7201_vm8, %v7203_v50, %v7199_v59  ;;  %15479 = vst [vmem:[#allocation228_spill] sm:$0xff] %v10526_v11  ;;  %v10535_v0 = vand.u32 4294901760, %v10520_v48  ;;  %v10537_v50 = vpop.xlane.xlu0 %975  ;;  %vm10539_vm8 = vmand %vm1227_vm14, %vm1259_vm15  ;;  %v10543_v59 = vpop.eup %8301  ;;  %v1628_v25 = vsub.f32 %v1626_v15, %v1627_v34 }
 0x334   :  { %15482 = vst [vmem:[#allocation229_spill] sm:$0xff] %v10543_v59  ;;  %8071 = vmatpush.msk.msra.mxu3 %vm10539_vm8, %v15427_v29  ;;  %v10552_v14 = vmul.f32 %v9964_v13, %v10524_v4  ;;  %8087 = vmatpush.msk.msrb.mxu2 %vm10539_vm8, %v15427_v29  ;;  %v10563_v21 = vmul.f32 %v9952_v12, %v10524_v4  ;;  %v10566_v41 = vpop.f32.mrf.mxu1  ;;  %v15487_v13 = vld [vmem:[#allocation125_spill] sm:$0xff]  ;;  %vm812_vm14 = vcmp.lt.s32.totalorder %v8625_v58, 48  ;;  %v15492_v58 = vand.u32 4294901760, %v10530_v55 }
 0x335   :  { %3053 = vmatpush.msra.mxu0 %v3052_v16  ;;  %v1040_v8 = vsub.f32 %v15487_v13, %v10537_v50  ;;  %v10580_v12 = vsub.f32 %v10520_v48, %v10535_v0  ;;  %1875 = vmatmul.f32.gmra.mxu2 %v10489_v6  ;;  %v7992_v13 = vsel %vm10477_vm12, 1.0, %v15190_v31  ;;  %v15488_v16 = vld [vmem:[#allocation36_spill] sm:$0xff]  ;;  %vm10592_vm15 = vmand %vm810_vm5, %vm812_vm14  ;;  %v10756_v37 = vmul.f32 %v10072_v40, %v10524_v4 }
 0x336   :  { %2293 = vmatmul.f32.gmra.mxu0 %v1619_v49  ;;  %15483 = vst [vmem:[#allocation230_spill] sm:$0xff] %v10552_v14  ;;  %v10556_v49 = vmul.f32 %v9950_v17, %v10524_v4  ;;  %v10568_v60 = vpop.f32.mrf.mxu3  ;;  %7451 = vrot.lane.b32.xlu1 %v10552_v14, %s8438_s23  ;;  %v10583_v17 = vand.u32 4294901760, %v10543_v59  ;;  %v981_v14 = vsub.f32 -1e+30, %v15488_v16  ;;  %v10596_v48 = vsub.f32 %v7992_v13, %v7992_v13 }
 0x337   :  { %15485 = vst [vmem:[#allocation232_spill] sm:$0xff] %v10563_v21  ;;  %7449 = vrot.lane.b32.xlu0 %v10563_v21, %s8438_s23  ;;  %2079 = vmatmul.f32.gmra.mxu3 %v1626_v15  ;;  %v10601_v21 = vsub.f32 %v10530_v55, %v15492_v58  ;;  %v1164_v11 = vmul.f32 1.442695, %v1040_v8  ;;  %v10620_v8 = vpop.xlane.xlu1 %978  ;;  %v10632_v15 = vmul.f32 %v10052_v38, %v10524_v4  ;;  %v10648_v44 = vpop.f32.mrf.mxu2  ;;  %v15542_v7 = vand.u32 4294901760, %v10580_v12 }
 0x338   :  { %15484 = vst [vmem:[#allocation231_spill] sm:$0xff] %v10556_v49  ;;  %7447 = vrot.lane.b32.xlu2 %v10556_v49, %s8438_s23  ;;  %1622 = vmatmul.f32.gmra.mxu1 %v1621_v54  ;;  %v15489_v54 = vmov 0  ;;  %v1629_v49 = vand.u32 4294901760, %v1628_v25  ;;  %v10610_v16 = vsub.f32 %v10543_v59, %v10583_v17  ;;  %v10615_v25 = vmul.f32 %v10000_v62, %v10524_v4 }
 0x339   :  { %15486 = vst [vmem:[#allocation233_spill] sm:$0xff] %v10568_v60  ;;  %v15490_v54 = vsel %vm10592_vm15, 4294967295, %v15489_v54  ;;  %v10605_v60 = vmul.f32 %v10023_v30, %v10524_v4  ;;  %3242 = vmatpush.msrb.mxu1 %v10596_v48  ;;  %v10618_v58 = vpop.f32.mrf.mxu0  ;;  %v10624_v30 = vmul.f32 %v9973_v20, %v10524_v4  ;;  %v10636_v62 = vmul.f32 %v10014_v1, %v10524_v4 }
 0x33a   :  { %15491 = vst [vmem:[#allocation125_spill] sm:$0xff] %v15490_v54  ;;  %v10638_v13 = vmul.f32 1.442695, %v981_v14  ;;  %v15499_v59 = vand.u32 4294901760, %v10596_v48  ;;  %8303 = vpow2.f32 %v1164_v11  ;;  %v1189_v1 = vadd.s32 128, %v8623_v57 }
 0x33b   :  { %15493 = vst [vmem:[#allocation36_spill] sm:$0xff] %v10605_v60  ;;  %v10669_v14 = vmul.f32 %v10034_v9, %v10524_v4  ;;  %vm15624_vm15 = vnez %v15472_v22 }
 0x33c   :  { %15494 = vst [vmem:[#allocation234_spill] sm:$0xff] %v10615_v25  ;;  %v3057_v20 = vsub.f32 %v10596_v48, %v15499_v59  ;;  %vm1226_vm5 = vcmp.ge.s32.totalorder %v1189_v1, %v8638_v5  ;;  %vm1258_vm14 = vcmp.lt.s32.totalorder %v1189_v1, %v8630_v2  ;;  %v7991_v59 = vsel %vm10539_vm8, 1.0, %v15190_v31 }
 0x33d   :  { %15495 = vst [vmem:[#allocation235_spill] sm:$0xff] %v10618_v58  ;;  %v10645_v58 = vmul.f32 %v9981_v43, %v10524_v4  ;;  %v1042_v43 = vsub.f32 %v9897_v61, %v10620_v8  ;;  %1879 = vmatmul.f32.gmra.mxu2 %v10515_v42  ;;  %v15502_v61 = vand.u32 4294901760, %v10580_v12  ;;  %vm10685_vm12 = vmand %vm1226_vm5, %vm1258_vm14  ;;  %v10698_v5 = vmul.f32 %v10081_v46, %v10524_v4 }
 0x33e   :  { %2299 = vmatmul.f32.gmra.mxu0 %v1627_v34  ;;  %15496 = vst [vmem:[#allocation236_spill] sm:$0xff] %v10624_v30  ;;  %v1637_v34 = vand.u32 4294901760, %v10601_v21  ;;  %7459 = vrot.lane.b32.xlu1 %v10615_v25, %s8438_s23  ;;  %v3058_v11 = vand.u32 4294901760, %v3057_v20  ;;  %v10672_v21 = vpop.f32.mrf.mxu1  ;;  %v10702_v2 = vmul.f32 %v10043_v45, %v10524_v4  ;;  %v10709_v1 = vmul.f32 %v9991_v26, %v10524_v4 }
 0x33f   :  { %15497 = vst [vmem:[#allocation237_spill] sm:$0xff] %v10632_v15  ;;  %7455 = vrot.lane.b32.xlu0 %v10645_v58, %s8438_s23  ;;  %v10679_v20 = vsub.f32 %v10580_v12, %v15502_v61  ;;  %2084 = vmatmul.f32.gmra.mxu3 %v10530_v55  ;;  %v7990_v61 = vsel %vm10685_vm12, 1.0, %v15190_v31  ;;  %v10718_v46 = vmul.f32 %v10063_v10, %v10524_v4  ;;  %v15509_v45 = vand.u32 4294901760, %v10530_v55 }
 0x340   :  { %15498 = vst [vmem:[#allocation238_spill] sm:$0xff] %v10636_v62  ;;  %7453 = vrot.lane.b32.xlu2 %v10624_v30, %s8438_s23  ;;  %1630 = vmatmul.f32.gmra.mxu1 %v1629_v49  ;;  %v10674_v49 = vpop.f32.mrf.mxu3  ;;  %v1168_v38 = vmul.f32 1.442695, %v1042_v43  ;;  %v10725_v26 = vsub.f32 %v7990_v61, %v7990_v61  ;;  %v10737_v25 = vpop.eup %8303  ;;  %v10741_v55 = vmul.f32 %v10005_v3, %v10524_v4  ;;  %v15520_v43 = vand.u32 4294901760, %v15519_v23  ;;  %v15530_v61 = vld [vmem:[#allocation166_spill] sm:$0xff] }
 0x341   :  { %15500 = vst [vmem:[#allocation239_spill] sm:$0xff] %v10645_v58  ;;  %3059 = vmatpush.msra.mxu0 %v3058_v11  ;;  %8072 = vmatpush.msk.msra.mxu3 %vm10685_vm12, %v15427_v29  ;;  %v10711_v11 = vsub.f32 %v7991_v59, %v7991_v59  ;;  %v15510_v59 = vld [vmem:[#allocation49_spill] sm:$0xff]  ;;  %v10760_v3 = vmul.f32 %v10086_v18, %v10524_v4  ;;  %v10769_v35 = vpop.f32.mrf.mxu0 }
 0x342   :  { %15501 = vst [vmem:[#allocation240_spill] sm:$0xff] %v10669_v14  ;;  %8088 = vmatpush.msk.msrb.mxu2 %vm10685_vm12, %v15427_v29  ;;  %v15511_v32 = vand.u32 4294901760, %v15510_v59  ;;  %v15523_v59 = vand.u32 4294901760, %v10610_v16  ;;  %8305 = vpow2.f32 %v1168_v38  ;;  %v10804_v38 = vand.u32 4294901760, %v10737_v25  ;;  %v15558_v58 = vld [vmem:[#allocation85_spill] sm:$0xff] }
 0x343   :  { %15505 = vst [vmem:[#allocation241_spill] sm:$0xff] %v10698_v5  ;;  %3245 = vmatpush.msrb.mxu1 %v10711_v11  ;;  %v15524_v23 = vand.u32 4294901760, %v10711_v11  ;;  %8307 = vpow2.f32 %v10638_v13  ;;  %v15560_v13 = vld [vmem:[#allocation40_spill] sm:$0xff] }
 0x344   :  { %15506 = vst [vmem:[#allocation242_spill] sm:$0xff] %v10702_v2  ;;  %3638 = vmatpush.msrb.mxu3 %v15511_v32  ;;  %v10766_v32 = vmul.f32 %v10149_v47, %v10524_v4  ;;  %v10774_v40 = vsub.f32 %v10610_v16, %v15523_v59  ;;  %v10812_v59 = vmul.f32 %v15530_v61, %v10524_v4  ;;  %v983_v30 = vsub.f32 -1e+30, %v15560_v13 }
 0x345   :  { %15507 = vst [vmem:[#allocation243_spill] sm:$0xff] %v10709_v1  ;;  %v3063_v47 = vsub.f32 %v10711_v11, %v15524_v23  ;;  %1883 = vmatmul.f32.gmra.mxu2 %v10535_v0  ;;  %v15534_v23 = vld [vmem:[#allocation174_spill] sm:$0xff]  ;;  %3248 = vmatpush.msrb.mxu1 %v10725_v26  ;;  %v1658_v13 = vsub.f32 %v10737_v25, %v10804_v38 }
 0x346   :  { %15508 = vst [vmem:[#allocation244_spill] sm:$0xff] %v10718_v46  ;;  %2305 = vmatmul.f32.gmra.mxu0 %v15509_v45  ;;  %v10750_v45 = vmul.f32 %v10107_v51, %v10524_v4  ;;  %3642 = vmatpush.msrb.mxu3 %v15520_v43  ;;  %v1645_v51 = vand.u32 4294901760, %v10679_v20  ;;  %v15525_v20 = vand.u32 4294901760, %v10725_v26  ;;  %v10830_v61 = vpop.f32.mrf.mxu1 }
 0x347   :  { %15513 = vst [vmem:[#allocation49_spill] sm:$0xff] %v10737_v25  ;;  %7465 = vrot.lane.b32.xlu1 %v10605_v60, %s8438_s23  ;;  %7461 = vrot.lane.b32.xlu0 %v10741_v55, %s8438_s23  ;;  %v3064_v18 = vand.u32 4294901760, %v3063_v47  ;;  %v15532_v60 = vld [vmem:[#allocation73_spill] sm:$0xff]  ;;  %v10823_v47 = vmul.f32 %v10177_v36, %v10524_v4  ;;  %v10840_v36 = vmul.f32 %v10156_v27, %v10524_v4  ;;  %v15576_v25 = vand.u32 4294901760, %v10610_v16 }
 0x348   :  { %15514 = vst [vmem:[#allocation245_spill] sm:$0xff] %v10741_v55  ;;  %7457 = vrot.lane.b32.xlu2 %v10709_v1, %s8438_s23  ;;  %1638 = vmatmul.f32.gmra.mxu1 %v1637_v34  ;;  %v3069_v43 = vsub.f32 %v10725_v26, %v15525_v20  ;;  %v10801_v34 = vpop.f32.mrf.mxu2  ;;  %v15533_v55 = vand.u32 4294901760, %v15532_v60  ;;  %v10819_v1 = vmul.f32 %v15534_v23, %v10524_v4  ;;  %v10832_v60 = vpop.f32.mrf.mxu3  ;;  %v1659_v54 = vand.u32 4294901760, %v1658_v13 }
 0x349   :  { %15516 = vst [vmem:[#allocation246_spill] sm:$0xff] %v10750_v45  ;;  %2089 = vmatmul.f32.gmra.mxu3 %v10580_v12  ;;  %v10827_v20 = vmul.f32 %v10128_v28, %v10524_v4  ;;  %3065 = vmatpush.msra.mxu0 %v3064_v18  ;;  %v10844_v28 = vmul.f32 %v10209_v19, %v10524_v4  ;;  %v15559_v18 = vand.u32 4294901760, %v15558_v58  ;;  %v15564_v58 = vld [vmem:[#allocation197_spill] sm:$0xff] }
 0x34a   :  { %15517 = vst [vmem:[#allocation247_spill] sm:$0xff] %v10756_v37  ;;  %3646 = vmatpush.msrb.mxu3 %v15533_v55  ;;  %v3070_v10 = vand.u32 4294901760, %v3069_v43  ;;  %v10848_v23 = vmul.f32 %v10168_v56, %v10524_v4  ;;  %v10866_v56 = vmul.f32 %v10194_v39, %v10524_v4  ;;  %v10882_v39 = vmul.f32 %v10239_v63, %v10524_v4  ;;  %v15554_v43 = vld [vmem:[#allocation187_spill] sm:$0xff]  ;;  %v15626_v12 = vld [vmem:[#allocation69_spill] sm:$0xff] }
 0x34b   :  { %15518 = vst [vmem:[#allocation248_spill] sm:$0xff] %v10760_v3  ;;  %v10896_v19 = vmul.f32 %v15554_v43, %v10524_v4  ;;  %v15556_v63 = vld [vmem:[#allocation191_spill] sm:$0xff] }
 0x34c   :  { %15521 = vst [vmem:[#allocation61_spill] sm:$0xff] %v10766_v32  ;;  %3071 = vmatpush.msra.mxu0 %v3070_v10  ;;  %v10884_v10 = vpop.eup %8305  ;;  %v10900_v55 = vmul.f32 %v15556_v63, %v10524_v4  ;;  %3650 = vmatpush.msrb.mxu3 %v15559_v18  ;;  %v10919_v18 = vmul.f32 %v15564_v58, %v10524_v4  ;;  %v1653_v58 = vand.u32 4294901760, %v10774_v40 }
 0x34d   :  { %15522 = vst [vmem:[#allocation249_spill] sm:$0xff] %v10769_v35  ;;  %1887 = vmatmul.f32.gmra.mxu2 %v10583_v17  ;;  %v8308_v31 = vpop.eup %8307  ;;  %v10959_v43 = vand.u32 4294901760, %v10884_v10 }
 0x34e   :  { %15528 = vst [vmem:[#allocation250_spill] sm:$0xff] %v10804_v38  ;;  %2311 = vmatmul.f32.gmra.mxu0 %v15542_v7  ;;  %v15562_v7 = vld [vmem:[#allocation194_spill] sm:$0xff]  ;;  %v10975_v40 = vand.u32 4294901760, %v8308_v31 }
 0x34f   :  { %15531 = vst [vmem:[#allocation166_spill] sm:$0xff] %v10812_v59  ;;  %8089 = vmatpush.msk.msrb.mxu0 %vm9325_vm7, %v15427_v29  ;;  %7471 = vrot.lane.b32.xlu1 %v10632_v15, %s8438_s23  ;;  %v10915_v63 = vmul.f32 %v15562_v7, %v10524_v4  ;;  %v10934_v4 = vpop.f32.mrf.mxu0  ;;  %v1050_v7 = vmul.f32 1.442695, %v983_v30  ;;  %v10961_v30 = vpop.f32.mrf.mxu1 }
 0x350   :  { %15535 = vst [vmem:[#allocation73_spill] sm:$0xff] %v10819_v1  ;;  %7463 = vrot.lane.b32.xlu2 %v10636_v62, %s8438_s23  ;;  %1646 = vmatmul.f32.gmra.mxu1 %v1645_v51  ;;  %v10948_v27 = vpop.f32.mrf.mxu2  ;;  %v15574_v62 = vld [vmem:[#allocation96_spill] sm:$0xff] }
 0x351   :  { %15536 = vst [vmem:[#allocation174_spill] sm:$0xff] %v10823_v47  ;;  %7467 = vrot.lane.b32.xlu0 %v10669_v14, %s8438_s23  ;;  %8090 = vmatpush.msk.msrb.mxu0 %vm9405_vm3, %v15427_v29  ;;  %v10963_v14 = vpop.f32.mrf.mxu3  ;;  %8309 = vpow2.f32 %v1050_v7  ;;  %v15631_v7 = vld [vmem:[#allocation60_spill] sm:$0xff] }
 0x352   :  { %15537 = vst [vmem:[#allocation251_spill] sm:$0xff] %v10827_v20  ;;  %2094 = vmatmul.f32.gmra.mxu3 %v10610_v16  ;;  %v15583_v16 = vld [vmem:[#allocation45_spill] sm:$0xff] }
 0x353   :  { %15539 = vst [vmem:[#allocation252_spill] sm:$0xff] %v10840_v36  ;;  %8091 = vmatpush.msk.msrb.mxu0 %vm9474_vm2, %v15427_v29 }
 0x354   :  { %15540 = vst [vmem:[#allocation253_spill] sm:$0xff] %v10844_v28 }
 0x355   :  { %15541 = vst [vmem:[#allocation254_spill] sm:$0xff] %v10848_v23  ;;  %8092 = vmatpush.msk.msrb.mxu0 %vm9543_vm0, %v15427_v29  ;;  %1891 = vmatmul.f32.gmra.mxu2 %v10804_v38 }
 0x356   :  { %15546 = vst [vmem:[#allocation255_spill] sm:$0xff] %v10866_v56  ;;  %2317 = vmatmul.f32.gmra.mxu0 %v15576_v25  ;;  %v985_v25 = vsub.f32 -1e+30, %v15583_v16  ;;  %v15586_v16 = vld [vmem:[#allocation198_spill] sm:$0xff] }
 0x357   :  { %15550 = vst [vmem:[#allocation256_spill] sm:$0xff] %v10882_v39  ;;  %7477 = vrot.lane.b32.xlu1 %v10698_v5, %s8438_s23  ;;  %8093 = vmatpush.msk.msrb.mxu0 %vm9610_vm13, %v15427_v29  ;;  %v15587_v5 = vand.u32 4294901760, %v15586_v16  ;;  %v8310_v38 = vpop.eup %8309  ;;  %v11003_v57 = vpop.f32.mrf.mxu1 }
 0x358   :  { %15551 = vst [vmem:[#allocation257_spill] sm:$0xff] %v10884_v10  ;;  %7469 = vrot.lane.b32.xlu2 %v10702_v2, %s8438_s23  ;;  %1654 = vmatmul.f32.gmra.mxu1 %v1653_v58 }
 0x359   :  { %15555 = vst [vmem:[#allocation37_spill] sm:$0xff] %v10896_v19  ;;  %7473 = vrot.lane.b32.xlu0 %v10718_v46, %s8438_s23  ;;  %8094 = vmatpush.msk.msrb.mxu0 %vm9679_vm9, %v15427_v29 }
 0x35a   :  { %15557 = vst [vmem:[#allocation187_spill] sm:$0xff] %v10900_v55  ;;  %2099 = vmatmul.f32.gmra.mxu3 %v1658_v13 }
 0x35b   :  { %15563 = vst [vmem:[#allocation191_spill] sm:$0xff] %v10915_v63  ;;  %8095 = vmatpush.msk.msrb.mxu0 %vm9746_vm6, %v15427_v29 }
 0x35c   :  { %15565 = vst [vmem:[#allocation85_spill] sm:$0xff] %v10919_v18 }
 0x35d   :  { %15568 = vst [vmem:[#allocation40_spill] sm:$0xff] %v10934_v4  ;;  %v15575_v4 = vand.u32 4294901760, %v15574_v62  ;;  %v15581_v62 = vld [vmem:[#allocation110_spill] sm:$0xff]  ;;  %1895 = vmatmul.f32.gmra.mxu2 %v10959_v43  ;;  %8096 = vmatpush.msk.msrb.mxu0 %vm10272_vm10, %v15427_v29 }
 0x35e   :  { %15572 = vst [vmem:[#allocation194_spill] sm:$0xff] %v10948_v27  ;;  %v1666_v27 = vsub.f32 %v10884_v10, %v10959_v43  ;;  %v10993_v10 = vsub.f32 %v8308_v31, %v10975_v40  ;;  %2323 = vmatmul.f32.gmra.mxu0 %v1659_v54  ;;  %v11005_v31 = vpop.f32.mrf.mxu3 }
 0x35f   :  { %3654 = vmatpush.msrb.mxu3 %v15575_v4  ;;  %15577 = vst [vmem:[#allocation197_spill] sm:$0xff] %v10959_v43  ;;  %v15582_v4 = vand.u32 4294901760, %v15581_v62  ;;  %v1054_v62 = vmul.f32 1.442695, %v985_v25  ;;  %7483 = vrot.lane.b32.xlu1 %v10750_v45, %s8438_s23 }
 0x360   :  { %15578 = vst [vmem:[#allocation46_spill] sm:$0xff] %v10961_v30  ;;  %v1667_v2 = vand.u32 4294901760, %v1666_v27  ;;  %v10995_v30 = vpop.f32.mrf.mxu2  ;;  %7475 = vrot.lane.b32.xlu2 %v10756_v37, %s8438_s23  ;;  %v15598_v37 = vld [vmem:[#allocation208_spill] sm:$0xff]  ;;  %8097 = vmatpush.msk.msrb.mxu0 %vm10286_vm11, %v15427_v29 }
 0x361   :  { %15579 = vst [vmem:[#allocation58_spill] sm:$0xff] %v10963_v14  ;;  %3658 = vmatpush.msrb.mxu3 %v15582_v4  ;;  %v1660_v14 = vsub.f32 %v1658_v13, %v1659_v54  ;;  %v10985_v4 = vpop.f32.mrf.mxu0  ;;  %v15590_v13 = vld [vmem:[#allocation204_spill] sm:$0xff]  ;;  %8311 = vpow2.f32 %v1054_v62  ;;  %7479 = vrot.lane.b32.xlu0 %v10760_v3, %s8438_s23  ;;  %v15599_v54 = vand.u32 4294901760, %v15598_v37  ;;  %v15606_v37 = vld [vmem:[#allocation57_spill] sm:$0xff] }
 0x362   :  { %15585 = vst [vmem:[#allocation96_spill] sm:$0xff] %v10985_v4  ;;  %v15591_v25 = vand.u32 4294901760, %v15590_v13  ;;  %v1668_v13 = vsub.f32 %v1666_v27, %v1667_v2  ;;  %v15595_v62 = vld [vmem:[#allocation100_spill] sm:$0xff]  ;;  %2104 = vmatmul.f32.gmra.mxu3 %v1666_v27  ;;  %8098 = vmatpush.msk.msrb.mxu0 %vm10307_vm4, %v15427_v29 }
 0x363   :  { %3662 = vmatpush.msrb.mxu3 %v15587_v5  ;;  %v1661_v46 = vand.u32 4294901760, %v1660_v14  ;;  %15589 = vst [vmem:[#allocation70_spill] sm:$0xff] %v10995_v30  ;;  %v15593_v5 = vld [vmem:[#allocation52_spill] sm:$0xff]  ;;  %v11012_v14 = vand.u32 4294901760, %v8310_v38 }
 0x364   :  { %v987_v16 = vsub.f32 -1e+30, %v15593_v5  ;;  %15594 = vst [vmem:[#allocation110_spill] sm:$0xff] %v11005_v31  ;;  %v15600_v31 = vand.u32 4294901760, %v10993_v10  ;;  %8099 = vmatpush.msk.msrb.mxu0 %vm10321_vm1, %v15427_v29 }
 0x365   :  { %3666 = vmatpush.msrb.mxu3 %v15591_v25  ;;  %1662 = vmatmul.f32.gmra.mxu1 %v1661_v46  ;;  %v15596_v25 = vand.u32 4294901760, %v15595_v62  ;;  %v1669_v46 = vand.u32 4294901760, %v1668_v13  ;;  %v11028_v43 = vsub.f32 %v8310_v38, %v11012_v14 }
 0x366   :  { %v1058_v45 = vmul.f32 1.442695, %v987_v16  ;;  %2329 = vmatmul.f32.gmra.mxu0 %v1667_v2  ;;  %v2722_v3 = vsub.f32 %v10993_v10, %v15600_v31  ;;  %v15604_v16 = vld [vmem:[#allocation209_spill] sm:$0xff]  ;;  %v989_v2 = vsub.f32 -1e+30, %v15606_v37 }
 0x367   :  { %3670 = vmatpush.msrb.mxu3 %v15596_v25  ;;  %15601 = vst [vmem:[#allocation45_spill] sm:$0xff] %v11028_v43  ;;  %v8312_v62 = vpop.eup %8311  ;;  %v15605_v30 = vand.u32 4294901760, %v15604_v16  ;;  %7489 = vrot.lane.b32.xlu1 %v10766_v32, %s8438_s23  ;;  %v11052_v16 = vpop.f32.mrf.mxu3 }
 0x368   :  { %8313 = vpow2.f32 %v1058_v45  ;;  %7481 = vrot.lane.b32.xlu2 %v10812_v59, %s8438_s23  ;;  %v11044_v38 = vand.u32 4294901760, %v8312_v62  ;;  %v2723_v31 = vand.u32 4294901760, %v2722_v3  ;;  %v15607_v45 = vld [vmem:[#allocation42_spill] sm:$0xff]  ;;  %v1062_v3 = vmul.f32 1.442695, %v989_v2 }
 0x369   :  { %3674 = vmatpush.msrb.mxu3 %v15599_v54  ;;  %v11030_v25 = vpop.f32.mrf.mxu0  ;;  %v11038_v54 = vpop.f32.mrf.mxu2  ;;  %7485 = vrot.lane.b32.xlu0 %v10819_v1, %s8438_s23  ;;  %v15612_v1 = vand.u32 4294901760, %v11028_v43 }
 0x36a   :  { %15602 = vst [vmem:[#allocation81_spill] sm:$0xff] %v11030_v25  ;;  %2559 = vmatmul.f32.vlgmr.msra.gmra.mxu2 %v15607_v45  ;;  %2724 = vmatmul.f32.vlgmr.msra.gmra.mxu3 %v2723_v31  ;;  %v11070_v31 = vsub.f32 %v8312_v62, %v11044_v38  ;;  %8315 = vpow2.f32 %v1062_v3  ;;  %v15618_v3 = vld [vmem:[#allocation48_spill] sm:$0xff]  ;;  %v15622_v25 = vand.u32 4294901760, %v10711_v11  ;;  %v15625_v11 = vand.u32 4294901760, %v10725_v26 }
 0x36b   :  { %3678 = vmatpush.msrb.mxu3 %v15605_v30  ;;  %v11050_v30 = vpop.f32.mrf.mxu1  ;;  %8142 = vmatpush.msk.msra.mxu2 %vm9325_vm7, %v15427_v29  ;;  %v2730_v59 = vsub.f32 %v11028_v43, %v15612_v1  ;;  %v15616_v1 = vld [vmem:[#allocation64_spill] sm:$0xff] }
 0x36c   :  { %v991_v62 = vsub.f32 -1e+30, %v15616_v1 }
 0x36d   :  { %1670 = vmatmul.f32.gmra.mxu1 %v1669_v46  ;;  %v15609_v46 = vld [vmem:[#allocation219_spill] sm:$0xff]  ;;  %8144 = vmatpush.msk.msra.mxu2 %vm9405_vm3, %v15427_v29 }
 0x36e   :  { %v15610_v13 = vand.u32 4294901760, %v15609_v46  ;;  %3073 = vmatmul.f32.vlgmr.msra.gmra.mxu0 %v10975_v40  ;;  %v8314_v2 = vpop.eup %8313  ;;  %v15614_v46 = vld [vmem:[#allocation214_spill] sm:$0xff] }
 0x36f   :  { %vm15615_vm5 = vnez %v15614_v46  ;;  %8146 = vmatpush.msk.msra.mxu2 %vm9474_vm2, %v15427_v29  ;;  %7495 = vrot.lane.b32.xlu1 %v10823_v47, %s8438_s23  ;;  %v15620_v47 = vld [vmem:[#allocation216_spill] sm:$0xff] }
 0x370   :  { %3682 = vmatpush.msrb.mxu3 %v15610_v13  ;;  %v15613_v13 = vand.u32 4294901760, %v10496_v33  ;;  %8100 = vmatpush.msk.msrb.mxu0 %vm15615_vm5, %v15427_v29  ;;  %v11090_v33 = vand.u32 4294901760, %v8314_v2  ;;  %vm15621_vm14 = vnez %v15620_v47 }
 0x371   :  { %v11084_v43 = vpop.f32.mrf.mxu0  ;;  %7487 = vrot.lane.b32.xlu2 %v10827_v20, %s8438_s23  ;;  %7491 = vrot.lane.b32.xlu0 %v10840_v36, %s8438_s23  ;;  %v11097_v1 = vpop.f32.mrf.mxu2  ;;  %v1066_v20 = vmul.f32 1.442695, %v991_v62 }
 0x372   :  { %3686 = vmatpush.msrb.mxu3 %v15613_v13  ;;  %15617 = vst [vmem:[#allocation198_spill] sm:$0xff] %v11084_v43  ;;  %v2731_v13 = vand.u32 4294901760, %v2730_v59  ;;  %2563 = vmatmul.f32.gmra.mxu2 %v15618_v3  ;;  %v15619_v43 = vand.u32 4294901760, %v10596_v48  ;;  %v11106_v59 = vpop.f32.mrf.mxu3  ;;  %v15623_v48 = vand.u32 4294901760, %v11070_v31  ;;  %v8316_v62 = vpop.eup %8315 }
 0x373   :  { %8101 = vmatpush.msk.msrb.mxu0 %vm15621_vm14, %v15427_v29  ;;  %8148 = vmatpush.msk.msra.mxu2 %vm9543_vm0, %v15427_v29  ;;  %8317 = vpow2.f32 %v1066_v20 }
 0x374   :  { %3690 = vmatpush.msrb.mxu3 %v15619_v43  ;;  %v2738_v43 = vsub.f32 %v11070_v31, %v15623_v48  ;;  %v15628_v48 = vld [vmem:[#allocation54_spill] sm:$0xff] }
 0x375   :  { %2398 = vmatmul.f32.vlgmr.msra.gmra.mxu1 %v15607_v45  ;;  %2732 = vmatmul.f32.gmra.mxu3 %v2731_v13  ;;  %v11104_v45 = vpop.f32.mrf.mxu1  ;;  %v11118_v13 = vsub.f32 %v8314_v2, %v11090_v33  ;;  %v11139_v2 = vand.u32 4294901760, %v8316_v62 }
 0x376   :  { %3694 = vmatpush.msrb.mxu3 %v15622_v25  ;;  %8141 = vmatpush.msk.msra.mxu1 %vm9325_vm7, %v15427_v29  ;;  %v993_v25 = vsub.f32 -1e+30, %v15626_v12  ;;  %v2739_v26 = vand.u32 4294901760, %v2738_v43 }
 0x377   :  { %3077 = vmatmul.f32.gmra.mxu0 %v11012_v14  ;;  %8150 = vmatpush.msk.msra.mxu2 %vm9610_vm13, %v15427_v29  ;;  %15627 = vst [vmem:[#allocation93_spill] sm:$0xff] %v11139_v2  ;;  %v14893_v51 = vand.u32 4294901760, %v11118_v13  ;;  %v11165_v12 = vsub.f32 %v8316_v62, %v11139_v2 }
 0x378   :  { %8102 = vmatpush.msk.msrb.mxu0 %vm15624_vm15, %v15427_v29  ;;  %3698 = vmatpush.msrb.mxu3 %v15625_v11 }
 0x379   :  { %8143 = vmatpush.msk.msra.mxu1 %vm9405_vm3, %v15427_v29  ;;  %7501 = vrot.lane.b32.xlu1 %v10844_v28, %s8438_s23  ;;  %v11146_v20 = vpop.f32.mrf.mxu0  ;;  %v1844_v43 = vpop.f32.mrf.mxu2  ;;  %v2746_v11 = vsub.f32 %v11118_v13, %v14893_v51  ;;  %v15629_v51 = vld [vmem:[#allocation75_spill] sm:$0xff] }
 0x37a   :  { %7493 = vrot.lane.b32.xlu2 %v10848_v23, %s8438_s23  ;;  %7497 = vrot.lane.b32.xlu0 %v10866_v56, %s8438_s23  ;;  %v8318_v15 = vpop.eup %8317  ;;  %v995_v62 = vsub.f32 -1e+30, %v15629_v51 }
 0x37b   :  { %2567 = vmatmul.f32.gmra.mxu2 %v15628_v48  ;;  %8103 = vmatpush.msk.msrb.mxu0 %vm10539_vm8, %v15427_v29  ;;  %v11181_v35 = vand.u32 4294901760, %v8318_v15 }
 0x37c   :  { %8145 = vmatpush.msk.msra.mxu1 %vm9474_vm2, %v15427_v29  ;;  %8152 = vmatpush.msk.msra.mxu2 %vm9679_vm9, %v15427_v29  ;;  %vm4566_vm2 = vcmask 1043456  }
 0x37d   :  { %2402 = vmatmul.f32.gmra.mxu1 %v15618_v3  ;;  %2740 = vmatmul.f32.gmra.mxu3 %v2739_v26  ;;  %v1070_v3 = vmul.f32 1.442695, %v993_v25  ;;  %v1567_v25 = vpop.f32.mrf.mxu1  ;;  %v2040_v26 = vpop.f32.mrf.mxu3  ;;  %15630 = vst [vmem:[#allocation204_spill] sm:$0xff] %v11181_v35  ;;  %v11206_v58 = vsub.f32 %v8318_v15, %v11181_v35 }
 0x37e   :  { %8104 = vmatpush.msk.msrb.mxu0 %vm10685_vm12, %v15427_v29  ;;  %8147 = vmatpush.msk.msra.mxu1 %vm9543_vm0, %v15427_v29  ;;  %v1845_v28 = vadd.f32 %v1844_v43, %v1567_v25  ;;  %v2747_v43 = vand.u32 4294901760, %v2746_v11  ;;  %v14895_v25 = vand.u32 4294901760, %v11165_v12 }
 0x37f   :  { %3081 = vmatmul.f32.gmra.mxu0 %v11044_v38  ;;  %8154 = vmatpush.msk.msra.mxu2 %vm9746_vm6, %v15427_v29  ;;  %8319 = vpow2.f32 %v1070_v3  ;;  %15632 = vst [vmem:[#allocation105_spill] sm:$0xff] %v11206_v58 }
 0x380   :  { %8149 = vmatpush.msk.msra.mxu1 %vm9610_vm13, %v15427_v29  ;;  %v11183_v56 = vadd.f32 %v2040_v26, %v1845_v28  ;;  %v1074_v28 = vmul.f32 1.442695, %v995_v62  ;;  %v2754_v3 = vsub.f32 %v11165_v12, %v14895_v25 }
 0x381   :  { %7507 = vrot.lane.b32.xlu1 %v10882_v39, %s8438_s23  ;;  %v11190_v51 = vpop.f32.mrf.mxu0  ;;  %8156 = vmatpush.msk.msra.mxu2 %vm10272_vm10, %v15427_v29 }
 0x382   :  { %7499 = vrot.lane.b32.xlu2 %v10896_v19, %s8438_s23  ;;  %7503 = vrot.lane.b32.xlu0 %v10900_v55, %s8438_s23  ;;  %8321 = vpow2.f32 %v1074_v28  ;;  %v2755_v5 = vand.u32 4294901760, %v2754_v3  ;;  %v15635_v28 = vld [vmem:[#allocation66_spill] sm:$0xff] }
 0x383   :  { %2571 = vmatmul.f32.gmra.mxu2 %v15631_v7  ;;  %8151 = vmatpush.msk.msra.mxu1 %vm9679_vm9, %v15427_v29  ;;  %v15643_v55 = vld [vmem:[#allocation78_spill] sm:$0xff] }
 0x384   :  { %8158 = vmatpush.msk.msra.mxu2 %vm10286_vm11, %v15427_v29 }
 0x385   :  { %2406 = vmatmul.f32.gmra.mxu1 %v15628_v48  ;;  %2748 = vmatmul.f32.gmra.mxu3 %v2747_v43  ;;  %v1848_v48 = vpop.f32.mrf.mxu2  ;;  %v8320_v11 = vpop.eup %8319  ;;  %v15633_v43 = vld [vmem:[#allocation80_spill] sm:$0xff] }
 0x386   :  { %8153 = vmatpush.msk.msra.mxu1 %vm9746_vm6, %v15427_v29  ;;  %v1575_v26 = vpop.f32.mrf.mxu1  ;;  %v2045_v62 = vpop.f32.mrf.mxu3  ;;  %8160 = vmatpush.msk.msra.mxu2 %vm10307_vm4, %v15427_v29  ;;  %v997_v15 = vsub.f32 -1e+30, %v15633_v43  ;;  %v11223_v25 = vand.u32 4294901760, %v8320_v11 }
 0x387   :  { %3085 = vmatmul.f32.gmra.mxu0 %v11090_v33  ;;  %v1849_v4 = vadd.f32 %v1848_v48, %v1575_v26  ;;  %v14897_v48 = vand.u32 4294901760, %v11206_v58 }
 0x388   :  { %8155 = vmatpush.msk.msra.mxu1 %vm10272_vm10, %v15427_v29  ;;  %15634 = vst [vmem:[#allocation52_spill] sm:$0xff] %v11223_v25  ;;  %8162 = vmatpush.msk.msra.mxu2 %vm10321_vm1, %v15427_v29  ;;  %v1078_v27 = vmul.f32 1.442695, %v997_v15  ;;  %v11248_v37 = vsub.f32 %v8320_v11, %v11223_v25  ;;  %v15637_v15 = vld [vmem:[#allocation87_spill] sm:$0xff] }
 0x389   :  { %v11225_v39 = vadd.f32 %v2045_v62, %v1849_v4  ;;  %v11232_v26 = vpop.f32.mrf.mxu0  ;;  %v2762_v3 = vsub.f32 %v11206_v58, %v14897_v48  ;;  %v8322_v62 = vpop.eup %8321  ;;  %v999_v11 = vsub.f32 -1e+30, %v15637_v15 }
 0x38a   :  { %7505 = vrot.lane.b32.xlu2 %v10915_v63, %s8438_s23  ;;  %8157 = vmatpush.msk.msra.mxu1 %vm10286_vm11, %v15427_v29  ;;  %15636 = vst [vmem:[#allocation100_spill] sm:$0xff] %v11248_v37  ;;  %8323 = vpow2.f32 %v1078_v27  ;;  %v15639_v27 = vld [vmem:[#allocation72_spill] sm:$0xff]  ;;  %vm4469_vm11 = vcmask 31744  }
 0x38b   :  { %7509 = vrot.lane.b32.xlu0 %v10919_v18, %s8438_s23  ;;  %2575 = vmatmul.f32.gmra.mxu2 %v15635_v28  ;;  %v2763_v46 = vand.u32 4294901760, %v2762_v3  ;;  %v1082_v47 = vmul.f32 1.442695, %v999_v11  ;;  %v15641_v11 = vld [vmem:[#allocation92_spill] sm:$0xff] }
 0x38c   :  { %8159 = vmatpush.msk.msra.mxu1 %vm10307_vm4, %v15427_v29  ;;  %8164 = vmatpush.msk.msra.mxu2 %vm15615_vm5, %v15427_v29 }
 0x38d   :  { %2410 = vmatmul.f32.gmra.mxu1 %v15631_v7  ;;  %2756 = vmatmul.f32.gmra.mxu3 %v2755_v5  ;;  %v1852_v7 = vpop.f32.mrf.mxu2  ;;  %v11263_v5 = vand.u32 4294901760, %v8322_v62  ;;  %8325 = vpow2.f32 %v1082_v47 }
 0x38e   :  { %8161 = vmatpush.msk.msra.mxu1 %vm10321_vm1, %v15427_v29  ;;  %v1583_v4 = vpop.f32.mrf.mxu1  ;;  %v2050_v43 = vpop.f32.mrf.mxu3  ;;  %8166 = vmatpush.msk.msra.mxu2 %vm15621_vm14, %v15427_v29 }
 0x38f   :  { %3089 = vmatmul.f32.gmra.mxu0 %v11139_v2  ;;  %v1853_v32 = vadd.f32 %v1852_v7, %v1583_v4  ;;  %15638 = vst [vmem:[#allocation200_spill] sm:$0xff] %v11263_v5  ;;  %v14899_v7 = vand.u32 4294901760, %v11248_v37  ;;  %v11289_v22 = vsub.f32 %v8322_v62, %v11263_v5 }
 0x390   :  { %8163 = vmatpush.msk.msra.mxu1 %vm15615_vm5, %v15427_v29  ;;  %8168 = vmatpush.msk.msra.mxu2 %vm15624_vm15, %v15427_v29 }
 0x391   :  { %v11265_v48 = vadd.f32 %v2050_v43, %v1853_v32  ;;  %v11273_v4 = vpop.f32.mrf.mxu0  ;;  %v2770_v3 = vsub.f32 %v11248_v37, %v14899_v7  ;;  %15640 = vst [vmem:[#allocation208_spill] sm:$0xff] %v11289_v22  ;;  %v8324_v43 = vpop.eup %8323  ;;  %v14904_v63 = vand.u32 4294901760, %v11289_v22 }
 0x392   :  { %8165 = vmatpush.msk.msra.mxu1 %vm15621_vm14, %v15427_v29  ;;  %8170 = vmatpush.msk.msra.mxu2 %vm10539_vm8, %v15427_v29  ;;  %v11298_v18 = vand.u32 4294901760, %v8324_v43 }
 0x393   :  { %2579 = vmatmul.f32.gmra.mxu2 %v15639_v27  ;;  %v2771_v62 = vand.u32 4294901760, %v2770_v3  ;;  %v8326_v3 = vpop.eup %8325 }
 0x394   :  { %8167 = vmatpush.msk.msra.mxu1 %vm15624_vm15, %v15427_v29  ;;  %8172 = vmatpush.msk.msra.mxu2 %vm10685_vm12, %v15427_v29  ;;  %15642 = vst [vmem:[#allocation202_spill] sm:$0xff] %v11298_v18 }
 0x395   :  { %2414 = vmatmul.f32.gmra.mxu1 %v15635_v28  ;;  %2764 = vmatmul.f32.gmra.mxu3 %v2763_v46  ;;  %v1856_v28 = vpop.f32.mrf.mxu2  ;;  %v1001_v46 = vsub.f32 -1e+30, %v15641_v11  ;;  %v15645_v11 = vld [vmem:[#allocation99_spill] sm:$0xff] }
 0x396   :  { %8169 = vmatpush.msk.msra.mxu1 %vm10539_vm8, %v15427_v29  ;;  %v1591_v32 = vpop.f32.mrf.mxu1  ;;  %v2055_v15 = vpop.f32.mrf.mxu3 }
 0x397   :  { %3093 = vmatmul.f32.gmra.mxu0 %v11181_v35  ;;  %v1857_v52 = vadd.f32 %v1856_v28, %v1591_v32  ;;  %v1086_v9 = vmul.f32 1.442695, %v1001_v46  ;;  %v11316_v28 = vsub.f32 %v8324_v43, %v11298_v18 }
 0x398   :  { %8171 = vmatpush.msk.msra.mxu1 %vm10685_vm12, %v15427_v29  ;;  %v11309_v29 = vadd.f32 %v11146_v20, %v11183_v56  ;;  %v11319_v56 = vand.u32 4294901760, %v8326_v3 }
 0x399   :  { %v11300_v7 = vadd.f32 %v2055_v15, %v1857_v52  ;;  %15644 = vst [vmem:[#allocation209_spill] sm:$0xff] %v11316_v28  ;;  %8327 = vpow2.f32 %v1086_v9  ;;  %v14910_v23 = vand.u32 4294901760, %v11316_v28 }
 0x39a   :  { %v11305_v19 = vpop.f32.mrf.mxu0  ;;  %15646 = vst [vmem:[#allocation57_spill] sm:$0xff] %v11319_v56 }
 0x39b   :  { %2583 = vmatmul.f32.gmra.mxu2 %v15643_v55 }
 0x39d   :  { %2418 = vmatmul.f32.gmra.mxu1 %v15639_v27  ;;  %2772 = vmatmul.f32.gmra.mxu3 %v2771_v62  ;;  %v1860_v47 = vpop.f32.mrf.mxu2  ;;  %v2778_v27 = vsub.f32 %v11289_v22, %v14904_v63  ;;  %v1003_v62 = vsub.f32 -1e+30, %v15645_v11  ;;  %v15647_v63 = vld [vmem:[#allocation84_spill] sm:$0xff] }
 0x39e   :  { %v1599_v32 = vpop.f32.mrf.mxu1  ;;  %v2060_v15 = vpop.f32.mrf.mxu3 }
 0x39f   :  { %3097 = vmatmul.f32.gmra.mxu0 %v11223_v25  ;;  %v1861_v52 = vadd.f32 %v1860_v47, %v1599_v32  ;;  %v2779_v46 = vand.u32 4294901760, %v2778_v27  ;;  %v11330_v47 = vadd.f32 %v11190_v51, %v11225_v39  ;;  %v1090_v9 = vmul.f32 1.442695, %v1003_v62 }
 0x3a0   :  { %v11337_v27 = vsub.f32 %v8326_v3, %v11319_v56 }
 0x3a1   :  { %v11321_v20 = vadd.f32 %v2060_v15, %v1861_v52  ;;  %v8328_v15 = vpop.eup %8327  ;;  %8329 = vpow2.f32 %v1090_v9 }
 0x3a2   :  { %v11326_v43 = vpop.f32.mrf.mxu0  ;;  %15648 = vst [vmem:[#allocation42_spill] sm:$0xff] %v11337_v27  ;;  %v11340_v39 = vand.u32 4294901760, %v8328_v15 }
 0x3a3   :  { %2587 = vmatmul.f32.gmra.mxu2 %v15647_v63 }
 0x3a4   :  { %15650 = vst [vmem:[#allocation205_spill] sm:$0xff] %v11340_v39 }
 0x3a5   :  { %2422 = vmatmul.f32.gmra.mxu1 %v15643_v55  ;;  %2780 = vmatmul.f32.gmra.mxu3 %v2779_v46  ;;  %v1864_v32 = vpop.f32.mrf.mxu2  ;;  %v2786_v55 = vsub.f32 %v11316_v28, %v14910_v23  ;;  %v15649_v46 = vld [vmem:[#allocation104_spill] sm:$0xff]  ;;  %v15651_v23 = vld [vmem:[#allocation89_spill] sm:$0xff] }
 0x3a6   :  { %v1607_v52 = vpop.f32.mrf.mxu1  ;;  %v2065_v11 = vpop.f32.mrf.mxu3  ;;  %v1005_v22 = vsub.f32 -1e+30, %v15649_v46 }
 0x3a7   :  { %3101 = vmatmul.f32.gmra.mxu0 %v11263_v5  ;;  %v1865_v36 = vadd.f32 %v1864_v32, %v1607_v52  ;;  %v2787_v62 = vand.u32 4294901760, %v2786_v55  ;;  %v14917_v5 = vand.u32 4294901760, %v11337_v27  ;;  %v11351_v32 = vadd.f32 %v11232_v26, %v11265_v48  ;;  %v8330_v55 = vpop.eup %8329 }
 0x3a8   :  { %v1094_v9 = vmul.f32 1.442695, %v1005_v22  ;;  %v11361_v48 = vand.u32 4294901760, %v8330_v55 }
 0x3a9   :  { %v11342_v51 = vadd.f32 %v2065_v11, %v1865_v36  ;;  %15652 = vst [vmem:[#allocation219_spill] sm:$0xff] %v11351_v32  ;;  %v2794_v36 = vsub.f32 %v11337_v27, %v14917_v5  ;;  %v15656_v5 = vld [vmem:[#allocation95_spill] sm:$0xff] }
 0x3aa   :  { %v11347_v3 = vpop.f32.mrf.mxu0  ;;  %8331 = vpow2.f32 %v1094_v9  ;;  %15655 = vst [vmem:[#allocation214_spill] sm:$0xff] %v11361_v48 }
 0x3ab   :  { %2591 = vmatmul.f32.gmra.mxu2 %v15651_v23  ;;  %v2795_v22 = vand.u32 4294901760, %v2794_v36 }
 0x3ad   :  { %2426 = vmatmul.f32.gmra.mxu1 %v15647_v63  ;;  %2788 = vmatmul.f32.gmra.mxu3 %v2787_v62  ;;  %v1868_v52 = vpop.f32.mrf.mxu2  ;;  %v11358_v63 = vsub.f32 %v8328_v15, %v11340_v39  ;;  %v15654_v62 = vld [vmem:[#allocation112_spill] sm:$0xff] }
 0x3ae   :  { %v1615_v11 = vpop.f32.mrf.mxu1  ;;  %v2070_v46 = vpop.f32.mrf.mxu3  ;;  %v1007_v25 = vsub.f32 -1e+30, %v15654_v62 }
 0x3af   :  { %3105 = vmatmul.f32.gmra.mxu0 %v11298_v18  ;;  %15653 = vst [vmem:[#allocation206_spill] sm:$0xff] %v11358_v63  ;;  %v1869_v28 = vadd.f32 %v1868_v52, %v1615_v11  ;;  %v14924_v18 = vand.u32 4294901760, %v11358_v63  ;;  %v11372_v52 = vadd.f32 %v11273_v4, %v11300_v7 }
 0x3b0   :  { %v1098_v9 = vmul.f32 1.442695, %v1007_v25  ;;  %v8332_v36 = vpop.eup %8331 }
 0x3b1   :  { %v11363_v26 = vadd.f32 %v2070_v46, %v1869_v28  ;;  %15657 = vst [vmem:[#allocation64_spill] sm:$0xff] %v11372_v52  ;;  %v11379_v28 = vsub.f32 %v8330_v55, %v11361_v48  ;;  %v11382_v7 = vand.u32 4294901760, %v8332_v36 }
 0x3b2   :  { %8333 = vpow2.f32 %v1098_v9 }
 0x3b3   :  { %2595 = vmatmul.f32.gmra.mxu2 %v15656_v5  ;;  %v11368_v15 = vpop.f32.mrf.mxu0  ;;  %15658 = vst [vmem:[#allocation48_spill] sm:$0xff] %v11379_v28 }
 0x3b4   :  { %15660 = vst [vmem:[#allocation216_spill] sm:$0xff] %v11382_v7 }
 0x3b5   :  { %2430 = vmatmul.f32.gmra.mxu1 %v15651_v23  ;;  %2796 = vmatmul.f32.gmra.mxu3 %v2795_v22  ;;  %v1872_v11 = vpop.f32.mrf.mxu2  ;;  %v2802_v23 = vsub.f32 %v11358_v63, %v14924_v18  ;;  %v15659_v22 = vld [vmem:[#allocation118_spill] sm:$0xff] }
 0x3b6   :  { %v1623_v46 = vpop.f32.mrf.mxu1  ;;  %v2075_v62 = vpop.f32.mrf.mxu3  ;;  %v1009_v37 = vsub.f32 -1e+30, %v15659_v22  ;;  %v15661_v18 = vld [vmem:[#allocation102_spill] sm:$0xff] }
 0x3b7   :  { %3109 = vmatmul.f32.gmra.mxu0 %v11319_v56  ;;  %v1873_v27 = vadd.f32 %v1872_v11, %v1623_v46  ;;  %v2803_v4 = vand.u32 4294901760, %v2802_v23  ;;  %v14929_v56 = vand.u32 4294901760, %v11379_v28  ;;  %v11393_v11 = vadd.f32 %v11305_v19, %v11321_v20 }
 0x3b8   :  { %v1102_v9 = vmul.f32 1.442695, %v1009_v37  ;;  %v8334_v23 = vpop.eup %8333 }
 0x3b9   :  { %v11384_v25 = vadd.f32 %v2075_v62, %v1873_v27  ;;  %15662 = vst [vmem:[#allocation69_spill] sm:$0xff] %v11393_v11  ;;  %v11400_v27 = vsub.f32 %v8332_v36, %v11382_v7  ;;  %v11403_v19 = vand.u32 4294901760, %v8334_v23 }
 0x3ba   :  { %8335 = vpow2.f32 %v1102_v9 }
 0x3bb   :  { %2599 = vmatmul.f32.gmra.mxu2 %v15661_v18  ;;  %v11389_v55 = vpop.f32.mrf.mxu0  ;;  %15663 = vst [vmem:[#allocation54_spill] sm:$0xff] %v11400_v27 }
 0x3bc   :  { %15665 = vst [vmem:[#allocation75_spill] sm:$0xff] %v11403_v19 }
 0x3bd   :  { %2434 = vmatmul.f32.gmra.mxu1 %v15656_v5  ;;  %2804 = vmatmul.f32.gmra.mxu3 %v2803_v4  ;;  %v1876_v46 = vpop.f32.mrf.mxu2  ;;  %v2810_v5 = vsub.f32 %v11379_v28, %v14929_v56  ;;  %v15664_v4 = vld [vmem:[#allocation124_spill] sm:$0xff]  ;;  %v15666_v56 = vld [vmem:[#allocation109_spill] sm:$0xff] }
 0x3be   :  { %v1631_v62 = vpop.f32.mrf.mxu1  ;;  %v2080_v22 = vpop.f32.mrf.mxu3  ;;  %v1011_v52 = vsub.f32 -1e+30, %v15664_v4 }
 0x3bf   :  { %3113 = vmatmul.f32.gmra.mxu0 %v11340_v39  ;;  %v1877_v63 = vadd.f32 %v1876_v46, %v1631_v62  ;;  %v2811_v20 = vand.u32 4294901760, %v2810_v5  ;;  %v14934_v39 = vand.u32 4294901760, %v11400_v27  ;;  %v11414_v46 = vadd.f32 %v11326_v43, %v11342_v51 }
 0x3c0   :  { %v1106_v9 = vmul.f32 1.442695, %v1011_v52  ;;  %v8336_v5 = vpop.eup %8335 }
 0x3c1   :  { %v11405_v37 = vadd.f32 %v2080_v22, %v1877_v63  ;;  %15667 = vst [vmem:[#allocation60_spill] sm:$0xff] %v11414_v46  ;;  %v11421_v63 = vsub.f32 %v8334_v23, %v11403_v19  ;;  %v11424_v43 = vand.u32 4294901760, %v8336_v5 }
 0x3c2   :  { %8337 = vpow2.f32 %v1106_v9 }
 0x3c3   :  { %2603 = vmatmul.f32.gmra.mxu2 %v15666_v56  ;;  %v11410_v36 = vpop.f32.mrf.mxu0  ;;  %15668 = vst [vmem:[#allocation80_spill] sm:$0xff] %v11421_v63 }
 0x3c4   :  { %15670 = vst [vmem:[#allocation66_spill] sm:$0xff] %v11424_v43 }
 0x3c5   :  { %2438 = vmatmul.f32.gmra.mxu1 %v15661_v18  ;;  %2812 = vmatmul.f32.gmra.mxu3 %v2811_v20  ;;  %v1880_v62 = vpop.f32.mrf.mxu2  ;;  %v2818_v18 = vsub.f32 %v11400_v27, %v14934_v39  ;;  %v15669_v20 = vld [vmem:[#allocation130_spill] sm:$0xff]  ;;  %v15671_v39 = vld [vmem:[#allocation116_spill] sm:$0xff] }
 0x3c6   :  { %v1639_v22 = vpop.f32.mrf.mxu1  ;;  %v2085_v4 = vpop.f32.mrf.mxu3  ;;  %v1013_v11 = vsub.f32 -1e+30, %v15669_v20 }
 0x3c7   :  { %3117 = vmatmul.f32.gmra.mxu0 %v11361_v48  ;;  %v1881_v28 = vadd.f32 %v1880_v62, %v1639_v22  ;;  %v2819_v52 = vand.u32 4294901760, %v2818_v18  ;;  %v14939_v48 = vand.u32 4294901760, %v11421_v63  ;;  %v11435_v62 = vadd.f32 %v11347_v3, %v11363_v26 }
 0x3c8   :  { %v1110_v9 = vmul.f32 1.442695, %v1013_v11  ;;  %v8338_v18 = vpop.eup %8337 }
 0x3c9   :  { %v11426_v51 = vadd.f32 %v2085_v4, %v1881_v28  ;;  %15672 = vst [vmem:[#allocation87_spill] sm:$0xff] %v11435_v62  ;;  %v11442_v28 = vsub.f32 %v8336_v5, %v11424_v43  ;;  %v11445_v3 = vand.u32 4294901760, %v8338_v18 }
 0x3ca   :  { %8339 = vpow2.f32 %v1110_v9 }
 0x3cb   :  { %2607 = vmatmul.f32.gmra.mxu2 %v15671_v39  ;;  %v11431_v23 = vpop.f32.mrf.mxu0  ;;  %15673 = vst [vmem:[#allocation72_spill] sm:$0xff] %v11442_v28 }
 0x3cc   :  { %15675 = vst [vmem:[#allocation92_spill] sm:$0xff] %v11445_v3 }
 0x3cd   :  { %2442 = vmatmul.f32.gmra.mxu1 %v15666_v56  ;;  %2820 = vmatmul.f32.gmra.mxu3 %v2819_v52  ;;  %v1884_v22 = vpop.f32.mrf.mxu2  ;;  %v2826_v56 = vsub.f32 %v11421_v63, %v14939_v48  ;;  %v15674_v52 = vld [vmem:[#allocation137_spill] sm:$0xff] }
 0x3ce   :  { %v1647_v4 = vpop.f32.mrf.mxu1  ;;  %v2090_v20 = vpop.f32.mrf.mxu3  ;;  %v1015_v46 = vsub.f32 -1e+30, %v15674_v52  ;;  %v15676_v48 = vld [vmem:[#allocation121_spill] sm:$0xff] }
 0x3cf   :  { %3121 = vmatmul.f32.gmra.mxu0 %v11382_v7  ;;  %v1885_v27 = vadd.f32 %v1884_v22, %v1647_v4  ;;  %v2827_v11 = vand.u32 4294901760, %v2826_v56  ;;  %v14944_v7 = vand.u32 4294901760, %v11442_v28  ;;  %v11456_v22 = vadd.f32 %v11368_v15, %v11384_v25 }
 0x3d0   :  { %v1114_v9 = vmul.f32 1.442695, %v1015_v46  ;;  %v8340_v56 = vpop.eup %8339 }
 0x3d1   :  { %v11447_v26 = vadd.f32 %v2090_v20, %v1885_v27  ;;  %15677 = vst [vmem:[#allocation78_spill] sm:$0xff] %v11456_v22  ;;  %v11463_v27 = vsub.f32 %v8338_v18, %v11445_v3  ;;  %v11466_v15 = vand.u32 4294901760, %v8340_v56 }
 0x3d2   :  { %8341 = vpow2.f32 %v1114_v9 }
 0x3d3   :  { %2611 = vmatmul.f32.gmra.mxu2 %v15676_v48  ;;  %v11452_v5 = vpop.f32.mrf.mxu0  ;;  %15678 = vst [vmem:[#allocation99_spill] sm:$0xff] %v11463_v27 }
 0x3d4   :  { %15680 = vst [vmem:[#allocation84_spill] sm:$0xff] %v11466_v15 }
 0x3d5   :  { %2446 = vmatmul.f32.gmra.mxu1 %v15671_v39  ;;  %2828 = vmatmul.f32.gmra.mxu3 %v2827_v11  ;;  %v1888_v4 = vpop.f32.mrf.mxu2  ;;  %v2834_v39 = vsub.f32 %v11442_v28, %v14944_v7  ;;  %v15679_v11 = vld [vmem:[#allocation152_spill] sm:$0xff]  ;;  %v15681_v7 = vld [vmem:[#allocation127_spill] sm:$0xff] }
 0x3d6   :  { %v1655_v20 = vpop.f32.mrf.mxu1  ;;  %v2095_v52 = vpop.f32.mrf.mxu3  ;;  %v1017_v62 = vsub.f32 -1e+30, %v15679_v11 }
 0x3d7   :  { %3125 = vmatmul.f32.gmra.mxu0 %v11403_v19  ;;  %v1889_v63 = vadd.f32 %v1888_v4, %v1655_v20  ;;  %v2835_v46 = vand.u32 4294901760, %v2834_v39  ;;  %v14949_v19 = vand.u32 4294901760, %v11463_v27  ;;  %v11477_v4 = vadd.f32 %v11389_v55, %v11405_v37 }
 0x3d8   :  { %v1118_v9 = vmul.f32 1.442695, %v1017_v62  ;;  %v8342_v39 = vpop.eup %8341 }
 0x3d9   :  { %v11468_v25 = vadd.f32 %v2095_v52, %v1889_v63  ;;  %15682 = vst [vmem:[#allocation104_spill] sm:$0xff] %v11477_v4  ;;  %v11484_v63 = vsub.f32 %v8340_v56, %v11466_v15  ;;  %v11487_v55 = vand.u32 4294901760, %v8342_v39 }
 0x3da   :  { %8343 = vpow2.f32 %v1118_v9  ;;  %v15688_v9 = vld [vmem:[#allocation140_spill] sm:$0xff] }
 0x3db   :  { %2615 = vmatmul.f32.gmra.mxu2 %v15681_v7  ;;  %v11473_v18 = vpop.f32.mrf.mxu0  ;;  %15683 = vst [vmem:[#allocation89_spill] sm:$0xff] %v11484_v63 }
 0x3dc   :  { %15685 = vst [vmem:[#allocation112_spill] sm:$0xff] %v11487_v55 }
 0x3dd   :  { %2450 = vmatmul.f32.gmra.mxu1 %v15676_v48  ;;  %2836 = vmatmul.f32.gmra.mxu3 %v2835_v46  ;;  %v1892_v20 = vpop.f32.mrf.mxu2  ;;  %v2842_v48 = vsub.f32 %v11463_v27, %v14949_v19  ;;  %v15684_v46 = vld [vmem:[#allocation154_spill] sm:$0xff]  ;;  %v15686_v19 = vld [vmem:[#allocation133_spill] sm:$0xff] }
 0x3de   :  { %v2100_v11 = vpop.f32.mrf.mxu3  ;;  %v1019_v22 = vsub.f32 -1e+30, %v15684_v46 }
 0x3df   :  { %3129 = vmatmul.f32.gmra.mxu0 %v11424_v43  ;;  %v2843_v62 = vand.u32 4294901760, %v2842_v48  ;;  %v14956_v43 = vand.u32 4294901760, %v11484_v63  ;;  %v11507_v48 = vsub.f32 %v8342_v39, %v11487_v55  ;;  %v15694_v39 = vld [vmem:[#allocation135_spill] sm:$0xff] }
 0x3e0   :  { %v1122_v27 = vmul.f32 1.442695, %v1019_v22 }
 0x3e1   :  { %15690 = vst [vmem:[#allocation118_spill] sm:$0xff] %v11507_v48 }
 0x3e2   :  { %v1663_v52 = vpop.f32.mrf.mxu1  ;;  %8345 = vpow2.f32 %v1122_v27  ;;  %v15696_v27 = vld [vmem:[#allocation144_spill] sm:$0xff] }
 0x3e3   :  { %v1893_v28 = vadd.f32 %v1892_v20, %v1663_v52  ;;  %2619 = vmatmul.f32.gmra.mxu2 %v15686_v19  ;;  %v11494_v56 = vpop.f32.mrf.mxu0  ;;  %v11498_v20 = vadd.f32 %v11410_v36, %v11426_v51  ;;  %v15689_v52 = vld [vmem:[#allocation139_spill] sm:$0xff]  ;;  %v15691_v36 = vld [vmem:[#allocation141_spill] sm:$0xff] }
 0x3e4   :  { %v1773_v46 = vadd.f32 %v15689_v52, %v15688_v9 }
 0x3e5   :  { %v11489_v37 = vadd.f32 %v2100_v11, %v1893_v28  ;;  %2454 = vmatmul.f32.gmra.mxu1 %v15681_v7  ;;  %2844 = vmatmul.f32.gmra.mxu3 %v2843_v62  ;;  %15687 = vst [vmem:[#allocation95_spill] sm:$0xff] %v11498_v20  ;;  %v1896_v28 = vpop.f32.mrf.mxu2  ;;  %v2850_v7 = vsub.f32 %v11484_v63, %v14956_v43  ;;  %v8344_v11 = vpop.eup %8343  ;;  %v15692_v20 = vld [vmem:[#allocation158_spill] sm:$0xff]  ;;  %v14963_v43 = vand.u32 4294901760, %v11507_v48 }
 0x3e6   :  { %v2105_v4 = vpop.f32.mrf.mxu3  ;;  %v1951_v51 = vadd.f32 %v15691_v36, %v1773_v46  ;;  %v1021_v9 = vsub.f32 -1e+30, %v15692_v20  ;;  %v11511_v22 = vand.u32 4294901760, %v8344_v11  ;;  %v11522_v46 = vadd.f32 %v11431_v23, %v11447_v26  ;;  %v15697_v20 = vld [vmem:[#allocation143_spill] sm:$0xff] }
 0x3e7   :  { %3133 = vmatmul.f32.gmra.mxu0 %v11445_v3  ;;  %v2851_v3 = vand.u32 4294901760, %v2850_v7  ;;  %v2858_v7 = vsub.f32 %v11507_v48, %v14963_v43  ;;  %v15703_v43 = vld [vmem:[#allocation147_spill] sm:$0xff] }
 0x3e8   :  { %15693 = vst [vmem:[#allocation102_spill] sm:$0xff] %v11511_v22  ;;  %v11532_v36 = vsub.f32 %v8344_v11, %v11511_v22 }
 0x3e9   :  { %15695 = vst [vmem:[#allocation124_spill] sm:$0xff] %v11522_v46  ;;  %v15700_v46 = vld [vmem:[#allocation145_spill] sm:$0xff] }
 0x3ea   :  { %v1671_v62 = vpop.f32.mrf.mxu1  ;;  %15699 = vst [vmem:[#allocation109_spill] sm:$0xff] %v11532_v36 }
 0x3eb   :  { %v1897_v35 = vadd.f32 %v1896_v28, %v1671_v62  ;;  %2623 = vmatmul.f32.gmra.mxu2 %v15694_v39  ;;  %v11518_v63 = vpop.f32.mrf.mxu0  ;;  %v1777_v28 = vadd.f32 %v15697_v20, %v15696_v27  ;;  %v1126_v62 = vmul.f32 1.442695, %v1021_v9  ;;  %v15701_v9 = vld [vmem:[#allocation159_spill] sm:$0xff] }
 0x3ec   :  { %v1023_v27 = vsub.f32 -1e+30, %v15701_v9 }
 0x3ed   :  { %v11513_v52 = vadd.f32 %v2105_v4, %v1897_v35  ;;  %2458 = vmatmul.f32.gmra.mxu1 %v15686_v19  ;;  %2852 = vmatmul.f32.gmra.mxu3 %v2851_v3  ;;  %v2560_v35 = vpop.f32.mrf.mxu2  ;;  %v15698_v19 = vld [vmem:[#allocation138_spill] sm:$0xff]  ;;  %v8346_v3 = vpop.eup %8345  ;;  %v1956_v32 = vadd.f32 %v15700_v46, %v1777_v28  ;;  %8347 = vpow2.f32 %v1126_v62  ;;  %v15706_v28 = vld [vmem:[#allocation149_spill] sm:$0xff] }
 0x3ee   :  { %v2145_v4 = vadd.f32 %v15698_v19, %v1951_v51  ;;  %v2725_v23 = vpop.f32.mrf.mxu3  ;;  %v11536_v20 = vand.u32 4294901760, %v8346_v3  ;;  %v2859_v51 = vand.u32 4294901760, %v2858_v7  ;;  %v14968_v19 = vand.u32 4294901760, %v11532_v36  ;;  %v15705_v46 = vld [vmem:[#allocation150_spill] sm:$0xff] }
 0x3ef   :  { %3137 = vmatmul.f32.gmra.mxu0 %v11466_v15  ;;  %v1781_v62 = vadd.f32 %v15706_v28, %v15705_v46 }
 0x3f0   :  { %15702 = vst [vmem:[#allocation130_spill] sm:$0xff] %v11536_v20 }
 0x3f2   :  { %v2399_v58 = vpop.f32.mrf.mxu1 }
 0x3f3   :  { %v2400_v26 = vadd.f32 %v2399_v58, %v2145_v4  ;;  %2627 = vmatmul.f32.gmra.mxu2 %v15703_v43  ;;  %v11547_v58 = vadd.f32 %v11452_v5, %v11468_v25 }
 0x3f4   :  { %v11541_v11 = vpop.f32.mrf.mxu0 }
 0x3f5   :  { %v2561_v15 = vadd.f32 %v2560_v35, %v2400_v26  ;;  %2462 = vmatmul.f32.gmra.mxu1 %v15694_v39  ;;  %2860 = vmatmul.f32.gmra.mxu3 %v2859_v51  ;;  %15704 = vst [vmem:[#allocation116_spill] sm:$0xff] %v11547_v58  ;;  %v1130_v35 = vmul.f32 1.442695, %v1023_v27  ;;  %v2564_v4 = vpop.f32.mrf.mxu2  ;;  %v15707_v39 = vld [vmem:[#allocation142_spill] sm:$0xff]  ;;  %v2866_v26 = vsub.f32 %v11532_v36, %v14968_v19  ;;  %v15709_v51 = vld [vmem:[#allocation151_spill] sm:$0xff]  ;;  %v15710_v27 = vld [vmem:[#allocation160_spill] sm:$0xff] }
 0x3f6   :  { %v2151_v7 = vadd.f32 %v15707_v39, %v1956_v32  ;;  %v1961_v58 = vadd.f32 %v15709_v51, %v1781_v62  ;;  %v1025_v46 = vsub.f32 -1e+30, %v15710_v27  ;;  %v15712_v19 = vld [vmem:[#allocation167_spill] sm:$0xff]  ;;  %v11572_v62 = vadd.f32 %v11473_v18, %v11489_v37 }
 0x3f7   :  { %v11543_v48 = vadd.f32 %v2725_v23, %v2561_v15  ;;  %3141 = vmatmul.f32.gmra.mxu0 %v11487_v55  ;;  %v11557_v15 = vsub.f32 %v8346_v3, %v11536_v20  ;;  %v8348_v23 = vpop.eup %8347  ;;  %8349 = vpow2.f32 %v1130_v35  ;;  %v2867_v32 = vand.u32 4294901760, %v2866_v26  ;;  %v15714_v35 = vld [vmem:[#allocation156_spill] sm:$0xff] }
 0x3f8   :  { %v2733_v5 = vpop.f32.mrf.mxu3  ;;  %v11561_v28 = vand.u32 4294901760, %v8348_v23  ;;  %15713 = vst [vmem:[#allocation152_spill] sm:$0xff] %v11572_v62 }
 0x3f9   :  { %15708 = vst [vmem:[#allocation137_spill] sm:$0xff] %v11557_v15  ;;  %v14973_v39 = vand.u32 4294901760, %v11557_v15 }
 0x3fa   :  { %v2403_v9 = vpop.f32.mrf.mxu1  ;;  %15711 = vst [vmem:[#allocation121_spill] sm:$0xff] %v11561_v28 }
 0x3fb   :  { %v2404_v25 = vadd.f32 %v2403_v9, %v2151_v7  ;;  %2631 = vmatmul.f32.gmra.mxu2 %v15712_v19  ;;  %v15715_v7 = vld [vmem:[#allocation155_spill] sm:$0xff]  ;;  %v2874_v51 = vsub.f32 %v11557_v15, %v14973_v39  ;;  %v15721_v39 = vld [vmem:[#allocation170_spill] sm:$0xff] }
 0x3fc   :  { %v11566_v3 = vpop.f32.mrf.mxu0  ;;  %v1785_v9 = vadd.f32 %v15715_v7, %v15714_v35 }
 0x3fd   :  { %v2565_v55 = vadd.f32 %v2564_v4, %v2404_v25  ;;  %2466 = vmatmul.f32.gmra.mxu1 %v15703_v43  ;;  %2868 = vmatmul.f32.gmra.mxu3 %v2867_v32  ;;  %v1134_v4 = vmul.f32 1.442695, %v1025_v46  ;;  %v15716_v43 = vld [vmem:[#allocation148_spill] sm:$0xff]  ;;  %v15718_v32 = vld [vmem:[#allocation157_spill] sm:$0xff]  ;;  %v15719_v46 = vld [vmem:[#allocation171_spill] sm:$0xff] }
 0x3fe   :  { %v2568_v25 = vpop.f32.mrf.mxu2  ;;  %v2157_v26 = vadd.f32 %v15716_v43, %v1961_v58  ;;  %v1966_v62 = vadd.f32 %v15718_v32, %v1785_v9  ;;  %v1027_v35 = vsub.f32 -1e+30, %v15719_v46  ;;  %v2875_v58 = vand.u32 4294901760, %v2874_v51 }
 0x3ff   :  { %v11568_v36 = vadd.f32 %v2733_v5, %v2565_v55  ;;  %3145 = vmatmul.f32.gmra.mxu0 %v11511_v22  ;;  %v11582_v55 = vsub.f32 %v8348_v23, %v11561_v28  ;;  %v8350_v5 = vpop.eup %8349  ;;  %8351 = vpow2.f32 %v1134_v4  ;;  %v11597_v9 = vadd.f32 %v11494_v56, %v11513_v52  ;;  %v15723_v4 = vld [vmem:[#allocation163_spill] sm:$0xff] }
 0x400   :  { %v2741_v18 = vpop.f32.mrf.mxu3  ;;  %v11586_v7 = vand.u32 4294901760, %v8350_v5 }
 0x401   :  { %15717 = vst [vmem:[#allocation127_spill] sm:$0xff] %v11582_v55  ;;  %v14978_v43 = vand.u32 4294901760, %v11582_v55 }
 0x402   :  { %v2407_v27 = vpop.f32.mrf.mxu1  ;;  %15720 = vst [vmem:[#allocation154_spill] sm:$0xff] %v11586_v7 }
 0x403   :  { %v2408_v37 = vadd.f32 %v2407_v27, %v2157_v26  ;;  %2635 = vmatmul.f32.gmra.mxu2 %v15721_v39  ;;  %15722 = vst [vmem:[#allocation133_spill] sm:$0xff] %v11597_v9  ;;  %v15724_v26 = vld [vmem:[#allocation162_spill] sm:$0xff]  ;;  %v2882_v32 = vsub.f32 %v11582_v55, %v14978_v43  ;;  %v15730_v43 = vld [vmem:[#allocation175_spill] sm:$0xff] }
 0x404   :  { %v11591_v23 = vpop.f32.mrf.mxu0  ;;  %v1789_v27 = vadd.f32 %v15724_v26, %v15723_v4 }
 0x405   :  { %v2569_v22 = vadd.f32 %v2568_v25, %v2408_v37  ;;  %2470 = vmatmul.f32.gmra.mxu1 %v15712_v19  ;;  %2876 = vmatmul.f32.gmra.mxu3 %v2875_v58  ;;  %v1138_v25 = vmul.f32 1.442695, %v1027_v35  ;;  %v15725_v19 = vld [vmem:[#allocation153_spill] sm:$0xff]  ;;  %v15727_v58 = vld [vmem:[#allocation164_spill] sm:$0xff] }
 0x406   :  { %v2572_v37 = vpop.f32.mrf.mxu2  ;;  %v2163_v51 = vadd.f32 %v15725_v19, %v1966_v62  ;;  %v1971_v9 = vadd.f32 %v15727_v58, %v1789_v27  ;;  %v15728_v35 = vld [vmem:[#allocation184_spill] sm:$0xff]  ;;  %v2883_v62 = vand.u32 4294901760, %v2882_v32  ;;  %v15732_v27 = vld [vmem:[#allocation173_spill] sm:$0xff] }
 0x407   :  { %v11593_v15 = vadd.f32 %v2741_v18, %v2569_v22  ;;  %3149 = vmatmul.f32.gmra.mxu0 %v11536_v20  ;;  %v11607_v22 = vsub.f32 %v8350_v5, %v11586_v7  ;;  %v8352_v18 = vpop.eup %8351  ;;  %8353 = vpow2.f32 %v1138_v25  ;;  %v1029_v4 = vsub.f32 -1e+30, %v15728_v35 }
 0x408   :  { %v2749_v56 = vpop.f32.mrf.mxu3  ;;  %v11611_v26 = vand.u32 4294901760, %v8352_v18 }
 0x409   :  { %15726 = vst [vmem:[#allocation140_spill] sm:$0xff] %v11607_v22  ;;  %v14985_v19 = vand.u32 4294901760, %v11607_v22 }
 0x40a   :  { %v2411_v46 = vpop.f32.mrf.mxu1  ;;  %15729 = vst [vmem:[#allocation139_spill] sm:$0xff] %v11611_v26  ;;  %v11628_v32 = vsub.f32 %v8352_v18, %v11611_v26 }
 0x40b   :  { %v2412_v52 = vadd.f32 %v2411_v46, %v2163_v51  ;;  %2639 = vmatmul.f32.gmra.mxu2 %v15730_v43  ;;  %v15731_v51 = vld [vmem:[#allocation176_spill] sm:$0xff]  ;;  %v1142_v46 = vmul.f32 1.442695, %v1029_v4 }
 0x40c   :  { %v11616_v5 = vpop.f32.mrf.mxu0  ;;  %v1793_v25 = vadd.f32 %v15732_v27, %v15731_v51  ;;  %15734 = vst [vmem:[#allocation141_spill] sm:$0xff] %v11628_v32  ;;  %v15736_v51 = vld [vmem:[#allocation177_spill] sm:$0xff] }
 0x40d   :  { %v2573_v20 = vadd.f32 %v2572_v37, %v2412_v52  ;;  %2474 = vmatmul.f32.gmra.mxu1 %v15721_v39  ;;  %2884 = vmatmul.f32.gmra.mxu3 %v2883_v62  ;;  %v15733_v37 = vld [vmem:[#allocation161_spill] sm:$0xff]  ;;  %v2890_v39 = vsub.f32 %v11607_v22, %v14985_v19  ;;  %8355 = vpow2.f32 %v1142_v46  ;;  %v14990_v19 = vand.u32 4294901760, %v11628_v32  ;;  %v15739_v22 = vld [vmem:[#allocation180_spill] sm:$0xff] }
 0x40e   :  { %v2576_v58 = vpop.f32.mrf.mxu2  ;;  %v2169_v52 = vadd.f32 %v15733_v37, %v1971_v9  ;;  %v1976_v27 = vadd.f32 %v15736_v51, %v1793_v25  ;;  %v15741_v25 = vld [vmem:[#allocation183_spill] sm:$0xff] }
 0x40f   :  { %v11618_v55 = vadd.f32 %v2749_v56, %v2573_v20  ;;  %3153 = vmatmul.f32.gmra.mxu0 %v11561_v28  ;;  %v11632_v20 = vadd.f32 %v11518_v63, %v11543_v48  ;;  %v8354_v56 = vpop.eup %8353  ;;  %v15737_v28 = vld [vmem:[#allocation189_spill] sm:$0xff]  ;;  %v2891_v18 = vand.u32 4294901760, %v2890_v39 }
 0x410   :  { %v2757_v62 = vpop.f32.mrf.mxu3  ;;  %v1031_v9 = vsub.f32 -1e+30, %v15737_v28  ;;  %v11636_v37 = vand.u32 4294901760, %v8354_v56 }
 0x411   :  { %15735 = vst [vmem:[#allocation158_spill] sm:$0xff] %v11632_v20 }
 0x412   :  { %v2415_v35 = vpop.f32.mrf.mxu1  ;;  %15738 = vst [vmem:[#allocation135_spill] sm:$0xff] %v11636_v37  ;;  %v11653_v39 = vsub.f32 %v8354_v56, %v11636_v37 }
 0x413   :  { %v2416_v4 = vadd.f32 %v2415_v35, %v2169_v52  ;;  %2643 = vmatmul.f32.gmra.mxu2 %v15739_v22  ;;  %v15740_v52 = vld [vmem:[#allocation185_spill] sm:$0xff]  ;;  %v1146_v35 = vmul.f32 1.442695, %v1031_v9 }
 0x414   :  { %v11641_v63 = vpop.f32.mrf.mxu0  ;;  %v1797_v46 = vadd.f32 %v15741_v25, %v15740_v52  ;;  %15743 = vst [vmem:[#allocation144_spill] sm:$0xff] %v11653_v39  ;;  %v15745_v52 = vld [vmem:[#allocation186_spill] sm:$0xff] }
 0x415   :  { %v2577_v2 = vadd.f32 %v2576_v58, %v2416_v4  ;;  %2478 = vmatmul.f32.gmra.mxu1 %v15730_v43  ;;  %2892 = vmatmul.f32.gmra.mxu3 %v2891_v18  ;;  %v15742_v58 = vld [vmem:[#allocation169_spill] sm:$0xff]  ;;  %v2898_v43 = vsub.f32 %v11628_v32, %v14990_v19  ;;  %8357 = vpow2.f32 %v1146_v35  ;;  %v14995_v19 = vand.u32 4294901760, %v11653_v39 }
 0x416   :  { %v2580_v28 = vpop.f32.mrf.mxu2  ;;  %v2175_v4 = vadd.f32 %v15742_v58, %v1976_v27  ;;  %v1981_v25 = vadd.f32 %v15745_v52, %v1797_v46  ;;  %v15748_v32 = vld [vmem:[#allocation181_spill] sm:$0xff] }
 0x417   :  { %v11643_v48 = vadd.f32 %v2757_v62, %v2577_v2  ;;  %3157 = vmatmul.f32.gmra.mxu0 %v11586_v7  ;;  %v11657_v2 = vadd.f32 %v11541_v11, %v11568_v36  ;;  %v8356_v62 = vpop.eup %8355  ;;  %v15746_v7 = vld [vmem:[#allocation199_spill] sm:$0xff]  ;;  %v2899_v56 = vand.u32 4294901760, %v2898_v43  ;;  %v15750_v46 = vld [vmem:[#allocation193_spill] sm:$0xff] }
 0x418   :  { %v2765_v18 = vpop.f32.mrf.mxu3  ;;  %v1033_v27 = vsub.f32 -1e+30, %v15746_v7  ;;  %v11661_v58 = vand.u32 4294901760, %v8356_v62 }
 0x419   :  { %15744 = vst [vmem:[#allocation143_spill] sm:$0xff] %v11657_v2 }
 0x41a   :  { %v2419_v51 = vpop.f32.mrf.mxu1  ;;  %15747 = vst [vmem:[#allocation138_spill] sm:$0xff] %v11661_v58  ;;  %v11678_v43 = vsub.f32 %v8356_v62, %v11661_v58 }
 0x41b   :  { %v2420_v9 = vadd.f32 %v2419_v51, %v2175_v4  ;;  %2647 = vmatmul.f32.gmra.mxu2 %v15748_v32  ;;  %v15749_v4 = vld [vmem:[#allocation195_spill] sm:$0xff]  ;;  %v1150_v51 = vmul.f32 1.442695, %v1033_v27 }
 0x41c   :  { %v11666_v36 = vpop.f32.mrf.mxu0  ;;  %v1801_v35 = vadd.f32 %v15750_v46, %v15749_v4  ;;  %15752 = vst [vmem:[#allocation145_spill] sm:$0xff] %v11678_v43  ;;  %v15754_v4 = vld [vmem:[#allocation196_spill] sm:$0xff] }
 0x41d   :  { %v2581_v20 = vadd.f32 %v2580_v28, %v2420_v9  ;;  %2482 = vmatmul.f32.gmra.mxu1 %v15739_v22  ;;  %2900 = vmatmul.f32.gmra.mxu3 %v2899_v56  ;;  %v15751_v28 = vld [vmem:[#allocation182_spill] sm:$0xff]  ;;  %v2906_v22 = vsub.f32 %v11653_v39, %v14995_v19  ;;  %8359 = vpow2.f32 %v1150_v51  ;;  %v15000_v19 = vand.u32 4294901760, %v11678_v43  ;;  %v15757_v39 = vld [vmem:[#allocation192_spill] sm:$0xff] }
 0x41e   :  { %v2584_v7 = vpop.f32.mrf.mxu2  ;;  %v2181_v9 = vadd.f32 %v15751_v28, %v1981_v25  ;;  %v1986_v46 = vadd.f32 %v15754_v4, %v1801_v35  ;;  %v15759_v35 = vld [vmem:[#allocation207_spill] sm:$0xff] }
 0x41f   :  { %v11668_v11 = vadd.f32 %v2765_v18, %v2581_v20  ;;  %3161 = vmatmul.f32.gmra.mxu0 %v11611_v26  ;;  %v11682_v20 = vadd.f32 %v11566_v3, %v11593_v15  ;;  %v8358_v18 = vpop.eup %8357  ;;  %v15755_v26 = vld [vmem:[#allocation213_spill] sm:$0xff]  ;;  %v2907_v62 = vand.u32 4294901760, %v2906_v22 }
 0x420   :  { %v2773_v56 = vpop.f32.mrf.mxu3  ;;  %v1035_v25 = vsub.f32 -1e+30, %v15755_v26  ;;  %v11686_v28 = vand.u32 4294901760, %v8358_v18 }
 0x421   :  { %15753 = vst [vmem:[#allocation159_spill] sm:$0xff] %v11682_v20 }
 0x422   :  { %v2423_v52 = vpop.f32.mrf.mxu1  ;;  %15756 = vst [vmem:[#allocation147_spill] sm:$0xff] %v11686_v28  ;;  %v11703_v22 = vsub.f32 %v8358_v18, %v11686_v28 }
 0x423   :  { %v2424_v27 = vadd.f32 %v2423_v52, %v2181_v9  ;;  %2651 = vmatmul.f32.gmra.mxu2 %v15757_v39  ;;  %v15758_v9 = vld [vmem:[#allocation210_spill] sm:$0xff]  ;;  %v1154_v52 = vmul.f32 1.442695, %v1035_v25 }
 0x424   :  { %v11691_v15 = vpop.f32.mrf.mxu0  ;;  %v1805_v51 = vadd.f32 %v15759_v35, %v15758_v9  ;;  %v15762_v9 = vld [vmem:[#allocation211_spill] sm:$0xff] }
 0x425   :  { %v2585_v2 = vadd.f32 %v2584_v7, %v2424_v27  ;;  %2486 = vmatmul.f32.gmra.mxu1 %v15748_v32  ;;  %2908 = vmatmul.f32.gmra.mxu3 %v2907_v62  ;;  %v15760_v7 = vld [vmem:[#allocation190_spill] sm:$0xff]  ;;  %v2914_v32 = vsub.f32 %v11678_v43, %v15000_v19  ;;  %8361 = vpow2.f32 %v1154_v52  ;;  %v15005_v19 = vand.u32 4294901760, %v11703_v22  ;;  %v15764_v43 = vld [vmem:[#allocation212_spill] sm:$0xff] }
 0x426   :  { %v2588_v26 = vpop.f32.mrf.mxu2  ;;  %v2187_v27 = vadd.f32 %v15760_v7, %v1986_v46  ;;  %v1991_v35 = vadd.f32 %v15762_v9, %v1805_v51  ;;  %v15766_v51 = vld [vmem:[#allocation218_spill] sm:$0xff] }
 0x427   :  { %v11693_v3 = vadd.f32 %v2773_v56, %v2585_v2  ;;  %3165 = vmatmul.f32.gmra.mxu0 %v11636_v37  ;;  %v11707_v2 = vadd.f32 %v11591_v23, %v11618_v55  ;;  %v8360_v56 = vpop.eup %8359  ;;  %v15763_v37 = vld [vmem:[#allocation217_spill] sm:$0xff]  ;;  %v2915_v18 = vand.u32 4294901760, %v2914_v32 }
 0x428   :  { %v2781_v62 = vpop.f32.mrf.mxu3  ;;  %v1037_v46 = vsub.f32 -1e+30, %v15763_v37  ;;  %v11711_v7 = vand.u32 4294901760, %v8360_v56 }
 0x429   :  { %15761 = vst [vmem:[#allocation150_spill] sm:$0xff] %v11707_v2 }
 0x42a   :  { %v2427_v4 = vpop.f32.mrf.mxu1  ;;  %v11728_v32 = vsub.f32 %v8360_v56, %v11711_v7 }
 0x42b   :  { %v2428_v25 = vadd.f32 %v2427_v4, %v2187_v27  ;;  %2655 = vmatmul.f32.gmra.mxu2 %v15764_v43  ;;  %v15765_v27 = vld [vmem:[#allocation220_spill] sm:$0xff]  ;;  %v1158_v4 = vmul.f32 1.442695, %v1037_v46 }
 0x42c   :  { %v11716_v55 = vpop.f32.mrf.mxu0  ;;  %v1809_v52 = vadd.f32 %v15766_v51, %v15765_v27  ;;  %15768 = vst [vmem:[#allocation149_spill] sm:$0xff] %v11728_v32  ;;  %v15769_v27 = vld [vmem:[#allocation221_spill] sm:$0xff] }
 0x42d   :  { %v2589_v20 = vadd.f32 %v2588_v26, %v2428_v25  ;;  %2490 = vmatmul.f32.gmra.mxu1 %v15757_v39  ;;  %2916 = vmatmul.f32.gmra.mxu3 %v2915_v18  ;;  %v15767_v26 = vld [vmem:[#allocation203_spill] sm:$0xff]  ;;  %v2922_v39 = vsub.f32 %v11703_v22, %v15005_v19  ;;  %8363 = vpow2.f32 %v1158_v4  ;;  %v15008_v19 = vand.u32 4294901760, %v11728_v32 }
 0x42e   :  { %v2592_v37 = vpop.f32.mrf.mxu2  ;;  %v2193_v25 = vadd.f32 %v15767_v26, %v1991_v35  ;;  %v1996_v51 = vadd.f32 %v15769_v27, %v1809_v52  ;;  %v15772_v52 = vld [vmem:[#allocation223_spill] sm:$0xff] }
 0x42f   :  { %v11718_v23 = vadd.f32 %v2781_v62, %v2589_v20  ;;  %3169 = vmatmul.f32.gmra.mxu0 %v11661_v58  ;;  %v11732_v20 = vadd.f32 %v11616_v5, %v11643_v48  ;;  %v8362_v62 = vpop.eup %8361  ;;  %v15770_v58 = vld [vmem:[#allocation113_spill] sm:$0xff]  ;;  %v2923_v56 = vand.u32 4294901760, %v2922_v39 }
 0x430   :  { %v2789_v18 = vpop.f32.mrf.mxu3  ;;  %v1039_v35 = vsub.f32 -1e+30, %v15770_v58  ;;  %v11736_v26 = vand.u32 4294901760, %v8362_v62 }
 0x432   :  { %v2431_v9 = vpop.f32.mrf.mxu1  ;;  %v11753_v39 = vsub.f32 %v8362_v62, %v11736_v26 }
 0x433   :  { %v2432_v46 = vadd.f32 %v2431_v9, %v2193_v25  ;;  %2659 = vmatmul.f32.gmra.mxu2 %v10454_v24  ;;  %v15771_v25 = vld [vmem:[#allocation225_spill] sm:$0xff]  ;;  %v1162_v9 = vmul.f32 1.442695, %v1039_v35  ;;  %v1041_v35 = vsub.f32 -1e+30, %v10537_v50  ;;  %v1817_v50 = vadd.f32 %v10545_v53, %v10566_v41 }
 0x434   :  { %v11741_v5 = vpop.f32.mrf.mxu0  ;;  %v1813_v4 = vadd.f32 %v15772_v52, %v15771_v25  ;;  %v15774_v52 = vld [vmem:[#allocation226_spill] sm:$0xff]  ;;  %v15776_v41 = vld [vmem:[#allocation233_spill] sm:$0xff] }
 0x435   :  { %v2593_v2 = vadd.f32 %v2592_v37, %v2432_v46  ;;  %2494 = vmatmul.f32.gmra.mxu1 %v15764_v43  ;;  %2924 = vmatmul.f32.gmra.mxu3 %v2923_v56  ;;  %v15773_v37 = vld [vmem:[#allocation107_spill] sm:$0xff]  ;;  %v2930_v43 = vsub.f32 %v11728_v32, %v15008_v19  ;;  %8365 = vpow2.f32 %v1162_v9  ;;  %v15014_v19 = vand.u32 4294901760, %v11753_v39 }
 0x436   :  { %v2596_v58 = vpop.f32.mrf.mxu2  ;;  %v2199_v46 = vadd.f32 %v15773_v37, %v1996_v51  ;;  %v15775_v9 = vld [vmem:[#allocation119_spill] sm:$0xff] }
 0x437   :  { %v11743_v48 = vadd.f32 %v2789_v18, %v2593_v2  ;;  %3173 = vmatmul.f32.gmra.mxu0 %v11686_v28  ;;  %v11757_v2 = vadd.f32 %v11641_v63, %v11668_v11  ;;  %v8364_v18 = vpop.eup %8363  ;;  %v2001_v28 = vadd.f32 %v15774_v52, %v1813_v4  ;;  %v2931_v62 = vand.u32 4294901760, %v2930_v43 }
 0x438   :  { %v2797_v56 = vpop.f32.mrf.mxu3  ;;  %v11761_v51 = vand.u32 4294901760, %v8364_v18  ;;  %v1166_v11 = vmul.f32 1.442695, %v1041_v35  ;;  %v11782_v43 = vadd.f32 %v11666_v36, %v11693_v3 }
 0x43a   :  { %v2435_v27 = vpop.f32.mrf.mxu1  ;;  %8367 = vpow2.f32 %v1166_v11  ;;  %v1821_v11 = vadd.f32 %v10648_v44, %v10672_v21 }
 0x43b   :  { %v2436_v25 = vadd.f32 %v2435_v27, %v2199_v46  ;;  %2663 = vmatmul.f32.gmra.mxu2 %v10489_v6  ;;  %v11778_v46 = vsub.f32 %v8364_v18, %v11761_v51  ;;  %v8366_v27 = vpop.eup %8365 }
 0x43c   :  { %v11766_v63 = vpop.f32.mrf.mxu0  ;;  %v11786_v52 = vand.u32 4294901760, %v8366_v27 }
 0x43d   :  { %v2597_v37 = vadd.f32 %v2596_v58, %v2436_v25  ;;  %2498 = vmatmul.f32.gmra.mxu1 %v10454_v24  ;;  %2932 = vmatmul.f32.gmra.mxu3 %v2931_v62  ;;  %v2205_v58 = vadd.f32 %v15775_v9, %v2001_v28  ;;  %v2938_v24 = vsub.f32 %v11753_v39, %v15014_v19  ;;  %v1043_v28 = vsub.f32 -1e+30, %v10620_v8  ;;  %v15791_v19 = vld [vmem:[#allocation110_spill] sm:$0xff] }
 0x43e   :  { %v2600_v4 = vpop.f32.mrf.mxu2  ;;  %v2006_v25 = vadd.f32 %v15776_v41, %v1817_v50  ;;  %v15013_v62 = vand.u32 4294901760, %v11778_v46  ;;  %v2011_v41 = vadd.f32 %v10674_v49, %v1821_v11 }
 0x43f   :  { %v11768_v32 = vadd.f32 %v2797_v56, %v2597_v37  ;;  %3177 = vmatmul.f32.gmra.mxu0 %v11711_v7  ;;  %v2939_v18 = vand.u32 4294901760, %v2938_v24  ;;  %v1170_v50 = vmul.f32 1.442695, %v1043_v28  ;;  %v11803_v24 = vsub.f32 %v8366_v27, %v11786_v52 }
 0x440   :  { %v2805_v35 = vpop.f32.mrf.mxu3  ;;  %v8368_v8 = vpop.eup %8367 }
 0x441   :  { %8369 = vpow2.f32 %v1170_v50 }
 0x442   :  { %v2439_v56 = vpop.f32.mrf.mxu1 }
 0x443   :  { %v2440_v53 = vadd.f32 %v2439_v56, %v2205_v58  ;;  %2667 = vmatmul.f32.gmra.mxu2 %v10515_v42  ;;  %v2946_v58 = vsub.f32 %v11778_v46, %v15013_v62  ;;  %v11807_v56 = vadd.f32 %v11691_v15, %v11718_v23  ;;  %v1825_v23 = vadd.f32 %v10801_v34, %v10830_v61 }
 0x444   :  { %v11791_v36 = vpop.f32.mrf.mxu0 }
 0x445   :  { %v2601_v37 = vadd.f32 %v2600_v4, %v2440_v53  ;;  %2502 = vmatmul.f32.gmra.mxu1 %v10489_v6  ;;  %2940 = vmatmul.f32.gmra.mxu3 %v2939_v18  ;;  %v15777_v4 = vld [vmem:[#allocation228_spill] sm:$0xff]  ;;  %v11809_v53 = vand.u32 4294901760, %v8368_v8  ;;  %v2947_v28 = vand.u32 4294901760, %v2946_v58  ;;  %v2016_v61 = vadd.f32 %v10832_v60, %v1825_v23  ;;  %v15782_v23 = vld [vmem:[#allocation249_spill] sm:$0xff] }
 0x446   :  { %v2604_v9 = vpop.f32.mrf.mxu2  ;;  %v2211_v6 = vadd.f32 %v15777_v4, %v2006_v25 }
 0x447   :  { %v11793_v3 = vadd.f32 %v2805_v35, %v2601_v37  ;;  %3181 = vmatmul.f32.gmra.mxu0 %v11736_v26  ;;  %v15012_v37 = vand.u32 4294901760, %v11803_v24  ;;  %v11822_v18 = vsub.f32 %v8368_v8, %v11809_v53  ;;  %v8370_v4 = vpop.eup %8369 }
 0x448   :  { %v2813_v44 = vpop.f32.mrf.mxu3 }
 0x449   :  { %v2954_v50 = vsub.f32 %v11803_v24, %v15012_v37  ;;  %v15011_v8 = vand.u32 4294901760, %v11822_v18 }
 0x44a   :  { %v2443_v35 = vpop.f32.mrf.mxu1 }
 0x44b   :  { %v2444_v21 = vadd.f32 %v2443_v35, %v2211_v6  ;;  %2671 = vmatmul.f32.gmra.mxu2 %v10535_v0  ;;  %v11835_v35 = vand.u32 4294901760, %v8370_v4 }
 0x44c   :  { %v11815_v27 = vpop.f32.mrf.mxu0 }
 0x44d   :  { %v2605_v25 = vadd.f32 %v2604_v9, %v2444_v21  ;;  %2506 = vmatmul.f32.gmra.mxu1 %v10515_v42  ;;  %2948 = vmatmul.f32.gmra.mxu3 %v2947_v28  ;;  %v15778_v42 = vld [vmem:[#allocation235_spill] sm:$0xff]  ;;  %v11831_v9 = vadd.f32 %v11716_v55, %v11743_v48  ;;  %v2955_v21 = vand.u32 4294901760, %v2954_v50  ;;  %v15779_v48 = vld [vmem:[#allocation2_spill] sm:$0xff]  ;;  %v11853_v50 = vsub.f32 %v8370_v4, %v11835_v35 }
 0x44e   :  { %v2608_v49 = vpop.f32.mrf.mxu2  ;;  %v2217_v11 = vadd.f32 %v15778_v42, %v2011_v41  ;;  %v15780_v28 = vld [vmem:[#allocation46_spill] sm:$0xff]  ;;  %vm1370_vm12 = vcmp.eq.s32.totalorder %v15779_v48, 0 }
 0x44f   :  { %v11817_v15 = vadd.f32 %v2813_v44, %v2605_v25  ;;  %3185 = vmatmul.f32.gmra.mxu0 %v11761_v51  ;;  %v1371_v25 = vmul.u32 9, %v15779_v48  ;;  %v15781_v42 = vld [vmem:[#allocation194_spill] sm:$0xff]  ;;  %v15785_v48 = vld [vmem:[#allocation3_spill] sm:$0xff] }
 0x450   :  { %v2821_v58 = vpop.f32.mrf.mxu3  ;;  %v1829_v60 = vadd.f32 %v15781_v42, %v15780_v28  ;;  %v15786_v4 = vld [vmem:[#allocation58_spill] sm:$0xff] }
 0x452   :  { %v2447_v6 = vpop.f32.mrf.mxu1  ;;  %v2021_v42 = vadd.f32 %v15786_v4, %v1829_v60  ;;  %v15789_v60 = vld [vmem:[#allocation70_spill] sm:$0xff] }
 0x453   :  { %v2448_v34 = vadd.f32 %v2447_v6, %v2217_v11  ;;  %2675 = vmatmul.f32.gmra.mxu2 %v10583_v17  ;;  %v2223_v11 = vadd.f32 %v15782_v23, %v2016_v61  ;;  %v8006_v6 = vadd.s32 4294967295, %v1371_v25 }
 0x454   :  { %v11839_v41 = vpop.f32.mrf.mxu0 }
 0x455   :  { %v2609_v44 = vadd.f32 %v2608_v49, %v2448_v34  ;;  %2510 = vmatmul.f32.gmra.mxu1 %v10535_v0  ;;  %2956 = vmatmul.f32.gmra.mxu3 %v2955_v21  ;;  %v2962_v49 = vsub.f32 %v11822_v18, %v15011_v8  ;;  %v11859_v34 = vadd.f32 %v11741_v5, %v11768_v32  ;;  %v11861_v28 = vsel %vm1370_vm12, 0, %v8006_v6  ;;  %v15787_v5 = vld [vmem:[#allocation250_spill] sm:$0xff] }
 0x456   :  { %v2612_v0 = vpop.f32.mrf.mxu2  ;;  %15784 = vst [vmem:[#allocation151_spill] sm:$0xff] %v11861_v28  ;;  %vm1375_vm3 = vcmp.ge.s32.totalorder %v15785_v48, %v11861_v28  ;;  %v15016_v32 = vand.u32 4294901760, %v11853_v50  ;;  %v15788_v6 = vmov 0.0  }
 0x457   :  { %v11841_v55 = vadd.f32 %v2821_v58, %v2609_v44  ;;  %3189 = vmatmul.f32.gmra.mxu0 %v11786_v52  ;;  %v11855_v58 = vadd.s32 8, %v1371_v25  ;;  %v2963_v23 = vand.u32 4294901760, %v2962_v49  ;;  %v1833_v49 = vadd.f32 %v15789_v60, %v11003_v57 }
 0x458   :  { %v2829_v44 = vpop.f32.mrf.mxu3 }
 0x459   :  { %15783 = vst [vmem:[#allocation142_spill] sm:$0xff] %v11855_v58  ;;  %vm1377_vm7 = vcmp.lt.s32.totalorder %v15785_v48, %v11855_v58  ;;  %v2026_v57 = vadd.f32 %v15791_v19, %v1833_v49  ;;  %v11903_v19 = vadd.f32 %v11791_v36, %v11817_v15  ;;  %v15795_v15 = vld [vmem:[#allocation81_spill] sm:$0xff] }
 0x45a   :  { %v2451_v61 = vpop.f32.mrf.mxu1  ;;  %vm1379_vm0 = vmand %vm1375_vm3, %vm1377_vm7 }
 0x45b   :  { %v2452_v21 = vadd.f32 %v2451_v61, %v2223_v11  ;;  %2679 = vmatmul.f32.gmra.mxu2 %v15787_v5  ;;  %v11874_v61 = vsel %vm1379_vm0, 1.0, %v15788_v6 }
 0x45c   :  { %v11871_v11 = vpop.f32.mrf.mxu0  ;;  %v4568_v37 = vsel %vm4566_vm2, %v11874_v61, 0  ;;  %8106 = vmatpush.msk.msra.mxu0 %vm4566_vm2, %v11874_v61 }
 0x45d   :  { %v2613_v25 = vadd.f32 %v2612_v0, %v2452_v21  ;;  %2514 = vmatmul.f32.gmra.mxu1 %v10583_v17  ;;  %2964 = vmatmul.f32.gmra.mxu3 %v2963_v23  ;;  %v11880_v17 = vsub.f32 %v4568_v37, %v4568_v37  ;;  %v15790_v21 = vld [vmem:[#allocation40_spill] sm:$0xff] }
 0x45e   :  { %v2616_v0 = vpop.f32.mrf.mxu2  ;;  %v2229_v4 = vadd.f32 %v15790_v21, %v2021_v42  ;;  %v15792_v42 = vld [vmem:[#allocation197_spill] sm:$0xff] }
 0x45f   :  { %v2830_v8 = vadd.f32 %v2829_v44, %v2613_v25  ;;  %3193 = vmatmul.f32.gmra.mxu0 %v11809_v53  ;;  %v2970_v44 = vsub.f32 %v11853_v50, %v15016_v32  ;;  %v11891_v25 = vadd.f32 %v11766_v63, %v11793_v3  ;;  %5014 = vmatpush.msra.mxu3 %v11880_v17  ;;  %v15793_v32 = vld [vmem:[#allocation96_spill] sm:$0xff] }
 0x460   :  { %v2837_v62 = vpop.f32.mrf.mxu3  ;;  %v1837_v63 = vadd.f32 %v11038_v54, %v11050_v30  ;;  %v2235_v28 = vadd.f32 %v15793_v32, %v2026_v57  ;;  %v1841_v32 = vadd.f32 %v11097_v1, %v11104_v45 }
 0x461   :  { %v2971_v6 = vand.u32 4294901760, %v2970_v44 }
 0x462   :  { %v2455_v23 = vpop.f32.mrf.mxu1  ;;  %v2036_v57 = vadd.f32 %v11106_v59, %v1841_v32  ;;  %v11928_v59 = vadd.f32 %v11839_v41, %v2830_v8 }
 0x463   :  { %v2456_v37 = vadd.f32 %v2455_v23, %v2229_v4  ;;  %2683 = vmatmul.f32.gmra.mxu2 %v15792_v42  ;;  %v2031_v4 = vadd.f32 %v11052_v16, %v1837_v63  ;;  %v11916_v16 = vadd.f32 %v11815_v27, %v11841_v55  ;;  %v15798_v27 = vld [vmem:[#allocation198_spill] sm:$0xff] }
 0x464   :  { %v3134_v21 = vpop.f32.mrf.mxu0  ;;  %v2247_v55 = vadd.f32 %v15798_v27, %v2036_v57 }
 0x465   :  { %v2617_v60 = vadd.f32 %v2616_v0, %v2456_v37  ;;  %2518 = vmatmul.f32.gmra.mxu1 %v15787_v5  ;;  %2972 = vmatmul.f32.gmra.mxu3 %v2971_v6 }
 0x466   :  { %v2620_v3 = vpop.f32.mrf.mxu2 }
 0x467   :  { %v2838_v58 = vadd.f32 %v2837_v62, %v2617_v60  ;;  %3197 = vmatmul.f32.gmra.mxu0 %v11835_v35  ;;  %v15794_v62 = vand.u32 4294901760, %v10993_v10 }
 0x468   :  { %v2845_v5 = vpop.f32.mrf.mxu3 }
 0x46a   :  { %v2459_v49 = vpop.f32.mrf.mxu1 }
 0x46b   :  { %v2460_v0 = vadd.f32 %v2459_v49, %v2235_v28  ;;  %3445 = vmatmul.f32.vlgmr.msrb.gmra.mxu2 %v15794_v62  ;;  %v2241_v28 = vadd.f32 %v15795_v15, %v2031_v4  ;;  %v15800_v15 = vand.u32 4294901760, %v11118_v13 }
 0x46c   :  { %v3138_v54 = vpop.f32.mrf.mxu0 }
 0x46d   :  { %v2621_v44 = vadd.f32 %v2620_v3, %v2460_v0  ;;  %2522 = vmatmul.f32.gmra.mxu1 %v15792_v42  ;;  %3700 = vmatmul.f32.vlgmr.msrb.gmra.mxu3 %v10975_v40  ;;  %v15796_v42 = vld [vmem:[#allocation45_spill] sm:$0xff]  ;;  %v15799_v0 = vand.u32 4294901760, %v11070_v31 }
 0x46e   :  { %v2624_v36 = vpop.f32.mrf.mxu2  ;;  %v15797_v63 = vand.u32 4294901760, %v15796_v42 }
 0x46f   :  { %v2846_v30 = vadd.f32 %v2845_v5, %v2621_v44  ;;  %3861 = vmatmul.f32.vlgmr.msrb.gmra.mxu0 %v10975_v40 }
 0x470   :  { %v2853_v23 = vpop.f32.mrf.mxu3 }
 0x472   :  { %v2463_v6 = vpop.f32.mrf.mxu1 }
 0x473   :  { %v2464_v37 = vadd.f32 %v2463_v6, %v2241_v28  ;;  %3451 = vmatmul.f32.gmra.mxu2 %v15797_v63 }
 0x474   :  { %v3142_v1 = vpop.f32.mrf.mxu0 }
 0x475   :  { %v2625_v60 = vadd.f32 %v2624_v36, %v2464_v37  ;;  %3251 = vmatmul.f32.vlgmr.msrb.gmra.mxu1 %v10993_v10  ;;  %3704 = vmatmul.f32.gmra.mxu3 %v11012_v14 }
 0x476   :  { %8105 = vmatpush.msk.msrb.mxu1 %vm4566_vm2, %v11874_v61  ;;  %v2628_v45 = vpop.f32.mrf.mxu2 }
 0x477   :  { %v2854_v40 = vadd.f32 %v2853_v23, %v2625_v60  ;;  %3865 = vmatmul.f32.gmra.mxu0 %v11012_v14  ;;  %v11936_v14 = vadd.f32 %v11871_v11, %v2838_v58 }
 0x478   :  { %v2861_v10 = vpop.f32.mrf.mxu3 }
 0x47a   :  { %v2467_v3 = vpop.f32.mrf.mxu1 }
 0x47b   :  { %v2468_v49 = vadd.f32 %v2467_v3, %v2247_v55  ;;  %3457 = vmatmul.f32.gmra.mxu2 %v15799_v0 }
 0x47c   :  { %v3146_v4 = vpop.f32.mrf.mxu0 }
 0x47d   :  { %v2629_v5 = vadd.f32 %v2628_v45, %v2468_v49  ;;  %3256 = vmatmul.f32.gmra.mxu1 %v15796_v42  ;;  %3708 = vmatmul.f32.gmra.mxu3 %v11044_v38  ;;  %v15802_v42 = vld [vmem:[#allocation93_spill] sm:$0xff]  ;;  %v15803_v45 = vld [vmem:[#allocation219_spill] sm:$0xff]  ;;  %v15806_v49 = vld [vmem:[#allocation204_spill] sm:$0xff] }
 0x47e   :  { %v2632_v62 = vpop.f32.mrf.mxu2 }
 0x47f   :  { %v2862_v44 = vadd.f32 %v2861_v10, %v2629_v5  ;;  %3869 = vmatmul.f32.gmra.mxu0 %v11044_v38  ;;  %v11944_v38 = vadd.f32 %v3134_v21, %v2846_v30 }
 0x480   :  { %v2869_v41 = vpop.f32.mrf.mxu3 }
 0x481   :  { %v11960_v0 = vadd.f32 %v3142_v1, %v2862_v44 }
 0x482   :  { %v2471_v8 = vpop.f32.mrf.mxu1 }
 0x483   :  { %v2472_v32 = vadd.f32 %v2471_v8, %v11309_v29  ;;  %3463 = vmatmul.f32.gmra.mxu2 %v15800_v15 }
 0x484   :  { %v3150_v28 = vpop.f32.mrf.mxu0 }
 0x485   :  { %v2633_v36 = vadd.f32 %v2632_v62, %v2472_v32  ;;  %3261 = vmatmul.f32.gmra.mxu1 %v11070_v31  ;;  %3712 = vmatmul.f32.gmra.mxu3 %v11090_v33  ;;  %v15801_v31 = vand.u32 4294901760, %v11165_v12  ;;  %v15807_v62 = vld [vmem:[#allocation64_spill] sm:$0xff] }
 0x486   :  { %v2636_v23 = vpop.f32.mrf.mxu2 }
 0x487   :  { %v2870_v6 = vadd.f32 %v2869_v41, %v2633_v36  ;;  %3873 = vmatmul.f32.gmra.mxu0 %v11090_v33  ;;  %v11952_v33 = vadd.f32 %v3138_v54, %v2854_v40 }
 0x488   :  { %v2877_v11 = vpop.f32.mrf.mxu3 }
 0x48a   :  { %v2475_v58 = vpop.f32.mrf.mxu1 }
 0x48b   :  { %v2476_v37 = vadd.f32 %v2475_v58, %v11330_v47  ;;  %3469 = vmatmul.f32.gmra.mxu2 %v15801_v31 }
 0x48c   :  { %v3154_v57 = vpop.f32.mrf.mxu0 }
 0x48d   :  { %v2637_v29 = vadd.f32 %v2636_v23, %v2476_v37  ;;  %3266 = vmatmul.f32.gmra.mxu1 %v11118_v13  ;;  %3716 = vmatmul.f32.gmra.mxu3 %v15802_v42  ;;  %v15804_v13 = vld [vmem:[#allocation105_spill] sm:$0xff]  ;;  %v15810_v23 = vld [vmem:[#allocation52_spill] sm:$0xff] }
 0x48e   :  { %v2640_v63 = vpop.f32.mrf.mxu2  ;;  %v15805_v55 = vand.u32 4294901760, %v15804_v13  ;;  %v15811_v37 = vld [vmem:[#allocation69_spill] sm:$0xff] }
 0x48f   :  { %v2878_v60 = vadd.f32 %v2877_v11, %v2637_v29  ;;  %3877 = vmatmul.f32.gmra.mxu0 %v15802_v42  ;;  %v11968_v11 = vadd.f32 %v3146_v4, %v2870_v6  ;;  %v15812_v42 = vld [vmem:[#allocation208_spill] sm:$0xff] }
 0x490   :  { %v2885_v30 = vpop.f32.mrf.mxu3 }
 0x492   :  { %v2479_v21 = vpop.f32.mrf.mxu1 }
 0x493   :  { %v2480_v27 = vadd.f32 %v2479_v21, %v15803_v45  ;;  %3475 = vmatmul.f32.gmra.mxu2 %v15805_v55  ;;  %v15814_v45 = vld [vmem:[#allocation200_spill] sm:$0xff] }
 0x494   :  { %v3158_v3 = vpop.f32.mrf.mxu0 }
 0x495   :  { %v2641_v47 = vadd.f32 %v2640_v63, %v2480_v27  ;;  %3271 = vmatmul.f32.gmra.mxu1 %v11165_v12  ;;  %3720 = vmatmul.f32.gmra.mxu3 %v15806_v49  ;;  %v15808_v12 = vld [vmem:[#allocation100_spill] sm:$0xff]  ;;  %v15813_v63 = vand.u32 4294901760, %v15812_v42 }
 0x496   :  { %v2644_v5 = vpop.f32.mrf.mxu2  ;;  %v15809_v32 = vand.u32 4294901760, %v15808_v12 }
 0x497   :  { %v2886_v10 = vadd.f32 %v2885_v30, %v2641_v47  ;;  %3881 = vmatmul.f32.gmra.mxu0 %v15806_v49  ;;  %v11976_v47 = vadd.f32 %v3150_v28, %v2878_v60 }
 0x498   :  { %v2893_v40 = vpop.f32.mrf.mxu3 }
 0x49a   :  { %v2483_v54 = vpop.f32.mrf.mxu1 }
 0x49b   :  { %v2484_v8 = vadd.f32 %v2483_v54, %v15807_v62  ;;  %3481 = vmatmul.f32.gmra.mxu2 %v15809_v32  ;;  %v15819_v32 = vld [vmem:[#allocation87_spill] sm:$0xff] }
 0x49c   :  { %v3162_v36 = vpop.f32.mrf.mxu0 }
 0x49d   :  { %v2645_v41 = vadd.f32 %v2644_v5, %v2484_v8  ;;  %3276 = vmatmul.f32.gmra.mxu1 %v15804_v13  ;;  %3724 = vmatmul.f32.gmra.mxu3 %v15810_v23  ;;  %v15815_v13 = vld [vmem:[#allocation60_spill] sm:$0xff]  ;;  %v15816_v5 = vld [vmem:[#allocation209_spill] sm:$0xff]  ;;  %v15818_v8 = vld [vmem:[#allocation202_spill] sm:$0xff] }
 0x49e   :  { %v2648_v58 = vpop.f32.mrf.mxu2  ;;  %v15817_v54 = vand.u32 4294901760, %v15816_v5 }
 0x49f   :  { %v2894_v15 = vadd.f32 %v2893_v40, %v2645_v41  ;;  %3885 = vmatmul.f32.gmra.mxu0 %v15810_v23 }
 0x4a0   :  { %v2901_v44 = vpop.f32.mrf.mxu3 }
 0x4a2   :  { %v2487_v1 = vpop.f32.mrf.mxu1 }
 0x4a3   :  { %v2488_v29 = vadd.f32 %v2487_v1, %v15811_v37  ;;  %3487 = vmatmul.f32.gmra.mxu2 %v15813_v63  ;;  %v15820_v1 = vld [vmem:[#allocation42_spill] sm:$0xff]  ;;  %v11992_v63 = vadd.f32 %v3158_v3, %v2894_v15 }
 0x4a4   :  { %v3166_v21 = vpop.f32.mrf.mxu0 }
 0x4a5   :  { %v2649_v31 = vadd.f32 %v2648_v58, %v2488_v29  ;;  %3281 = vmatmul.f32.gmra.mxu1 %v15808_v12  ;;  %3728 = vmatmul.f32.gmra.mxu3 %v15814_v45  ;;  %v11984_v12 = vadd.f32 %v3154_v57, %v2886_v10 }
 0x4a6   :  { %v2652_v27 = vpop.f32.mrf.mxu2 }
 0x4a7   :  { %v2902_v30 = vadd.f32 %v2901_v44, %v2649_v31  ;;  %3889 = vmatmul.f32.gmra.mxu0 %v15814_v45  ;;  %v15821_v44 = vand.u32 4294901760, %v15820_v1  ;;  %v15822_v31 = vld [vmem:[#allocation57_spill] sm:$0xff]  ;;  %v15823_v45 = vld [vmem:[#allocation78_spill] sm:$0xff] }
 0x4a8   :  { %v2909_v6 = vpop.f32.mrf.mxu3 }
 0x4aa   :  { %v2491_v4 = vpop.f32.mrf.mxu1 }
 0x4ab   :  { %v2492_v55 = vadd.f32 %v2491_v4, %v15815_v13  ;;  %3493 = vmatmul.f32.gmra.mxu2 %v15817_v54 }
 0x4ac   :  { %v3170_v40 = vpop.f32.mrf.mxu0 }
 0x4ad   :  { %v2653_v49 = vadd.f32 %v2652_v27, %v2492_v55  ;;  %3286 = vmatmul.f32.gmra.mxu1 %v15812_v42  ;;  %3732 = vmatmul.f32.gmra.mxu3 %v15818_v8 }
 0x4ae   :  { %v2656_v41 = vpop.f32.mrf.mxu2 }
 0x4af   :  { %v2910_v62 = vadd.f32 %v2909_v6, %v2653_v49  ;;  %3893 = vmatmul.f32.gmra.mxu0 %v15818_v8  ;;  %v15824_v6 = vld [vmem:[#allocation206_spill] sm:$0xff]  ;;  %v12000_v8 = vadd.f32 %v3162_v36, %v2902_v30 }
 0x4b0   :  { %v2917_v60 = vpop.f32.mrf.mxu3  ;;  %v15825_v13 = vand.u32 4294901760, %v15824_v6 }
 0x4b2   :  { %v2495_v28 = vpop.f32.mrf.mxu1 }
 0x4b3   :  { %v2496_v23 = vadd.f32 %v2495_v28, %v15819_v32  ;;  %3499 = vmatmul.f32.gmra.mxu2 %v15821_v44  ;;  %v15828_v32 = vld [vmem:[#allocation48_spill] sm:$0xff]  ;;  %v15830_v44 = vld [vmem:[#allocation214_spill] sm:$0xff] }
 0x4b4   :  { %v3174_v37 = vpop.f32.mrf.mxu0 }
 0x4b5   :  { %v2657_v58 = vadd.f32 %v2656_v41, %v2496_v23  ;;  %3291 = vmatmul.f32.gmra.mxu1 %v15816_v5  ;;  %3736 = vmatmul.f32.gmra.mxu3 %v15822_v31  ;;  %v15826_v5 = vld [vmem:[#allocation205_spill] sm:$0xff]  ;;  %v15827_v41 = vld [vmem:[#allocation104_spill] sm:$0xff]  ;;  %v15829_v23 = vand.u32 4294901760, %v15828_v32 }
 0x4b6   :  { %v2660_v42 = vpop.f32.mrf.mxu2 }
 0x4b7   :  { %v2918_v29 = vadd.f32 %v2917_v60, %v2657_v58  ;;  %3897 = vmatmul.f32.gmra.mxu0 %v15822_v31 }
 0x4b8   :  { %v2925_v10 = vpop.f32.mrf.mxu3 }
 0x4ba   :  { %v2499_v57 = vpop.f32.mrf.mxu1 }
 0x4bb   :  { %v2500_v27 = vadd.f32 %v2499_v57, %v15823_v45  ;;  %3505 = vmatmul.f32.gmra.mxu2 %v15825_v13  ;;  %v15831_v57 = vld [vmem:[#allocation95_spill] sm:$0xff] }
 0x4bc   :  { %v3178_v55 = vpop.f32.mrf.mxu0 }
 0x4bd   :  { %v2661_v4 = vadd.f32 %v2660_v42, %v2500_v27  ;;  %3296 = vmatmul.f32.gmra.mxu1 %v15820_v1  ;;  %3740 = vmatmul.f32.gmra.mxu3 %v15826_v5  ;;  %v12008_v42 = vadd.f32 %v3166_v21, %v2910_v62  ;;  %v15832_v27 = vld [vmem:[#allocation54_spill] sm:$0xff] }
 0x4be   :  { %v2664_v54 = vpop.f32.mrf.mxu2 }
 0x4bf   :  { %v2926_v49 = vadd.f32 %v2925_v10, %v2661_v4  ;;  %3901 = vmatmul.f32.gmra.mxu0 %v15826_v5  ;;  %v15833_v4 = vand.u32 4294901760, %v15832_v27  ;;  %v15834_v5 = vld [vmem:[#allocation216_spill] sm:$0xff] }
 0x4c0   :  { %v2933_v15 = vpop.f32.mrf.mxu3 }
 0x4c2   :  { %v2503_v3 = vpop.f32.mrf.mxu1 }
 0x4c3   :  { %v2504_v28 = vadd.f32 %v2503_v3, %v15827_v41  ;;  %3511 = vmatmul.f32.gmra.mxu2 %v15829_v23  ;;  %v12016_v3 = vadd.f32 %v3170_v40, %v2918_v29 }
 0x4c4   :  { %v3182_v58 = vpop.f32.mrf.mxu0 }
 0x4c5   :  { %v2665_v60 = vadd.f32 %v2664_v54, %v2504_v28  ;;  %3301 = vmatmul.f32.gmra.mxu1 %v15824_v6  ;;  %3744 = vmatmul.f32.gmra.mxu3 %v15830_v44 }
 0x4c6   :  { %v2668_v31 = vpop.f32.mrf.mxu2 }
 0x4c7   :  { %v2934_v1 = vadd.f32 %v2933_v15, %v2665_v60  ;;  %3905 = vmatmul.f32.gmra.mxu0 %v15830_v44  ;;  %v15835_v15 = vld [vmem:[#allocation124_spill] sm:$0xff] }
 0x4c8   :  { %v2941_v30 = vpop.f32.mrf.mxu3  ;;  %v15836_v60 = vld [vmem:[#allocation80_spill] sm:$0xff] }
 0x4ca   :  { %v2507_v36 = vpop.f32.mrf.mxu1 }
 0x4cb   :  { %v2508_v10 = vadd.f32 %v2507_v36, %v15831_v57  ;;  %3517 = vmatmul.f32.gmra.mxu2 %v15833_v4  ;;  %v15839_v57 = vld [vmem:[#allocation116_spill] sm:$0xff] }
 0x4cc   :  { %v3186_v6 = vpop.f32.mrf.mxu0 }
 0x4cd   :  { %v2669_v45 = vadd.f32 %v2668_v31, %v2508_v10  ;;  %3306 = vmatmul.f32.gmra.mxu1 %v15828_v32  ;;  %3748 = vmatmul.f32.gmra.mxu3 %v15834_v5  ;;  %v15837_v32 = vand.u32 4294901760, %v15836_v60  ;;  %v15838_v31 = vld [vmem:[#allocation75_spill] sm:$0xff] }
 0x4ce   :  { %v2672_v54 = vpop.f32.mrf.mxu2 }
 0x4cf   :  { %v2942_v13 = vadd.f32 %v2941_v30, %v2669_v45  ;;  %3909 = vmatmul.f32.gmra.mxu0 %v15834_v5  ;;  %v12024_v30 = vadd.f32 %v3174_v37, %v2926_v49 }
 0x4d0   :  { %v2949_v62 = vpop.f32.mrf.mxu3 }
 0x4d2   :  { %v2511_v21 = vpop.f32.mrf.mxu1 }
 0x4d3   :  { %v2512_v41 = vadd.f32 %v2511_v21, %v15835_v15  ;;  %3523 = vmatmul.f32.gmra.mxu2 %v15837_v32  ;;  %v15842_v21 = vld [vmem:[#allocation66_spill] sm:$0xff]  ;;  %v12032_v15 = vadd.f32 %v3178_v55, %v2934_v1 }
 0x4d4   :  { %v3190_v23 = vpop.f32.mrf.mxu0 }
 0x4d5   :  { %v2673_v28 = vadd.f32 %v2672_v54, %v2512_v41  ;;  %3311 = vmatmul.f32.gmra.mxu1 %v15832_v27  ;;  %3752 = vmatmul.f32.gmra.mxu3 %v15838_v31  ;;  %v15840_v27 = vld [vmem:[#allocation72_spill] sm:$0xff] }
 0x4d6   :  { %v2676_v36 = vpop.f32.mrf.mxu2  ;;  %v15841_v4 = vand.u32 4294901760, %v15840_v27  ;;  %v15843_v41 = vld [vmem:[#allocation152_spill] sm:$0xff] }
 0x4d7   :  { %v2950_v44 = vadd.f32 %v2949_v62, %v2673_v28  ;;  %3913 = vmatmul.f32.gmra.mxu0 %v15838_v31 }
 0x4d8   :  { %v2957_v29 = vpop.f32.mrf.mxu3 }
 0x4da   :  { %v2515_v40 = vpop.f32.mrf.mxu1 }
 0x4db   :  { %v2516_v10 = vadd.f32 %v2515_v40, %v15839_v57  ;;  %3529 = vmatmul.f32.gmra.mxu2 %v15841_v4 }
 0x4dc   :  { %v3194_v5 = vpop.f32.mrf.mxu0 }
 0x4dd   :  { %v2677_v45 = vadd.f32 %v2676_v36, %v2516_v10  ;;  %3316 = vmatmul.f32.gmra.mxu1 %v15836_v60  ;;  %3756 = vmatmul.f32.gmra.mxu3 %v15842_v21  ;;  %v15844_v60 = vld [vmem:[#allocation99_spill] sm:$0xff]  ;;  %v12040_v10 = vadd.f32 %v3182_v58, %v2942_v13 }
 0x4de   :  { %v2680_v62 = vpop.f32.mrf.mxu2  ;;  %v15845_v31 = vand.u32 4294901760, %v15844_v60 }
 0x4df   :  { %v2958_v54 = vadd.f32 %v2957_v29, %v2677_v45  ;;  %3917 = vmatmul.f32.gmra.mxu0 %v15842_v21  ;;  %v15846_v29 = vld [vmem:[#allocation92_spill] sm:$0xff]  ;;  %v15847_v45 = vld [vmem:[#allocation133_spill] sm:$0xff] }
 0x4e0   :  { %v2965_v49 = vpop.f32.mrf.mxu3 }
 0x4e2   :  { %v2519_v37 = vpop.f32.mrf.mxu1 }
 0x4e3   :  { %v2520_v28 = vadd.f32 %v2519_v37, %v15843_v41  ;;  %3535 = vmatmul.f32.gmra.mxu2 %v15845_v31  ;;  %v15851_v31 = vld [vmem:[#allocation158_spill] sm:$0xff] }
 0x4e4   :  { %v3198_v36 = vpop.f32.mrf.mxu0 }
 0x4e5   :  { %v2681_v32 = vadd.f32 %v2680_v62, %v2520_v28  ;;  %3321 = vmatmul.f32.gmra.mxu1 %v15840_v27  ;;  %3760 = vmatmul.f32.gmra.mxu3 %v15846_v29  ;;  %v15848_v27 = vld [vmem:[#allocation89_spill] sm:$0xff] }
 0x4e6   :  { %v2684_v57 = vpop.f32.mrf.mxu2  ;;  %v15849_v62 = vand.u32 4294901760, %v15848_v27 }
 0x4e7   :  { %v2966_v40 = vadd.f32 %v2965_v49, %v2681_v32  ;;  %3921 = vmatmul.f32.gmra.mxu0 %v15846_v29  ;;  %v15850_v49 = vld [vmem:[#allocation84_spill] sm:$0xff]  ;;  %v12048_v32 = vadd.f32 %v3186_v6, %v2950_v44  ;;  %v12058_v6 = vadd.f32 %v3190_v23, %v2958_v54 }
 0x4e8   :  { %v2973_v1 = vpop.f32.mrf.mxu3 }
 0x4e9   :  { %15855 = vst [vmem:[#allocation160_spill] sm:$0xff] %v12058_v6 }
 0x4ea   :  { %v2523_v55 = vpop.f32.mrf.mxu1 }
 0x4eb   :  { %v2524_v4 = vadd.f32 %v2523_v55, %v15847_v45  ;;  %3541 = vmatmul.f32.gmra.mxu2 %v15849_v62 }
 0x4ec   :  { %v3862_v37 = vpop.f32.mrf.mxu0 }
 0x4ed   :  { %v2685_v21 = vadd.f32 %v2684_v57, %v2524_v4  ;;  %3326 = vmatmul.f32.gmra.mxu1 %v15844_v60  ;;  %3764 = vmatmul.f32.gmra.mxu3 %v15850_v49  ;;  %v15852_v60 = vld [vmem:[#allocation118_spill] sm:$0xff] }
 0x4ee   :  { %v3446_v28 = vpop.f32.mrf.mxu2  ;;  %v15853_v57 = vand.u32 4294901760, %v15852_v60 }
 0x4ef   :  { %v2974_v41 = vadd.f32 %v2973_v1, %v2685_v21  ;;  %3925 = vmatmul.f32.gmra.mxu0 %v15850_v49  ;;  %v15854_v1 = vld [vmem:[#allocation112_spill] sm:$0xff] }
 0x4f0   :  { %v3701_v13 = vpop.f32.mrf.mxu3 }
 0x4f2   :  { %v3252_v58 = vpop.f32.mrf.mxu1 }
 0x4f3   :  { %v3253_v29 = vadd.f32 %v3252_v58, %v15851_v31  ;;  %3547 = vmatmul.f32.gmra.mxu2 %v15853_v57  ;;  %v15856_v58 = vld [vmem:[#allocation143_spill] sm:$0xff]  ;;  %v15857_v31 = vld [vmem:[#allocation109_spill] sm:$0xff] }
 0x4f4   :  { %v3866_v45 = vpop.f32.mrf.mxu0 }
 0x4f5   :  { %v3447_v55 = vadd.f32 %v3446_v28, %v3253_v29  ;;  %3331 = vmatmul.f32.gmra.mxu1 %v15848_v27  ;;  %3768 = vmatmul.f32.gmra.mxu3 %v15854_v1  ;;  %v15858_v29 = vand.u32 4294901760, %v15857_v31 }
 0x4f6   :  { %v3452_v62 = vpop.f32.mrf.mxu2 }
 0x4f7   :  { %v3702_v4 = vadd.f32 %v3701_v13, %v3447_v55  ;;  %3929 = vmatmul.f32.gmra.mxu0 %v15854_v1  ;;  %v15859_v55 = vld [vmem:[#allocation102_spill] sm:$0xff] }
 0x4f8   :  { %v3705_v49 = vpop.f32.mrf.mxu3 }
 0x4f9   :  { %v12055_v21 = vadd.f32 %v3862_v37, %v3702_v4  ;;  %v12066_v4 = vadd.f32 %v3194_v5, %v2966_v40  ;;  %v12078_v40 = vadd.f32 %v3198_v36, %v2974_v41 }
 0x4fa   :  { %v3257_v44 = vpop.f32.mrf.mxu1 }
 0x4fb   :  { %v3258_v28 = vadd.f32 %v3257_v44, %v15856_v58  ;;  %3553 = vmatmul.f32.gmra.mxu2 %v15858_v29  ;;  %v15860_v44 = vld [vmem:[#allocation159_spill] sm:$0xff] }
 0x4fc   :  { %v3870_v13 = vpop.f32.mrf.mxu0 }
 0x4fd   :  { %3336 = vmatmul.f32.gmra.mxu1 %v15852_v60  ;;  %v3453_v27 = vadd.f32 %v3452_v62, %v3258_v28  ;;  %3772 = vmatmul.f32.gmra.mxu3 %v15859_v55  ;;  %v15861_v62 = vld [vmem:[#allocation137_spill] sm:$0xff] }
 0x4fe   :  { %v3458_v57 = vpop.f32.mrf.mxu2  ;;  %v15862_v28 = vand.u32 4294901760, %v15861_v62 }
 0x4ff   :  { %v3706_v37 = vadd.f32 %v3705_v49, %v3453_v27  ;;  %3933 = vmatmul.f32.gmra.mxu0 %v15859_v55  ;;  %v15863_v49 = vld [vmem:[#allocation130_spill] sm:$0xff] }
 0x500   :  { %v3709_v1 = vpop.f32.mrf.mxu3 }
 0x501   :  { %v12068_v23 = vadd.f32 %v3866_v45, %v3706_v37  ;;  %v15864_v37 = vld [vmem:[#allocation150_spill] sm:$0xff] }
 0x502   :  { %v3262_v54 = vpop.f32.mrf.mxu1 }
 0x503   :  { %v3263_v58 = vadd.f32 %v3262_v54, %v15860_v44  ;;  %3559 = vmatmul.f32.gmra.mxu2 %v15862_v28  ;;  %v15865_v54 = vld [vmem:[#allocation127_spill] sm:$0xff] }
 0x504   :  { %v3874_v29 = vpop.f32.mrf.mxu0  ;;  %v15866_v44 = vand.u32 4294901760, %v15865_v54 }
 0x505   :  { %v3459_v60 = vadd.f32 %v3458_v57, %v3263_v58  ;;  %3341 = vmatmul.f32.gmra.mxu1 %v15857_v31  ;;  %3776 = vmatmul.f32.gmra.mxu3 %v15863_v49  ;;  %v15867_v58 = vld [vmem:[#allocation121_spill] sm:$0xff] }
 0x506   :  { %v3464_v5 = vpop.f32.mrf.mxu2 }
 0x507   :  { %v3710_v6 = vadd.f32 %v3709_v1, %v3459_v60  ;;  %3937 = vmatmul.f32.gmra.mxu0 %v15863_v49 }
 0x508   :  { %v3713_v55 = vpop.f32.mrf.mxu3 }
 0x509   :  { %v12075_v27 = vadd.f32 %v3870_v13, %v3710_v6 }
 0x50a   :  { %v3267_v45 = vpop.f32.mrf.mxu1 }
 0x50b   :  { %v3268_v57 = vadd.f32 %v3267_v45, %v15864_v37  ;;  %3565 = vmatmul.f32.gmra.mxu2 %v15866_v44 }
 0x50c   :  { %v3878_v1 = vpop.f32.mrf.mxu0 }
 0x50d   :  { %3346 = vmatmul.f32.gmra.mxu1 %v15861_v62  ;;  %v3465_v31 = vadd.f32 %v3464_v5, %v3268_v57  ;;  %3780 = vmatmul.f32.gmra.mxu3 %v15867_v58  ;;  %v15868_v62 = vld [vmem:[#allocation140_spill] sm:$0xff]  ;;  %v15870_v57 = vld [vmem:[#allocation154_spill] sm:$0xff] }
 0x50e   :  { %v3470_v13 = vpop.f32.mrf.mxu2  ;;  %v15869_v5 = vand.u32 4294901760, %v15868_v62 }
 0x50f   :  { %v3714_v6 = vadd.f32 %v3713_v55, %v3465_v31  ;;  %3941 = vmatmul.f32.gmra.mxu0 %v15867_v58 }
 0x510   :  { %v3717_v41 = vpop.f32.mrf.mxu3 }
 0x511   :  { %v12086_v60 = vadd.f32 %v3874_v29, %v3714_v6 }
 0x512   :  { %v3272_v36 = vpop.f32.mrf.mxu1 }
 0x513   :  { %v3273_v28 = vadd.f32 %v3272_v36, %v11732_v20  ;;  %3571 = vmatmul.f32.gmra.mxu2 %v15869_v5  ;;  %v15873_v36 = vld [vmem:[#allocation139_spill] sm:$0xff] }
 0x514   :  { %v3882_v45 = vpop.f32.mrf.mxu0 }
 0x515   :  { %v3471_v49 = vadd.f32 %v3470_v13, %v3273_v28  ;;  %3351 = vmatmul.f32.gmra.mxu1 %v15865_v54  ;;  %3784 = vmatmul.f32.gmra.mxu3 %v15870_v57  ;;  %v15871_v54 = vld [vmem:[#allocation141_spill] sm:$0xff] }
 0x516   :  { %v3476_v31 = vpop.f32.mrf.mxu2  ;;  %v15872_v6 = vand.u32 4294901760, %v15871_v54 }
 0x517   :  { %v3718_v37 = vadd.f32 %v3717_v41, %v3471_v49  ;;  %3945 = vmatmul.f32.gmra.mxu0 %v15870_v57 }
 0x518   :  { %v3721_v44 = vpop.f32.mrf.mxu3 }
 0x519   :  { %v12093_v55 = vadd.f32 %v3878_v1, %v3718_v37 }
 0x51a   :  { %v3277_v29 = vpop.f32.mrf.mxu1 }
 0x51b   :  { %v3278_v58 = vadd.f32 %v3277_v29, %v11757_v2  ;;  %3577 = vmatmul.f32.gmra.mxu2 %v15872_v6 }
 0x51c   :  { %v3886_v13 = vpop.f32.mrf.mxu0 }
 0x51d   :  { %3356 = vmatmul.f32.gmra.mxu1 %v15868_v62  ;;  %v3477_v20 = vadd.f32 %v3476_v31, %v3278_v58  ;;  %3788 = vmatmul.f32.gmra.mxu3 %v15873_v36  ;;  %v15874_v62 = vld [vmem:[#allocation144_spill] sm:$0xff]  ;;  %v15876_v58 = vld [vmem:[#allocation135_spill] sm:$0xff] }
 0x51e   :  { %v3482_v28 = vpop.f32.mrf.mxu2  ;;  %v15875_v57 = vand.u32 4294901760, %v15874_v62 }
 0x51f   :  { %v3722_v41 = vadd.f32 %v3721_v44, %v3477_v20  ;;  %3949 = vmatmul.f32.gmra.mxu0 %v15873_v36 }
 0x520   :  { %v3725_v5 = vpop.f32.mrf.mxu3 }
 0x521   :  { %v12102_v1 = vadd.f32 %v3882_v45, %v3722_v41 }
 0x522   :  { %v3282_v49 = vpop.f32.mrf.mxu1 }
 0x523   :  { %v3283_v37 = vadd.f32 %v3282_v49, %v11782_v43  ;;  %3583 = vmatmul.f32.gmra.mxu2 %v15875_v57  ;;  %v15879_v49 = vld [vmem:[#allocation138_spill] sm:$0xff] }
 0x524   :  { %v3890_v31 = vpop.f32.mrf.mxu0 }
 0x525   :  { %v3483_v2 = vadd.f32 %v3482_v28, %v3283_v37  ;;  %3361 = vmatmul.f32.gmra.mxu1 %v15871_v54  ;;  %3792 = vmatmul.f32.gmra.mxu3 %v15876_v58  ;;  %v15877_v54 = vld [vmem:[#allocation145_spill] sm:$0xff] }
 0x526   :  { %v3488_v20 = vpop.f32.mrf.mxu2  ;;  %v15878_v41 = vand.u32 4294901760, %v15877_v54 }
 0x527   :  { %v3726_v29 = vadd.f32 %v3725_v5, %v3483_v2  ;;  %3953 = vmatmul.f32.gmra.mxu0 %v15876_v58  ;;  %v15880_v58 = vand.u32 4294901760, %v11703_v22 }
 0x528   :  { %v3729_v6 = vpop.f32.mrf.mxu3 }
 0x529   :  { %v12109_v44 = vadd.f32 %v3886_v13, %v3726_v29  ;;  %v12118_v13 = vmax.f32 %v12055_v21, 1e-30 }
 0x52a   :  { %v3287_v45 = vpop.f32.mrf.mxu1 }
 0x52b   :  { %v3288_v36 = vadd.f32 %v3287_v45, %v11807_v56  ;;  %3589 = vmatmul.f32.gmra.mxu2 %v15878_v41  ;;  %8371 = vrcp.f32 %v12118_v13  ;;  %v15881_v45 = vld [vmem:[#allocation147_spill] sm:$0xff]  ;;  %vm4026_vm9 = vweird.f32 %v12118_v13 }
 0x52c   :  { %v3894_v28 = vpop.f32.mrf.mxu0 }
 0x52d   :  { %3366 = vmatmul.f32.gmra.mxu1 %v15874_v62  ;;  %v3489_v43 = vadd.f32 %v3488_v20, %v3288_v36  ;;  %3796 = vmatmul.f32.gmra.mxu3 %v15879_v49 }
 0x52e   :  { %v3494_v37 = vpop.f32.mrf.mxu2 }
 0x52f   :  { %v3730_v5 = vadd.f32 %v3729_v6, %v3489_v43  ;;  %3957 = vmatmul.f32.gmra.mxu0 %v15879_v49  ;;  %v12130_v6 = vmax.f32 %v12068_v23, 1e-30 }
 0x530   :  { %v3733_v56 = vpop.f32.mrf.mxu3 }
 0x531   :  { %v12121_v2 = vadd.f32 %v3890_v31, %v3730_v5  ;;  %v8372_v41 = vpop.eup %8371  ;;  %8373 = vrcp.f32 %v12130_v6  ;;  %vm4040_vm1 = vweird.f32 %v12130_v6 }
 0x532   :  { %v3292_v57 = vpop.f32.mrf.mxu1  ;;  %v4022_v49 = vmul.f32 %v8372_v41, %v12118_v13  ;;  %vm4027_vm13 = vweird.f32 %v8372_v41 }
 0x533   :  { %v3293_v62 = vadd.f32 %v3292_v57, %v11831_v9  ;;  %3595 = vmatmul.f32.gmra.mxu2 %v15880_v58  ;;  %vm4028_vm6 = vmor %vm4026_vm9, %vm4027_vm13 }
 0x534   :  { %v3898_v20 = vpop.f32.mrf.mxu0 }
 0x535   :  { %v3495_v29 = vadd.f32 %v3494_v37, %v3293_v62  ;;  %3371 = vmatmul.f32.gmra.mxu1 %v15877_v54  ;;  %3800 = vmatmul.f32.gmra.mxu3 %v15881_v45  ;;  %v15882_v37 = vld [vmem:[#allocation149_spill] sm:$0xff] }
 0x536   :  { %v3500_v36 = vpop.f32.mrf.mxu2  ;;  %v15883_v23 = vand.u32 4294901760, %v15882_v37 }
 0x537   :  { %v3734_v21 = vadd.f32 %v3733_v56, %v3495_v29  ;;  %3961 = vmatmul.f32.gmra.mxu0 %v15881_v45  ;;  %v12143_v56 = vmax.f32 %v12075_v27, 1e-30 }
 0x538   :  { %v3737_v43 = vpop.f32.mrf.mxu3 }
 0x539   :  { %v12132_v31 = vadd.f32 %v3894_v28, %v3734_v21  ;;  %v12148_v21 = vpop.eup %8373  ;;  %8375 = vrcp.f32 %v12143_v56  ;;  %vm4054_vm14 = vweird.f32 %v12143_v56 }
 0x53a   :  { %v3297_v9 = vpop.f32.mrf.mxu1  ;;  %v4036_v27 = vmul.f32 %v12148_v21, %v12130_v6  ;;  %vm4041_vm4 = vweird.f32 %v12148_v21 }
 0x53b   :  { %v3298_v54 = vadd.f32 %v3297_v9, %v11859_v34  ;;  %3601 = vmatmul.f32.gmra.mxu2 %v15883_v23  ;;  %v4023_v34 = vsub.f32 1.0, %v4022_v49  ;;  %vm12193_vm8 = vmor %vm4040_vm1, %vm4041_vm4 }
 0x53c   :  { %v3902_v28 = vpop.f32.mrf.mxu0 }
 0x53d   :  { %3376 = vmatmul.f32.gmra.mxu1 %v11703_v22  ;;  %v3501_v5 = vadd.f32 %v3500_v36, %v3298_v54  ;;  %3804 = vmatmul.f32.gmra.mxu3 %v11711_v7  ;;  %v4024_v9 = vmul.f32 %v8372_v41, %v4023_v34  ;;  %v12159_v54 = vmax.f32 %v12086_v60, 1e-30  ;;  %v4032_v34 = vand.u32 2147483648, %v12118_v13 }
 0x53e   :  { %v3506_v62 = vpop.f32.mrf.mxu2  ;;  %v4030_v60 = vand.u32 2147483647, %v12118_v13 }
 0x53f   :  { %v3738_v57 = vadd.f32 %v3737_v43, %v3501_v5  ;;  %3965 = vmatmul.f32.gmra.mxu0 %v11711_v7  ;;  %v15884_v7 = vand.u32 4294901760, %v11753_v39  ;;  %v4025_v5 = vadd.f32 %v8372_v41, %v4024_v9  ;;  %8377 = vrcp.f32 %v12159_v54 }
 0x540   :  { %v3741_v58 = vpop.f32.mrf.mxu3  ;;  %v4033_v9 = vor.u32 1.1754944e-38, %v4032_v34  ;;  %vm4031_vm10 = vcmp.eq.f32.partialorder %v4030_v60, 8.507059e+37  ;;  %vm4068_vm0 = vweird.f32 %v12159_v54 }
 0x541   :  { %v12146_v29 = vadd.f32 %v3898_v20, %v3738_v57 }
 0x542   :  { %v3302_v22 = vpop.f32.mrf.mxu1 }
 0x543   :  { %v3303_v45 = vadd.f32 %v3302_v22, %v11891_v25  ;;  %3607 = vmatmul.f32.gmra.mxu2 %v15884_v7 }
 0x544   :  { %v3906_v20 = vpop.f32.mrf.mxu0 }
 0x545   :  { %v3507_v36 = vadd.f32 %v3506_v62, %v3303_v45  ;;  %3381 = vmatmul.f32.gmra.mxu1 %v15882_v37  ;;  %3808 = vmatmul.f32.gmra.mxu3 %v11736_v26  ;;  %v4037_v37 = vsub.f32 1.0, %v4036_v27  ;;  %v12164_v62 = vpop.eup %8375 }
 0x546   :  { %v3512_v49 = vpop.f32.mrf.mxu2  ;;  %vm4055_vm5 = vweird.f32 %v12164_v62 }
 0x547   :  { %v3742_v43 = vadd.f32 %v3741_v58, %v3507_v36  ;;  %3969 = vmatmul.f32.gmra.mxu0 %v11736_v26  ;;  %v4029_v26 = vsel %vm4028_vm6, %v8372_v41, %v4025_v5  ;;  %v4050_v58 = vmul.f32 %v12164_v62, %v12143_v56  ;;  %v15885_v36 = vand.u32 4294901760, %v11778_v46  ;;  %vm12229_vm12 = vmor %vm4054_vm14, %vm4055_vm5 }
 0x548   :  { %v3745_v57 = vpop.f32.mrf.mxu3  ;;  %v4034_v27 = vsel %vm4031_vm10, %v4033_v9, %v4029_v26  ;;  %v15888_v26 = vand.u32 4294901760, %v11803_v24 }
 0x549   :  { %v12161_v25 = vadd.f32 %v3902_v28, %v3742_v43  ;;  %v4038_v28 = vmul.f32 %v12148_v21, %v4037_v37  ;;  %v4051_v7 = vsub.f32 1.0, %v4050_v58 }
 0x54a   :  { %v3307_v23 = vpop.f32.mrf.mxu1 }
 0x54b   :  { %v3308_v22 = vadd.f32 %v3307_v23, %v11903_v19  ;;  %3613 = vmatmul.f32.gmra.mxu2 %v15885_v36  ;;  %v4039_v37 = vadd.f32 %v12148_v21, %v4038_v28  ;;  %v12186_v23 = vpop.eup %8377  ;;  %v4052_v60 = vmul.f32 %v12164_v62, %v4051_v7 }
 0x54c   :  { %v3910_v19 = vpop.f32.mrf.mxu0  ;;  %vm4069_vm3 = vweird.f32 %v12186_v23 }
 0x54d   :  { %3386 = vmatmul.f32.gmra.mxu1 %v11753_v39  ;;  %v3513_v45 = vadd.f32 %v3512_v49, %v3308_v22  ;;  %3812 = vmatmul.f32.gmra.mxu3 %v11761_v51  ;;  %v12179_v39 = vmax.f32 %v12093_v55, 1e-30  ;;  %v4471_v55 = vsel %vm4469_vm11, %v4034_v27, 0  ;;  %v15892_v22 = vand.u32 4294901760, %v11822_v18  ;;  %vm12270_vm13 = vmor %vm4068_vm0, %vm4069_vm3 }
 0x54e   :  { %v3518_v41 = vpop.f32.mrf.mxu2  ;;  %v12207_v58 = vand.u32 4294901760, %v4471_v55 }
 0x54f   :  { %v3746_v13 = vadd.f32 %v3745_v57, %v3513_v45  ;;  %3973 = vmatmul.f32.gmra.mxu0 %v11761_v51  ;;  %v4046_v57 = vand.u32 2147483648, %v12130_v6  ;;  %v4044_v51 = vand.u32 2147483647, %v12130_v6  ;;  %8379 = vrcp.f32 %v12179_v39 }
 0x550   :  { %v3749_v5 = vpop.f32.mrf.mxu3  ;;  %v4043_v6 = vsel %vm12193_vm8, %v12148_v21, %v4039_v37  ;;  %v4060_v37 = vand.u32 2147483648, %v12143_v56  ;;  %vm4082_vm1 = vweird.f32 %v12179_v39 }
 0x551   :  { %v12183_v43 = vadd.f32 %v3906_v20, %v3746_v13  ;;  %v4047_v45 = vor.u32 1.1754944e-38, %v4046_v57  ;;  %vm4045_vm15 = vcmp.eq.f32.partialorder %v4044_v51, 8.507059e+37  ;;  %v4058_v57 = vand.u32 2147483647, %v12143_v56 }
 0x552   :  { %v3312_v49 = vpop.f32.mrf.mxu1 }
 0x553   :  { %v3313_v34 = vadd.f32 %v3312_v49, %v11916_v16  ;;  %v4064_v16 = vmul.f32 %v12186_v23, %v12159_v54  ;;  %3619 = vmatmul.f32.gmra.mxu2 %v15888_v26  ;;  %v4048_v27 = vsel %vm4045_vm15, %v4047_v45, %v4043_v6  ;;  %v4053_v49 = vadd.f32 %v12164_v62, %v4052_v60 }
 0x554   :  { %v3914_v28 = vpop.f32.mrf.mxu0  ;;  %v4061_v60 = vor.u32 1.1754944e-38, %v4060_v37  ;;  %vm4059_vm7 = vcmp.eq.f32.partialorder %v4058_v57, 8.507059e+37  ;;  %v12249_v6 = vmax.f32 %v12109_v44, 1e-30  ;;  %v4074_v44 = vand.u32 2147483648, %v12159_v54 }
 0x555   :  { %v3519_v20 = vadd.f32 %v3518_v41, %v3313_v34  ;;  %3391 = vmatmul.f32.gmra.mxu1 %v11778_v46  ;;  %3816 = vmatmul.f32.gmra.mxu3 %v11786_v52  ;;  %v12211_v46 = vmax.f32 %v12102_v1, 1e-30  ;;  %v4065_v41 = vsub.f32 1.0, %v4064_v16  ;;  %v4057_v56 = vsel %vm12229_vm12, %v12164_v62, %v4053_v49 }
 0x556   :  { %v3524_v13 = vpop.f32.mrf.mxu2  ;;  %v4072_v34 = vand.u32 2147483647, %v12159_v54 }
 0x557   :  { %v3750_v36 = vadd.f32 %v3749_v5, %v3519_v20  ;;  %3977 = vmatmul.f32.gmra.mxu0 %v11786_v52  ;;  %v12218_v5 = vpop.eup %8379  ;;  %8381 = vrcp.f32 %v12211_v46  ;;  %v4474_v52 = vsel %vm4469_vm11, %v4048_v27, 0  ;;  %v4066_v51 = vmul.f32 %v12186_v23, %v4065_v41 }
 0x558   :  { %v3753_v7 = vpop.f32.mrf.mxu3  ;;  %8383 = vrcp.f32 %v12249_v6  ;;  %vm4073_vm9 = vcmp.eq.f32.partialorder %v4072_v34, 8.507059e+37  ;;  %vm4083_vm6 = vweird.f32 %v12218_v5  ;;  %vm4096_vm12 = vweird.f32 %v12211_v46 }
 0x559   :  { %v12213_v9 = vadd.f32 %v3910_v19, %v3750_v36  ;;  %v12223_v19 = vsub.f32 %v4471_v55, %v12207_v58  ;;  %v4864_v36 = vand.u32 4294901760, %v11880_v17  ;;  %vm12315_vm15 = vmor %vm4082_vm1, %vm4083_vm6 }
 0x55a   :  { %v3317_v21 = vpop.f32.mrf.mxu1 }
 0x55b   :  { %v3318_v1 = vadd.f32 %v3317_v21, %v11928_v59  ;;  %15889 = vst [vmem:[#allocation167_spill] sm:$0xff] %v12223_v19  ;;  %v4078_v59 = vmul.f32 %v12218_v5, %v12179_v39  ;;  %3625 = vmatmul.f32.gmra.mxu2 %v15892_v22  ;;  %v12244_v16 = vand.u32 4294901760, %v12223_v19  ;;  %v4865_v57 = vsub.f32 %v11880_v17, %v4864_v36 }
 0x55c   :  { %v3918_v20 = vpop.f32.mrf.mxu0  ;;  %v15897_v22 = vand.u32 4294901760, %v11853_v50 }
 0x55d   :  { %3396 = vmatmul.f32.gmra.mxu1 %v11803_v24  ;;  %v3525_v55 = vadd.f32 %v3524_v13, %v3318_v1  ;;  %3820 = vmatmul.f32.gmra.mxu3 %v11809_v53  ;;  %15893 = vst [vmem:[#allocation156_spill] sm:$0xff] %v12244_v16  ;;  %v12246_v24 = vand.u32 4294901760, %v4474_v52  ;;  %v4062_v13 = vsel %vm4059_vm7, %v4061_v60, %v4057_v56  ;;  %v12253_v62 = vpop.eup %8381  ;;  %v4079_v27 = vsub.f32 1.0, %v4078_v59  ;;  %v15900_v59 = vld [vmem:[#allocation142_spill] sm:$0xff] }
 0x55e   :  { %v3530_v45 = vpop.f32.mrf.mxu2  ;;  %v4075_v60 = vor.u32 1.1754944e-38, %v4074_v44  ;;  %vm4097_vm14 = vweird.f32 %v12253_v62 }
 0x55f   :  { %v3754_v26 = vadd.f32 %v3753_v7, %v3525_v55  ;;  %5196 = vmatmul.f32.vlgmr.msra.gmra.mxu0 %v12244_v16  ;;  %v4067_v7 = vadd.f32 %v12186_v23, %v4066_v51  ;;  %v12262_v1 = vsub.f32 %v4474_v52, %v12246_v24  ;;  %v4866_v51 = vand.u32 4294901760, %v4865_v57  ;;  %v15899_v57 = vld [vmem:[#allocation151_spill] sm:$0xff]  ;;  %vm12359_vm7 = vmor %vm4096_vm12, %vm4097_vm14 }
 0x560   :  { %v3757_v49 = vpop.f32.mrf.mxu3  ;;  %v4080_v55 = vmul.f32 %v12218_v5, %v4079_v27  ;;  %v807_v27 = vadd.s32 128, %v15785_v48 }
 0x561   :  { %v12256_v41 = vadd.f32 %v3914_v28, %v3754_v26  ;;  %15894 = vst [vmem:[#allocation155_spill] sm:$0xff] %v12262_v1  ;;  %v4477_v28 = vsel %vm4469_vm11, %v4062_v13, 0  ;;  %v4071_v54 = vsel %vm12270_vm13, %v12186_v23, %v4067_v7  ;;  %v12286_v13 = vand.u32 4294901760, %v12262_v1  ;;  %4867 = vmatpush.msrb.mxu2 %v4866_v51 }
 0x562   :  { %v3322_v21 = vpop.f32.mrf.mxu1  ;;  %vm1376_vm10 = vcmp.ge.s32.totalorder %v807_v27, %v15899_v57  ;;  %vm1378_vm4 = vcmp.lt.s32.totalorder %v807_v27, %v15900_v59  ;;  %v15902_v51 = vmov 0.0   ;;  %v4102_v57 = vand.u32 2147483648, %v12211_v46 }
 0x563   :  { %v3323_v37 = vadd.f32 %v3322_v21, %v11936_v14  ;;  %v4092_v14 = vmul.f32 %v12253_v62, %v12211_v46  ;;  %3631 = vmatmul.f32.gmra.mxu2 %v15897_v22  ;;  %15898 = vst [vmem:[#allocation148_spill] sm:$0xff] %v12286_v13  ;;  %vm1380_vm8 = vmand %vm1376_vm10, %vm1378_vm4  ;;  %v12341_v59 = vmax.f32 %v12132_v31, 1e-30 }
 0x564   :  { %v3922_v56 = vpop.f32.mrf.mxu0  ;;  %v8008_v22 = vsel %vm1380_vm8, 1.0, %v15902_v51 }
 0x565   :  { %v3531_v52 = vadd.f32 %v3530_v45, %v3323_v37  ;;  %3401 = vmatmul.f32.gmra.mxu1 %v11822_v18  ;;  %3824 = vmatmul.f32.gmra.mxu3 %v11835_v35  ;;  %v12288_v18 = vand.u32 4294901760, %v4477_v28  ;;  %v12291_v45 = vmax.f32 %v12121_v2, 1e-30  ;;  %v4093_v21 = vsub.f32 1.0, %v4092_v14 }
 0x566   :  { %v3536_v23 = vpop.f32.mrf.mxu2  ;;  %v4081_v2 = vadd.f32 %v12218_v5, %v4080_v55  ;;  %v4086_v55 = vand.u32 2147483647, %v12179_v39  ;;  %8108 = vmatpush.msk.msrb.mxu3 %vm4566_vm2, %v8008_v22 }
 0x567   :  { %v3758_v26 = vadd.f32 %v3757_v49, %v3531_v52  ;;  %5202 = vmatmul.f32.gmra.mxu0 %v12286_v13  ;;  %v4076_v49 = vsel %vm4073_vm9, %v4075_v60, %v4071_v54  ;;  %v12301_v52 = vpop.eup %8383  ;;  %v12307_v14 = vsub.f32 %v4477_v28, %v12288_v18  ;;  %8385 = vrcp.f32 %v12291_v45 }
 0x568   :  { %v3761_v44 = vpop.f32.mrf.mxu3  ;;  %v4480_v54 = vsel %vm4469_vm11, %v4076_v49, 0  ;;  %v4106_v28 = vmul.f32 %v12301_v52, %v12249_v6  ;;  %v4085_v49 = vsel %vm12315_vm15, %v12218_v5, %v4081_v2  ;;  %vm4087_vm5 = vcmp.eq.f32.partialorder %v4086_v55, 8.507059e+37 }
 0x569   :  { %v12294_v37 = vadd.f32 %v3918_v20, %v3758_v26  ;;  %v4088_v20 = vand.u32 2147483648, %v12179_v39  ;;  %15901 = vst [vmem:[#allocation157_spill] sm:$0xff] %v12307_v14  ;;  %v4571_v39 = vsel %vm4566_vm2, %v8008_v22, 0  ;;  %8387 = vrcp.f32 %v12341_v59 }
 0x56a   :  { %v3327_v7 = vpop.f32.mrf.mxu1  ;;  %vm4111_vm0 = vweird.f32 %v12301_v52  ;;  %vm4124_vm10 = vweird.f32 %v12291_v45  ;;  %vm4138_vm15 = vweird.f32 %v12341_v59 }
 0x56b   :  { %v3328_v34 = vadd.f32 %v3327_v7, %v11944_v38  ;;  %v4094_v38 = vmul.f32 %v12253_v62, %v4093_v21  ;;  %3985 = vmatmul.f32.vlgmr.msra.gmra.mxu2 %v11835_v35  ;;  %v4089_v7 = vor.u32 1.1754944e-38, %v4088_v20  ;;  %v12335_v21 = vsub.f32 %v4571_v39, %v4571_v39 }
 0x56c   :  { %v3926_v27 = vpop.f32.mrf.mxu0  ;;  %8107 = vmatpush.msk.msra.mxu2 %vm4566_vm2, %v11874_v61  ;;  %v4107_v61 = vsub.f32 1.0, %v4106_v28  ;;  %v4100_v28 = vand.u32 2147483647, %v12211_v46 }
 0x56d   :  { %3406 = vmatmul.f32.gmra.mxu1 %v11853_v50  ;;  %v3537_v26 = vadd.f32 %v3536_v23, %v3328_v34  ;;  %5017 = vmatmul.f32.vlgmr.msra.gmra.mxu3 %v12223_v19  ;;  %v12331_v50 = vand.u32 4294901760, %v12307_v14  ;;  %v12337_v23 = vand.u32 4294901760, %v4480_v54  ;;  %v5971_v2 = vand.u32 4294901760, %v12335_v21  ;;  %v12345_v34 = vpop.eup %8385 }
 0x56e   :  { %v3542_v5 = vpop.f32.mrf.mxu2  ;;  %v4090_v20 = vsel %vm4087_vm5, %v4089_v7, %v4085_v49  ;;  %v4095_v60 = vadd.f32 %v12253_v62, %v4094_v38  ;;  %v4120_v38 = vmul.f32 %v12345_v34, %v12291_v45  ;;  %v4103_v7 = vor.u32 1.1754944e-38, %v4102_v57 }
 0x56f   :  { %15905 = vst [vmem:[#allocation171_spill] sm:$0xff] %v12331_v50  ;;  %v3762_v35 = vadd.f32 %v3761_v44, %v3537_v26  ;;  %5208 = vmatmul.f32.gmra.mxu0 %v12331_v50  ;;  %v12353_v26 = vsub.f32 %v4480_v54, %v12337_v23  ;;  %v5972_v39 = vsub.f32 %v12335_v21, %v5971_v2  ;;  %v4483_v49 = vsel %vm4469_vm11, %v4090_v20, 0 }
 0x570   :  { %v3765_v55 = vpop.f32.mrf.mxu3  ;;  %6511 = vmatpush.msra.mxu3 %v5971_v2  ;;  %v4099_v46 = vsel %vm12359_vm7, %v12253_v62, %v4095_v60  ;;  %v12380_v57 = vand.u32 4294901760, %v4483_v49  ;;  %vm4101_vm3 = vcmp.eq.f32.partialorder %v4100_v28, 8.507059e+37  ;;  %v4121_v17 = vsub.f32 1.0, %v4120_v38 }
 0x571   :  { %v12348_v51 = vadd.f32 %v3922_v56, %v3762_v35  ;;  %15906 = vst [vmem:[#allocation170_spill] sm:$0xff] %v12353_v26  ;;  %v5973_v54 = vand.u32 4294901760, %v5972_v39  ;;  %v4108_v35 = vmul.f32 %v12301_v52, %v4107_v61  ;;  %v12392_v39 = vpop.eup %8387  ;;  %v4114_v38 = vand.u32 2147483647, %v12249_v6 }
 0x572   :  { %v3332_v44 = vpop.f32.mrf.mxu1  ;;  %vm4125_vm6 = vweird.f32 %v12345_v34  ;;  %vm4139_vm8 = vweird.f32 %v12392_v39 }
 0x573   :  { %v3333_v31 = vadd.f32 %v3332_v44, %v11952_v33  ;;  %4869 = vmatmul.f32.vlgmr.msrb.gmra.mxu2 %v12207_v58  ;;  %5974 = vmatpush.msrb.mxu0 %v5973_v54  ;;  %v4104_v44 = vsel %vm4101_vm3, %v4103_v7, %v4099_v46  ;;  %v4122_v54 = vmul.f32 %v12345_v34, %v4121_v17  ;;  %vm4115_vm9 = vcmp.eq.f32.partialorder %v4114_v38, 8.507059e+37  ;;  %vm12446_vm4 = vmor %vm4124_vm10, %vm4125_vm6 }
 0x574   :  { %v3930_v2 = vpop.f32.mrf.mxu0  ;;  %8109 = vmatpush.msk.msrb.mxu2 %vm4566_vm2, %v8008_v22  ;;  %v4486_v56 = vsel %vm4469_vm11, %v4104_v44, 0  ;;  %v12428_v44 = vmax.f32 %v12161_v25, 1e-30  ;;  %vm12487_vm5 = vmor %vm4138_vm15, %vm4139_vm8 }
 0x575   :  { %v3543_v33 = vadd.f32 %v3542_v5, %v3333_v31  ;;  %3981 = vmatmul.f32.vlgmr.msra.gmra.mxu1 %v11809_v53  ;;  %5022 = vmatmul.f32.gmra.mxu3 %v12262_v1  ;;  %v12376_v5 = vand.u32 4294901760, %v12353_v26  ;;  %v4593_v53 = vsub.f32 %v12223_v19, %v12244_v16  ;;  %v4109_v31 = vadd.f32 %v12301_v52, %v4108_v35 }
 0x576   :  { %5404 = vmatpush.msra.mxu1 %v4864_v36  ;;  %8110 = vmatpush.msk.msra.mxu0 %vm4566_vm2, %v8008_v22  ;;  %v12385_v36 = vmax.f32 %v12146_v29, 1e-30  ;;  %v3548_v61 = vpop.f32.mrf.mxu2  ;;  %v4116_v22 = vand.u32 2147483648, %v12249_v6  ;;  %vm4110_vm2 = vweird.f32 %v12249_v6 }
 0x577   :  { %v3766_v20 = vadd.f32 %v3765_v55, %v3543_v33  ;;  %15909 = vst [vmem:[#allocation163_spill] sm:$0xff] %v12376_v5  ;;  %5214 = vmatmul.f32.gmra.mxu0 %v12376_v5  ;;  %v12396_v29 = vand.u32 4294901760, %v4593_v53  ;;  %vm12404_vm13 = vmor %vm4110_vm2, %vm4111_vm0  ;;  %v12424_v53 = vand.u32 4294901760, %v4486_v56  ;;  %v4123_v33 = vadd.f32 %v12345_v34, %v4122_v54 }
 0x578   :  { %v3769_v60 = vpop.f32.mrf.mxu3  ;;  %8389 = vrcp.f32 %v12385_v36  ;;  %v4113_v6 = vsel %vm12404_vm13, %v12301_v52, %v4109_v31  ;;  %v4117_v35 = vor.u32 1.1754944e-38, %v4116_v22  ;;  %vm4152_vm7 = vweird.f32 %v12385_v36 }
 0x579   :  { %v12387_v62 = vadd.f32 %v3926_v27, %v3766_v20  ;;  %v12399_v27 = vsub.f32 %v4483_v49, %v12380_v57  ;;  %v4601_v20 = vsub.f32 %v12262_v1, %v12286_v13  ;;  %15914 = vst [vmem:[#allocation164_spill] sm:$0xff] %v12424_v53  ;;  %v12441_v25 = vsub.f32 %v4486_v56, %v12424_v53 }
 0x57a   :  { %v3337_v55 = vpop.f32.mrf.mxu1  ;;  %8391 = vrcp.f32 %v12428_v44  ;;  %vm4166_vm13 = vweird.f32 %v12428_v44 }
 0x57b   :  { %v3338_v28 = vadd.f32 %v3337_v55, %v11960_v0  ;;  %15910 = vst [vmem:[#allocation162_spill] sm:$0xff] %v12399_v27  ;;  %v4134_v0 = vmul.f32 %v12392_v39, %v12341_v59  ;;  %4873 = vmatmul.f32.gmra.mxu2 %v12246_v24  ;;  %v12420_v46 = vand.u32 4294901760, %v12399_v27 }
 0x57c   :  { %v3934_v7 = vpop.f32.mrf.mxu0  ;;  %15915 = vst [vmem:[#allocation184_spill] sm:$0xff] %v12441_v25 }
 0x57d   :  { %4595 = vmatmul.f32.vlgmr.msrb.gmra.mxu1 %v12396_v29  ;;  %v3549_v49 = vadd.f32 %v3548_v61, %v3338_v28  ;;  %5027 = vmatmul.f32.gmra.mxu3 %v12307_v14  ;;  %15913 = vst [vmem:[#allocation153_spill] sm:$0xff] %v12420_v46  ;;  %v4130_v61 = vand.u32 2147483648, %v12291_v45  ;;  %v4135_v55 = vsub.f32 1.0, %v4134_v0 }
 0x57e   :  { %6121 = vmatpush.msrb.mxu1 %v12335_v21  ;;  %v3554_v52 = vpop.f32.mrf.mxu2  ;;  %v4118_v21 = vsel %vm4115_vm9, %v4117_v35, %v4113_v6 }
 0x57f   :  { %v3770_v17 = vadd.f32 %v3769_v60, %v3549_v49  ;;  %5220 = vmatmul.f32.gmra.mxu0 %v12420_v46  ;;  %v12435_v60 = vpop.eup %8389  ;;  %v12438_v49 = vand.u32 4294901760, %v4601_v20  ;;  %v4489_v6 = vsel %vm4469_vm11, %v4118_v21, 0  ;;  %v4136_v35 = vmul.f32 %v12392_v39, %v4135_v55 }
 0x580   :  { %v3773_v28 = vpop.f32.mrf.mxu3  ;;  %v4148_v56 = vmul.f32 %v12435_v60, %v12385_v36  ;;  %v12465_v21 = vand.u32 4294901760, %v4489_v6  ;;  %v12468_v55 = vmax.f32 %v12183_v43, 1e-30  ;;  %vm4153_vm12 = vweird.f32 %v12435_v60 }
 0x581   :  { %v12432_v31 = vadd.f32 %v3930_v2, %v3770_v17  ;;  %v4128_v2 = vand.u32 2147483647, %v12291_v45  ;;  %v4127_v45 = vsel %vm12446_vm4, %v12345_v34, %v4123_v33  ;;  %vm12528_vm3 = vmor %vm4152_vm7, %vm4153_vm12 }
 0x582   :  { %v3342_v22 = vpop.f32.mrf.mxu1  ;;  %15919 = vst [vmem:[#allocation176_spill] sm:$0xff] %v12465_v21  ;;  %8393 = vrcp.f32 %v12468_v55  ;;  %vm4180_vm4 = vweird.f32 %v12468_v55 }
 0x583   :  { %v3343_v38 = vadd.f32 %v3342_v22, %v11968_v11  ;;  %v4131_v11 = vor.u32 1.1754944e-38, %v4130_v61  ;;  %4877 = vmatmul.f32.gmra.mxu2 %v12288_v18  ;;  %v4609_v61 = vsub.f32 %v12307_v14, %v12331_v50  ;;  %vm4129_vm1 = vcmp.eq.f32.partialorder %v4128_v2, 8.507059e+37  ;;  %v12475_v14 = vpop.eup %8391 }
 0x584   :  { %v3938_v20 = vpop.f32.mrf.mxu0  ;;  %v4144_v2 = vand.u32 2147483648, %v12341_v59  ;;  %vm4167_vm2 = vweird.f32 %v12475_v14 }
 0x585   :  { %v3555_v54 = vadd.f32 %v3554_v52, %v3343_v38  ;;  %4603 = vmatmul.f32.gmra.mxu1 %v12438_v49  ;;  %5032 = vmatmul.f32.gmra.mxu3 %v12353_v26  ;;  %v12461_v52 = vand.u32 4294901760, %v12441_v25  ;;  %v4132_v34 = vsel %vm4129_vm1, %v4131_v11, %v4127_v45  ;;  %v12479_v50 = vand.u32 4294901760, %v4609_v61  ;;  %vm12569_vm9 = vmor %vm4166_vm13, %vm4167_vm2 }
 0x586   :  { %v3560_v38 = vpop.f32.mrf.mxu2  ;;  %v4492_v11 = vsel %vm4469_vm11, %v4132_v34, 0  ;;  %v4145_v61 = vor.u32 1.1754944e-38, %v4144_v2 }
 0x587   :  { %v3774_v17 = vadd.f32 %v3773_v28, %v3555_v54  ;;  %15918 = vst [vmem:[#allocation175_spill] sm:$0xff] %v12461_v52  ;;  %5226 = vmatmul.f32.gmra.mxu0 %v12461_v52  ;;  %v4149_v28 = vsub.f32 1.0, %v4148_v56  ;;  %v4137_v54 = vadd.f32 %v12392_v39, %v4136_v35  ;;  %v4142_v56 = vand.u32 2147483647, %v12341_v59 }
 0x588   :  { %v3777_v0 = vpop.f32.mrf.mxu3 }
 0x589   :  { %v12470_v22 = vadd.f32 %v3934_v7, %v3774_v17  ;;  %v12482_v7 = vsub.f32 %v4489_v6, %v12465_v21  ;;  %v4162_v6 = vmul.f32 %v12475_v14, %v12428_v44  ;;  %v4141_v59 = vsel %vm12487_vm5, %v12392_v39, %v4137_v54 }
 0x58a   :  { %v3347_v33 = vpop.f32.mrf.mxu1  ;;  %vm4143_vm14 = vcmp.eq.f32.partialorder %v4142_v56, 8.507059e+37 }
 0x58b   :  { %v3348_v43 = vadd.f32 %v3347_v33, %v11976_v47  ;;  %15920 = vst [vmem:[#allocation173_spill] sm:$0xff] %v12482_v7  ;;  %v4150_v47 = vmul.f32 %v12435_v60, %v4149_v28  ;;  %4881 = vmatmul.f32.gmra.mxu2 %v12337_v23  ;;  %v12502_v34 = vand.u32 4294901760, %v12482_v7  ;;  %v4617_v28 = vsub.f32 %v12353_v26, %v12376_v5 }
 0x58c   :  { %v3942_v17 = vpop.f32.mrf.mxu0  ;;  %v12506_v33 = vand.u32 4294901760, %v4492_v11  ;;  %v4146_v39 = vsel %vm4143_vm14, %v4145_v61, %v4141_v59  ;;  %v4163_v54 = vsub.f32 1.0, %v4162_v6 }
 0x58d   :  { %4611 = vmatmul.f32.gmra.mxu1 %v12479_v50  ;;  %v3561_v35 = vadd.f32 %v3560_v38, %v3348_v43  ;;  %5037 = vmatmul.f32.gmra.mxu3 %v12399_v27  ;;  %15923 = vst [vmem:[#allocation161_spill] sm:$0xff] %v12502_v34  ;;  %v4158_v38 = vand.u32 2147483648, %v12385_v36  ;;  %v12510_v43 = vmax.f32 %v12213_v9, 1e-30  ;;  %v4151_v5 = vadd.f32 %v12435_v60, %v4150_v47 }
 0x58e   :  { %15924 = vst [vmem:[#allocation177_spill] sm:$0xff] %v12506_v33  ;;  %v3566_v45 = vpop.f32.mrf.mxu2  ;;  %v12523_v9 = vsub.f32 %v4492_v11, %v12506_v33  ;;  %v4495_v59 = vsel %vm4469_vm11, %v4146_v39, 0  ;;  %v12550_v39 = vmax.f32 %v12256_v41, 1e-30 }
 0x58f   :  { %v3778_v1 = vadd.f32 %v3777_v0, %v3561_v35  ;;  %5232 = vmatmul.f32.gmra.mxu0 %v12502_v34  ;;  %v12517_v0 = vpop.eup %8393  ;;  %v12520_v35 = vand.u32 4294901760, %v4617_v28  ;;  %8395 = vrcp.f32 %v12510_v43  ;;  %vm4194_vm5 = vweird.f32 %v12510_v43 }
 0x590   :  { %v3781_v26 = vpop.f32.mrf.mxu3  ;;  %15925 = vst [vmem:[#allocation189_spill] sm:$0xff] %v12523_v9  ;;  %v4176_v11 = vmul.f32 %v12517_v0, %v12468_v55  ;;  %v12543_v28 = vand.u32 4294901760, %v12523_v9  ;;  %8397 = vrcp.f32 %v12550_v39  ;;  %vm4181_vm10 = vweird.f32 %v12517_v0 }
 0x591   :  { %v12514_v2 = vadd.f32 %v3938_v20, %v3778_v1  ;;  %v4156_v1 = vand.u32 2147483647, %v12385_v36  ;;  %v4155_v36 = vsel %vm12528_vm3, %v12435_v60, %v4151_v5  ;;  %vm12610_vm1 = vmor %vm4180_vm4, %vm4181_vm10  ;;  %vm4208_vm3 = vweird.f32 %v12550_v39 }
 0x592   :  { %v3352_v13 = vpop.f32.mrf.mxu1  ;;  %15928 = vst [vmem:[#allocation180_spill] sm:$0xff] %v12543_v28  ;;  %v4177_v5 = vsub.f32 1.0, %v4176_v11  ;;  %v4170_v11 = vand.u32 2147483647, %v12428_v44 }
 0x593   :  { %v3353_v56 = vadd.f32 %v3352_v13, %v11984_v12  ;;  %v4159_v12 = vor.u32 1.1754944e-38, %v4158_v38  ;;  %v4164_v13 = vmul.f32 %v12475_v14, %v4163_v54  ;;  %4885 = vmatmul.f32.gmra.mxu2 %v12380_v57  ;;  %v4625_v38 = vsub.f32 %v12399_v27, %v12420_v46 }
 0x594   :  { %v3946_v6 = vpop.f32.mrf.mxu0  ;;  %vm4157_vm0 = vcmp.eq.f32.partialorder %v4156_v1, 8.507059e+37  ;;  %v4172_v1 = vand.u32 2147483648, %v12428_v44  ;;  %vm4171_vm6 = vcmp.eq.f32.partialorder %v4170_v11, 8.507059e+37 }
 0x595   :  { %v3567_v47 = vadd.f32 %v3566_v45, %v3353_v56  ;;  %4619 = vmatmul.f32.gmra.mxu1 %v12520_v35  ;;  %5042 = vmatmul.f32.gmra.mxu3 %v12441_v25  ;;  %v12547_v45 = vand.u32 4294901760, %v4495_v59  ;;  %v12557_v27 = vpop.eup %8395  ;;  %v12561_v46 = vand.u32 4294901760, %v4625_v38 }
 0x596   :  { %v3572_v56 = vpop.f32.mrf.mxu2  ;;  %v4173_v38 = vor.u32 1.1754944e-38, %v4172_v1  ;;  %vm4195_vm15 = vweird.f32 %v12557_v27 }
 0x597   :  { %v3782_v61 = vadd.f32 %v3781_v26, %v3567_v47  ;;  %15929 = vst [vmem:[#allocation185_spill] sm:$0xff] %v12547_v45  ;;  %5238 = vmatmul.f32.gmra.mxu0 %v12543_v28  ;;  %v4160_v26 = vsel %vm4157_vm0, %v4159_v12, %v4155_v36  ;;  %v4165_v47 = vadd.f32 %v12475_v14, %v4164_v13  ;;  %vm12651_vm14 = vmor %vm4194_vm5, %vm4195_vm15 }
 0x598   :  { %v3785_v20 = vpop.f32.mrf.mxu3  ;;  %v4498_v12 = vsel %vm4469_vm11, %v4160_v26, 0 }
 0x599   :  { %v12552_v54 = vadd.f32 %v3942_v17, %v3782_v61  ;;  %v12564_v17 = vsub.f32 %v4495_v59, %v12547_v45  ;;  %v4190_v59 = vmul.f32 %v12557_v27, %v12510_v43  ;;  %v4169_v44 = vsel %vm12569_vm9, %v12475_v14, %v4165_v47 }
 0x59a   :  { %v3357_v60 = vpop.f32.mrf.mxu1  ;;  %v4174_v14 = vsel %vm4171_vm6, %v4173_v38, %v4169_v44 }
 0x59b   :  { %v3358_v41 = vadd.f32 %v3357_v60, %v11992_v63  ;;  %15930 = vst [vmem:[#allocation183_spill] sm:$0xff] %v12564_v17  ;;  %v4178_v63 = vmul.f32 %v12517_v0, %v4177_v5  ;;  %4889 = vmatmul.f32.gmra.mxu2 %v12424_v53  ;;  %v12584_v26 = vand.u32 4294901760, %v12564_v17  ;;  %v4633_v5 = vsub.f32 %v12441_v25, %v12461_v52 }
 0x59c   :  { %v3950_v61 = vpop.f32.mrf.mxu0  ;;  %v12588_v60 = vand.u32 4294901760, %v4498_v12  ;;  %v4191_v47 = vsub.f32 1.0, %v4190_v59  ;;  %v4501_v44 = vsel %vm4469_vm11, %v4174_v14, 0  ;;  %v12632_v14 = vmax.f32 %v12348_v51, 1e-30 }
 0x59d   :  { %4627 = vmatmul.f32.gmra.mxu1 %v12561_v46  ;;  %v3573_v13 = vadd.f32 %v3572_v56, %v3358_v41  ;;  %5047 = vmatmul.f32.gmra.mxu3 %v12482_v7  ;;  %15933 = vst [vmem:[#allocation169_spill] sm:$0xff] %v12584_v26  ;;  %v4186_v56 = vand.u32 2147483648, %v12468_v55  ;;  %v12592_v41 = vmax.f32 %v12294_v37, 1e-30  ;;  %v4179_v52 = vadd.f32 %v12517_v0, %v4178_v63 }
 0x59e   :  { %15934 = vst [vmem:[#allocation186_spill] sm:$0xff] %v12588_v60  ;;  %v3578_v36 = vpop.f32.mrf.mxu2  ;;  %v12605_v37 = vsub.f32 %v4498_v12, %v12588_v60 }
 0x59f   :  { %v3786_v19 = vadd.f32 %v3785_v20, %v3573_v13  ;;  %5244 = vmatmul.f32.gmra.mxu0 %v12584_v26  ;;  %v12599_v20 = vpop.eup %8397  ;;  %v12602_v13 = vand.u32 4294901760, %v4633_v5  ;;  %8399 = vrcp.f32 %v12592_v41  ;;  %vm4222_vm9 = vweird.f32 %v12592_v41 }
 0x5a0   :  { %v3789_v25 = vpop.f32.mrf.mxu3  ;;  %15935 = vst [vmem:[#allocation199_spill] sm:$0xff] %v12605_v37  ;;  %v4204_v12 = vmul.f32 %v12599_v20, %v12550_v39  ;;  %v12625_v5 = vand.u32 4294901760, %v12605_v37  ;;  %8401 = vrcp.f32 %v12632_v14  ;;  %vm4209_vm7 = vweird.f32 %v12599_v20 }
 0x5a1   :  { %v12596_v1 = vadd.f32 %v3946_v6, %v3786_v19  ;;  %v4184_v19 = vand.u32 2147483647, %v12468_v55  ;;  %v4183_v55 = vsel %vm12610_vm1, %v12517_v0, %v4179_v52  ;;  %vm12692_vm0 = vmor %vm4208_vm3, %vm4209_vm7  ;;  %vm4236_vm1 = vweird.f32 %v12632_v14 }
 0x5a2   :  { %v3362_v16 = vpop.f32.mrf.mxu1  ;;  %15938 = vst [vmem:[#allocation181_spill] sm:$0xff] %v12625_v5  ;;  %v4205_v52 = vsub.f32 1.0, %v4204_v12  ;;  %v4198_v12 = vand.u32 2147483647, %v12510_v43 }
 0x5a3   :  { %v3363_v11 = vadd.f32 %v3362_v16, %v12000_v8  ;;  %v4187_v8 = vor.u32 1.1754944e-38, %v4186_v56  ;;  %v4192_v16 = vmul.f32 %v12557_v27, %v4191_v47  ;;  %4893 = vmatmul.f32.gmra.mxu2 %v12465_v21  ;;  %v4641_v56 = vsub.f32 %v12482_v7, %v12502_v34 }
 0x5a4   :  { %v3954_v59 = vpop.f32.mrf.mxu0  ;;  %vm4185_vm8 = vcmp.eq.f32.partialorder %v4184_v19, 8.507059e+37  ;;  %v4200_v19 = vand.u32 2147483648, %v12510_v43  ;;  %vm4199_vm12 = vcmp.eq.f32.partialorder %v4198_v12, 8.507059e+37 }
 0x5a5   :  { %v3579_v63 = vadd.f32 %v3578_v36, %v3363_v11  ;;  %4635 = vmatmul.f32.gmra.mxu1 %v12602_v13  ;;  %5052 = vmatmul.f32.gmra.mxu3 %v12523_v9  ;;  %v12629_v36 = vand.u32 4294901760, %v4501_v44  ;;  %v12639_v7 = vpop.eup %8399  ;;  %v12643_v34 = vand.u32 4294901760, %v4641_v56 }
 0x5a6   :  { %v3584_v11 = vpop.f32.mrf.mxu2  ;;  %v4201_v56 = vor.u32 1.1754944e-38, %v4200_v19  ;;  %vm4223_vm13 = vweird.f32 %v12639_v7 }
 0x5a7   :  { %v3790_v38 = vadd.f32 %v3789_v25, %v3579_v63  ;;  %15939 = vst [vmem:[#allocation195_spill] sm:$0xff] %v12629_v36  ;;  %5250 = vmatmul.f32.gmra.mxu0 %v12625_v5  ;;  %v4188_v25 = vsel %vm4185_vm8, %v4187_v8, %v4183_v55  ;;  %v4193_v63 = vadd.f32 %v12557_v27, %v4192_v16  ;;  %vm12733_vm6 = vmor %vm4222_vm9, %vm4223_vm13 }
 0x5a8   :  { %v3793_v6 = vpop.f32.mrf.mxu3  ;;  %15940 = vst [vmem:[#allocation193_spill] sm:$0xff] %v12643_v34  ;;  %v4504_v8 = vsel %vm4469_vm11, %v4188_v25, 0 }
 0x5a9   :  { %v12634_v47 = vadd.f32 %v3950_v61, %v3790_v38  ;;  %v12646_v61 = vsub.f32 %v4501_v44, %v12629_v36  ;;  %v4218_v44 = vmul.f32 %v12639_v7, %v12592_v41  ;;  %v4197_v43 = vsel %vm12651_vm14, %v12557_v27, %v4193_v63 }
 0x5aa   :  { %v3367_v0 = vpop.f32.mrf.mxu1  ;;  %v4202_v27 = vsel %vm4199_vm12, %v4201_v56, %v4197_v43 }
 0x5ab   :  { %v3368_v51 = vadd.f32 %v3367_v0, %v12008_v42  ;;  %15941 = vst [vmem:[#allocation182_spill] sm:$0xff] %v12646_v61  ;;  %v4206_v42 = vmul.f32 %v12599_v20, %v4205_v52  ;;  %4897 = vmatmul.f32.gmra.mxu2 %v12506_v33  ;;  %v12666_v25 = vand.u32 4294901760, %v12646_v61  ;;  %v4649_v52 = vsub.f32 %v12523_v9, %v12543_v28 }
 0x5ac   :  { %v3958_v38 = vpop.f32.mrf.mxu0  ;;  %v12670_v0 = vand.u32 4294901760, %v4504_v8  ;;  %v4219_v63 = vsub.f32 1.0, %v4218_v44  ;;  %v4507_v43 = vsel %vm4469_vm11, %v4202_v27, 0  ;;  %v12714_v27 = vmax.f32 %v12432_v31, 1e-30 }
 0x5ad   :  { %4643 = vmatmul.f32.gmra.mxu1 %v12643_v34  ;;  %v3585_v16 = vadd.f32 %v3584_v11, %v3368_v51  ;;  %5057 = vmatmul.f32.gmra.mxu3 %v12564_v17  ;;  %15944 = vst [vmem:[#allocation196_spill] sm:$0xff] %v12666_v25  ;;  %v4214_v11 = vand.u32 2147483648, %v12550_v39  ;;  %v12674_v51 = vmax.f32 %v12387_v62, 1e-30  ;;  %v4207_v28 = vadd.f32 %v12599_v20, %v4206_v42 }
 0x5ae   :  { %15945 = vst [vmem:[#allocation213_spill] sm:$0xff] %v12670_v0  ;;  %v3590_v55 = vpop.f32.mrf.mxu2  ;;  %v12687_v62 = vsub.f32 %v4504_v8, %v12670_v0 }
 0x5af   :  { %v3794_v48 = vadd.f32 %v3793_v6, %v3585_v16  ;;  %5256 = vmatmul.f32.gmra.mxu0 %v12666_v25  ;;  %v12681_v6 = vpop.eup %8401  ;;  %v12684_v16 = vand.u32 4294901760, %v4649_v52  ;;  %8403 = vrcp.f32 %v12674_v51  ;;  %vm4250_vm14 = vweird.f32 %v12674_v51 }
 0x5b0   :  { %v3797_v9 = vpop.f32.mrf.mxu3  ;;  %15946 = vst [vmem:[#allocation192_spill] sm:$0xff] %v12687_v62  ;;  %v4232_v8 = vmul.f32 %v12681_v6, %v12632_v14  ;;  %v12707_v52 = vand.u32 4294901760, %v12687_v62  ;;  %8405 = vrcp.f32 %v12714_v27  ;;  %vm4237_vm4 = vweird.f32 %v12681_v6 }
 0x5b1   :  { %v12678_v19 = vadd.f32 %v3954_v59, %v3794_v48  ;;  %v4212_v48 = vand.u32 2147483647, %v12550_v39  ;;  %v4211_v39 = vsel %vm12692_vm0, %v12599_v20, %v4207_v28  ;;  %vm12774_vm8 = vmor %vm4236_vm1, %vm4237_vm4  ;;  %vm4264_vm0 = vweird.f32 %v12714_v27 }
 0x5b2   :  { %v3372_v34 = vpop.f32.mrf.mxu1  ;;  %15949 = vst [vmem:[#allocation210_spill] sm:$0xff] %v12707_v52  ;;  %v4233_v28 = vsub.f32 1.0, %v4232_v8  ;;  %v4226_v8 = vand.u32 2147483647, %v12592_v41 }
 0x5b3   :  { %v3373_v12 = vadd.f32 %v3372_v34, %v12016_v3  ;;  %v4215_v3 = vor.u32 1.1754944e-38, %v4214_v11  ;;  %v4220_v34 = vmul.f32 %v12639_v7, %v4219_v63  ;;  %4901 = vmatmul.f32.gmra.mxu2 %v12547_v45  ;;  %v4657_v11 = vsub.f32 %v12564_v17, %v12584_v26 }
 0x5b4   :  { %v3962_v44 = vpop.f32.mrf.mxu0  ;;  %vm4213_vm2 = vcmp.eq.f32.partialorder %v4212_v48, 8.507059e+37  ;;  %v4228_v48 = vand.u32 2147483648, %v12592_v41  ;;  %vm4227_vm10 = vcmp.eq.f32.partialorder %v4226_v8, 8.507059e+37 }
 0x5b5   :  { %v3591_v42 = vadd.f32 %v3590_v55, %v3373_v12  ;;  %4651 = vmatmul.f32.gmra.mxu1 %v12684_v16  ;;  %5062 = vmatmul.f32.gmra.mxu3 %v12605_v37  ;;  %v12711_v55 = vand.u32 4294901760, %v4507_v43  ;;  %v12721_v17 = vpop.eup %8403  ;;  %v12725_v26 = vand.u32 4294901760, %v4657_v11 }
 0x5b6   :  { %v3596_v12 = vpop.f32.mrf.mxu2  ;;  %v4229_v11 = vor.u32 1.1754944e-38, %v4228_v48  ;;  %vm4251_vm5 = vweird.f32 %v12721_v17 }
 0x5b7   :  { %v3798_v56 = vadd.f32 %v3797_v9, %v3591_v42  ;;  %15950 = vst [vmem:[#allocation207_spill] sm:$0xff] %v12711_v55  ;;  %5262 = vmatmul.f32.gmra.mxu0 %v12707_v52  ;;  %v4216_v9 = vsel %vm4213_vm2, %v4215_v3, %v4211_v39  ;;  %v4221_v42 = vadd.f32 %v12639_v7, %v4220_v34  ;;  %vm12815_vm12 = vmor %vm4250_vm14, %vm4251_vm5 }
 0x5b8   :  { %v3801_v59 = vpop.f32.mrf.mxu3  ;;  %15951 = vst [vmem:[#allocation190_spill] sm:$0xff] %v12725_v26  ;;  %v4510_v3 = vsel %vm4469_vm11, %v4216_v9, 0 }
 0x5b9   :  { %v12716_v63 = vadd.f32 %v3958_v38, %v3798_v56  ;;  %v12728_v38 = vsub.f32 %v4507_v43, %v12711_v55  ;;  %v4246_v43 = vmul.f32 %v12721_v17, %v12674_v51  ;;  %v4225_v41 = vsel %vm12733_vm6, %v12639_v7, %v4221_v42 }
 0x5ba   :  { %v3377_v20 = vpop.f32.mrf.mxu1  ;;  %v4230_v7 = vsel %vm4227_vm10, %v4229_v11, %v4225_v41 }
 0x5bb   :  { %v3378_v31 = vadd.f32 %v3377_v20, %v12024_v30  ;;  %15952 = vst [vmem:[#allocation211_spill] sm:$0xff] %v12728_v38  ;;  %v4234_v30 = vmul.f32 %v12681_v6, %v4233_v28  ;;  %4905 = vmatmul.f32.gmra.mxu2 %v12588_v60  ;;  %v12748_v9 = vand.u32 4294901760, %v12728_v38  ;;  %v4665_v28 = vsub.f32 %v12605_v37, %v12625_v5 }
 0x5bc   :  { %v3966_v56 = vpop.f32.mrf.mxu0  ;;  %v12752_v20 = vand.u32 4294901760, %v4510_v3  ;;  %v4247_v42 = vsub.f32 1.0, %v4246_v43  ;;  %v4513_v41 = vsel %vm4469_vm11, %v4230_v7, 0  ;;  %v12796_v7 = vmax.f32 %v12514_v2, 1e-30 }
 0x5bd   :  { %4659 = vmatmul.f32.gmra.mxu1 %v12725_v26  ;;  %v3597_v34 = vadd.f32 %v3596_v12, %v3378_v31  ;;  %5067 = vmatmul.f32.gmra.mxu3 %v12646_v61  ;;  %15955 = vst [vmem:[#allocation217_spill] sm:$0xff] %v12748_v9  ;;  %v4242_v12 = vand.u32 2147483648, %v12632_v14  ;;  %v12756_v31 = vmax.f32 %v12470_v22, 1e-30  ;;  %v4235_v5 = vadd.f32 %v12681_v6, %v4234_v30 }
 0x5be   :  { %15956 = vst [vmem:[#allocation212_spill] sm:$0xff] %v12752_v20  ;;  %v3602_v39 = vpop.f32.mrf.mxu2  ;;  %v12769_v22 = vsub.f32 %v4510_v3, %v12752_v20 }
 0x5bf   :  { %v3802_v26 = vadd.f32 %v3801_v59, %v3597_v34  ;;  %5268 = vmatmul.f32.gmra.mxu0 %v12748_v9  ;;  %v12763_v59 = vpop.eup %8405  ;;  %v12766_v34 = vand.u32 4294901760, %v4665_v28  ;;  %8407 = vrcp.f32 %v12756_v31  ;;  %vm4278_vm6 = vweird.f32 %v12756_v31 }
 0x5c0   :  { %v3805_v37 = vpop.f32.mrf.mxu3  ;;  %15958 = vst [vmem:[#allocation218_spill] sm:$0xff] %v12769_v22  ;;  %v4260_v3 = vmul.f32 %v12763_v59, %v12714_v27  ;;  %v12789_v28 = vand.u32 4294901760, %v12769_v22  ;;  %8409 = vrcp.f32 %v12796_v7  ;;  %vm4265_vm3 = vweird.f32 %v12763_v59 }
 0x5c1   :  { %v12760_v48 = vadd.f32 %v3962_v44, %v3802_v26  ;;  %15957 = vst [vmem:[#allocation220_spill] sm:$0xff] %v12766_v34  ;;  %v4240_v26 = vand.u32 2147483647, %v12632_v14  ;;  %v4239_v14 = vsel %vm12774_vm8, %v12681_v6, %v4235_v5  ;;  %vm12856_vm2 = vmor %vm4264_vm0, %vm4265_vm3  ;;  %vm4292_vm8 = vweird.f32 %v12796_v7 }
 0x5c2   :  { %v3382_v60 = vpop.f32.mrf.mxu1  ;;  %15961 = vst [vmem:[#allocation203_spill] sm:$0xff] %v12789_v28  ;;  %v4261_v5 = vsub.f32 1.0, %v4260_v3  ;;  %v4254_v3 = vand.u32 2147483647, %v12674_v51 }
 0x5c3   :  { %v3383_v8 = vadd.f32 %v3382_v60, %v12032_v15  ;;  %v4243_v15 = vor.u32 1.1754944e-38, %v4242_v12  ;;  %v4248_v60 = vmul.f32 %v12721_v17, %v4247_v42  ;;  %4909 = vmatmul.f32.gmra.mxu2 %v12629_v36  ;;  %v4673_v12 = vsub.f32 %v12646_v61, %v12666_v25 }
 0x5c4   :  { %v3970_v43 = vpop.f32.mrf.mxu0  ;;  %vm4241_vm15 = vcmp.eq.f32.partialorder %v4240_v26, 8.507059e+37  ;;  %v4256_v26 = vand.u32 2147483648, %v12674_v51  ;;  %vm4255_vm7 = vcmp.eq.f32.partialorder %v4254_v3, 8.507059e+37 }
 0x5c5   :  { %v3603_v30 = vadd.f32 %v3602_v39, %v3383_v8  ;;  %4667 = vmatmul.f32.gmra.mxu1 %v12766_v34  ;;  %5072 = vmatmul.f32.gmra.mxu3 %v12687_v62  ;;  %v12793_v39 = vand.u32 4294901760, %v4513_v41  ;;  %v12803_v61 = vpop.eup %8407  ;;  %v12807_v25 = vand.u32 4294901760, %v4673_v12 }
 0x5c6   :  { %v3608_v8 = vpop.f32.mrf.mxu2  ;;  %v4257_v12 = vor.u32 1.1754944e-38, %v4256_v26  ;;  %vm4279_vm9 = vweird.f32 %v12803_v61 }
 0x5c7   :  { %v3806_v11 = vadd.f32 %v3805_v37, %v3603_v30  ;;  %15962 = vst [vmem:[#allocation221_spill] sm:$0xff] %v12793_v39  ;;  %5274 = vmatmul.f32.gmra.mxu0 %v12789_v28  ;;  %v4244_v37 = vsel %vm4241_vm15, %v4243_v15, %v4239_v14  ;;  %v4249_v30 = vadd.f32 %v12721_v17, %v4248_v60  ;;  %vm12897_vm10 = vmor %vm4278_vm6, %vm4279_vm9 }
 0x5c8   :  { %v3809_v44 = vpop.f32.mrf.mxu3  ;;  %15963 = vst [vmem:[#allocation113_spill] sm:$0xff] %v12807_v25  ;;  %v4516_v15 = vsel %vm4469_vm11, %v4244_v37, 0 }
 0x5c9   :  { %v12798_v42 = vadd.f32 %v3966_v56, %v3806_v11  ;;  %v12810_v56 = vsub.f32 %v4513_v41, %v12793_v39  ;;  %v4274_v41 = vmul.f32 %v12803_v61, %v12756_v31  ;;  %v4253_v51 = vsel %vm12815_vm12, %v12721_v17, %v4249_v30 }
 0x5ca   :  { %v3387_v6 = vpop.f32.mrf.mxu1  ;;  %v4258_v17 = vsel %vm4255_vm7, %v4257_v12, %v4253_v51 }
 0x5cb   :  { %v3388_v2 = vadd.f32 %v3387_v6, %v12040_v10  ;;  %15964 = vst [vmem:[#allocation225_spill] sm:$0xff] %v12810_v56  ;;  %v4262_v10 = vmul.f32 %v12763_v59, %v4261_v5  ;;  %4913 = vmatmul.f32.gmra.mxu2 %v12670_v0  ;;  %v12830_v37 = vand.u32 4294901760, %v12810_v56  ;;  %v4681_v5 = vsub.f32 %v12687_v62, %v12707_v52 }
 0x5cc   :  { %v3974_v11 = vpop.f32.mrf.mxu0  ;;  %v12834_v6 = vand.u32 4294901760, %v4516_v15  ;;  %v4275_v30 = vsub.f32 1.0, %v4274_v41  ;;  %v4519_v51 = vsel %vm4469_vm11, %v4258_v17, 0  ;;  %v12878_v17 = vmax.f32 %v12596_v1, 1e-30 }
 0x5cd   :  { %4675 = vmatmul.f32.gmra.mxu1 %v12807_v25  ;;  %v3609_v60 = vadd.f32 %v3608_v8, %v3388_v2  ;;  %5077 = vmatmul.f32.gmra.mxu3 %v12728_v38  ;;  %15967 = vst [vmem:[#allocation223_spill] sm:$0xff] %v12830_v37  ;;  %v4270_v8 = vand.u32 2147483648, %v12714_v27  ;;  %v12838_v2 = vmax.f32 %v12552_v54, 1e-30  ;;  %v4263_v52 = vadd.f32 %v12763_v59, %v4262_v10 }
 0x5ce   :  { %15968 = vst [vmem:[#allocation107_spill] sm:$0xff] %v12834_v6  ;;  %v3614_v14 = vpop.f32.mrf.mxu2  ;;  %v12851_v54 = vsub.f32 %v4516_v15, %v12834_v6 }
 0x5cf   :  { %v3810_v25 = vadd.f32 %v3809_v44, %v3609_v60  ;;  %5280 = vmatmul.f32.gmra.mxu0 %v12830_v37  ;;  %v12845_v44 = vpop.eup %8409  ;;  %v12848_v60 = vand.u32 4294901760, %v4681_v5  ;;  %8411 = vrcp.f32 %v12838_v2  ;;  %vm4306_vm12 = vweird.f32 %v12838_v2 }
 0x5d0   :  { %v3813_v62 = vpop.f32.mrf.mxu3  ;;  %15970 = vst [vmem:[#allocation119_spill] sm:$0xff] %v12851_v54  ;;  %v4288_v15 = vmul.f32 %v12845_v44, %v12796_v7  ;;  %v12871_v5 = vand.u32 4294901760, %v12851_v54  ;;  %8413 = vrcp.f32 %v12878_v17  ;;  %vm4293_vm1 = vweird.f32 %v12845_v44 }
 0x5d1   :  { %v12842_v26 = vadd.f32 %v3970_v43, %v3810_v25  ;;  %15969 = vst [vmem:[#allocation226_spill] sm:$0xff] %v12848_v60  ;;  %v4268_v25 = vand.u32 2147483647, %v12714_v27  ;;  %v4267_v27 = vsel %vm12856_vm2, %v12763_v59, %v4263_v52  ;;  %vm12940_vm15 = vmor %vm4292_vm8, %vm4293_vm1  ;;  %vm4320_vm2 = vweird.f32 %v12878_v17 }
 0x5d2   :  { %v3392_v0 = vpop.f32.mrf.mxu1  ;;  %15973 = vst [vmem:[#allocation233_spill] sm:$0xff] %v12871_v5  ;;  %v4289_v52 = vsub.f32 1.0, %v4288_v15  ;;  %v4282_v15 = vand.u32 2147483647, %v12756_v31 }
 0x5d3   :  { %v3393_v3 = vadd.f32 %v3392_v0, %v12048_v32  ;;  %v4271_v32 = vor.u32 1.1754944e-38, %v4270_v8  ;;  %v4276_v0 = vmul.f32 %v12803_v61, %v4275_v30  ;;  %4917 = vmatmul.f32.gmra.mxu2 %v12711_v55  ;;  %v4689_v8 = vsub.f32 %v12728_v38, %v12748_v9  ;;  %v15975_v9 = vld [vmem:[#allocation160_spill] sm:$0xff] }
 0x5d4   :  { %v3978_v41 = vpop.f32.mrf.mxu0  ;;  %vm4269_vm13 = vcmp.eq.f32.partialorder %v4268_v25, 8.507059e+37  ;;  %v4284_v25 = vand.u32 2147483648, %v12756_v31  ;;  %vm4283_vm4 = vcmp.eq.f32.partialorder %v4282_v15, 8.507059e+37 }
 0x5d5   :  { %v3615_v10 = vadd.f32 %v3614_v14, %v3393_v3  ;;  %4683 = vmatmul.f32.gmra.mxu1 %v12848_v60  ;;  %5082 = vmatmul.f32.gmra.mxu3 %v12769_v22  ;;  %v12875_v14 = vand.u32 4294901760, %v4519_v51  ;;  %v12885_v38 = vpop.eup %8411  ;;  %v12889_v60 = vand.u32 4294901760, %v4689_v8 }
 0x5d6   :  { %v3620_v3 = vpop.f32.mrf.mxu2  ;;  %v4285_v8 = vor.u32 1.1754944e-38, %v4284_v25  ;;  %vm4307_vm14 = vweird.f32 %v12885_v38 }
 0x5d7   :  { %v3814_v12 = vadd.f32 %v3813_v62, %v3615_v10  ;;  %15974 = vst [vmem:[#allocation228_spill] sm:$0xff] %v12875_v14  ;;  %5286 = vmatmul.f32.gmra.mxu0 %v12871_v5  ;;  %v4272_v62 = vsel %vm4269_vm13, %v4271_v32, %v4267_v27  ;;  %v4277_v10 = vadd.f32 %v12803_v61, %v4276_v0  ;;  %vm12981_vm7 = vmor %vm4306_vm12, %vm4307_vm14 }
 0x5d8   :  { %v3817_v43 = vpop.f32.mrf.mxu3  ;;  %15976 = vst [vmem:[#allocation235_spill] sm:$0xff] %v12889_v60  ;;  %v4522_v32 = vsel %vm4469_vm11, %v4272_v62, 0 }
 0x5d9   :  { %v12880_v30 = vadd.f32 %v3974_v11, %v3814_v12  ;;  %v12892_v11 = vsub.f32 %v4519_v51, %v12875_v14  ;;  %v4302_v51 = vmul.f32 %v12885_v38, %v12838_v2  ;;  %v4281_v31 = vsel %vm12897_vm10, %v12803_v61, %v4277_v10 }
 0x5da   :  { %v3397_v59 = vpop.f32.mrf.mxu1  ;;  %v4286_v61 = vsel %vm4283_vm4, %v4285_v8, %v4281_v31 }
 0x5db   :  { %v3398_v1 = vadd.f32 %v3397_v59, %v15975_v9  ;;  %15977 = vst [vmem:[#allocation2_spill] sm:$0xff] %v12892_v11  ;;  %v4290_v9 = vmul.f32 %v12845_v44, %v4289_v52  ;;  %4921 = vmatmul.f32.gmra.mxu2 %v12752_v20  ;;  %v12914_v62 = vand.u32 4294901760, %v12892_v11  ;;  %v4697_v52 = vsub.f32 %v12769_v22, %v12789_v28 }
 0x5dc   :  { %v12907_v12 = vpop.f32.mrf.mxu0  ;;  %v12918_v59 = vand.u32 4294901760, %v4522_v32  ;;  %v4303_v10 = vsub.f32 1.0, %v4302_v51  ;;  %v4525_v31 = vsel %vm4469_vm11, %v4286_v61, 0  ;;  %v12964_v61 = vmax.f32 %v12678_v19, 1e-30 }
 0x5dd   :  { %4691 = vmatmul.f32.gmra.mxu1 %v12889_v60  ;;  %v3621_v0 = vadd.f32 %v3620_v3, %v3398_v1  ;;  %5087 = vmatmul.f32.gmra.mxu3 %v12810_v56  ;;  %15980 = vst [vmem:[#allocation46_spill] sm:$0xff] %v12914_v62  ;;  %v4298_v1 = vand.u32 2147483648, %v12796_v7  ;;  %v12922_v60 = vmax.f32 %v12634_v47, 1e-30  ;;  %v4291_v28 = vadd.f32 %v12845_v44, %v4290_v9 }
 0x5de   :  { %15981 = vst [vmem:[#allocation194_spill] sm:$0xff] %v12918_v59  ;;  %v3626_v27 = vpop.f32.mrf.mxu2  ;;  %v12935_v47 = vsub.f32 %v4522_v32, %v12918_v59 }
 0x5df   :  { %v3818_v3 = vadd.f32 %v3817_v43, %v3621_v0  ;;  %5292 = vmatmul.f32.gmra.mxu0 %v12914_v62  ;;  %v12929_v43 = vpop.eup %8413  ;;  %v12932_v0 = vand.u32 4294901760, %v4697_v52  ;;  %8415 = vrcp.f32 %v12922_v60  ;;  %vm4334_vm10 = vweird.f32 %v12922_v60 }
 0x5e0   :  { %v3821_v22 = vpop.f32.mrf.mxu3  ;;  %15983 = vst [vmem:[#allocation58_spill] sm:$0xff] %v12935_v47  ;;  %v4316_v32 = vmul.f32 %v12929_v43, %v12878_v17  ;;  %8417 = vrcp.f32 %v12964_v61  ;;  %vm4321_vm0 = vweird.f32 %v12929_v43 }
 0x5e1   :  { %v12926_v25 = vadd.f32 %v3978_v41, %v3818_v3  ;;  %15982 = vst [vmem:[#allocation249_spill] sm:$0xff] %v12932_v0  ;;  %v4296_v41 = vand.u32 2147483647, %v12796_v7  ;;  %v4295_v7 = vsel %vm12940_vm15, %v12845_v44, %v4291_v28  ;;  %v12957_v3 = vand.u32 4294901760, %v12935_v47  ;;  %vm13025_vm13 = vmor %vm4320_vm2, %vm4321_vm0 }
 0x5e2   :  { %v3402_v20 = vpop.f32.mrf.mxu1  ;;  %v4317_v28 = vsub.f32 1.0, %v4316_v32  ;;  %vm4348_vm15 = vweird.f32 %v12964_v61 }
 0x5e3   :  { %v3403_v15 = vadd.f32 %v3402_v20, %v12066_v4  ;;  %v4299_v4 = vor.u32 1.1754944e-38, %v4298_v1  ;;  %v4304_v20 = vmul.f32 %v12885_v38, %v4303_v10  ;;  %4925 = vmatmul.f32.gmra.mxu2 %v12793_v39  ;;  %15986 = vst [vmem:[#allocation250_spill] sm:$0xff] %v12957_v3  ;;  %v4705_v1 = vsub.f32 %v12810_v56, %v12830_v37 }
 0x5e4   :  { %v12950_v8 = vpop.f32.mrf.mxu0  ;;  %vm4297_vm5 = vcmp.eq.f32.partialorder %v4296_v41, 8.507059e+37 }
 0x5e5   :  { %v3627_v9 = vadd.f32 %v3626_v27, %v3403_v15  ;;  %4699 = vmatmul.f32.gmra.mxu1 %v12932_v0  ;;  %5092 = vmatmul.f32.gmra.mxu3 %v12851_v54  ;;  %v12961_v27 = vand.u32 4294901760, %v4525_v31  ;;  %v4300_v15 = vsel %vm4297_vm5, %v4299_v4, %v4295_v7  ;;  %v12970_v56 = vpop.eup %8415  ;;  %v12973_v37 = vand.u32 4294901760, %v4705_v1 }
 0x5e6   :  { %v3632_v10 = vpop.f32.mrf.mxu2  ;;  %v4528_v4 = vsel %vm4469_vm11, %v4300_v15, 0  ;;  %v4310_v7 = vand.u32 2147483647, %v12838_v2  ;;  %v4318_v1 = vmul.f32 %v12929_v43, %v4317_v28  ;;  %vm4335_vm6 = vweird.f32 %v12970_v56 }
 0x5e7   :  { %v3822_v52 = vadd.f32 %v3821_v22, %v3627_v9  ;;  %15987 = vst [vmem:[#allocation70_spill] sm:$0xff] %v12961_v27  ;;  %5298 = vmatmul.f32.gmra.mxu0 %v12957_v3  ;;  %v4312_v22 = vand.u32 2147483648, %v12838_v2  ;;  %v4305_v9 = vadd.f32 %v12885_v38, %v4304_v20  ;;  %v12976_v19 = vsub.f32 %v4525_v31, %v12961_v27  ;;  %vm13065_vm4 = vmor %vm4334_vm10, %vm4335_vm6 }
 0x5e8   :  { %v3825_v51 = vpop.f32.mrf.mxu3  ;;  %15988 = vst [vmem:[#allocation40_spill] sm:$0xff] %v12973_v37  ;;  %v4330_v31 = vmul.f32 %v12970_v56, %v12922_v60  ;;  %v13002_v28 = vand.u32 4294901760, %v4528_v4  ;;  %vm4311_vm3 = vcmp.eq.f32.partialorder %v4310_v7, 8.507059e+37  ;;  %v4326_v7 = vand.u32 2147483648, %v12878_v17 }
 0x5e9   :  { %15989 = vst [vmem:[#allocation110_spill] sm:$0xff] %v12976_v19  ;;  %v4309_v2 = vsel %vm12981_vm7, %v12885_v38, %v4305_v9 }
 0x5ea   :  { %v3407_v44 = vpop.f32.mrf.mxu1  ;;  %15993 = vst [vmem:[#allocation96_spill] sm:$0xff] %v13002_v28  ;;  %v4331_v38 = vsub.f32 1.0, %v4330_v31  ;;  %v13020_v0 = vsub.f32 %v4528_v4, %v13002_v28 }
 0x5eb   :  { %v3408_v41 = vadd.f32 %v3407_v44, %v12078_v40  ;;  %v4313_v40 = vor.u32 1.1754944e-38, %v4312_v22  ;;  %4929 = vmatmul.f32.gmra.mxu2 %v12834_v6  ;;  %v4713_v22 = vsub.f32 %v12851_v54, %v12871_v5  ;;  %v4319_v6 = vadd.f32 %v12929_v43, %v4318_v1  ;;  %v13012_v54 = vpop.eup %8417 }
 0x5ec   :  { %v12991_v15 = vpop.f32.mrf.mxu0  ;;  %15995 = vst [vmem:[#allocation45_spill] sm:$0xff] %v13020_v0  ;;  %v4344_v4 = vmul.f32 %v13012_v54, %v12964_v61  ;;  %vm4349_vm8 = vweird.f32 %v13012_v54 }
 0x5ed   :  { %v3633_v20 = vadd.f32 %v3632_v10, %v3408_v41  ;;  %4707 = vmatmul.f32.gmra.mxu1 %v12973_v37  ;;  %5097 = vmatmul.f32.gmra.mxu3 %v12892_v11  ;;  %v12998_v10 = vand.u32 4294901760, %v12976_v19  ;;  %v13005_v41 = vmax.f32 %v12716_v63, 1e-30  ;;  %v4314_v32 = vsel %vm4311_vm3, %v4313_v40, %v4309_v2  ;;  %vm13107_vm5 = vmor %vm4348_vm15, %vm4349_vm8 }
 0x5ee   :  { %v3986_v37 = vpop.f32.mrf.mxu2  ;;  %v13017_v63 = vand.u32 4294901760, %v4713_v22  ;;  %v4324_v40 = vand.u32 2147483647, %v12878_v17  ;;  %v4323_v17 = vsel %vm13025_vm13, %v12929_v43, %v4319_v6  ;;  %v4327_v2 = vor.u32 1.1754944e-38, %v4326_v7 }
 0x5ef   :  { %v3826_v44 = vadd.f32 %v3825_v51, %v3633_v20  ;;  %15992 = vst [vmem:[#allocation197_spill] sm:$0xff] %v12998_v10  ;;  %5304 = vmatmul.f32.gmra.mxu0 %v12998_v10  ;;  %8419 = vrcp.f32 %v13005_v41  ;;  %v4721_v22 = vsub.f32 %v12892_v11, %v12914_v62  ;;  %v4345_v6 = vsub.f32 1.0, %v4344_v4 }
 0x5f0   :  { %v5018_v20 = vpop.f32.mrf.mxu3  ;;  %15994 = vst [vmem:[#allocation81_spill] sm:$0xff] %v13017_v63  ;;  %vm4325_vm9 = vcmp.eq.f32.partialorder %v4324_v40, 8.507059e+37  ;;  %v4340_v11 = vand.u32 2147483648, %v12922_v60  ;;  %v4338_v4 = vand.u32 2147483647, %v12922_v60  ;;  %vm4362_vm7 = vweird.f32 %v13005_v41 }
 0x5f1   :  { %v13009_v51 = vadd.f32 %v3986_v37, %v3826_v44  ;;  %v4531_v37 = vsel %vm4469_vm11, %v4314_v32, 0  ;;  %v13042_v44 = vand.u32 4294901760, %v13020_v0  ;;  %v4328_v31 = vsel %vm4325_vm9, %v4327_v2, %v4323_v17 }
 0x5f2   :  { %v3982_v9 = vpop.f32.mrf.mxu1  ;;  %v13046_v32 = vand.u32 4294901760, %v4531_v37  ;;  %v13057_v40 = vand.u32 4294901760, %v4721_v22  ;;  %v4534_v17 = vsel %vm4469_vm11, %v4328_v31, 0  ;;  %v4346_v22 = vmul.f32 %v13012_v54, %v4345_v6 }
 0x5f3   :  { %v13015_v5 = vadd.f32 %v3982_v9, %v3822_v52  ;;  %v4332_v52 = vmul.f32 %v12970_v56, %v4331_v38  ;;  %4933 = vmatmul.f32.gmra.mxu2 %v12875_v14  ;;  %15998 = vst [vmem:[#allocation198_spill] sm:$0xff] %v13042_v44  ;;  %v13049_v38 = vmax.f32 %v12760_v48, 1e-30  ;;  %v4341_v31 = vor.u32 1.1754944e-38, %v4340_v11 }
 0x5f4   :  { %v13035_v1 = vpop.f32.mrf.mxu0  ;;  %15999 = vst [vmem:[#allocation93_spill] sm:$0xff] %v13046_v32  ;;  %v13060_v48 = vsub.f32 %v4531_v37, %v13046_v32  ;;  %v13088_v6 = vand.u32 4294901760, %v4534_v17  ;;  %vm4339_vm1 = vcmp.eq.f32.partialorder %v4338_v4, 8.507059e+37 }
 0x5f5   :  { %4715 = vmatmul.f32.gmra.mxu1 %v13017_v63  ;;  %5102 = vmatmul.f32.gmra.mxu3 %v12935_v47  ;;  %v4333_v63 = vadd.f32 %v12970_v56, %v4332_v52  ;;  %v13054_v14 = vpop.eup %8419  ;;  %16000 = vst [vmem:[#allocation219_spill] sm:$0xff] %v13057_v40  ;;  %8421 = vrcp.f32 %v13049_v38  ;;  %vm4376_vm13 = vweird.f32 %v13049_v38 }
 0x5f6   :  { %v4870_v9 = vpop.f32.mrf.mxu2  ;;  %16001 = vst [vmem:[#allocation105_spill] sm:$0xff] %v13060_v48  ;;  %v4358_v37 = vmul.f32 %v13054_v14, %v13005_v41  ;;  %vm4363_vm12 = vweird.f32 %v13054_v14 }
 0x5f7   :  { %5310 = vmatmul.f32.gmra.mxu0 %v13042_v44  ;;  %v4337_v60 = vsel %vm13065_vm4, %v12970_v56, %v4333_v63  ;;  %16005 = vst [vmem:[#allocation64_spill] sm:$0xff] %v13088_v6  ;;  %vm13149_vm3 = vmor %vm4362_vm7, %vm4363_vm12 }
 0x5f8   :  { %v5023_v7 = vpop.f32.mrf.mxu3  ;;  %v4342_v2 = vsel %vm4339_vm1, %v4341_v31, %v4337_v60  ;;  %v4359_v56 = vsub.f32 1.0, %v4358_v37  ;;  %v4352_v37 = vand.u32 2147483647, %v12964_v61 }
 0x5f9   :  { %v4537_v60 = vsel %vm4469_vm11, %v4342_v2, 0 }
 0x5fa   :  { %v4596_v43 = vpop.f32.mrf.mxu1  ;;  %vm4353_vm14 = vcmp.eq.f32.partialorder %v4352_v37, 8.507059e+37 }
 0x5fb   :  { %v4871_v62 = vadd.f32 %v4870_v9, %v4596_v43  ;;  %4937 = vmatmul.f32.gmra.mxu2 %v12918_v59  ;;  %v13091_v43 = vmax.f32 %v12798_v42, 1e-30  ;;  %v4347_v59 = vadd.f32 %v13012_v54, %v4346_v22  ;;  %v13096_v39 = vpop.eup %8421  ;;  %v13102_v42 = vsub.f32 %v4534_v17, %v13088_v6 }
 0x5fc   :  { %v13077_v9 = vpop.f32.mrf.mxu0  ;;  %v4372_v17 = vmul.f32 %v13096_v39, %v13049_v38  ;;  %vm4377_vm2 = vweird.f32 %v13096_v39 }
 0x5fd   :  { %v13070_v52 = vadd.f32 %v5018_v20, %v4871_v62  ;;  %4723 = vmatmul.f32.gmra.mxu1 %v13057_v40  ;;  %5107 = vmatmul.f32.gmra.mxu3 %v12976_v19  ;;  %v13084_v62 = vand.u32 4294901760, %v13060_v48  ;;  %v4729_v20 = vsub.f32 %v12935_v47, %v12957_v3  ;;  %v4354_v47 = vand.u32 2147483648, %v12964_v61  ;;  %16007 = vst [vmem:[#allocation52_spill] sm:$0xff] %v13102_v42  ;;  %vm13191_vm9 = vmor %vm4376_vm13, %vm4377_vm2 }
 0x5fe   :  { %v4874_v40 = vpop.f32.mrf.mxu2  ;;  %8423 = vrcp.f32 %v13091_v43  ;;  %v4351_v61 = vsel %vm13107_vm5, %v13012_v54, %v4347_v59  ;;  %v4373_v54 = vsub.f32 1.0, %v4372_v17  ;;  %v4366_v17 = vand.u32 2147483647, %v13005_v41 }
 0x5ff   :  { %16004 = vst [vmem:[#allocation204_spill] sm:$0xff] %v13084_v62  ;;  %5316 = vmatmul.f32.gmra.mxu0 %v13084_v62  ;;  %v13099_v4 = vand.u32 4294901760, %v4729_v20  ;;  %v4355_v2 = vor.u32 1.1754944e-38, %v4354_v47  ;;  %vm4390_vm4 = vweird.f32 %v13091_v43 }
 0x600   :  { %v5028_v63 = vpop.f32.mrf.mxu3  ;;  %vm4367_vm0 = vcmp.eq.f32.partialorder %v4366_v17, 8.507059e+37 }
 0x601   :  { %16006 = vst [vmem:[#allocation100_spill] sm:$0xff] %v13099_v4  ;;  %v4356_v31 = vsel %vm4353_vm14, %v4355_v2, %v4351_v61 }
 0x602   :  { %v4604_v11 = vpop.f32.mrf.mxu1  ;;  %v4540_v61 = vsel %vm4469_vm11, %v4356_v31, 0 }
 0x603   :  { %v4875_v3 = vadd.f32 %v4874_v40, %v4604_v11  ;;  %v4360_v40 = vmul.f32 %v13054_v14, %v4359_v56  ;;  %4941 = vmatmul.f32.gmra.mxu2 %v12961_v27  ;;  %v13130_v56 = vand.u32 4294901760, %v4537_v60  ;;  %v13133_v11 = vmax.f32 %v12842_v26, 1e-30 }
 0x604   :  { %v13119_v20 = vpop.f32.mrf.mxu0  ;;  %v13138_v55 = vpop.eup %8423 }
 0x605   :  { %v13112_v22 = vadd.f32 %v5023_v7, %v4875_v3  ;;  %4731 = vmatmul.f32.gmra.mxu1 %v13099_v4  ;;  %5112 = vmatmul.f32.gmra.mxu3 %v13020_v0  ;;  %v13126_v3 = vand.u32 4294901760, %v13102_v42  ;;  %v4737_v7 = vsub.f32 %v12976_v19, %v12998_v10  ;;  %16011 = vst [vmem:[#allocation208_spill] sm:$0xff] %v13130_v56  ;;  %v4368_v19 = vand.u32 2147483648, %v13005_v41 }
 0x606   :  { %v4878_v4 = vpop.f32.mrf.mxu2  ;;  %v4361_v27 = vadd.f32 %v13054_v14, %v4360_v40  ;;  %v13144_v26 = vsub.f32 %v4537_v60, %v13130_v56  ;;  %8425 = vrcp.f32 %v13133_v11  ;;  %v4386_v60 = vmul.f32 %v13138_v55, %v13091_v43 }
 0x607   :  { %16010 = vst [vmem:[#allocation69_spill] sm:$0xff] %v13126_v3  ;;  %5322 = vmatmul.f32.gmra.mxu0 %v13126_v3  ;;  %v13141_v37 = vand.u32 4294901760, %v4737_v7  ;;  %v4369_v31 = vor.u32 1.1754944e-38, %v4368_v19  ;;  %vm4391_vm10 = vweird.f32 %v13138_v55  ;;  %vm4404_vm5 = vweird.f32 %v13133_v11 }
 0x608   :  { %v5033_v47 = vpop.f32.mrf.mxu3  ;;  %16013 = vst [vmem:[#allocation60_spill] sm:$0xff] %v13144_v26  ;;  %v4365_v41 = vsel %vm13149_vm3, %v13054_v14, %v4361_v27  ;;  %v4382_v14 = vand.u32 2147483648, %v13049_v38  ;;  %v4387_v27 = vsub.f32 1.0, %v4386_v60  ;;  %vm13237_vm1 = vmor %vm4390_vm4, %vm4391_vm10 }
 0x609   :  { %16012 = vst [vmem:[#allocation200_spill] sm:$0xff] %v13141_v37  ;;  %v4370_v2 = vsel %vm4367_vm0, %v4369_v31, %v4365_v41  ;;  %v4380_v31 = vand.u32 2147483647, %v13049_v38 }
 0x60a   :  { %v4612_v59 = vpop.f32.mrf.mxu1  ;;  %v4543_v41 = vsel %vm4469_vm11, %v4370_v2, 0 }
 0x60b   :  { %v4879_v10 = vadd.f32 %v4878_v4, %v4612_v59  ;;  %v4374_v4 = vmul.f32 %v13096_v39, %v4373_v54  ;;  %4945 = vmatmul.f32.gmra.mxu2 %v13002_v28  ;;  %v13172_v54 = vand.u32 4294901760, %v4540_v61  ;;  %v13175_v59 = vmax.f32 %v12880_v30, 1e-30 }
 0x60c   :  { %v13161_v7 = vpop.f32.mrf.mxu0  ;;  %vm4381_vm6 = vcmp.eq.f32.partialorder %v4380_v31, 8.507059e+37 }
 0x60d   :  { %v13154_v40 = vadd.f32 %v5028_v63, %v4879_v10  ;;  %4739 = vmatmul.f32.gmra.mxu1 %v13141_v37  ;;  %5117 = vmatmul.f32.gmra.mxu3 %v13060_v48  ;;  %v13168_v10 = vand.u32 4294901760, %v13144_v26  ;;  %v4745_v63 = vsub.f32 %v13020_v0, %v13042_v44  ;;  %16017 = vst [vmem:[#allocation202_spill] sm:$0xff] %v13172_v54  ;;  %v13181_v0 = vpop.eup %8425  ;;  %8427 = vrcp.f32 %v13175_v59 }
 0x60e   :  { %v4882_v37 = vpop.f32.mrf.mxu2  ;;  %v4375_v34 = vadd.f32 %v13096_v39, %v4374_v4  ;;  %v13186_v30 = vsub.f32 %v4540_v61, %v13172_v54  ;;  %v4388_v61 = vmul.f32 %v13138_v55, %v4387_v27  ;;  %v13218_v27 = vadd.f32 %v12907_v12, %v13070_v52 }
 0x60f   :  { %16016 = vst [vmem:[#allocation209_spill] sm:$0xff] %v13168_v10  ;;  %5328 = vmatmul.f32.gmra.mxu0 %v13168_v10  ;;  %v13183_v17 = vand.u32 4294901760, %v4745_v63  ;;  %v4400_v63 = vmul.f32 %v13181_v0, %v13133_v11  ;;  %vm4405_vm15 = vweird.f32 %v13181_v0  ;;  %vm4418_vm3 = vweird.f32 %v13175_v59 }
 0x610   :  { %v5038_v28 = vpop.f32.mrf.mxu3  ;;  %16019 = vst [vmem:[#allocation42_spill] sm:$0xff] %v13186_v30  ;;  %v4379_v38 = vsel %vm13191_vm9, %v13096_v39, %v4375_v34  ;;  %v4396_v39 = vand.u32 2147483648, %v13091_v43  ;;  %vm13283_vm14 = vmor %vm4404_vm5, %vm4405_vm15 }
 0x611   :  { %16018 = vst [vmem:[#allocation87_spill] sm:$0xff] %v13183_v17 }
 0x612   :  { %v4620_v19 = vpop.f32.mrf.mxu1 }
 0x613   :  { %v4883_v44 = vadd.f32 %v4882_v37, %v4620_v19  ;;  %v4383_v37 = vor.u32 1.1754944e-38, %v4382_v14  ;;  %4949 = vmatmul.f32.gmra.mxu2 %v13046_v32  ;;  %v13214_v14 = vand.u32 4294901760, %v4543_v41  ;;  %v13221_v19 = vmax.f32 %v12926_v25, 1e-30  ;;  %v13227_v36 = vpop.eup %8427 }
 0x614   :  { %v13203_v2 = vpop.f32.mrf.mxu0  ;;  %v4389_v32 = vadd.f32 %v13138_v55, %v4388_v61  ;;  %vm4419_vm7 = vweird.f32 %v13227_v36 }
 0x615   :  { %v13196_v4 = vadd.f32 %v5033_v47, %v4883_v44  ;;  %4747 = vmatmul.f32.gmra.mxu1 %v13183_v17  ;;  %5122 = vmatmul.f32.gmra.mxu3 %v13102_v42  ;;  %v13210_v44 = vand.u32 4294901760, %v13186_v30  ;;  %v4753_v47 = vsub.f32 %v13060_v48, %v13084_v62  ;;  %v4384_v34 = vsel %vm4381_vm6, %v4383_v37, %v4379_v38  ;;  %vm13329_vm0 = vmor %vm4418_vm3, %vm4419_vm7 }
 0x616   :  { %v4886_v60 = vpop.f32.mrf.mxu2  ;;  %v4401_v17 = vsub.f32 1.0, %v4400_v63  ;;  %v13232_v25 = vsub.f32 %v4543_v41, %v13214_v14  ;;  %v4546_v31 = vsel %vm4469_vm11, %v4384_v34, 0  ;;  %v4394_v37 = vand.u32 2147483647, %v13091_v43 }
 0x617   :  { %16022 = vst [vmem:[#allocation57_spill] sm:$0xff] %v13210_v44  ;;  %5334 = vmatmul.f32.gmra.mxu0 %v13210_v44  ;;  %v13229_v52 = vand.u32 4294901760, %v4753_v47  ;;  %8429 = vrcp.f32 %v13221_v19  ;;  %v4414_v38 = vmul.f32 %v13227_v36, %v13175_v59  ;;  %v4393_v43 = vsel %vm13237_vm1, %v13138_v55, %v4389_v32 }
 0x618   :  { %v5043_v62 = vpop.f32.mrf.mxu3  ;;  %16024 = vst [vmem:[#allocation206_spill] sm:$0xff] %v13232_v25  ;;  %v4402_v41 = vmul.f32 %v13181_v0, %v4401_v17  ;;  %v13260_v17 = vand.u32 4294901760, %v4546_v31  ;;  %v13264_v34 = vadd.f32 %v12950_v8, %v13112_v22  ;;  %vm4395_vm8 = vcmp.eq.f32.partialorder %v4394_v37, 8.507059e+37 }
 0x619   :  { %16023 = vst [vmem:[#allocation78_spill] sm:$0xff] %v13229_v52  ;;  %v4410_v32 = vand.u32 2147483648, %v13133_v11  ;;  %v4415_v63 = vsub.f32 1.0, %v4414_v38  ;;  %vm4432_vm9 = vweird.f32 %v13221_v19 }
 0x61a   :  { %v4628_v48 = vpop.f32.mrf.mxu1 }
 0x61b   :  { %v4887_v12 = vadd.f32 %v4886_v60, %v4628_v48  ;;  %v4397_v48 = vor.u32 1.1754944e-38, %v4396_v39  ;;  %4953 = vmatmul.f32.gmra.mxu2 %v13088_v6  ;;  %v4761_v60 = vsub.f32 %v13102_v42, %v13126_v3  ;;  %v13267_v39 = vmax.f32 %v13015_v5, 1e-30 }
 0x61c   :  { %v13249_v47 = vpop.f32.mrf.mxu0  ;;  %v13278_v5 = vsub.f32 %v4546_v31, %v13260_v17  ;;  %v4416_v31 = vmul.f32 %v13227_v36, %v4415_v63  ;;  %v13313_v63 = vmax.f32 %v13009_v51, 1e-30 }
 0x61d   :  { %v13242_v61 = vadd.f32 %v5038_v28, %v4887_v12  ;;  %4755 = vmatmul.f32.gmra.mxu1 %v13229_v52  ;;  %5127 = vmatmul.f32.gmra.mxu3 %v13144_v26  ;;  %v13256_v28 = vand.u32 4294901760, %v13232_v25  ;;  %v4398_v55 = vsel %vm4395_vm8, %v4397_v48, %v4393_v43  ;;  %v4403_v52 = vadd.f32 %v13181_v0, %v4402_v41  ;;  %v13273_v6 = vpop.eup %8429 }
 0x61e   :  { %v4890_v12 = vpop.f32.mrf.mxu2  ;;  %v13275_v22 = vand.u32 4294901760, %v4761_v60  ;;  %16029 = vst [vmem:[#allocation48_spill] sm:$0xff] %v13278_v5  ;;  %v4549_v37 = vsel %vm4469_vm11, %v4398_v55, 0  ;;  %v4408_v48 = vand.u32 2147483647, %v13133_v11  ;;  %8431 = vrcp.f32 %v13267_v39 }
 0x61f   :  { %16027 = vst [vmem:[#allocation205_spill] sm:$0xff] %v13256_v28  ;;  %5340 = vmatmul.f32.gmra.mxu0 %v13256_v28  ;;  %v4428_v43 = vmul.f32 %v13273_v6, %v13221_v19  ;;  %v4407_v11 = vsel %vm13283_vm14, %v13181_v0, %v4403_v52  ;;  %v13306_v55 = vand.u32 4294901760, %v4549_v37  ;;  %v4424_v52 = vand.u32 2147483648, %v13175_v59 }
 0x620   :  { %v5048_v3 = vpop.f32.mrf.mxu3  ;;  %16028 = vst [vmem:[#allocation104_spill] sm:$0xff] %v13275_v22  ;;  %vm4409_vm12 = vcmp.eq.f32.partialorder %v4408_v48, 8.507059e+37  ;;  %8433 = vrcp.f32 %v13313_v63  ;;  %vm4433_vm13 = vweird.f32 %v13273_v6  ;;  %vm4446_vm1 = vweird.f32 %v13267_v39 }
 0x621   :  { %v4429_v38 = vsub.f32 1.0, %v4428_v43  ;;  %v13324_v51 = vsub.f32 %v4549_v37, %v13306_v55  ;;  %vm13372_vm6 = vmor %vm4432_vm9, %vm4433_vm13  ;;  %vm4460_vm14 = vweird.f32 %v13313_v63 }
 0x622   :  { %v4636_v42 = vpop.f32.mrf.mxu1 }
 0x623   :  { %v4891_v8 = vadd.f32 %v4890_v12, %v4636_v42  ;;  %v4411_v42 = vor.u32 1.1754944e-38, %v4410_v32  ;;  %4957 = vmatmul.f32.gmra.mxu2 %v13130_v56  ;;  %v4769_v12 = vsub.f32 %v13144_v26, %v13168_v10  ;;  %v13310_v32 = vadd.f32 %v12991_v15, %v13154_v40  ;;  %16035 = vst [vmem:[#allocation216_spill] sm:$0xff] %v13324_v51 }
 0x624   :  { %v13295_v60 = vpop.f32.mrf.mxu0  ;;  %v13319_v56 = vpop.eup %8431  ;;  %v4430_v37 = vmul.f32 %v13273_v6, %v4429_v38 }
 0x625   :  { %v13288_v41 = vadd.f32 %v5043_v62, %v4891_v8  ;;  %4763 = vmatmul.f32.gmra.mxu1 %v13275_v22  ;;  %5132 = vmatmul.f32.gmra.mxu3 %v13186_v30  ;;  %v13302_v62 = vand.u32 4294901760, %v13278_v5  ;;  %16033 = vst [vmem:[#allocation95_spill] sm:$0xff] %v13310_v32  ;;  %v4412_v0 = vsel %vm4409_vm12, %v4411_v42, %v4407_v11  ;;  %v13321_v40 = vand.u32 4294901760, %v4769_v12 }
 0x626   :  { %v4894_v8 = vpop.f32.mrf.mxu2  ;;  %v4417_v22 = vadd.f32 %v13227_v36, %v4416_v31  ;;  %v4552_v48 = vsel %vm4469_vm11, %v4412_v0, 0  ;;  %v4422_v42 = vand.u32 2147483647, %v13175_v59  ;;  %v4442_v11 = vmul.f32 %v13319_v56, %v13267_v39 }
 0x627   :  { %16032 = vst [vmem:[#allocation214_spill] sm:$0xff] %v13302_v62  ;;  %5346 = vmatmul.f32.gmra.mxu0 %v13302_v62  ;;  %v13352_v0 = vand.u32 4294901760, %v4552_v48  ;;  %vm4447_vm4 = vweird.f32 %v13319_v56 }
 0x628   :  { %v5053_v10 = vpop.f32.mrf.mxu3  ;;  %16034 = vst [vmem:[#allocation54_spill] sm:$0xff] %v13321_v40  ;;  %v4421_v59 = vsel %vm13329_vm0, %v13227_v36, %v4417_v22  ;;  %vm4423_vm2 = vcmp.eq.f32.partialorder %v4422_v42, 8.507059e+37  ;;  %v4438_v36 = vand.u32 2147483648, %v13221_v19  ;;  %v4443_v22 = vsub.f32 1.0, %v4442_v11  ;;  %vm13412_vm8 = vmor %vm4446_vm1, %vm4447_vm4 }
 0x629   :  { %v4436_v42 = vand.u32 2147483647, %v13221_v19 }
 0x62a   :  { %v4644_v26 = vpop.f32.mrf.mxu1 }
 0x62b   :  { %v4895_v15 = vadd.f32 %v4894_v8, %v4644_v26  ;;  %v4425_v26 = vor.u32 1.1754944e-38, %v4424_v52  ;;  %4961 = vmatmul.f32.gmra.mxu2 %v13172_v54  ;;  %v4777_v8 = vsub.f32 %v13186_v30, %v13210_v44  ;;  %v13356_v52 = vadd.f32 %v13035_v1, %v13196_v4  ;;  %v13362_v44 = vpop.eup %8433 }
 0x62c   :  { %v13341_v12 = vpop.f32.mrf.mxu0  ;;  %v4431_v30 = vadd.f32 %v13273_v6, %v4430_v37  ;;  %v13367_v1 = vsub.f32 %v4552_v48, %v13352_v0  ;;  %v4439_v37 = vor.u32 1.1754944e-38, %v4438_v36  ;;  %v4444_v48 = vmul.f32 %v13319_v56, %v4443_v22 }
 0x62d   :  { %v13334_v31 = vadd.f32 %v5048_v3, %v4895_v15  ;;  %4771 = vmatmul.f32.gmra.mxu1 %v13321_v40  ;;  %5137 = vmatmul.f32.gmra.mxu3 %v13232_v25  ;;  %v13348_v3 = vand.u32 4294901760, %v13324_v51  ;;  %v4426_v15 = vsel %vm4423_vm2, %v4425_v26, %v4421_v59  ;;  %v13364_v32 = vand.u32 4294901760, %v4777_v8 }
 0x62e   :  { %v4898_v38 = vpop.f32.mrf.mxu2  ;;  %16040 = vst [vmem:[#allocation75_spill] sm:$0xff] %v13367_v1  ;;  %v4555_v4 = vsel %vm4469_vm11, %v4426_v15, 0  ;;  %v4456_v59 = vmul.f32 %v13362_v44, %v13313_v63  ;;  %v4435_v19 = vsel %vm13372_vm6, %v13273_v6, %v4431_v30  ;;  %v13398_v15 = vadd.f32 %v13077_v9, %v13242_v61 }
 0x62f   :  { %16038 = vst [vmem:[#allocation124_spill] sm:$0xff] %v13348_v3  ;;  %5352 = vmatmul.f32.gmra.mxu0 %v13348_v3  ;;  %vm4437_vm10 = vcmp.eq.f32.partialorder %v4436_v42, 8.507059e+37  ;;  %v4445_v30 = vadd.f32 %v13319_v56, %v4444_v48  ;;  %v4450_v61 = vand.u32 2147483647, %v13267_v39  ;;  %vm4461_vm5 = vweird.f32 %v13362_v44 }
 0x630   :  { %v5058_v40 = vpop.f32.mrf.mxu3  ;;  %16039 = vst [vmem:[#allocation80_spill] sm:$0xff] %v13364_v32  ;;  %v4440_v22 = vsel %vm4437_vm10, %v4439_v37, %v4435_v19  ;;  %v4457_v6 = vsub.f32 1.0, %v4456_v59  ;;  %vm13450_vm12 = vmor %vm4460_vm14, %vm4461_vm5  ;;  %vm7703_vm14 = vcmask 982016  }
 0x631   :  { %v4558_v42 = vsel %vm4469_vm11, %v4440_v22, 0  ;;  %vm4451_vm15 = vcmp.eq.f32.partialorder %v4450_v61, 8.507059e+37 }
 0x632   :  { %v4652_v43 = vpop.f32.mrf.mxu1  ;;  %v4458_v48 = vmul.f32 %v13362_v44, %v4457_v6 }
 0x633   :  { %v4899_v54 = vadd.f32 %v4898_v38, %v4652_v43  ;;  %4965 = vmatmul.f32.gmra.mxu2 %v13214_v14  ;;  %v13394_v38 = vand.u32 4294901760, %v4555_v4  ;;  %v4452_v43 = vand.u32 2147483648, %v13267_v39  ;;  %v4449_v39 = vsel %vm13412_vm8, %v13319_v56, %v4445_v30 }
 0x634   :  { %v13383_v8 = vpop.f32.mrf.mxu0  ;;  %v4459_v56 = vadd.f32 %v13362_v44, %v4458_v48  ;;  %v4466_v30 = vand.u32 2147483648, %v13313_v63 }
 0x635   :  { %v13376_v11 = vadd.f32 %v5053_v10, %v4899_v54  ;;  %4779 = vmatmul.f32.gmra.mxu1 %v13364_v32  ;;  %5142 = vmatmul.f32.gmra.mxu3 %v13278_v5  ;;  %v13390_v10 = vand.u32 4294901760, %v13367_v1  ;;  %v4785_v54 = vsub.f32 %v13232_v25, %v13256_v28  ;;  %v13407_v9 = vsub.f32 %v4555_v4, %v13394_v38 }
 0x636   :  { %v4902_v36 = vpop.f32.mrf.mxu2  ;;  %v4453_v19 = vor.u32 1.1754944e-38, %v4452_v43 }
 0x637   :  { %16043 = vst [vmem:[#allocation116_spill] sm:$0xff] %v13390_v10  ;;  %5358 = vmatmul.f32.gmra.mxu0 %v13390_v10  ;;  %v13404_v32 = vand.u32 4294901760, %v4785_v54  ;;  %v13428_v54 = vand.u32 4294901760, %v13407_v9 }
 0x638   :  { %v5063_v25 = vpop.f32.mrf.mxu3  ;;  %16044 = vst [vmem:[#allocation72_spill] sm:$0xff] %v13407_v9  ;;  %v4454_v6 = vsel %vm4451_vm15, %v4453_v19, %v4449_v39  ;;  %v4467_v19 = vor.u32 1.1754944e-38, %v4466_v30 }
 0x639   :  { %16047 = vst [vmem:[#allocation66_spill] sm:$0xff] %v13428_v54 }
 0x63a   :  { %v4660_v26 = vpop.f32.mrf.mxu1 }
 0x63b   :  { %v4903_v28 = vadd.f32 %v4902_v36, %v4660_v26  ;;  %4969 = vmatmul.f32.gmra.mxu2 %v13260_v17  ;;  %v13436_v36 = vadd.f32 %v13119_v20, %v13288_v41  ;;  %v4464_v20 = vand.u32 2147483647, %v13313_v63  ;;  %v4561_v41 = vsel %vm4469_vm11, %v4454_v6, 0 }
 0x63c   :  { %v13421_v4 = vpop.f32.mrf.mxu0 }
 0x63d   :  { %v13416_v59 = vadd.f32 %v5058_v40, %v4903_v28  ;;  %4787 = vmatmul.f32.gmra.mxu1 %v13404_v32  ;;  %5147 = vmatmul.f32.gmra.mxu3 %v13324_v51  ;;  %v4793_v28 = vsub.f32 %v13278_v5, %v13302_v62  ;;  %v13432_v40 = vand.u32 4294901760, %v4558_v42  ;;  %vm4465_vm7 = vcmp.eq.f32.partialorder %v4464_v20, 8.507059e+37 }
 0x63e   :  { %v4906_v22 = vpop.f32.mrf.mxu2  ;;  %v4809_v20 = vsub.f32 %v13367_v1, %v13390_v10 }
 0x63f   :  { %5364 = vmatmul.f32.gmra.mxu0 %v13428_v54  ;;  %v13442_v5 = vand.u32 4294901760, %v4793_v28  ;;  %v13445_v62 = vsub.f32 %v4558_v42, %v13432_v40  ;;  %v4463_v42 = vsel %vm13450_vm12, %v13362_v44, %v4459_v56  ;;  %v4801_v28 = vsub.f32 %v13324_v51, %v13348_v3 }
 0x640   :  { %v5068_v26 = vpop.f32.mrf.mxu3  ;;  %v4468_v30 = vsel %vm4465_vm7, %v4467_v19, %v4463_v42 }
 0x641   :  { %16048 = vst [vmem:[#allocation152_spill] sm:$0xff] %v13445_v62  ;;  %v13463_v63 = vand.u32 4294901760, %v13445_v62  ;;  %v4564_v51 = vsel %vm4469_vm11, %v4468_v30, 0  ;;  %v13497_v30 = vand.u32 4294901760, %v4809_v20  ;;  %v13514_v20 = vadd.f32 %v13249_v47, %v13416_v59 }
 0x642   :  { %v4668_v43 = vpop.f32.mrf.mxu1  ;;  %v13490_v19 = vand.u32 4294901760, %v4564_v51 }
 0x643   :  { %v4907_v37 = vadd.f32 %v4906_v22, %v4668_v43  ;;  %4973 = vmatmul.f32.gmra.mxu2 %v13306_v55  ;;  %16051 = vst [vmem:[#allocation99_spill] sm:$0xff] %v13463_v63  ;;  %v13471_v22 = vadd.f32 %v13161_v7, %v13334_v31  ;;  %v4825_v47 = vsub.f32 %v13445_v62, %v13463_v63 }
 0x644   :  { %v13456_v39 = vpop.f32.mrf.mxu0  ;;  %16054 = vst [vmem:[#allocation89_spill] sm:$0xff] %v13497_v30 }
 0x645   :  { %v5064_v48 = vadd.f32 %v5063_v25, %v4907_v37  ;;  %4795 = vmatmul.f32.gmra.mxu1 %v13442_v5  ;;  %5152 = vmatmul.f32.gmra.mxu3 %v13367_v1  ;;  %v13467_v25 = vand.u32 4294901760, %v4561_v41  ;;  %v13474_v37 = vand.u32 4294901760, %v4801_v28 }
 0x646   :  { %v4910_v6 = vpop.f32.mrf.mxu2 }
 0x647   :  { %5370 = vmatmul.f32.gmra.mxu0 %v13463_v63  ;;  %v13477_v61 = vsub.f32 %v4561_v41, %v13467_v25  ;;  %v13494_v41 = vadd.f32 %v13203_v2, %v13376_v11  ;;  %v4817_v11 = vsub.f32 %v13407_v9, %v13428_v54  ;;  %v13527_v59 = vadd.f32 %v13295_v60, %v5064_v48 }
 0x648   :  { %v5073_v56 = vpop.f32.mrf.mxu3 }
 0x649   :  { %16052 = vst [vmem:[#allocation92_spill] sm:$0xff] %v13477_v61  ;;  %v13486_v31 = vand.u32 4294901760, %v13477_v61 }
 0x64a   :  { %v4676_v44 = vpop.f32.mrf.mxu1 }
 0x64b   :  { %v4911_v43 = vadd.f32 %v4910_v6, %v4676_v44  ;;  %4977 = vmatmul.f32.gmra.mxu2 %v13352_v0  ;;  %16053 = vst [vmem:[#allocation133_spill] sm:$0xff] %v13486_v31  ;;  %v13500_v44 = vsub.f32 %v4564_v51, %v13490_v19  ;;  %v4833_v60 = vsub.f32 %v13477_v61, %v13486_v31 }
 0x64c   :  { %v13482_v7 = vpop.f32.mrf.mxu0 }
 0x64d   :  { %v5069_v3 = vadd.f32 %v5068_v26, %v4911_v43  ;;  %4803 = vmatmul.f32.gmra.mxu1 %v13474_v37  ;;  %5157 = vmatmul.f32.gmra.mxu3 %v13407_v9  ;;  %16055 = vst [vmem:[#allocation84_spill] sm:$0xff] %v13500_v44  ;;  %v13508_v2 = vand.u32 4294901760, %v13500_v44 }
 0x64e   :  { %v4914_v26 = vpop.f32.mrf.mxu2 }
 0x64f   :  { %5376 = vmatmul.f32.gmra.mxu0 %v13486_v31  ;;  %16056 = vst [vmem:[#allocation158_spill] sm:$0xff] %v13508_v2  ;;  %v13540_v48 = vadd.f32 %v13341_v12, %v5069_v3  ;;  %v4841_v12 = vsub.f32 %v13500_v44, %v13508_v2 }
 0x650   :  { %v5078_v28 = vpop.f32.mrf.mxu3 }
 0x652   :  { %v4684_v42 = vpop.f32.mrf.mxu1 }
 0x653   :  { %v4915_v6 = vadd.f32 %v4914_v26, %v4684_v42  ;;  %4981 = vmatmul.f32.gmra.mxu2 %v13394_v38 }
 0x654   :  { %v13504_v1 = vpop.f32.mrf.mxu0 }
 0x655   :  { %v5074_v43 = vadd.f32 %v5073_v56, %v4915_v6  ;;  %4811 = vmatmul.f32.gmra.mxu1 %v13497_v30  ;;  %5162 = vmatmul.f32.gmra.mxu3 %v13445_v62  ;;  %v13517_v6 = vand.u32 4294901760, %v4817_v11 }
 0x656   :  { %v4918_v51 = vpop.f32.mrf.mxu2 }
 0x657   :  { %5382 = vmatmul.f32.gmra.mxu0 %v13508_v2  ;;  %v13553_v3 = vadd.f32 %v13383_v8, %v5074_v43 }
 0x658   :  { %v5083_v26 = vpop.f32.mrf.mxu3 }
 0x65a   :  { %v4692_v56 = vpop.f32.mrf.mxu1 }
 0x65b   :  { %v4919_v42 = vadd.f32 %v4918_v51, %v4692_v56  ;;  %4985 = vmatmul.f32.gmra.mxu2 %v13432_v40  ;;  %v13530_v56 = vand.u32 4294901760, %v4825_v47 }
 0x65c   :  { %v13521_v30 = vpop.f32.mrf.mxu0 }
 0x65d   :  { %v5079_v10 = vadd.f32 %v5078_v28, %v4919_v42  ;;  %4819 = vmatmul.f32.gmra.mxu1 %v13517_v6  ;;  %5167 = vmatmul.f32.gmra.mxu3 %v13477_v61 }
 0x65e   :  { %v4922_v9 = vpop.f32.mrf.mxu2 }
 0x65f   :  { %5976 = vmatmul.f32.vlgmr.msrb.gmra.mxu0 %v12207_v58  ;;  %v13564_v8 = vadd.f32 %v13421_v4, %v5079_v10 }
 0x660   :  { %v5088_v51 = vpop.f32.mrf.mxu3 }
 0x662   :  { %v4700_v11 = vpop.f32.mrf.mxu1 }
 0x663   :  { %v4923_v28 = vadd.f32 %v4922_v9, %v4700_v11  ;;  %4989 = vmatmul.f32.gmra.mxu2 %v13467_v25  ;;  %v13543_v11 = vand.u32 4294901760, %v4833_v60 }
 0x664   :  { %v13534_v54 = vpop.f32.mrf.mxu0 }
 0x665   :  { %v5084_v42 = vadd.f32 %v5083_v26, %v4923_v28  ;;  %4827 = vmatmul.f32.gmra.mxu1 %v13530_v56  ;;  %5172 = vmatmul.f32.gmra.mxu3 %v13500_v44 }
 0x666   :  { %v4926_v62 = vpop.f32.mrf.mxu2 }
 0x667   :  { %5980 = vmatmul.f32.gmra.mxu0 %v12246_v24 }
 0x668   :  { %v5093_v47 = vpop.f32.mrf.mxu3 }
 0x66a   :  { %v4708_v9 = vpop.f32.mrf.mxu1 }
 0x66b   :  { %v4927_v26 = vadd.f32 %v4926_v62, %v4708_v9  ;;  %4993 = vmatmul.f32.gmra.mxu2 %v13490_v19  ;;  %v13556_v9 = vand.u32 4294901760, %v4841_v12 }
 0x66c   :  { %v13547_v63 = vpop.f32.mrf.mxu0 }
 0x66d   :  { %v5089_v28 = vadd.f32 %v5088_v51, %v4927_v26  ;;  %4835 = vmatmul.f32.gmra.mxu1 %v13543_v11  ;;  %5702 = vmatmul.f32.vlgmr.msrb.gmra.mxu3 %v12396_v29 }
 0x66e   :  { %v4930_v61 = vpop.f32.mrf.mxu2 }
 0x66f   :  { %5984 = vmatmul.f32.gmra.mxu0 %v12288_v18 }
 0x670   :  { %v5098_v60 = vpop.f32.mrf.mxu3 }
 0x672   :  { %v4716_v62 = vpop.f32.mrf.mxu1 }
 0x673   :  { %v4931_v51 = vadd.f32 %v4930_v61, %v4716_v62  ;;  %5552 = vmatmul.f32.vlgmr.msra.gmra.mxu2 %v12207_v58 }
 0x674   :  { %v13560_v29 = vpop.f32.mrf.mxu0 }
 0x675   :  { %v5094_v26 = vadd.f32 %v5093_v47, %v4931_v51  ;;  %4843 = vmatmul.f32.gmra.mxu1 %v13556_v9  ;;  %5710 = vmatmul.f32.gmra.mxu3 %v12438_v49  ;;  %v13573_v49 = vadd.f32 %v13456_v39, %v5084_v42 }
 0x676   :  { %v4934_v43 = vpop.f32.mrf.mxu2 }
 0x677   :  { %5988 = vmatmul.f32.gmra.mxu0 %v12337_v23 }
 0x678   :  { %v5103_v2 = vpop.f32.mrf.mxu3 }
 0x67a   :  { %v4724_v44 = vpop.f32.mrf.mxu1 }
 0x67b   :  { %v4935_v61 = vadd.f32 %v4934_v43, %v4724_v44  ;;  %5556 = vmatmul.f32.gmra.mxu2 %v12246_v24 }
 0x67c   :  { %v13569_v47 = vpop.f32.mrf.mxu0 }
 0x67d   :  { %v5099_v12 = vadd.f32 %v5098_v60, %v4935_v61  ;;  %5406 = vmatmul.f32.vlgmr.msra.gmra.mxu1 %v12207_v58  ;;  %5718 = vmatmul.f32.gmra.mxu3 %v12479_v50  ;;  %v13582_v50 = vadd.f32 %v13482_v7, %v5089_v28 }
 0x67e   :  { %v4938_v10 = vpop.f32.mrf.mxu2 }
 0x67f   :  { %5992 = vmatmul.f32.gmra.mxu0 %v12380_v57 }
 0x680   :  { %v5108_v62 = vpop.f32.mrf.mxu3 }
 0x682   :  { %v4732_v4 = vpop.f32.mrf.mxu1 }
 0x683   :  { %v4939_v51 = vadd.f32 %v4938_v10, %v4732_v4  ;;  %5560 = vmatmul.f32.gmra.mxu2 %v12288_v18 }
 0x684   :  { %v13578_v44 = vpop.f32.mrf.mxu0 }
 0x685   :  { %v5104_v31 = vadd.f32 %v5103_v2, %v4939_v51  ;;  %5410 = vmatmul.f32.gmra.mxu1 %v12246_v24  ;;  %5726 = vmatmul.f32.gmra.mxu3 %v12520_v35  ;;  %v13591_v35 = vadd.f32 %v13504_v1, %v5094_v26 }
 0x686   :  { %v4942_v39 = vpop.f32.mrf.mxu2 }
 0x687   :  { %5996 = vmatmul.f32.gmra.mxu0 %v12424_v53 }
 0x688   :  { %v5113_v60 = vpop.f32.mrf.mxu3 }
 0x68a   :  { %v4740_v42 = vpop.f32.mrf.mxu1 }
 0x68b   :  { %v4943_v43 = vadd.f32 %v4942_v39, %v4740_v42  ;;  %5564 = vmatmul.f32.gmra.mxu2 %v12337_v23 }
 0x68c   :  { %v13587_v2 = vpop.f32.mrf.mxu0 }
 0x68d   :  { %v5109_v61 = vadd.f32 %v5108_v62, %v4943_v43  ;;  %5414 = vmatmul.f32.gmra.mxu1 %v12288_v18  ;;  %5734 = vmatmul.f32.gmra.mxu3 %v12561_v46  ;;  %v13600_v46 = vadd.f32 %v13521_v30, %v5099_v12 }
 0x68e   :  { %v4946_v7 = vpop.f32.mrf.mxu2 }
 0x68f   :  { %6000 = vmatmul.f32.gmra.mxu0 %v12465_v21  ;;  %16057 = vst [vmem:[#allocation118_spill] sm:$0xff] %v13600_v46 }
 0x690   :  { %v5118_v10 = vpop.f32.mrf.mxu3 }
 0x692   :  { %v4748_v28 = vpop.f32.mrf.mxu1 }
 0x693   :  { %v4947_v4 = vadd.f32 %v4946_v7, %v4748_v28  ;;  %5568 = vmatmul.f32.gmra.mxu2 %v12380_v57  ;;  %v16058_v7 = vld [vmem:[#allocation193_spill] sm:$0xff] }
 0x694   :  { %v13596_v62 = vpop.f32.mrf.mxu0 }
 0x695   :  { %v5114_v51 = vadd.f32 %v5113_v60, %v4947_v4  ;;  %5418 = vmatmul.f32.gmra.mxu1 %v12337_v23  ;;  %5742 = vmatmul.f32.gmra.mxu3 %v12602_v13  ;;  %v13609_v13 = vadd.f32 %v13534_v54, %v5104_v31  ;;  %v16061_v31 = vld [vmem:[#allocation186_spill] sm:$0xff] }
 0x696   :  { %v4950_v1 = vpop.f32.mrf.mxu2 }
 0x697   :  { %6004 = vmatmul.f32.gmra.mxu0 %v12506_v33  ;;  %16059 = vst [vmem:[#allocation112_spill] sm:$0xff] %v13609_v13 }
 0x698   :  { %v5123_v39 = vpop.f32.mrf.mxu3 }
 0x69a   :  { %v4756_v26 = vpop.f32.mrf.mxu1 }
 0x69b   :  { %v4951_v42 = vadd.f32 %v4950_v1, %v4756_v26  ;;  %5572 = vmatmul.f32.gmra.mxu2 %v12424_v53  ;;  %v13618_v1 = vadd.f32 %v13547_v63, %v5109_v61  ;;  %v16064_v61 = vld [vmem:[#allocation195_spill] sm:$0xff] }
 0x69c   :  { %v13605_v60 = vpop.f32.mrf.mxu0 }
 0x69d   :  { %v5119_v43 = vadd.f32 %v5118_v10, %v4951_v42  ;;  %5422 = vmatmul.f32.gmra.mxu1 %v12380_v57  ;;  %5750 = vmatmul.f32.gmra.mxu3 %v16058_v7  ;;  %16060 = vst [vmem:[#allocation143_spill] sm:$0xff] %v13618_v1 }
 0x69e   :  { %v4954_v30 = vpop.f32.mrf.mxu2 }
 0x69f   :  { %6008 = vmatmul.f32.gmra.mxu0 %v12547_v45 }
 0x6a0   :  { %v5128_v28 = vpop.f32.mrf.mxu3 }
 0x6a2   :  { %v4764_v12 = vpop.f32.mrf.mxu1 }
 0x6a3   :  { %v4955_v4 = vadd.f32 %v4954_v30, %v4764_v12  ;;  %5576 = vmatmul.f32.gmra.mxu2 %v12465_v21  ;;  %v16062_v30 = vld [vmem:[#allocation190_spill] sm:$0xff] }
 0x6a4   :  { %v13614_v10 = vpop.f32.mrf.mxu0 }
 0x6a5   :  { %v5124_v46 = vadd.f32 %v5123_v39, %v4955_v4  ;;  %5426 = vmatmul.f32.gmra.mxu1 %v12424_v53  ;;  %5758 = vmatmul.f32.gmra.mxu3 %v12684_v16  ;;  %v13627_v16 = vadd.f32 %v13560_v29, %v5114_v51  ;;  %v16067_v51 = vld [vmem:[#allocation213_spill] sm:$0xff] }
 0x6a6   :  { %v4958_v54 = vpop.f32.mrf.mxu2 }
 0x6a7   :  { %6012 = vmatmul.f32.gmra.mxu0 %v16061_v31  ;;  %16063 = vst [vmem:[#allocation109_spill] sm:$0xff] %v13627_v16 }
 0x6a8   :  { %v5133_v42 = vpop.f32.mrf.mxu3 }
 0x6aa   :  { %v4772_v26 = vpop.f32.mrf.mxu1 }
 0x6ab   :  { %v4959_v7 = vadd.f32 %v4958_v54, %v4772_v26  ;;  %5580 = vmatmul.f32.gmra.mxu2 %v12506_v33  ;;  %v16065_v54 = vld [vmem:[#allocation220_spill] sm:$0xff]  ;;  %v13636_v26 = vadd.f32 %v13569_v47, %v5119_v43  ;;  %v16070_v43 = vld [vmem:[#allocation207_spill] sm:$0xff] }
 0x6ac   :  { %v13623_v39 = vpop.f32.mrf.mxu0 }
 0x6ad   :  { %v5129_v13 = vadd.f32 %v5128_v28, %v4959_v7  ;;  %5430 = vmatmul.f32.gmra.mxu1 %v12465_v21  ;;  %5766 = vmatmul.f32.gmra.mxu3 %v16062_v30  ;;  %16066 = vst [vmem:[#allocation102_spill] sm:$0xff] %v13636_v26 }
 0x6ae   :  { %v4962_v63 = vpop.f32.mrf.mxu2 }
 0x6af   :  { %6016 = vmatmul.f32.gmra.mxu0 %v16064_v61 }
 0x6b0   :  { %v5138_v4 = vpop.f32.mrf.mxu3 }
 0x6b2   :  { %v4780_v12 = vpop.f32.mrf.mxu1 }
 0x6b3   :  { %v4963_v1 = vadd.f32 %v4962_v63, %v4780_v12  ;;  %5584 = vmatmul.f32.gmra.mxu2 %v12547_v45  ;;  %v13645_v63 = vadd.f32 %v13578_v44, %v5124_v46  ;;  %v16073_v46 = vld [vmem:[#allocation212_spill] sm:$0xff] }
 0x6b4   :  { %v13632_v28 = vpop.f32.mrf.mxu0 }
 0x6b5   :  { %v5134_v53 = vadd.f32 %v5133_v42, %v4963_v1  ;;  %5434 = vmatmul.f32.gmra.mxu1 %v12506_v33  ;;  %5774 = vmatmul.f32.gmra.mxu3 %v16065_v54  ;;  %v16068_v42 = vld [vmem:[#allocation113_spill] sm:$0xff]  ;;  %16069 = vst [vmem:[#allocation159_spill] sm:$0xff] %v13645_v63 }
 0x6b6   :  { %v4966_v29 = vpop.f32.mrf.mxu2 }
 0x6b7   :  { %6020 = vmatmul.f32.gmra.mxu0 %v16067_v51 }
 0x6b8   :  { %v5143_v30 = vpop.f32.mrf.mxu3 }
 0x6ba   :  { %v4788_v7 = vpop.f32.mrf.mxu1 }
 0x6bb   :  { %v4967_v16 = vadd.f32 %v4966_v29, %v4788_v7  ;;  %5588 = vmatmul.f32.gmra.mxu2 %v16061_v31  ;;  %v13654_v29 = vadd.f32 %v13587_v2, %v5129_v13  ;;  %v16076_v13 = vld [vmem:[#allocation221_spill] sm:$0xff] }
 0x6bc   :  { %v13641_v1 = vpop.f32.mrf.mxu0 }
 0x6bd   :  { %v5139_v21 = vadd.f32 %v5138_v4, %v4967_v16  ;;  %5438 = vmatmul.f32.gmra.mxu1 %v12547_v45  ;;  %5782 = vmatmul.f32.gmra.mxu3 %v16068_v42  ;;  %v16071_v4 = vld [vmem:[#allocation226_spill] sm:$0xff]  ;;  %16072 = vst [vmem:[#allocation137_spill] sm:$0xff] %v13654_v29 }
 0x6be   :  { %v4970_v47 = vpop.f32.mrf.mxu2 }
 0x6bf   :  { %6024 = vmatmul.f32.gmra.mxu0 %v16070_v43 }
 0x6c0   :  { %v5148_v54 = vpop.f32.mrf.mxu3 }
 0x6c2   :  { %v4796_v12 = vpop.f32.mrf.mxu1 }
 0x6c3   :  { %v4971_v26 = vadd.f32 %v4970_v47, %v4796_v12  ;;  %5592 = vmatmul.f32.gmra.mxu2 %v16064_v61  ;;  %v13663_v47 = vadd.f32 %v13596_v62, %v5134_v53  ;;  %v16079_v62 = vld [vmem:[#allocation107_spill] sm:$0xff] }
 0x6c4   :  { %v13650_v16 = vpop.f32.mrf.mxu0 }
 0x6c5   :  { %v5144_v33 = vadd.f32 %v5143_v30, %v4971_v26  ;;  %5442 = vmatmul.f32.gmra.mxu1 %v16061_v31  ;;  %5790 = vmatmul.f32.gmra.mxu3 %v16071_v4  ;;  %v16074_v30 = vld [vmem:[#allocation235_spill] sm:$0xff]  ;;  %16075 = vst [vmem:[#allocation130_spill] sm:$0xff] %v13663_v47 }
 0x6c6   :  { %v4974_v44 = vpop.f32.mrf.mxu2 }
 0x6c7   :  { %6028 = vmatmul.f32.gmra.mxu0 %v16073_v46 }
 0x6c8   :  { %v5153_v42 = vpop.f32.mrf.mxu3 }
 0x6ca   :  { %v4804_v7 = vpop.f32.mrf.mxu1 }
 0x6cb   :  { %v4975_v63 = vadd.f32 %v4974_v44, %v4804_v7  ;;  %5596 = vmatmul.f32.gmra.mxu2 %v16067_v51  ;;  %v13672_v44 = vadd.f32 %v13605_v60, %v5139_v21  ;;  %v16082_v21 = vld [vmem:[#allocation228_spill] sm:$0xff] }
 0x6cc   :  { %v13659_v26 = vpop.f32.mrf.mxu0 }
 0x6cd   :  { %v5149_v45 = vadd.f32 %v5148_v54, %v4975_v63  ;;  %5446 = vmatmul.f32.gmra.mxu1 %v16064_v61  ;;  %5798 = vmatmul.f32.gmra.mxu3 %v16074_v30  ;;  %v16077_v54 = vld [vmem:[#allocation249_spill] sm:$0xff]  ;;  %16078 = vst [vmem:[#allocation150_spill] sm:$0xff] %v13672_v44 }
 0x6ce   :  { %v4978_v2 = vpop.f32.mrf.mxu2 }
 0x6cf   :  { %6032 = vmatmul.f32.gmra.mxu0 %v16076_v13 }
 0x6d0   :  { %v5158_v4 = vpop.f32.mrf.mxu3 }
 0x6d2   :  { %v4812_v12 = vpop.f32.mrf.mxu1 }
 0x6d3   :  { %v4979_v29 = vadd.f32 %v4978_v2, %v4812_v12  ;;  %5600 = vmatmul.f32.gmra.mxu2 %v16070_v43  ;;  %v13679_v2 = vadd.f32 %v13614_v10, %v5144_v33  ;;  %v16085_v33 = vld [vmem:[#allocation194_spill] sm:$0xff] }
 0x6d4   :  { %v13668_v63 = vpop.f32.mrf.mxu0 }
 0x6d5   :  { %v5154_v31 = vadd.f32 %v5153_v42, %v4979_v29  ;;  %5450 = vmatmul.f32.gmra.mxu1 %v16067_v51  ;;  %5806 = vmatmul.f32.gmra.mxu3 %v16077_v54  ;;  %v16080_v42 = vld [vmem:[#allocation40_spill] sm:$0xff]  ;;  %16081 = vst [vmem:[#allocation127_spill] sm:$0xff] %v13679_v2 }
 0x6d6   :  { %v4982_v53 = vpop.f32.mrf.mxu2 }
 0x6d7   :  { %6036 = vmatmul.f32.gmra.mxu0 %v16079_v62 }
 0x6d8   :  { %v5163_v30 = vpop.f32.mrf.mxu3 }
 0x6da   :  { %v4820_v7 = vpop.f32.mrf.mxu1 }
 0x6db   :  { %v4983_v47 = vadd.f32 %v4982_v53, %v4820_v7  ;;  %5604 = vmatmul.f32.gmra.mxu2 %v16073_v46  ;;  %v13686_v53 = vadd.f32 %v13623_v39, %v5149_v45  ;;  %v16087_v39 = vld [vmem:[#allocation70_spill] sm:$0xff] }
 0x6dc   :  { %v5977_v29 = vpop.f32.mrf.mxu0 }
 0x6dd   :  { %v5159_v61 = vadd.f32 %v5158_v4, %v4983_v47  ;;  %5454 = vmatmul.f32.gmra.mxu1 %v16070_v43  ;;  %5814 = vmatmul.f32.gmra.mxu3 %v16080_v42  ;;  %v16083_v4 = vld [vmem:[#allocation81_spill] sm:$0xff]  ;;  %16084 = vst [vmem:[#allocation121_spill] sm:$0xff] %v13686_v53 }
 0x6de   :  { %v4986_v12 = vpop.f32.mrf.mxu2 }
 0x6df   :  { %6040 = vmatmul.f32.gmra.mxu0 %v16082_v21 }
 0x6e0   :  { %v5168_v54 = vpop.f32.mrf.mxu3 }
 0x6e2   :  { %v4828_v60 = vpop.f32.mrf.mxu1 }
 0x6e3   :  { %v4987_v44 = vadd.f32 %v4986_v12, %v4828_v60  ;;  %5608 = vmatmul.f32.gmra.mxu2 %v16076_v13  ;;  %v13693_v12 = vadd.f32 %v13632_v28, %v5154_v31  ;;  %v7448_v60 = vpop.permute.xlu2 %7447  ;;  %v16090_v28 = vld [vmem:[#allocation96_spill] sm:$0xff] }
 0x6e4   :  { %v5981_v47 = vpop.f32.mrf.mxu0 }
 0x6e5   :  { %v5164_v51 = vadd.f32 %v5163_v30, %v4987_v44  ;;  %5458 = vmatmul.f32.gmra.mxu1 %v16073_v46  ;;  %5822 = vmatmul.f32.gmra.mxu3 %v16083_v4  ;;  %v16086_v30 = vld [vmem:[#allocation219_spill] sm:$0xff] }
 0x6e6   :  { %v4990_v7 = vpop.f32.mrf.mxu2 }
 0x6e7   :  { %6044 = vmatmul.f32.gmra.mxu0 %v16085_v33 }
 0x6e8   :  { %v5173_v29 = vpop.f32.mrf.mxu3 }
 0x6ea   :  { %v4836_v10 = vpop.f32.mrf.mxu1 }
 0x6eb   :  { %v4991_v42 = vadd.f32 %v4990_v7, %v4836_v10  ;;  %5612 = vmatmul.f32.gmra.mxu2 %v16079_v62  ;;  %v16088_v7 = vld [vmem:[#allocation100_spill] sm:$0xff]  ;;  %v13700_v10 = vadd.f32 %v13641_v1, %v5159_v61  ;;  %v13711_v61 = vadd.f32 %v13650_v16, %v5164_v51  ;;  %v16093_v1 = vld [vmem:[#allocation5_spill] sm:$0xff] }
 0x6ec   :  { %v5985_v44 = vpop.f32.mrf.mxu0 }
 0x6ed   :  { %v5169_v2 = vadd.f32 %v5168_v54, %v4991_v42  ;;  %5462 = vmatmul.f32.gmra.mxu1 %v16076_v13  ;;  %5830 = vmatmul.f32.gmra.mxu3 %v16086_v30  ;;  %16089 = vst [vmem:[#allocation140_spill] sm:$0xff] %v13700_v10  ;;  %v13703_v30 = vpop.permute.xlu2 %7453 }
 0x6ee   :  { %v4994_v45 = vpop.f32.mrf.mxu2 }
 0x6ef   :  { %6048 = vmatmul.f32.gmra.mxu0 %v16087_v39 }
 0x6f0   :  { %v5703_v4 = vpop.f32.mrf.mxu3 }
 0x6f2   :  { %v4844_v47 = vpop.f32.mrf.mxu1 }
 0x6f3   :  { %v4995_v53 = vadd.f32 %v4994_v45, %v4844_v47  ;;  %5616 = vmatmul.f32.gmra.mxu2 %v16082_v21  ;;  %v16091_v47 = vld [vmem:[#allocation41_spill] sm:$0xff] }
 0x6f4   :  { %v5989_v54 = vpop.f32.mrf.mxu0 }
 0x6f5   :  { %v5174_v46 = vadd.f32 %v5173_v29, %v4995_v53  ;;  %5466 = vmatmul.f32.gmra.mxu1 %v16079_v62  ;;  %5838 = vmatmul.f32.gmra.mxu3 %v16088_v7  ;;  %v16092_v54 = vld [vmem:[#allocation200_spill] sm:$0xff]  ;;  %v16094_v7 = vld [vmem:[#allocation231_spill] sm:$0xff]  ;;  %v13725_v16 = vpop.permute.xlu2 %7457 }
 0x6f6   :  { %v5553_v31 = vpop.f32.mrf.mxu2  ;;  %v16097_v62 = vld [vmem:[#allocation3_spill] sm:$0xff] }
 0x6f7   :  { %6052 = vmatmul.f32.gmra.mxu0 %v16090_v28  ;;  %vm16098_vm3 = vcmp.lt.s32.totalorder %v16097_v62, 35 }
 0x6f8   :  { %v5711_v44 = vpop.f32.mrf.mxu3  ;;  %vm16104_vm0 = vmmov %vm16098_vm3 }
 0x6f9   :  { %v16095_v44 = vld [vmem:[#allocation125_spill] sm:$0xff]  ;;  %vm16111_vm2 = vmmov %vm16104_vm0 }
 0x6fa   :  { %v5407_v42 = vpop.f32.mrf.mxu1  ;;  %vm16096_vm11 = vnez %v16095_v44  ;;  %vm16117_vm13 = vmmov %vm16104_vm0 }
 0x6fb   :  { %v5408_v45 = vadd.f32 %v5407_v42, %v13218_v27  ;;  %5620 = vmatmul.f32.gmra.mxu2 %v16085_v33  ;;  %v7287_v10 = vsel %vm16096_vm11, %v16094_v7, %v16093_v1  ;;  %v16099_v42 = vld [vmem:[#allocation93_spill] sm:$0xff]  ;;  %v13732_v1 = vadd.f32 %v13659_v26, %v5169_v2  ;;  %v16102_v7 = vld [vmem:[#allocation7_spill] sm:$0xff]  ;;  %vm16123_vm9 = vmmov %vm16104_vm0 }
 0x6fc   :  { %v5993_v29 = vpop.f32.mrf.mxu0  ;;  %v16106_v2 = vld [vmem:[#allocation95_spill] sm:$0xff]  ;;  %vm16128_vm6 = vmmov %vm16104_vm0 }
 0x6fd   :  { %v5554_v53 = vadd.f32 %v5553_v31, %v5408_v45  ;;  %5470 = vmatmul.f32.gmra.mxu1 %v16082_v21  ;;  %5846 = vmatmul.f32.gmra.mxu3 %v16092_v54  ;;  %v16101_v54 = vld [vmem:[#allocation87_spill] sm:$0xff]  ;;  %vm16132_vm10 = vmmov %vm16104_vm0 }
 0x6fe   :  { %v5557_v31 = vpop.f32.mrf.mxu2  ;;  %vm16136_vm4 = vmmov %vm16104_vm0 }
 0x6ff   :  { %v6787_v4 = vmul.f32 %v16091_v47, %v5554_v53  ;;  %6056 = vmatmul.f32.gmra.mxu0 %v16099_v42  ;;  %vm16141_vm1 = vmmov %vm16104_vm0 }
 0x700   :  { %v5719_v29 = vpop.f32.mrf.mxu3  ;;  %vm16147_vm8 = vmmov %vm16104_vm0 }
 0x701   :  { %v7351_v27 = vsel %vm16098_vm3, %v6787_v4, %v7287_v10  ;;  %v7543_v45 = vmul.f32 %v7448_v60, %v6787_v4  ;;  %v16100_v60 = vld [vmem:[#allocation47_spill] sm:$0xff]  ;;  %v16105_v29 = vld [vmem:[#allocation64_spill] sm:$0xff]  ;;  %vm16152_vm15 = vmmov %vm16104_vm0 }
 0x702   :  { %7736 = vst [vmem:[%s14577_s3] sm:$0xff] %v7351_v27  ;;  %v5411_v53 = vpop.f32.mrf.mxu1  ;;  %vm16157_vm5 = vmmov %vm16104_vm0 }
 0x703   :  { %v5412_v51 = vadd.f32 %v5411_v53, %v13264_v34  ;;  %7607 = vrot.lane.b32.xlu2 %v7543_v45, %s8439_s26  ;;  %5624 = vmatmul.f32.gmra.mxu2 %v16087_v39  ;;  %v16103_v34 = vld [vmem:[#allocation232_spill] sm:$0xff]  ;;  %v7450_v45 = vpop.permute.xlu0 %7449  ;;  %vm16163_vm12 = vmmov %vm16104_vm0 }
 0x704   :  { %v5997_v10 = vpop.f32.mrf.mxu0  ;;  %v7289_v27 = vsel %vm16096_vm11, %v16103_v34, %v16102_v7  ;;  %v13748_v7 = vpop.permute.xlu2 %7463  ;;  %v16107_v34 = vld [vmem:[#allocation53_spill] sm:$0xff]  ;;  %vm16168_vm7 = vmmov %vm16104_vm0 }
 0x705   :  { %v5558_v47 = vadd.f32 %v5557_v31, %v5412_v51  ;;  %5474 = vmatmul.f32.gmra.mxu1 %v16085_v33  ;;  %5854 = vmatmul.f32.gmra.mxu3 %v16101_v54  ;;  %vm16173_vm3 = vmmov %vm16104_vm0 }
 0x706   :  { %v5561_v53 = vpop.f32.mrf.mxu2 }
 0x707   :  { %v6789_v4 = vmul.f32 %v16100_v60, %v5558_v47  ;;  %6060 = vmatmul.f32.gmra.mxu0 %v16105_v29 }
 0x708   :  { %v5727_v26 = vpop.f32.mrf.mxu3 }
 0x709   :  { %v7353_v31 = vsel %vm16104_vm0, %v6789_v4, %v7289_v27  ;;  %v7544_v51 = vmul.f32 %v7450_v45, %v6789_v4  ;;  %v16108_v27 = vld [vmem:[#allocation78_spill] sm:$0xff]  ;;  %v13753_v45 = vadd.f32 %v13668_v63, %v5174_v46 }
 0x70a   :  { %7738 = vst [vmem:[%s14577_s3 + $0x10] sm:$0xff] %v7353_v31  ;;  %v5415_v47 = vpop.f32.mrf.mxu1  ;;  %v16109_v31 = vld [vmem:[#allocation9_spill] sm:$0xff]  ;;  %v16110_v26 = vld [vmem:[#allocation230_spill] sm:$0xff] }
 0x70b   :  { %v5416_v10 = vadd.f32 %v5415_v47, %v16106_v2  ;;  %7609 = vrot.lane.b32.xlu1 %v7544_v51, %s8439_s26  ;;  %5628 = vmatmul.f32.gmra.mxu2 %v16090_v28  ;;  %v7291_v51 = vsel %vm16096_vm11, %v16110_v26, %v16109_v31  ;;  %v16113_v31 = vld [vmem:[#allocation59_spill] sm:$0xff] }
 0x70c   :  { %v6001_v54 = vpop.f32.mrf.mxu0 }
 0x70d   :  { %v5562_v60 = vadd.f32 %v5561_v53, %v5416_v10  ;;  %5478 = vmatmul.f32.gmra.mxu1 %v16087_v39  ;;  %5862 = vmatmul.f32.gmra.mxu3 %v16108_v27  ;;  %v7452_v53 = vpop.permute.xlu1 %7451  ;;  %v16112_v10 = vld [vmem:[#allocation208_spill] sm:$0xff] }
 0x70e   :  { %v5565_v2 = vpop.f32.mrf.mxu2 }
 0x70f   :  { %v6791_v4 = vmul.f32 %v16107_v34, %v5562_v60  ;;  %6064 = vmatmul.f32.gmra.mxu0 %v16112_v10 }
 0x710   :  { %v5735_v46 = vpop.f32.mrf.mxu3 }
 0x711   :  { %v7355_v47 = vsel %vm16111_vm2, %v6791_v4, %v7291_v51  ;;  %v7545_v54 = vmul.f32 %v7452_v53, %v6791_v4  ;;  %v16114_v51 = vld [vmem:[#allocation104_spill] sm:$0xff]  ;;  %v16115_v4 = vld [vmem:[#allocation11_spill] sm:$0xff]  ;;  %v13775_v46 = vpop.permute.xlu2 %7469  ;;  %vm16188_vm2 = vmmov %vm16104_vm0 }
 0x712   :  { %7740 = vst [vmem:[%s14577_s3 + $0x20] sm:$0xff] %v7355_v47  ;;  %v5419_v60 = vpop.f32.mrf.mxu1  ;;  %v16116_v53 = vld [vmem:[#allocation236_spill] sm:$0xff] }
 0x713   :  { %v5420_v63 = vadd.f32 %v5419_v60, %v13356_v52  ;;  %7611 = vrot.lane.b32.xlu0 %v7545_v54, %s8439_s26  ;;  %5632 = vmatmul.f32.gmra.mxu2 %v16099_v42  ;;  %v7293_v47 = vsel %vm16096_vm11, %v16116_v53, %v16115_v4  ;;  %v16118_v54 = vld [vmem:[#allocation202_spill] sm:$0xff]  ;;  %v16119_v4 = vld [vmem:[#allocation65_spill] sm:$0xff] }
 0x714   :  { %v6005_v27 = vpop.f32.mrf.mxu0 }
 0x715   :  { %v5566_v34 = vadd.f32 %v5565_v2, %v5420_v63  ;;  %5482 = vmatmul.f32.gmra.mxu1 %v16090_v28  ;;  %5870 = vmatmul.f32.gmra.mxu3 %v16114_v51 }
 0x716   :  { %v5569_v2 = vpop.f32.mrf.mxu2 }
 0x717   :  { %v6793_v26 = vmul.f32 %v16113_v31, %v5566_v34  ;;  %6068 = vmatmul.f32.gmra.mxu0 %v16118_v54 }
 0x718   :  { %v5743_v34 = vpop.f32.mrf.mxu3 }
 0x719   :  { %v7357_v52 = vsel %vm16117_vm13, %v6793_v26, %v7293_v47  ;;  %v7546_v60 = vmul.f32 %v13703_v30, %v6793_v26  ;;  %v16120_v47 = vld [vmem:[#allocation54_spill] sm:$0xff]  ;;  %v16121_v30 = vld [vmem:[#allocation13_spill] sm:$0xff]  ;;  %v16122_v26 = vld [vmem:[#allocation239_spill] sm:$0xff]  ;;  %v7456_v34 = vpop.permute.xlu0 %7455 }
 0x71a   :  { %7742 = vst [vmem:[%s14577_s3 + $0x30] sm:$0xff] %v7357_v52  ;;  %v5423_v63 = vpop.f32.mrf.mxu1  ;;  %v7295_v52 = vsel %vm16096_vm11, %v16122_v26, %v16121_v30  ;;  %vm16197_vm13 = vmmov %vm16104_vm0 }
 0x71b   :  { %v5424_v27 = vadd.f32 %v5423_v63, %v13398_v15  ;;  %7613 = vrot.lane.b32.xlu2 %v7546_v60, %s8439_s26  ;;  %5636 = vmatmul.f32.gmra.mxu2 %v16105_v29 }
 0x71c   :  { %v6009_v51 = vpop.f32.mrf.mxu0 }
 0x71d   :  { %v5570_v31 = vadd.f32 %v5569_v2, %v5424_v27  ;;  %5486 = vmatmul.f32.gmra.mxu1 %v16099_v42  ;;  %5878 = vmatmul.f32.gmra.mxu3 %v16120_v47 }
 0x71e   :  { %v5573_v60 = vpop.f32.mrf.mxu2 }
 0x71f   :  { %v6795_v53 = vmul.f32 %v16119_v4, %v5570_v31  ;;  %6072 = vmatmul.f32.gmra.mxu0 %v13214_v14  ;;  %v13800_v31 = vpop.permute.xlu2 %7475  ;;  %v7460_v4 = vpop.permute.xlu1 %7459 }
 0x720   :  { %v5751_v27 = vpop.f32.mrf.mxu3 }
 0x721   :  { %v7359_v15 = vsel %vm16123_vm9, %v6795_v53, %v7295_v52  ;;  %v7547_v2 = vmul.f32 %v7456_v34, %v6795_v53  ;;  %v16124_v53 = vld [vmem:[#allocation71_spill] sm:$0xff]  ;;  %v16125_v52 = vld [vmem:[#allocation80_spill] sm:$0xff]  ;;  %vm16207_vm9 = vmmov %vm16104_vm0 }
 0x722   :  { %7744 = vst [vmem:[%s14577_s3 + $0x40] sm:$0xff] %v7359_v15  ;;  %v5427_v63 = vpop.f32.mrf.mxu1  ;;  %v16126_v34 = vld [vmem:[#allocation15_spill] sm:$0xff] }
 0x723   :  { %v5428_v51 = vadd.f32 %v5427_v63, %v13436_v36  ;;  %7615 = vrot.lane.b32.xlu1 %v7547_v2, %s8439_s26  ;;  %5640 = vmatmul.f32.gmra.mxu2 %v16112_v10  ;;  %v16127_v15 = vld [vmem:[#allocation243_spill] sm:$0xff] }
 0x724   :  { %v6013_v30 = vpop.f32.mrf.mxu0  ;;  %v7297_v27 = vsel %vm16096_vm11, %v16127_v15, %v16126_v34 }
 0x725   :  { %v5574_v47 = vadd.f32 %v5573_v60, %v5428_v51  ;;  %5490 = vmatmul.f32.gmra.mxu1 %v16105_v29  ;;  %5886 = vmatmul.f32.gmra.mxu3 %v16125_v52  ;;  %v7462_v30 = vpop.permute.xlu0 %7461 }
 0x726   :  { %v5577_v2 = vpop.f32.mrf.mxu2 }
 0x727   :  { %v6797_v26 = vmul.f32 %v16124_v53, %v5574_v47  ;;  %6076 = vmatmul.f32.gmra.mxu0 %v13260_v17  ;;  %v13821_v53 = vpop.permute.xlu2 %7481 }
 0x728   :  { %v5759_v51 = vpop.f32.mrf.mxu3 }
 0x729   :  { %v7361_v36 = vsel %vm16128_vm6, %v6797_v26, %v7297_v27  ;;  %v7548_v60 = vmul.f32 %v13725_v16, %v6797_v26  ;;  %v7466_v16 = vpop.permute.xlu1 %7465  ;;  %v16129_v26 = vld [vmem:[#allocation77_spill] sm:$0xff]  ;;  %vm16217_vm6 = vmmov %vm16104_vm0 }
 0x72a   :  { %7746 = vst [vmem:[%s14577_s3 + $0x50] sm:$0xff] %v7361_v36  ;;  %v5431_v63 = vpop.f32.mrf.mxu1  ;;  %v16130_v27 = vld [vmem:[#allocation17_spill] sm:$0xff]  ;;  %v16131_v36 = vld [vmem:[#allocation234_spill] sm:$0xff] }
 0x72b   :  { %v5432_v47 = vadd.f32 %v5431_v63, %v13471_v22  ;;  %7617 = vrot.lane.b32.xlu0 %v7548_v60, %s8439_s26  ;;  %5644 = vmatmul.f32.gmra.mxu2 %v16118_v54  ;;  %v7299_v22 = vsel %vm16096_vm11, %v16131_v36, %v16130_v27  ;;  %v16134_v36 = vld [vmem:[#allocation19_spill] sm:$0xff] }
 0x72c   :  { %v6017_v34 = vpop.f32.mrf.mxu0 }
 0x72d   :  { %v5578_v52 = vadd.f32 %v5577_v2, %v5432_v47  ;;  %5494 = vmatmul.f32.gmra.mxu1 %v16112_v10  ;;  %5894 = vmatmul.f32.gmra.mxu3 %v13404_v32  ;;  %v7468_v34 = vpop.permute.xlu0 %7467 }
 0x72e   :  { %v5581_v63 = vpop.f32.mrf.mxu2 }
 0x72f   :  { %v6799_v15 = vmul.f32 %v16129_v26, %v5578_v52  ;;  %6080 = vmatmul.f32.gmra.mxu0 %v13306_v55  ;;  %v13841_v27 = vpop.permute.xlu2 %7487 }
 0x730   :  { %v5767_v47 = vpop.f32.mrf.mxu3 }
 0x731   :  { %v7363_v60 = vsel %vm16132_vm10, %v6799_v15, %v7299_v22  ;;  %v7549_v2 = vmul.f32 %v7460_v4, %v6799_v15  ;;  %v16133_v4 = vld [vmem:[#allocation82_spill] sm:$0xff]  ;;  %v16135_v22 = vld [vmem:[#allocation245_spill] sm:$0xff]  ;;  %vm16227_vm10 = vmmov %vm16104_vm0 }
 0x732   :  { %7748 = vst [vmem:[%s14577_s3 + $0x60] sm:$0xff] %v7363_v60  ;;  %v5435_v51 = vpop.f32.mrf.mxu1  ;;  %v13849_v60 = vpop.permute.xlu1 %7471 }
 0x733   :  { %v5436_v32 = vadd.f32 %v5435_v51, %v13494_v41  ;;  %7619 = vrot.lane.b32.xlu2 %v7549_v2, %s8439_s26  ;;  %5648 = vmatmul.f32.gmra.mxu2 %v13214_v14  ;;  %v7301_v41 = vsel %vm16096_vm11, %v16135_v22, %v16134_v36  ;;  %v16138_v22 = vld [vmem:[#allocation238_spill] sm:$0xff] }
 0x734   :  { %v6021_v26 = vpop.f32.mrf.mxu0 }
 0x735   :  { %v5582_v52 = vadd.f32 %v5581_v63, %v5436_v32  ;;  %5498 = vmatmul.f32.gmra.mxu1 %v16118_v54  ;;  %5902 = vmatmul.f32.gmra.mxu3 %v13442_v5 }
 0x736   :  { %v5585_v2 = vpop.f32.mrf.mxu2 }
 0x737   :  { %v6801_v15 = vmul.f32 %v16133_v4, %v5582_v52  ;;  %6084 = vmatmul.f32.gmra.mxu0 %v13352_v0  ;;  %v16137_v4 = vld [vmem:[#allocation88_spill] sm:$0xff] }
 0x738   :  { %v5775_v5 = vpop.f32.mrf.mxu3 }
 0x739   :  { %v7365_v63 = vsel %vm16136_vm4, %v6801_v15, %v7301_v41  ;;  %v7550_v51 = vmul.f32 %v7462_v30, %v6801_v15  ;;  %v13863_v30 = vpop.permute.xlu0 %7473  ;;  %v13865_v15 = vpop.permute.xlu2 %7493  ;;  %vm16237_vm4 = vmmov %vm16104_vm0 }
 0x73a   :  { %7750 = vst [vmem:[%s14577_s3 + $0x70] sm:$0xff] %v7365_v63  ;;  %v5439_v47 = vpop.f32.mrf.mxu1  ;;  %v13879_v5 = vpop.permute.xlu1 %7477 }
 0x73b   :  { %v5440_v32 = vadd.f32 %v5439_v47, %v13514_v20  ;;  %7621 = vrot.lane.b32.xlu1 %v7550_v51, %s8439_s26  ;;  %5652 = vmatmul.f32.gmra.mxu2 %v13260_v17  ;;  %v16139_v20 = vld [vmem:[#allocation21_spill] sm:$0xff] }
 0x73c   :  { %v6025_v26 = vpop.f32.mrf.mxu0  ;;  %v16140_v41 = vsel %vm16096_vm11, %v16138_v22, %v16139_v20  ;;  %v16144_v22 = vld [vmem:[#allocation36_spill] sm:$0xff]  ;;  %v16145_v20 = vld [vmem:[#allocation23_spill] sm:$0xff] }
 0x73d   :  { %v5586_v52 = vadd.f32 %v5585_v2, %v5440_v32  ;;  %5502 = vmatmul.f32.gmra.mxu1 %v13214_v14  ;;  %5910 = vmatmul.f32.gmra.mxu3 %v13474_v37 }
 0x73e   :  { %v5589_v2 = vpop.f32.mrf.mxu2 }
 0x73f   :  { %v6803_v36 = vmul.f32 %v16137_v4, %v5586_v52  ;;  %6088 = vmatmul.f32.gmra.mxu0 %v13394_v38  ;;  %v16142_v4 = vld [vmem:[#allocation94_spill] sm:$0xff] }
 0x740   :  { %v5783_v47 = vpop.f32.mrf.mxu3 }
 0x741   :  { %v7367_v63 = vsel %vm16141_vm1, %v6803_v36, %v16140_v41  ;;  %v7551_v51 = vmul.f32 %v13748_v7, %v6803_v36  ;;  %v16143_v36 = vld [vmem:[#allocation89_spill] sm:$0xff]  ;;  %v16146_v41 = vsel %vm16096_vm11, %v16144_v22, %v16145_v20  ;;  %v13898_v47 = vpop.permute.xlu0 %7479  ;;  %v16149_v22 = vld [vmem:[#allocation240_spill] sm:$0xff]  ;;  %vm16247_vm1 = vmmov %vm16104_vm0 }
 0x742   :  { %7752 = vst [vmem:[%s14577_s3 + $0x80] sm:$0xff] %v7367_v63  ;;  %v5443_v37 = vpop.f32.mrf.mxu1  ;;  %v16150_v20 = vld [vmem:[#allocation25_spill] sm:$0xff] }
 0x743   :  { %v5444_v32 = vadd.f32 %v5443_v37, %v13527_v59  ;;  %7623 = vrot.lane.b32.xlu0 %v7551_v51, %s8439_s26  ;;  %5656 = vmatmul.f32.gmra.mxu2 %v13306_v55 }
 0x744   :  { %v6029_v26 = vpop.f32.mrf.mxu0 }
 0x745   :  { %v5590_v52 = vadd.f32 %v5589_v2, %v5444_v32  ;;  %5506 = vmatmul.f32.gmra.mxu1 %v13260_v17  ;;  %5918 = vmatmul.f32.gmra.mxu3 %v16143_v36  ;;  %v13900_v32 = vpop.permute.xlu2 %7499  ;;  %v13904_v26 = vpop.permute.xlu1 %7483 }
 0x746   :  { %v5593_v63 = vpop.f32.mrf.mxu2 }
 0x747   :  { %v6805_v7 = vmul.f32 %v16142_v4, %v5590_v52  ;;  %6092 = vmatmul.f32.gmra.mxu0 %v13432_v40 }
 0x748   :  { %v5791_v37 = vpop.f32.mrf.mxu3 }
 0x749   :  { %v7369_v59 = vsel %vm16147_vm8, %v6805_v7, %v16146_v41  ;;  %v7552_v2 = vmul.f32 %v7466_v16, %v6805_v7  ;;  %v16148_v7 = vld [vmem:[#allocation101_spill] sm:$0xff]  ;;  %v16151_v41 = vsel %vm16096_vm11, %v16149_v22, %v16150_v20  ;;  %v13923_v37 = vpop.permute.xlu0 %7485  ;;  %v16154_v20 = vld [vmem:[#allocation242_spill] sm:$0xff]  ;;  %vm16257_vm8 = vmmov %vm16104_vm0 }
 0x74a   :  { %7754 = vst [vmem:[%s14577_s3 + $0x90] sm:$0xff] %v7369_v59  ;;  %v5447_v51 = vpop.f32.mrf.mxu1 }
 0x74b   :  { %v5448_v52 = vadd.f32 %v5447_v51, %v13540_v48  ;;  %7625 = vrot.lane.b32.xlu2 %v7552_v2, %s8439_s26  ;;  %5660 = vmatmul.f32.gmra.mxu2 %v13352_v0 }
 0x74c   :  { %v6033_v16 = vpop.f32.mrf.mxu0 }
 0x74d   :  { %v5594_v4 = vadd.f32 %v5593_v63, %v5448_v52  ;;  %5510 = vmatmul.f32.gmra.mxu1 %v13306_v55  ;;  %5926 = vmatmul.f32.gmra.mxu3 %v13517_v6  ;;  %v13925_v52 = vpop.permute.xlu2 %7505  ;;  %v13929_v16 = vpop.permute.xlu1 %7489 }
 0x74e   :  { %v5597_v59 = vpop.f32.mrf.mxu2 }
 0x74f   :  { %v6807_v36 = vmul.f32 %v16148_v7, %v5594_v4  ;;  %6096 = vmatmul.f32.gmra.mxu0 %v13467_v25  ;;  %v16153_v7 = vld [vmem:[#allocation108_spill] sm:$0xff] }
 0x750   :  { %v5799_v51 = vpop.f32.mrf.mxu3 }
 0x751   :  { %v7371_v48 = vsel %vm16152_vm15, %v6807_v36, %v16151_v41  ;;  %v7553_v63 = vmul.f32 %v7468_v34, %v6807_v36  ;;  %v16155_v41 = vld [vmem:[#allocation27_spill] sm:$0xff]  ;;  %vm16267_vm15 = vmmov %vm16104_vm0 }
 0x752   :  { %7756 = vst [vmem:[%s14577_s3 + $0xa0] sm:$0xff] %v7371_v48  ;;  %v5451_v2 = vpop.f32.mrf.mxu1  ;;  %v16156_v48 = vsel %vm16096_vm11, %v16154_v20, %v16155_v41  ;;  %v13957_v20 = vpop.permute.xlu0 %7491  ;;  %v16159_v41 = vld [vmem:[#allocation114_spill] sm:$0xff] }
 0x753   :  { %v5452_v6 = vadd.f32 %v5451_v2, %v13553_v3  ;;  %7627 = vrot.lane.b32.xlu1 %v7553_v63, %s8439_s26  ;;  %5664 = vmatmul.f32.gmra.mxu2 %v13394_v38  ;;  %v8435_v3 = vld [vmem:[%s14576_s2 + $0x20] ss:$8 sm:$0x3] }
 0x754   :  { %v6037_v34 = vpop.f32.mrf.mxu0  ;;  %v13936_v22 = vperm.slane %v8435_v3, 1 }
 0x755   :  { %v5598_v4 = vadd.f32 %v5597_v59, %v5452_v6  ;;  %5514 = vmatmul.f32.gmra.mxu1 %v13352_v0  ;;  %5934 = vmatmul.f32.gmra.mxu3 %v13530_v56 }
 0x756   :  { %v5601_v63 = vpop.f32.mrf.mxu2 }
 0x757   :  { %v6809_v36 = vmul.f32 %v16153_v7, %v5598_v4  ;;  %6100 = vmatmul.f32.gmra.mxu0 %v13490_v19  ;;  %v16158_v4 = vld [vmem:[#allocation4_spill] sm:$0xff] }
 0x758   :  { %v5807_v51 = vpop.f32.mrf.mxu3  ;;  %v726_v34 = vadd.f32 %v16158_v4, %v13936_v22 }
 0x759   :  { %v7373_v59 = vsel %vm16157_vm5, %v6809_v36, %v16156_v48  ;;  %v7554_v2 = vmul.f32 %v13775_v46, %v6809_v36  ;;  %vm16276_vm5 = vmmov %vm16104_vm0 }
 0x75a   :  { %7758 = vst [vmem:[%s14577_s3 + $0xb0] sm:$0xff] %v7373_v59  ;;  %v5455_v56 = vpop.f32.mrf.mxu1  ;;  %v16160_v59 = vld [vmem:[#allocation237_spill] sm:$0xff] }
 0x75b   :  { %v5456_v6 = vadd.f32 %v5455_v56, %v13564_v8  ;;  %7629 = vrot.lane.b32.xlu0 %v7554_v2, %s8439_s26  ;;  %5668 = vmatmul.f32.gmra.mxu2 %v13432_v40  ;;  %v13964_v8 = vpop.permute.xlu1 %7495 }
 0x75c   :  { %v6041_v36 = vpop.f32.mrf.mxu0 }
 0x75d   :  { %v5602_v7 = vadd.f32 %v5601_v63, %v5456_v6  ;;  %5518 = vmatmul.f32.gmra.mxu1 %v13394_v38  ;;  %v7608_v3 = vpop.permute.xlu2 %7607  ;;  %5942 = vmatmul.f32.gmra.mxu3 %v13543_v11  ;;  %v16161_v63 = vld [vmem:[#allocation29_spill] sm:$0xff] }
 0x75e   :  { %v7704_v46 = vsel %vm7703_vm14, %v726_v34, %v7608_v3  ;;  %v16162_v2 = vsel %vm16096_vm11, %v16160_v59, %v16161_v63  ;;  %v5605_v51 = vpop.f32.mrf.mxu2 }
 0x75f   :  { %v6811_v48 = vmul.f32 %v16159_v41, %v5602_v7  ;;  %7737 = vst [vmem:[%s14577_s3 + $0x8] sm:$0xff] %v7704_v46  ;;  %6659 = vmatmul.f32.vlgmr.msra.gmra.mxu0 %v12207_v58  ;;  %v16164_v46 = vld [vmem:[#allocation120_spill] sm:$0xff] }
 0x760   :  { %v5815_v4 = vpop.f32.mrf.mxu3  ;;  %v16165_v41 = vld [vmem:[#allocation244_spill] sm:$0xff] }
 0x761   :  { %v7375_v56 = vsel %vm16163_vm12, %v6811_v48, %v16162_v2  ;;  %v7555_v6 = vmul.f32 %v13849_v60, %v6811_v48  ;;  %v13984_v60 = vpop.permute.xlu0 %7497  ;;  %v16166_v48 = vld [vmem:[#allocation31_spill] sm:$0xff]  ;;  %vm16286_vm12 = vmmov %vm16104_vm0 }
 0x762   :  { %7760 = vst [vmem:[%s14577_s3 + $0xc0] sm:$0xff] %v7375_v56  ;;  %v5459_v11 = vpop.f32.mrf.mxu1  ;;  %v16167_v59 = vsel %vm16096_vm11, %v16165_v41, %v16166_v48 }
 0x763   :  { %v5460_v34 = vadd.f32 %v5459_v11, %v13573_v49  ;;  %7631 = vrot.lane.b32.xlu2 %v7555_v6, %s8439_s26  ;;  %5672 = vmatmul.f32.gmra.mxu2 %v13467_v25 }
 0x764   :  { %v6045_v3 = vpop.f32.mrf.mxu0 }
 0x765   :  { %v5606_v7 = vadd.f32 %v5605_v51, %v5460_v34  ;;  %5522 = vmatmul.f32.gmra.mxu1 %v13432_v40  ;;  %5950 = vmatmul.f32.gmra.mxu3 %v13556_v9  ;;  %v13998_v51 = vpop.permute.xlu1 %7501  ;;  %v16169_v34 = vld [vmem:[#allocation126_spill] sm:$0xff]  ;;  %v16171_v3 = vld [vmem:[#allocation33_spill] sm:$0xff] }
 0x766   :  { %v5609_v63 = vpop.f32.mrf.mxu2 }
 0x767   :  { %v6813_v36 = vmul.f32 %v16164_v46, %v5606_v7  ;;  %6663 = vmatmul.f32.gmra.mxu0 %v12246_v24  ;;  %v16170_v7 = vld [vmem:[#allocation247_spill] sm:$0xff] }
 0x768   :  { %v5823_v56 = vpop.f32.mrf.mxu3  ;;  %v16172_v46 = vsel %vm16096_vm11, %v16170_v7, %v16171_v3  ;;  %v16178_v7 = vld [vmem:[#allocation35_spill] sm:$0xff] }
 0x769   :  { %v7377_v49 = vsel %vm16168_vm7, %v6813_v36, %v16167_v59  ;;  %v7556_v2 = vmul.f32 %v13863_v30, %v6813_v36  ;;  %vm16294_vm7 = vmmov %vm16104_vm0 }
 0x76a   :  { %7762 = vst [vmem:[%s14577_s3 + $0xd0] sm:$0xff] %v7377_v49  ;;  %v5463_v9 = vpop.f32.mrf.mxu1 }
 0x76b   :  { %v5464_v6 = vadd.f32 %v5463_v9, %v13582_v50  ;;  %7633 = vrot.lane.b32.xlu1 %v7556_v2, %s8439_s26  ;;  %5676 = vmatmul.f32.gmra.mxu2 %v13490_v19 }
 0x76c   :  { %v6049_v4 = vpop.f32.mrf.mxu0 }
 0x76d   :  { %v5610_v11 = vadd.f32 %v5609_v63, %v5464_v6  ;;  %5526 = vmatmul.f32.gmra.mxu1 %v13467_v25  ;;  %6513 = vmatmul.f32.vlgmr.msra.gmra.mxu3 %v12207_v58  ;;  %v14018_v58 = vpop.permute.xlu0 %7503  ;;  %v16174_v63 = vld [vmem:[#allocation10_spill] sm:$0xff]  ;;  %v14024_v9 = vpop.permute.xlu1 %7507  ;;  %v16175_v6 = vld [vmem:[#allocation156_spill] sm:$0xff] }
 0x76e   :  { %v5613_v36 = vpop.f32.mrf.mxu2  ;;  %v733_v2 = vadd.f32 %v16174_v63, %v13936_v22 }
 0x76f   :  { %v6815_v30 = vmul.f32 %v16169_v34, %v5610_v11  ;;  %6667 = vmatmul.f32.gmra.mxu0 %v12288_v18  ;;  %v16176_v34 = vld [vmem:[#allocation131_spill] sm:$0xff] }
 0x770   :  { %v5831_v59 = vpop.f32.mrf.mxu3 }
 0x771   :  { %v7379_v50 = vsel %vm16173_vm3, %v6815_v30, %v16172_v46  ;;  %v7557_v41 = vmul.f32 %v13800_v31, %v6815_v30  ;;  %vm16304_vm3 = vmmov %vm16104_vm0 }
 0x772   :  { %7764 = vst [vmem:[%s14577_s3 + $0xe0] sm:$0xff] %v7379_v50  ;;  %v5467_v48 = vpop.f32.mrf.mxu1 }
 0x773   :  { %v5468_v49 = vadd.f32 %v5467_v48, %v13591_v35  ;;  %7635 = vrot.lane.b32.xlu0 %v7557_v41, %s8439_s26  ;;  %6303 = vmatmul.f32.vlgmr.msrb.gmra.mxu2 %v16175_v6  ;;  %v16177_v35 = vld [vmem:[#allocation241_spill] sm:$0xff] }
 0x774   :  { %v6053_v4 = vpop.f32.mrf.mxu0  ;;  %v16179_v3 = vsel %vm16096_vm11, %v16177_v35, %v16178_v7  ;;  %v16185_v35 = vld [vmem:[#allocation248_spill] sm:$0xff]  ;;  %v16186_v7 = vld [vmem:[#allocation39_spill] sm:$0xff] }
 0x775   :  { %v5614_v56 = vadd.f32 %v5613_v36, %v5468_v49  ;;  %5530 = vmatmul.f32.gmra.mxu1 %v13490_v19  ;;  %v7614_v31 = vpop.permute.xlu2 %7613  ;;  %6517 = vmatmul.f32.gmra.mxu3 %v12246_v24  ;;  %v16180_v24 = vld [vmem:[#allocation118_spill] sm:$0xff] }
 0x776   :  { %v7707_v11 = vsel %vm7703_vm14, %v733_v2, %v7614_v31  ;;  %v5617_v50 = vpop.f32.mrf.mxu2  ;;  %v16181_v49 = vld [vmem:[#allocation6_spill] sm:$0xff]  ;;  %v14050_v2 = vpop.permute.xlu0 %7509  ;;  %v16182_v31 = vld [vmem:[#allocation167_spill] sm:$0xff] }
 0x777   :  { %v6817_v30 = vmul.f32 %v16176_v34, %v5614_v56  ;;  %7743 = vst [vmem:[%s14577_s3 + $0x38] sm:$0xff] %v7707_v11  ;;  %6671 = vmatmul.f32.gmra.mxu0 %v12337_v23  ;;  %v728_v63 = vadd.f32 %v16181_v49, %v13936_v22  ;;  %v16184_v34 = vld [vmem:[#allocation134_spill] sm:$0xff] }
 0x778   :  { %v5839_v48 = vpop.f32.mrf.mxu3 }
 0x779   :  { %v7381_v46 = vsel %vm16104_vm0, %v6817_v30, %v16179_v3  ;;  %v7558_v36 = vmul.f32 %v13879_v5, %v6817_v30  ;;  %v16183_v5 = vld [vmem:[#allocation148_spill] sm:$0xff]  ;;  %v16187_v3 = vsel %vm16096_vm11, %v16185_v35, %v16186_v7 }
 0x77a   :  { %7766 = vst [vmem:[%s14577_s3 + $0xf0] sm:$0xff] %v7381_v46  ;;  %v5471_v41 = vpop.f32.mrf.mxu1 }
 0x77b   :  { %v5472_v59 = vadd.f32 %v5471_v41, %v16180_v24  ;;  %7637 = vrot.lane.b32.xlu2 %v7558_v36, %s8439_s26  ;;  %6309 = vmatmul.f32.gmra.mxu2 %v16183_v5 }
 0x77c   :  { %v6057_v4 = vpop.f32.mrf.mxu0 }
 0x77d   :  { %v5618_v56 = vadd.f32 %v5617_v50, %v5472_v59  ;;  %6124 = vmatmul.f32.vlgmr.msrb.gmra.mxu1 %v16182_v31  ;;  %v7610_v6 = vpop.permute.xlu1 %7609  ;;  %6521 = vmatmul.f32.gmra.mxu3 %v12288_v18  ;;  %v16189_v18 = vld [vmem:[#allocation112_spill] sm:$0xff] }
 0x77e   :  { %v7705_v11 = vsel %vm7703_vm14, %v728_v63, %v7610_v6  ;;  %v5621_v50 = vpop.f32.mrf.mxu2  ;;  %v16190_v59 = vld [vmem:[#allocation8_spill] sm:$0xff]  ;;  %v16192_v6 = vld [vmem:[#allocation171_spill] sm:$0xff] }
 0x77f   :  { %v6819_v30 = vmul.f32 %v16184_v34, %v5618_v56  ;;  %7739 = vst [vmem:[%s14577_s3 + $0x18] sm:$0xff] %v7705_v11  ;;  %6675 = vmatmul.f32.gmra.mxu0 %v12380_v57  ;;  %v731_v49 = vadd.f32 %v16190_v59, %v13936_v22  ;;  %v16191_v56 = vld [vmem:[#allocation155_spill] sm:$0xff]  ;;  %v16193_v11 = vld [vmem:[#allocation146_spill] sm:$0xff] }
 0x780   :  { %v5847_v48 = vpop.f32.mrf.mxu3  ;;  %v16194_v34 = vld [vmem:[#allocation166_spill] sm:$0xff] }
 0x781   :  { %v7383_v46 = vsel %vm16188_vm2, %v6819_v30, %v16187_v3  ;;  %v7559_v36 = vmul.f32 %v13898_v47, %v6819_v30  ;;  %v16195_v30 = vld [vmem:[#allocation44_spill] sm:$0xff]  ;;  %vm16319_vm2 = vmmov %vm16104_vm0 }
 0x782   :  { %7768 = vst [vmem:[%s14577_s3 + $0x100] sm:$0xff] %v7383_v46  ;;  %v5475_v41 = vpop.f32.mrf.mxu1  ;;  %v16196_v35 = vsel %vm16096_vm11, %v16194_v34, %v16195_v30  ;;  %v16198_v46 = vld [vmem:[#allocation164_spill] sm:$0xff] }
 0x783   :  { %v5476_v24 = vadd.f32 %v5475_v41, %v16189_v18  ;;  %7639 = vrot.lane.b32.xlu1 %v7559_v36, %s8439_s26  ;;  %6315 = vmatmul.f32.gmra.mxu2 %v16192_v6  ;;  %v16200_v18 = vld [vmem:[#allocation16_spill] sm:$0xff]  ;;  %v16203_v6 = vld [vmem:[#allocation165_spill] sm:$0xff] }
 0x784   :  { %v6061_v5 = vpop.f32.mrf.mxu0 }
 0x785   :  { %v5622_v63 = vadd.f32 %v5621_v50, %v5476_v24  ;;  %6129 = vmatmul.f32.gmra.mxu1 %v16191_v56  ;;  %v7612_v31 = vpop.permute.xlu0 %7611  ;;  %6525 = vmatmul.f32.gmra.mxu3 %v12337_v23  ;;  %v16199_v23 = vld [vmem:[#allocation143_spill] sm:$0xff]  ;;  %v741_v24 = vadd.f32 %v16200_v18, %v13936_v22  ;;  %v16204_v5 = vld [vmem:[#allocation246_spill] sm:$0xff] }
 0x786   :  { %v7706_v47 = vsel %vm7703_vm14, %v731_v49, %v7612_v31  ;;  %v5625_v3 = vpop.f32.mrf.mxu2  ;;  %v16201_v49 = vld [vmem:[#allocation157_spill] sm:$0xff]  ;;  %v16202_v56 = vld [vmem:[#allocation163_spill] sm:$0xff]  ;;  %v16211_v18 = vld [vmem:[#allocation170_spill] sm:$0xff] }
 0x787   :  { %v6821_v4 = vmul.f32 %v16193_v11, %v5622_v63  ;;  %7741 = vst [vmem:[%s14577_s3 + $0x28] sm:$0xff] %v7706_v47  ;;  %6679 = vmatmul.f32.gmra.mxu0 %v16198_v46  ;;  %v16205_v11 = vld [vmem:[#allocation51_spill] sm:$0xff] }
 0x788   :  { %v5855_v41 = vpop.f32.mrf.mxu3 }
 0x789   :  { %v7385_v7 = vsel %vm16197_vm13, %v6821_v4, %v16196_v35  ;;  %v7560_v50 = vmul.f32 %v13821_v53, %v6821_v4  ;;  %v16206_v4 = vsel %vm16096_vm11, %v16204_v5, %v16205_v11  ;;  %v16208_v35 = vld [vmem:[#allocation176_spill] sm:$0xff]  ;;  %v16218_v11 = vld [vmem:[#allocation177_spill] sm:$0xff]  ;;  %vm16327_vm13 = vmmov %vm16104_vm0 }
 0x78a   :  { %7770 = vst [vmem:[%s14577_s3 + $0x110] sm:$0xff] %v7385_v7  ;;  %v5479_v36 = vpop.f32.mrf.mxu1  ;;  %v16210_v41 = vld [vmem:[#allocation12_spill] sm:$0xff] }
 0x78b   :  { %v5480_v48 = vadd.f32 %v5479_v36, %v16199_v23  ;;  %7641 = vrot.lane.b32.xlu0 %v7560_v50, %s8439_s26  ;;  %6321 = vmatmul.f32.gmra.mxu2 %v16202_v56  ;;  %v736_v23 = vadd.f32 %v16210_v41, %v13936_v22 }
 0x78c   :  { %v6065_v31 = vpop.f32.mrf.mxu0 }
 0x78d   :  { %v5626_v59 = vadd.f32 %v5625_v3, %v5480_v48  ;;  %6134 = vmatmul.f32.gmra.mxu1 %v16201_v49  ;;  %v7620_v63 = vpop.permute.xlu2 %7619  ;;  %6529 = vmatmul.f32.gmra.mxu3 %v12380_v57  ;;  %v16209_v57 = vld [vmem:[#allocation109_spill] sm:$0xff]  ;;  %v16215_v31 = vld [vmem:[#allocation56_spill] sm:$0xff] }
 0x78e   :  { %v7710_v53 = vsel %vm7703_vm14, %v741_v24, %v7620_v63  ;;  %v5629_v30 = vpop.f32.mrf.mxu2  ;;  %v16213_v63 = vld [vmem:[#allocation168_spill] sm:$0xff] }
 0x78f   :  { %v6823_v47 = vmul.f32 %v16203_v6, %v5626_v59  ;;  %7749 = vst [vmem:[%s14577_s3 + $0x68] sm:$0xff] %v7710_v53  ;;  %6683 = vmatmul.f32.gmra.mxu0 %v16208_v35  ;;  %v16212_v59 = vld [vmem:[#allocation153_spill] sm:$0xff] }
 0x790   :  { %v5863_v50 = vpop.f32.mrf.mxu3  ;;  %v16214_v53 = vld [vmem:[#allocation73_spill] sm:$0xff] }
 0x791   :  { %v7387_v34 = vsel %vm16207_vm9, %v6823_v47, %v16206_v4  ;;  %v7561_v7 = vmul.f32 %v13904_v26, %v6823_v47  ;;  %v16216_v6 = vsel %vm16096_vm11, %v16214_v53, %v16215_v31  ;;  %v16228_v53 = vld [vmem:[#allocation185_spill] sm:$0xff] }
 0x792   :  { %7772 = vst [vmem:[%s14577_s3 + $0x120] sm:$0xff] %v7387_v34  ;;  %v5483_v3 = vpop.f32.mrf.mxu1 }
 0x793   :  { %v5484_v36 = vadd.f32 %v5483_v3, %v16209_v57  ;;  %7643 = vrot.lane.b32.xlu2 %v7561_v7, %s8439_s26  ;;  %6327 = vmatmul.f32.gmra.mxu2 %v16212_v59  ;;  %v16220_v3 = vld [vmem:[#allocation14_spill] sm:$0xff]  ;;  %v16224_v59 = vld [vmem:[#allocation251_spill] sm:$0xff] }
 0x794   :  { %v6069_v49 = vpop.f32.mrf.mxu0  ;;  %v738_v50 = vadd.f32 %v16220_v3, %v13936_v22  ;;  %v16232_v3 = vld [vmem:[#allocation161_spill] sm:$0xff] }
 0x795   :  { %v5630_v48 = vadd.f32 %v5629_v30, %v5484_v36  ;;  %6139 = vmatmul.f32.gmra.mxu1 %v16211_v18  ;;  %v7616_v24 = vpop.permute.xlu1 %7615  ;;  %6533 = vmatmul.f32.gmra.mxu3 %v16198_v46  ;;  %v16219_v46 = vld [vmem:[#allocation102_spill] sm:$0xff]  ;;  %v16223_v18 = vld [vmem:[#allocation172_spill] sm:$0xff] }
 0x796   :  { %v7708_v26 = vsel %vm7703_vm14, %v736_v23, %v7616_v24  ;;  %v5633_v5 = vpop.f32.mrf.mxu2  ;;  %v16221_v36 = vld [vmem:[#allocation162_spill] sm:$0xff]  ;;  %v16222_v23 = vld [vmem:[#allocation175_spill] sm:$0xff] }
 0x797   :  { %v6825_v56 = vmul.f32 %v16213_v63, %v5630_v48  ;;  %7745 = vst [vmem:[%s14577_s3 + $0x48] sm:$0xff] %v7708_v26  ;;  %6687 = vmatmul.f32.gmra.mxu0 %v16218_v11  ;;  %v16225_v26 = vld [vmem:[#allocation63_spill] sm:$0xff] }
 0x798   :  { %v5871_v30 = vpop.f32.mrf.mxu3  ;;  %v16226_v49 = vsel %vm16096_vm11, %v16224_v59, %v16225_v26 }
 0x799   :  { %v7389_v47 = vsel %vm16217_vm6, %v6825_v56, %v16216_v6  ;;  %v7562_v4 = vmul.f32 %v13923_v37, %v6825_v56 }
 0x79a   :  { %7774 = vst [vmem:[%s14577_s3 + $0x130] sm:$0xff] %v7389_v47  ;;  %v5487_v34 = vpop.f32.mrf.mxu1 }
 0x79b   :  { %v5488_v7 = vadd.f32 %v5487_v34, %v16219_v46  ;;  %7645 = vrot.lane.b32.xlu1 %v7562_v4, %s8439_s26  ;;  %6333 = vmatmul.f32.gmra.mxu2 %v16222_v23  ;;  %v16230_v4 = vld [vmem:[#allocation22_spill] sm:$0xff]  ;;  %v16231_v46 = vld [vmem:[#allocation184_spill] sm:$0xff] }
 0x79c   :  { %v6073_v48 = vpop.f32.mrf.mxu0  ;;  %v748_v34 = vadd.f32 %v16230_v4, %v13936_v22  ;;  %v16235_v23 = vld [vmem:[#allocation68_spill] sm:$0xff] }
 0x79d   :  { %v5634_v57 = vadd.f32 %v5633_v5, %v5488_v7  ;;  %6144 = vmatmul.f32.gmra.mxu1 %v16221_v36  ;;  %v7618_v41 = vpop.permute.xlu0 %7617  ;;  %6537 = vmatmul.f32.gmra.mxu3 %v16208_v35  ;;  %v16229_v35 = vld [vmem:[#allocation159_spill] sm:$0xff] }
 0x79e   :  { %v7709_v37 = vsel %vm7703_vm14, %v738_v50, %v7618_v41  ;;  %v5637_v56 = vpop.f32.mrf.mxu2  ;;  %v16234_v41 = vld [vmem:[#allocation61_spill] sm:$0xff] }
 0x79f   :  { %v6827_v24 = vmul.f32 %v16223_v18, %v5634_v57  ;;  %7747 = vst [vmem:[%s14577_s3 + $0x58] sm:$0xff] %v7709_v37  ;;  %6691 = vmatmul.f32.gmra.mxu0 %v16228_v53  ;;  %v16233_v57 = vld [vmem:[#allocation178_spill] sm:$0xff]  ;;  %v16236_v37 = vsel %vm16096_vm11, %v16234_v41, %v16235_v23 }
 0x7a0   :  { %v5879_v47 = vpop.f32.mrf.mxu3 }
 0x7a1   :  { %v7391_v63 = vsel %vm16227_vm10, %v6827_v24, %v16226_v49  ;;  %v7563_v31 = vmul.f32 %v13841_v27, %v6827_v24  ;;  %v16238_v24 = vld [vmem:[#allocation186_spill] sm:$0xff]  ;;  %v16241_v47 = vld [vmem:[#allocation173_spill] sm:$0xff] }
 0x7a2   :  { %7776 = vst [vmem:[%s14577_s3 + $0x140] sm:$0xff] %v7391_v63  ;;  %v5491_v6 = vpop.f32.mrf.mxu1 }
 0x7a3   :  { %v5492_v5 = vadd.f32 %v5491_v6, %v16229_v35  ;;  %7647 = vrot.lane.b32.xlu0 %v7563_v31, %s8439_s26  ;;  %6339 = vmatmul.f32.gmra.mxu2 %v16232_v3 }
 0x7a4   :  { %v6077_v50 = vpop.f32.mrf.mxu0 }
 0x7a5   :  { %v5638_v30 = vadd.f32 %v5637_v56, %v5492_v5  ;;  %6149 = vmatmul.f32.gmra.mxu1 %v16231_v46  ;;  %v7626_v7 = vpop.permute.xlu2 %7625  ;;  %6541 = vmatmul.f32.gmra.mxu3 %v16218_v11  ;;  %v16239_v11 = vld [vmem:[#allocation137_spill] sm:$0xff]  ;;  %v16240_v56 = vld [vmem:[#allocation18_spill] sm:$0xff]  ;;  %v16242_v5 = vld [vmem:[#allocation180_spill] sm:$0xff] }
 0x7a6   :  { %v7713_v27 = vsel %vm7703_vm14, %v748_v34, %v7626_v7  ;;  %v5641_v18 = vpop.f32.mrf.mxu2  ;;  %v743_v31 = vadd.f32 %v16240_v56, %v13936_v22  ;;  %v16243_v34 = vld [vmem:[#allocation179_spill] sm:$0xff]  ;;  %v16244_v46 = vld [vmem:[#allocation252_spill] sm:$0xff]  ;;  %v16245_v7 = vld [vmem:[#allocation74_spill] sm:$0xff] }
 0x7a7   :  { %v6829_v36 = vmul.f32 %v16233_v57, %v5638_v30  ;;  %7755 = vst [vmem:[%s14577_s3 + $0x98] sm:$0xff] %v7713_v27  ;;  %6695 = vmatmul.f32.gmra.mxu0 %v16238_v24  ;;  %v16246_v3 = vsel %vm16096_vm11, %v16244_v46, %v16245_v7  ;;  %v16248_v57 = vld [vmem:[#allocation195_spill] sm:$0xff]  ;;  %v16253_v56 = vld [vmem:[#allocation188_spill] sm:$0xff] }
 0x7a8   :  { %v5887_v49 = vpop.f32.mrf.mxu3 }
 0x7a9   :  { %v7393_v48 = vsel %vm16237_vm4, %v6829_v36, %v16236_v37  ;;  %v7564_v59 = vmul.f32 %v13929_v16, %v6829_v36 }
 0x7aa   :  { %7778 = vst [vmem:[%s14577_s3 + $0x150] sm:$0xff] %v7393_v48  ;;  %v5495_v26 = vpop.f32.mrf.mxu1  ;;  %v16250_v48 = vld [vmem:[#allocation20_spill] sm:$0xff] }
 0x7ab   :  { %v5496_v63 = vadd.f32 %v5495_v26, %v16239_v11  ;;  %7649 = vrot.lane.b32.xlu2 %v7564_v59, %s8439_s26  ;;  %6345 = vmatmul.f32.gmra.mxu2 %v16242_v5  ;;  %v16251_v26 = vld [vmem:[#allocation189_spill] sm:$0xff] }
 0x7ac   :  { %v6081_v4 = vpop.f32.mrf.mxu0  ;;  %v16252_v11 = vld [vmem:[#allocation169_spill] sm:$0xff] }
 0x7ad   :  { %v5642_v6 = vadd.f32 %v5641_v18, %v5496_v63  ;;  %6154 = vmatmul.f32.gmra.mxu1 %v16241_v47  ;;  %v7622_v35 = vpop.permute.xlu1 %7621  ;;  %6545 = vmatmul.f32.gmra.mxu3 %v16228_v53  ;;  %v16249_v53 = vld [vmem:[#allocation130_spill] sm:$0xff]  ;;  %v746_v18 = vadd.f32 %v16250_v48, %v13936_v22  ;;  %v16255_v47 = vld [vmem:[#allocation79_spill] sm:$0xff]  ;;  %v16258_v4 = vld [vmem:[#allocation213_spill] sm:$0xff] }
 0x7ae   :  { %v7711_v16 = vsel %vm7703_vm14, %v743_v31, %v7622_v35  ;;  %v5645_v50 = vpop.f32.mrf.mxu2 }
 0x7af   :  { %v6831_v30 = vmul.f32 %v16243_v34, %v5642_v6  ;;  %7751 = vst [vmem:[%s14577_s3 + $0x78] sm:$0xff] %v7711_v16  ;;  %6699 = vmatmul.f32.gmra.mxu0 %v16248_v57  ;;  %v16254_v6 = vld [vmem:[#allocation254_spill] sm:$0xff] }
 0x7b0   :  { %v5895_v23 = vpop.f32.mrf.mxu3  ;;  %v16256_v35 = vsel %vm16096_vm11, %v16254_v6, %v16255_v47  ;;  %v16269_v6 = vld [vmem:[#allocation24_spill] sm:$0xff] }
 0x7b1   :  { %v7395_v27 = vsel %vm16247_vm1, %v6831_v30, %v16246_v3  ;;  %v7565_v36 = vmul.f32 %v13957_v20, %v6831_v30  ;;  %v16260_v3 = vld [vmem:[#allocation28_spill] sm:$0xff]  ;;  %v16262_v23 = vld [vmem:[#allocation181_spill] sm:$0xff]  ;;  %v751_v47 = vadd.f32 %v16269_v6, %v13936_v22 }
 0x7b2   :  { %7780 = vst [vmem:[%s14577_s3 + $0x160] sm:$0xff] %v7395_v27  ;;  %v5499_v41 = vpop.f32.mrf.mxu1  ;;  %v756_v27 = vadd.f32 %v16260_v3, %v13936_v22  ;;  %v16274_v3 = vld [vmem:[#allocation91_spill] sm:$0xff] }
 0x7b3   :  { %v5500_v37 = vadd.f32 %v5499_v41, %v16249_v53  ;;  %7651 = vrot.lane.b32.xlu1 %v7565_v36, %s8439_s26  ;;  %6351 = vmatmul.f32.gmra.mxu2 %v16252_v11  ;;  %v16261_v36 = vld [vmem:[#allocation183_spill] sm:$0xff] }
 0x7b4   :  { %v6085_v63 = vpop.f32.mrf.mxu0 }
 0x7b5   :  { %v5646_v59 = vadd.f32 %v5645_v50, %v5500_v37  ;;  %6159 = vmatmul.f32.gmra.mxu1 %v16251_v26  ;;  %v7624_v49 = vpop.permute.xlu0 %7623  ;;  %6549 = vmatmul.f32.gmra.mxu3 %v16238_v24  ;;  %v16259_v24 = vld [vmem:[#allocation150_spill] sm:$0xff]  ;;  %v16263_v37 = vld [vmem:[#allocation201_spill] sm:$0xff] }
 0x7b6   :  { %v7712_v20 = vsel %vm7703_vm14, %v746_v18, %v7624_v49  ;;  %v5649_v16 = vpop.f32.mrf.mxu2  ;;  %v16264_v18 = vld [vmem:[#allocation174_spill] sm:$0xff] }
 0x7b7   :  { %v6833_v31 = vmul.f32 %v16253_v56, %v5646_v59  ;;  %7753 = vst [vmem:[%s14577_s3 + $0x88] sm:$0xff] %v7712_v20  ;;  %6703 = vmatmul.f32.gmra.mxu0 %v16258_v4  ;;  %v16265_v59 = vld [vmem:[#allocation86_spill] sm:$0xff] }
 0x7b8   :  { %v5903_v46 = vpop.f32.mrf.mxu3  ;;  %v16266_v26 = vsel %vm16096_vm11, %v16264_v18, %v16265_v59 }
 0x7b9   :  { %v7397_v5 = vsel %vm16257_vm8, %v6833_v31, %v16256_v35  ;;  %v7566_v34 = vmul.f32 %v13865_v15, %v6833_v31  ;;  %v16272_v46 = vld [vmem:[#allocation215_spill] sm:$0xff] }
 0x7ba   :  { %7782 = vst [vmem:[%s14577_s3 + $0x170] sm:$0xff] %v7397_v5  ;;  %v5503_v30 = vpop.f32.mrf.mxu1  ;;  %v16270_v5 = vld [vmem:[#allocation199_spill] sm:$0xff] }
 0x7bb   :  { %v5504_v7 = vadd.f32 %v5503_v30, %v16259_v24  ;;  %7653 = vrot.lane.b32.xlu0 %v7566_v34, %s8439_s26  ;;  %6357 = vmatmul.f32.gmra.mxu2 %v16262_v23  ;;  %v16271_v34 = vld [vmem:[#allocation196_spill] sm:$0xff] }
 0x7bc   :  { %v6089_v53 = vpop.f32.mrf.mxu0 }
 0x7bd   :  { %v5650_v50 = vadd.f32 %v5649_v16, %v5504_v7  ;;  %6164 = vmatmul.f32.gmra.mxu1 %v16261_v36  ;;  %v7632_v41 = vpop.permute.xlu2 %7631  ;;  %6553 = vmatmul.f32.gmra.mxu3 %v16248_v57  ;;  %v16268_v57 = vld [vmem:[#allocation127_spill] sm:$0xff] }
 0x7be   :  { %v7716_v15 = vsel %vm7703_vm14, %v756_v27, %v7632_v41  ;;  %v5653_v11 = vpop.f32.mrf.mxu2  ;;  %v16273_v7 = vld [vmem:[#allocation255_spill] sm:$0xff]  ;;  %v16277_v41 = vld [vmem:[#allocation212_spill] sm:$0xff] }
 0x7bf   :  { %v6835_v48 = vmul.f32 %v16263_v37, %v5650_v50  ;;  %7761 = vst [vmem:[%s14577_s3 + $0xc8] sm:$0xff] %v7716_v15  ;;  %6707 = vmatmul.f32.gmra.mxu0 %v16070_v43  ;;  %v16275_v27 = vsel %vm16096_vm11, %v16273_v7, %v16274_v3  ;;  %v16289_v3 = vld [vmem:[#allocation217_spill] sm:$0xff] }
 0x7c0   :  { %v5911_v56 = vpop.f32.mrf.mxu3 }
 0x7c1   :  { %v7399_v49 = vsel %vm16267_vm15, %v6835_v48, %v16266_v26  ;;  %v7567_v20 = vmul.f32 %v13964_v8, %v6835_v48  ;;  %v16279_v48 = vld [vmem:[#allocation26_spill] sm:$0xff] }
 0x7c2   :  { %7784 = vst [vmem:[%s14577_s3 + $0x180] sm:$0xff] %v7399_v49  ;;  %v5507_v63 = vpop.f32.mrf.mxu1  ;;  %v753_v18 = vadd.f32 %v16279_v48, %v13936_v22  ;;  %v16280_v26 = vld [vmem:[#allocation182_spill] sm:$0xff] }
 0x7c3   :  { %v5508_v31 = vadd.f32 %v5507_v63, %v16268_v57  ;;  %7655 = vrot.lane.b32.xlu2 %v7567_v20, %s8439_s26  ;;  %6363 = vmatmul.f32.gmra.mxu2 %v16271_v34  ;;  %v16282_v63 = vld [vmem:[#allocation222_spill] sm:$0xff]  ;;  %v16283_v57 = vld [vmem:[#allocation37_spill] sm:$0xff] }
 0x7c4   :  { %v6093_v30 = vpop.f32.mrf.mxu0 }
 0x7c5   :  { %v5654_v35 = vadd.f32 %v5653_v11, %v5508_v31  ;;  %6169 = vmatmul.f32.gmra.mxu1 %v16270_v5  ;;  %v7628_v16 = vpop.permute.xlu1 %7627  ;;  %6557 = vmatmul.f32.gmra.mxu3 %v16258_v4  ;;  %v16278_v4 = vld [vmem:[#allocation121_spill] sm:$0xff]  ;;  %v16281_v11 = vld [vmem:[#allocation210_spill] sm:$0xff] }
 0x7c6   :  { %v7714_v8 = vsel %vm7703_vm14, %v751_v47, %v7628_v16  ;;  %v5657_v36 = vpop.f32.mrf.mxu2  ;;  %v16284_v31 = vld [vmem:[#allocation98_spill] sm:$0xff] }
 0x7c7   :  { %v6837_v24 = vmul.f32 %v16272_v46, %v5654_v35  ;;  %7757 = vst [vmem:[%s14577_s3 + $0xa8] sm:$0xff] %v7714_v8  ;;  %6711 = vmatmul.f32.gmra.mxu0 %v16277_v41  ;;  %v16285_v6 = vsel %vm16096_vm11, %v16283_v57, %v16284_v31  ;;  %v16287_v8 = vld [vmem:[#allocation34_spill] sm:$0xff]  ;;  %v16300_v31 = vld [vmem:[#allocation227_spill] sm:$0xff] }
 0x7c8   :  { %v5919_v53 = vpop.f32.mrf.mxu3  ;;  %v763_v30 = vadd.f32 %v16287_v8, %v13936_v22 }
 0x7c9   :  { %v7401_v50 = vsel %vm16276_vm5, %v6837_v24, %v16275_v27  ;;  %v7568_v23 = vmul.f32 %v13984_v60, %v6837_v24  ;;  %v16288_v24 = vld [vmem:[#allocation192_spill] sm:$0xff] }
 0x7ca   :  { %7786 = vst [vmem:[%s14577_s3 + $0x190] sm:$0xff] %v7401_v50  ;;  %v5511_v15 = vpop.f32.mrf.mxu1  ;;  %v16290_v50 = vld [vmem:[#allocation224_spill] sm:$0xff] }
 0x7cb   :  { %v5512_v37 = vadd.f32 %v5511_v15, %v16278_v4  ;;  %7657 = vrot.lane.b32.xlu1 %v7568_v23, %s8439_s26  ;;  %6369 = vmatmul.f32.gmra.mxu2 %v16281_v11  ;;  %v16292_v23 = vld [vmem:[#allocation103_spill] sm:$0xff] }
 0x7cc   :  { %v6097_v20 = vpop.f32.mrf.mxu0 }
 0x7cd   :  { %v5658_v59 = vadd.f32 %v5657_v36, %v5512_v37  ;;  %6174 = vmatmul.f32.gmra.mxu1 %v16280_v26  ;;  %v7630_v49 = vpop.permute.xlu0 %7629  ;;  %6561 = vmatmul.f32.gmra.mxu3 %v16070_v43  ;;  %v16295_v37 = vld [vmem:[#allocation107_spill] sm:$0xff] }
 0x7ce   :  { %v7715_v60 = vsel %vm7703_vm14, %v753_v18, %v7630_v49  ;;  %v5661_v35 = vpop.f32.mrf.mxu2  ;;  %v16297_v49 = vld [vmem:[#allocation30_spill] sm:$0xff]  ;;  %v16298_v20 = vld [vmem:[#allocation211_spill] sm:$0xff] }
 0x7cf   :  { %v6839_v56 = vmul.f32 %v16282_v63, %v5658_v59  ;;  %7759 = vst [vmem:[%s14577_s3 + $0xb8] sm:$0xff] %v7715_v60  ;;  %6715 = vmatmul.f32.gmra.mxu0 %v16076_v13  ;;  %v758_v11 = vadd.f32 %v16297_v49, %v13936_v22 }
 0x7d0   :  { %v5927_v34 = vpop.f32.mrf.mxu3 }
 0x7d1   :  { %v7403_v47 = vsel %vm16286_vm12, %v6839_v56, %v16285_v6  ;;  %v7569_v5 = vmul.f32 %v13900_v32, %v6839_v56  ;;  %v16299_v56 = vld [vmem:[#allocation203_spill] sm:$0xff] }
 0x7d2   :  { %7788 = vst [vmem:[%s14577_s3 + $0x1a0] sm:$0xff] %v7403_v47  ;;  %v5515_v16 = vpop.f32.mrf.mxu1  ;;  %v16301_v47 = vld [vmem:[#allocation187_spill] sm:$0xff] }
 0x7d3   :  { %v5516_v43 = vadd.f32 %v5515_v16, %v13693_v12  ;;  %7659 = vrot.lane.b32.xlu0 %v7569_v5, %s8439_s26  ;;  %6375 = vmatmul.f32.gmra.mxu2 %v16289_v3  ;;  %v16291_v12 = vld [vmem:[#allocation253_spill] sm:$0xff]  ;;  %v16306_v3 = vld [vmem:[#allocation218_spill] sm:$0xff] }
 0x7d4   :  { %v6101_v27 = vpop.f32.mrf.mxu0  ;;  %v16293_v15 = vsel %vm16096_vm11, %v16291_v12, %v16292_v23  ;;  %v16310_v23 = vld [vmem:[#allocation117_spill] sm:$0xff] }
 0x7d5   :  { %v5662_v46 = vadd.f32 %v5661_v35, %v5516_v43  ;;  %6179 = vmatmul.f32.gmra.mxu1 %v16288_v24  ;;  %v7638_v7 = vpop.permute.xlu2 %7637  ;;  %6565 = vmatmul.f32.gmra.mxu3 %v16277_v41  ;;  %v16296_v41 = vld [vmem:[#allocation140_spill] sm:$0xff]  ;;  %v16302_v35 = vld [vmem:[#allocation111_spill] sm:$0xff] }
 0x7d6   :  { %v7719_v32 = vsel %vm7703_vm14, %v763_v30, %v7638_v7  ;;  %v5665_v4 = vpop.f32.mrf.mxu2  ;;  %v16303_v5 = vsel %vm16096_vm11, %v16301_v47, %v16302_v35  ;;  %v16307_v27 = vld [vmem:[#allocation223_spill] sm:$0xff] }
 0x7d7   :  { %v6841_v36 = vmul.f32 %v16290_v50, %v5662_v46  ;;  %7767 = vst [vmem:[%s14577_s3 + $0xf8] sm:$0xff] %v7719_v32  ;;  %6719 = vmatmul.f32.gmra.mxu0 %v16295_v37  ;;  %v16305_v46 = vld [vmem:[#allocation32_spill] sm:$0xff] }
 0x7d8   :  { %v5935_v59 = vpop.f32.mrf.mxu3  ;;  %v761_v24 = vadd.f32 %v16305_v46, %v13936_v22  ;;  %v16322_v46 = vld [vmem:[#allocation46_spill] sm:$0xff] }
 0x7d9   :  { %v7405_v53 = vsel %vm16294_vm7, %v6841_v36, %v16293_v15  ;;  %v7570_v48 = vmul.f32 %v13998_v51, %v6841_v36  ;;  %v16308_v36 = vld [vmem:[#allocation229_spill] sm:$0xff] }
 0x7da   :  { %7790 = vst [vmem:[%s14577_s3 + $0x1b0] sm:$0xff] %v7405_v53  ;;  %v5519_v18 = vpop.f32.mrf.mxu1 }
 0x7db   :  { %v5520_v26 = vadd.f32 %v5519_v18, %v16296_v41  ;;  %7661 = vrot.lane.b32.xlu2 %v7570_v48, %s8439_s26  ;;  %6381 = vmatmul.f32.gmra.mxu2 %v16299_v56  ;;  %v16312_v41 = vld [vmem:[#allocation50_spill] sm:$0xff]  ;;  %v16315_v56 = vld [vmem:[#allocation49_spill] sm:$0xff] }
 0x7dc   :  { %v6660_v57 = vpop.f32.mrf.mxu0 }
 0x7dd   :  { %v5666_v60 = vadd.f32 %v5665_v4, %v5520_v26  ;;  %6184 = vmatmul.f32.gmra.mxu1 %v16298_v20  ;;  %v7634_v63 = vpop.permute.xlu1 %7633  ;;  %6569 = vmatmul.f32.gmra.mxu3 %v16076_v13  ;;  %v771_v26 = vadd.f32 %v16312_v41, %v13936_v22  ;;  %v16314_v20 = vld [vmem:[#allocation233_spill] sm:$0xff]  ;;  %v16317_v57 = vld [vmem:[#allocation123_spill] sm:$0xff]  ;;  %v16332_v41 = vld [vmem:[#allocation58_spill] sm:$0xff] }
 0x7de   :  { %v7717_v51 = vsel %vm7703_vm14, %v758_v11, %v7634_v63  ;;  %v5669_v34 = vpop.f32.mrf.mxu2  ;;  %v16313_v11 = vld [vmem:[#allocation225_spill] sm:$0xff] }
 0x7df   :  { %v6843_v6 = vmul.f32 %v16300_v31, %v5666_v60  ;;  %7763 = vst [vmem:[%s14577_s3 + $0xd8] sm:$0xff] %v7717_v51  ;;  %6723 = vmatmul.f32.gmra.mxu0 %v16082_v21 }
 0x7e0   :  { %v5943_v30 = vpop.f32.mrf.mxu3 }
 0x7e1   :  { %v7407_v16 = vsel %vm16304_vm3, %v6843_v6, %v16303_v5  ;;  %v7571_v43 = vmul.f32 %v14018_v58, %v6843_v6  ;;  %v16321_v30 = vld [vmem:[#allocation119_spill] sm:$0xff] }
 0x7e2   :  { %7792 = vst [vmem:[%s14577_s3 + $0x1c0] sm:$0xff] %v7407_v16  ;;  %v5523_v8 = vpop.f32.mrf.mxu1 }
 0x7e3   :  { %v5524_v13 = vadd.f32 %v5523_v8, %v13711_v61  ;;  %7663 = vrot.lane.b32.xlu1 %v7571_v43, %s8439_s26  ;;  %6387 = vmatmul.f32.gmra.mxu2 %v16307_v27  ;;  %v16309_v61 = vld [vmem:[#allocation191_spill] sm:$0xff] }
 0x7e4   :  { %v6664_v50 = vpop.f32.mrf.mxu0  ;;  %v16311_v15 = vsel %vm16096_vm11, %v16309_v61, %v16310_v23  ;;  %v16329_v23 = vld [vmem:[#allocation2_spill] sm:$0xff] }
 0x7e5   :  { %v5670_v7 = vadd.f32 %v5669_v34, %v5524_v13  ;;  %6189 = vmatmul.f32.gmra.mxu1 %v16306_v3  ;;  %v7636_v32 = vpop.permute.xlu0 %7635  ;;  %6573 = vmatmul.f32.gmra.mxu3 %v16295_v37  ;;  %v16320_v34 = vld [vmem:[#allocation38_spill] sm:$0xff] }
 0x7e6   :  { %v7718_v58 = vsel %vm7703_vm14, %v761_v24, %v7636_v32  ;;  %v5673_v4 = vpop.f32.mrf.mxu2  ;;  %v766_v43 = vadd.f32 %v16320_v34, %v13936_v22  ;;  %v16325_v32 = vld [vmem:[#allocation129_spill] sm:$0xff] }
 0x7e7   :  { %v6845_v12 = vmul.f32 %v16308_v36, %v5670_v7  ;;  %7765 = vst [vmem:[%s14577_s3 + $0xe8] sm:$0xff] %v7718_v58  ;;  %6727 = vmatmul.f32.gmra.mxu0 %v16085_v33  ;;  %v16323_v7 = vld [vmem:[#allocation257_spill] sm:$0xff] }
 0x7e8   :  { %v5951_v59 = vpop.f32.mrf.mxu3 }
 0x7e9   :  { %v7409_v53 = vsel %vm16104_vm0, %v6845_v12, %v16311_v15  ;;  %v7572_v48 = vmul.f32 %v13925_v52, %v6845_v12  ;;  %v16330_v15 = vld [vmem:[#allocation250_spill] sm:$0xff]  ;;  %v16331_v59 = vld [vmem:[#allocation67_spill] sm:$0xff] }
 0x7ea   :  { %7794 = vst [vmem:[%s14577_s3 + $0x1d0] sm:$0xff] %v7409_v53  ;;  %v5527_v18 = vpop.f32.mrf.mxu1 }
 0x7eb   :  { %v5528_v37 = vadd.f32 %v5527_v18, %v13732_v1  ;;  %7665 = vrot.lane.b32.xlu0 %v7572_v48, %s8439_s26  ;;  %6393 = vmatmul.f32.gmra.mxu2 %v16314_v20  ;;  %v16316_v1 = vld [vmem:[#allocation256_spill] sm:$0xff] }
 0x7ec   :  { %v6668_v63 = vpop.f32.mrf.mxu0  ;;  %v16318_v31 = vsel %vm16096_vm11, %v16316_v1, %v16317_v57  ;;  %v16336_v57 = vld [vmem:[#allocation198_spill] sm:$0xff] }
 0x7ed   :  { %v5674_v49 = vadd.f32 %v5673_v4, %v5528_v37  ;;  %6194 = vmatmul.f32.gmra.mxu1 %v16313_v11  ;;  %v7644_v60 = vpop.permute.xlu2 %7643  ;;  %6577 = vmatmul.f32.gmra.mxu3 %v16082_v21  ;;  %v778_v37 = vadd.f32 %v16331_v59, %v13936_v22  ;;  %v16334_v63 = vld [vmem:[#allocation55_spill] sm:$0xff]  ;;  %v16348_v59 = vld [vmem:[#allocation57_spill] sm:$0xff] }
 0x7ee   :  { %v7722_v52 = vsel %vm7703_vm14, %v771_v26, %v7644_v60  ;;  %v5677_v47 = vpop.f32.mrf.mxu2 }
 0x7ef   :  { %v6847_v51 = vmul.f32 %v16315_v56, %v5674_v49  ;;  %7773 = vst [vmem:[%s14577_s3 + $0x128] sm:$0xff] %v7722_v52  ;;  %6731 = vmatmul.f32.gmra.mxu0 %v16087_v39  ;;  %v16333_v49 = vld [vmem:[#allocation197_spill] sm:$0xff]  ;;  %v773_v56 = vadd.f32 %v16334_v63, %v13936_v22 }
 0x7f0   :  { %v6514_v16 = vpop.f32.mrf.mxu3 }
 0x7f1   :  { %v7411_v6 = vsel %vm16319_vm2, %v6847_v51, %v16318_v31  ;;  %v7573_v35 = vmul.f32 %v14024_v9, %v6847_v51  ;;  %v16335_v51 = vld [vmem:[#allocation110_spill] sm:$0xff] }
 0x7f2   :  { %7796 = vst [vmem:[%s14577_s3 + $0x1e0] sm:$0xff] %v7411_v6  ;;  %v5531_v5 = vpop.f32.mrf.mxu1 }
 0x7f3   :  { %v5532_v21 = vadd.f32 %v5531_v5, %v13753_v45  ;;  %7667 = vrot.lane.b32.xlu2 %v7573_v35, %s8439_s26  ;;  %6399 = vmatmul.f32.gmra.mxu2 %v16322_v46  ;;  %v16324_v45 = vld [vmem:[#allocation85_spill] sm:$0xff]  ;;  %v16337_v5 = vld [vmem:[#allocation62_spill] sm:$0xff] }
 0x7f4   :  { %v6672_v24 = vpop.f32.mrf.mxu0  ;;  %v16326_v27 = vsel %vm16096_vm11, %v16324_v45, %v16325_v32  ;;  %v776_v16 = vadd.f32 %v16337_v5, %v13936_v22  ;;  %v16342_v45 = vld [vmem:[#allocation69_spill] sm:$0xff] }
 0x7f5   :  { %v5678_v8 = vadd.f32 %v5677_v47, %v5532_v21  ;;  %6199 = vmatmul.f32.gmra.mxu1 %v16321_v30  ;;  %v7640_v13 = vpop.permute.xlu1 %7639  ;;  %6581 = vmatmul.f32.gmra.mxu3 %v16085_v33  ;;  %v16328_v33 = vld [vmem:[#allocation43_spill] sm:$0xff]  ;;  %v16338_v21 = vld [vmem:[#allocation45_spill] sm:$0xff] }
 0x7f6   :  { %v7720_v9 = vsel %vm7703_vm14, %v766_v43, %v7640_v13  ;;  %v6304_v50 = vpop.f32.mrf.mxu2  ;;  %v768_v44 = vadd.f32 %v16328_v33, %v13936_v22  ;;  %v16339_v43 = vld [vmem:[#allocation204_spill] sm:$0xff] }
 0x7f7   :  { %v6849_v3 = vmul.f32 %v16323_v7, %v5678_v8  ;;  %7769 = vst [vmem:[%s14577_s3 + $0x108] sm:$0xff] %v7720_v9  ;;  %6735 = vmatmul.f32.gmra.mxu0 %v16090_v28  ;;  %v16340_v9 = vld [vmem:[#allocation90_spill] sm:$0xff]  ;;  %v16341_v7 = vld [vmem:[#allocation105_spill] sm:$0xff] }
 0x7f8   :  { %v6518_v61 = vpop.f32.mrf.mxu3  ;;  %v786_v24 = vadd.f32 %v16340_v9, %v13936_v22 }
 0x7f9   :  { %v7413_v58 = vsel %vm16327_vm13, %v6849_v3, %v16326_v27  ;;  %v7574_v36 = vmul.f32 %v14050_v2, %v6849_v3  ;;  %v16344_v61 = vld [vmem:[#allocation52_spill] sm:$0xff] }
 0x7fa   :  { %7798 = vst [vmem:[%s14577_s3 + $0x1f0] sm:$0xff] %v7413_v58  ;;  %v6125_v12 = vpop.f32.mrf.mxu1 }
 0x7fb   :  { %7669 = vrot.lane.b32.xlu1 %v7574_v36, %s8439_s26  ;;  %6405 = vmatmul.f32.gmra.mxu2 %v16330_v15  ;;  %v16343_v36 = vld [vmem:[#allocation76_spill] sm:$0xff] }
 0x7fc   :  { %v6676_v4 = vpop.f32.mrf.mxu0  ;;  %v781_v12 = vadd.f32 %v16343_v36, %v13936_v22 }
 0x7fd   :  { %6204 = vmatmul.f32.gmra.mxu1 %v16329_v23  ;;  %v7642_v62 = vpop.permute.xlu0 %7641  ;;  %6585 = vmatmul.f32.gmra.mxu3 %v16087_v39  ;;  %v16346_v4 = vld [vmem:[#allocation83_spill] sm:$0xff] }
 0x7fe   :  { %v7721_v53 = vsel %vm7703_vm14, %v768_v44, %v7642_v62  ;;  %v6310_v2 = vpop.f32.mrf.mxu2  ;;  %v16345_v44 = vld [vmem:[#allocation209_spill] sm:$0xff] }
 0x7ff   :  { %7771 = vst [vmem:[%s14577_s3 + $0x118] sm:$0xff] %v7721_v53  ;;  %6739 = vmatmul.f32.gmra.mxu0 %v16099_v42  ;;  %v783_v2 = vadd.f32 %v16346_v4, %v13936_v22  ;;  %v16364_v4 = vld [vmem:[#allocation128_spill] sm:$0xff] }
 0x800   :  { %v6522_v18 = vpop.f32.mrf.mxu3 }
 0x802   :  { %v6130_v48 = vpop.f32.mrf.mxu1 }
 0x803   :  { %6411 = vmatmul.f32.gmra.mxu2 %v16333_v49  ;;  %v16347_v48 = vld [vmem:[#allocation60_spill] sm:$0xff] }
 0x804   :  { %v6680_v60 = vpop.f32.mrf.mxu0 }
 0x805   :  { %6209 = vmatmul.f32.gmra.mxu1 %v16332_v41  ;;  %v7650_v26 = vpop.permute.xlu2 %7649  ;;  %6589 = vmatmul.f32.gmra.mxu3 %v16090_v28 }
 0x806   :  { %v7725_v11 = vsel %vm7703_vm14, %v778_v37, %v7650_v26  ;;  %v6316_v39 = vpop.f32.mrf.mxu2 }
 0x807   :  { %7779 = vst [vmem:[%s14577_s3 + $0x158] sm:$0xff] %v7725_v11  ;;  %6743 = vmatmul.f32.gmra.mxu0 %v16105_v29  ;;  %v16349_v11 = vld [vmem:[#allocation115_spill] sm:$0xff]  ;;  %v16350_v39 = vld [vmem:[#allocation42_spill] sm:$0xff] }
 0x808   :  { %v6526_v52 = vpop.f32.mrf.mxu3  ;;  %v793_v60 = vadd.f32 %v16349_v11, %v13936_v22  ;;  %v16368_v11 = vld [vmem:[#allocation133_spill] sm:$0xff] }
 0x809   :  { %v16351_v52 = vld [vmem:[#allocation205_spill] sm:$0xff] }
 0x80a   :  { %v6135_v20 = vpop.f32.mrf.mxu1 }
 0x80b   :  { %6417 = vmatmul.f32.gmra.mxu2 %v16336_v57  ;;  %v16352_v57 = vld [vmem:[#allocation97_spill] sm:$0xff] }
 0x80c   :  { %v6684_v6 = vpop.f32.mrf.mxu0 }
 0x80d   :  { %6214 = vmatmul.f32.gmra.mxu1 %v16335_v51  ;;  %v7646_v1 = vpop.permute.xlu1 %7645  ;;  %6593 = vmatmul.f32.gmra.mxu3 %v16099_v42  ;;  %v16353_v6 = vld [vmem:[#allocation206_spill] sm:$0xff] }
 0x80e   :  { %v7723_v31 = vsel %vm7703_vm14, %v773_v56, %v7646_v1  ;;  %v6322_v28 = vpop.f32.mrf.mxu2 }
 0x80f   :  { %7775 = vst [vmem:[%s14577_s3 + $0x138] sm:$0xff] %v7723_v31  ;;  %6747 = vmatmul.f32.gmra.mxu0 %v16112_v10  ;;  %v788_v31 = vadd.f32 %v16352_v57, %v13936_v22 }
 0x810   :  { %v6530_v35 = vpop.f32.mrf.mxu3 }
 0x812   :  { %v6140_v47 = vpop.f32.mrf.mxu1 }
 0x813   :  { %6423 = vmatmul.f32.gmra.mxu2 %v16339_v43  ;;  %v16354_v47 = vld [vmem:[#allocation214_spill] sm:$0xff] }
 0x814   :  { %v6688_v30 = vpop.f32.mrf.mxu0 }
 0x815   :  { %6219 = vmatmul.f32.gmra.mxu1 %v16338_v21  ;;  %v7648_v34 = vpop.permute.xlu0 %7647  ;;  %6597 = vmatmul.f32.gmra.mxu3 %v16105_v29 }
 0x816   :  { %v7724_v8 = vsel %vm7703_vm14, %v776_v16, %v7648_v34  ;;  %v6328_v42 = vpop.f32.mrf.mxu2  ;;  %v16355_v34 = vld [vmem:[#allocation106_spill] sm:$0xff] }
 0x817   :  { %7777 = vst [vmem:[%s14577_s3 + $0x148] sm:$0xff] %v7724_v8  ;;  %6751 = vmatmul.f32.gmra.mxu0 %v16118_v54  ;;  %v791_v43 = vadd.f32 %v16355_v34, %v13936_v22  ;;  %v16356_v8 = vld [vmem:[#allocation48_spill] sm:$0xff] }
 0x818   :  { %v6534_v46 = vpop.f32.mrf.mxu3  ;;  %v16357_v42 = vld [vmem:[#allocation124_spill] sm:$0xff] }
 0x81a   :  { %v6145_v13 = vpop.f32.mrf.mxu1 }
 0x81b   :  { %6429 = vmatmul.f32.gmra.mxu2 %v16342_v45  ;;  %v16359_v45 = vld [vmem:[#allocation216_spill] sm:$0xff] }
 0x81c   :  { %v6692_v27 = vpop.f32.mrf.mxu0 }
 0x81d   :  { %6224 = vmatmul.f32.gmra.mxu1 %v16341_v7  ;;  %v7656_v3 = vpop.permute.xlu2 %7655  ;;  %6601 = vmatmul.f32.gmra.mxu3 %v16112_v10  ;;  %v16358_v7 = vld [vmem:[#allocation132_spill] sm:$0xff] }
 0x81e   :  { %v7728_v32 = vsel %vm7703_vm14, %v786_v24, %v7656_v3  ;;  %v6334_v29 = vpop.f32.mrf.mxu2  ;;  %v801_v3 = vadd.f32 %v16358_v7, %v13936_v22  ;;  %v16360_v27 = vld [vmem:[#allocation116_spill] sm:$0xff] }
 0x81f   :  { %7785 = vst [vmem:[%s14577_s3 + $0x188] sm:$0xff] %v7728_v32  ;;  %6755 = vmatmul.f32.gmra.mxu0 %v13214_v14 }
 0x820   :  { %v6538_v50 = vpop.f32.mrf.mxu3 }
 0x822   :  { %v6150_v58 = vpop.f32.mrf.mxu1 }
 0x823   :  { %6435 = vmatmul.f32.gmra.mxu2 %v16345_v44 }
 0x824   :  { %v6696_v62 = vpop.f32.mrf.mxu0 }
 0x825   :  { %6229 = vmatmul.f32.gmra.mxu1 %v16344_v61  ;;  %v7652_v33 = vpop.permute.xlu1 %7651  ;;  %6605 = vmatmul.f32.gmra.mxu3 %v16118_v54 }
 0x826   :  { %v7726_v23 = vsel %vm7703_vm14, %v781_v12, %v7652_v33  ;;  %v6340_v10 = vpop.f32.mrf.mxu2  ;;  %v16361_v12 = vld [vmem:[#allocation122_spill] sm:$0xff]  ;;  %v16362_v33 = vld [vmem:[#allocation75_spill] sm:$0xff] }
 0x827   :  { %7781 = vst [vmem:[%s14577_s3 + $0x168] sm:$0xff] %v7726_v23  ;;  %6759 = vmatmul.f32.gmra.mxu0 %v13260_v17  ;;  %v796_v61 = vadd.f32 %v16361_v12, %v13936_v22  ;;  %v16363_v23 = vld [vmem:[#allocation66_spill] sm:$0xff] }
 0x828   :  { %v6542_v53 = vpop.f32.mrf.mxu3 }
 0x82a   :  { %v6155_v15 = vpop.f32.mrf.mxu1 }
 0x82b   :  { %6441 = vmatmul.f32.gmra.mxu2 %v16348_v59  ;;  %v16366_v59 = vld [vmem:[#allocation99_spill] sm:$0xff] }
 0x82c   :  { %v6700_v41 = vpop.f32.mrf.mxu0 }
 0x82d   :  { %6234 = vmatmul.f32.gmra.mxu1 %v16347_v48  ;;  %v7654_v18 = vpop.permute.xlu0 %7653  ;;  %6609 = vmatmul.f32.gmra.mxu3 %v13214_v14  ;;  %v16365_v48 = vld [vmem:[#allocation72_spill] sm:$0xff] }
 0x82e   :  { %v7727_v37 = vsel %vm7703_vm14, %v783_v2, %v7654_v18  ;;  %v6346_v54 = vpop.f32.mrf.mxu2  ;;  %v798_v2 = vadd.f32 %v16364_v4, %v13936_v22 }
 0x82f   :  { %7783 = vst [vmem:[%s14577_s3 + $0x178] sm:$0xff] %v7727_v37  ;;  %6763 = vmatmul.f32.gmra.mxu0 %v13306_v55 }
 0x830   :  { %v6546_v49 = vpop.f32.mrf.mxu3 }
 0x831   :  { %v16367_v49 = vld [vmem:[#allocation152_spill] sm:$0xff] }
 0x832   :  { %v6160_v26 = vpop.f32.mrf.mxu1 }
 0x833   :  { %6447 = vmatmul.f32.gmra.mxu2 %v16351_v52 }
 0x834   :  { %v6704_v56 = vpop.f32.mrf.mxu0 }
 0x835   :  { %6239 = vmatmul.f32.gmra.mxu1 %v16350_v39  ;;  %v7662_v20 = vpop.permute.xlu2 %7661  ;;  %6613 = vmatmul.f32.gmra.mxu3 %v13260_v17 }
 0x836   :  { %v7731_v63 = vsel %vm7703_vm14, %v793_v60, %v7662_v20  ;;  %v6352_v14 = vpop.f32.mrf.mxu2 }
 0x837   :  { %7791 = vst [vmem:[%s14577_s3 + $0x1b8] sm:$0xff] %v7731_v63  ;;  %6767 = vmatmul.f32.gmra.mxu0 %v13352_v0  ;;  %v16369_v63 = vld [vmem:[#allocation136_spill] sm:$0xff] }
 0x838   :  { %v6550_v1 = vpop.f32.mrf.mxu3  ;;  %v803_v56 = vadd.f32 %v16369_v63, %v13936_v22  ;;  %v16370_v14 = vld [vmem:[#allocation92_spill] sm:$0xff] }
 0x83a   :  { %v6165_v51 = vpop.f32.mrf.mxu1 }
 0x83b   :  { %6453 = vmatmul.f32.gmra.mxu2 %v16354_v47 }
 0x83c   :  { %v6708_v5 = vpop.f32.mrf.mxu0 }
 0x83d   :  { %6244 = vmatmul.f32.gmra.mxu1 %v16353_v6  ;;  %v7658_v28 = vpop.permute.xlu1 %7657  ;;  %6617 = vmatmul.f32.gmra.mxu3 %v13306_v55 }
 0x83e   :  { %v7729_v35 = vsel %vm7703_vm14, %v788_v31, %v7658_v28  ;;  %v6358_v17 = vpop.f32.mrf.mxu2  ;;  %v16372_v28 = vld [vmem:[#allocation84_spill] sm:$0xff] }
 0x83f   :  { %7787 = vst [vmem:[%s14577_s3 + $0x198] sm:$0xff] %v7729_v35  ;;  %6771 = vmatmul.f32.gmra.mxu0 %v13394_v38 }
 0x840   :  { %v6554_v21 = vpop.f32.mrf.mxu3 }
 0x842   :  { %v6170_v16 = vpop.f32.mrf.mxu1 }
 0x843   :  { %6459 = vmatmul.f32.gmra.mxu2 %v16357_v42 }
 0x844   :  { %v6712_v46 = vpop.f32.mrf.mxu0 }
 0x845   :  { %6249 = vmatmul.f32.gmra.mxu1 %v16356_v8  ;;  %v7660_v30 = vpop.permute.xlu0 %7659  ;;  %6621 = vmatmul.f32.gmra.mxu3 %v13352_v0 }
 0x846   :  { %v7730_v13 = vsel %vm7703_vm14, %v791_v43, %v7660_v30  ;;  %v6364_v55 = vpop.f32.mrf.mxu2 }
 0x847   :  { %7789 = vst [vmem:[%s14577_s3 + $0x1a8] sm:$0xff] %v7730_v13  ;;  %6775 = vmatmul.f32.gmra.mxu0 %v13432_v40 }
 0x848   :  { %v6558_v24 = vpop.f32.mrf.mxu3 }
 0x84a   :  { %v6175_v9 = vpop.f32.mrf.mxu1 }
 0x84b   :  { %6465 = vmatmul.f32.gmra.mxu2 %v16360_v27 }
 0x84c   :  { %v6716_v58 = vpop.f32.mrf.mxu0 }
 0x84d   :  { %6254 = vmatmul.f32.gmra.mxu1 %v16359_v45  ;;  %v7668_v32 = vpop.permute.xlu2 %7667  ;;  %6625 = vmatmul.f32.gmra.mxu3 %v13394_v38 }
 0x84e   :  { %v7734_v29 = vsel %vm7703_vm14, %v801_v3, %v7668_v32  ;;  %v6370_v0 = vpop.f32.mrf.mxu2 }
 0x84f   :  { %7797 = vst [vmem:[%s14577_s3 + $0x1e8] sm:$0xff] %v7734_v29  ;;  %6779 = vmatmul.f32.gmra.mxu0 %v13467_v25 }
 0x850   :  { %v6562_v36 = vpop.f32.mrf.mxu3 }
 0x852   :  { %v6180_v50 = vpop.f32.mrf.mxu1 }
 0x853   :  { %6471 = vmatmul.f32.gmra.mxu2 %v16363_v23 }
 0x854   :  { %v6720_v10 = vpop.f32.mrf.mxu0 }
 0x855   :  { %6259 = vmatmul.f32.gmra.mxu1 %v16362_v33  ;;  %v7664_v44 = vpop.permute.xlu1 %7663  ;;  %6629 = vmatmul.f32.gmra.mxu3 %v13432_v40 }
 0x856   :  { %v7732_v62 = vsel %vm7703_vm14, %v796_v61, %v7664_v44  ;;  %v6376_v38 = vpop.f32.mrf.mxu2 }
 0x857   :  { %7793 = vst [vmem:[%s14577_s3 + $0x1c8] sm:$0xff] %v7732_v62  ;;  %6783 = vmatmul.f32.gmra.mxu0 %v13490_v19 }
 0x858   :  { %v6566_v53 = vpop.f32.mrf.mxu3 }
 0x85a   :  { %v6185_v15 = vpop.f32.mrf.mxu1 }
 0x85b   :  { %6477 = vmatmul.f32.gmra.mxu2 %v16366_v59 }
 0x85c   :  { %v6724_v41 = vpop.f32.mrf.mxu0 }
 0x85d   :  { %6264 = vmatmul.f32.gmra.mxu1 %v16365_v48  ;;  %v7666_v18 = vpop.permute.xlu0 %7665  ;;  %6633 = vmatmul.f32.gmra.mxu3 %v13467_v25  ;;  %v16371_v25 = vld [vmem:[#allocation158_spill] sm:$0xff] }
 0x85e   :  { %v7733_v37 = vsel %vm7703_vm14, %v798_v2, %v7666_v18  ;;  %v6382_v40 = vpop.f32.mrf.mxu2 }
 0x85f   :  { %7795 = vst [vmem:[%s14577_s3 + $0x1d8] sm:$0xff] %v7733_v37 }
 0x860   :  { %v6570_v26 = vpop.f32.mrf.mxu3 }
 0x862   :  { %v6190_v54 = vpop.f32.mrf.mxu1 }
 0x863   :  { %6483 = vmatmul.f32.gmra.mxu2 %v16368_v11 }
 0x864   :  { %v6728_v60 = vpop.f32.mrf.mxu0 }
 0x865   :  { %6269 = vmatmul.f32.gmra.mxu1 %v16367_v49  ;;  %6637 = vmatmul.f32.gmra.mxu3 %v13490_v19 }
 0x866   :  { %v6388_v39 = vpop.f32.mrf.mxu2 }
 0x868   :  { %v6574_v52 = vpop.f32.mrf.mxu3 }
 0x86a   :  { %v6195_v20 = vpop.f32.mrf.mxu1 }
 0x86b   :  { %6489 = vmatmul.f32.gmra.mxu2 %v16371_v25 }
 0x86c   :  { %v6732_v57 = vpop.f32.mrf.mxu0 }
 0x86d   :  { %6274 = vmatmul.f32.gmra.mxu1 %v16370_v14  ;;  %v7670_v51 = vpop.permute.xlu1 %7669 }
 0x86e   :  { %v7735_v1 = vsel %vm7703_vm14, %v803_v56, %v7670_v51  ;;  %v6394_v31 = vpop.f32.mrf.mxu2 }
 0x86f   :  { %7799 = vst [vmem:[%s14577_s3 + $0x1f8] sm:$0xff] %v7735_v1 }
 0x870   :  { %v6578_v6 = vpop.f32.mrf.mxu3 }
 0x872   :  { %v6200_v19 = vpop.f32.mrf.mxu1 }
 0x874   :  { %v6736_v47 = vpop.f32.mrf.mxu0 }
 0x875   :  { %6279 = vmatmul.f32.gmra.mxu1 %v16372_v28 }
 0x876   :  { %v6400_v35 = vpop.f32.mrf.mxu2 }
 0x878   :  { %v6582_v5 = vpop.f32.mrf.mxu3 }
 0x87a   :  { %v6205_v22 = vpop.f32.mrf.mxu1 }
 0x87c   :  { %v6740_v17 = vpop.f32.mrf.mxu0 }
 0x87e   :  { %v6406_v16 = vpop.f32.mrf.mxu2 }
 0x880   :  { %v6586_v34 = vpop.f32.mrf.mxu3 }
 0x882   :  { %v6210_v21 = vpop.f32.mrf.mxu1 }
 0x884   :  { %v6744_v43 = vpop.f32.mrf.mxu0 }
 0x886   :  { %v6412_v8 = vpop.f32.mrf.mxu2 }
 0x888   :  { %v6590_v42 = vpop.f32.mrf.mxu3 }
 0x88a   :  { %v6215_v30 = vpop.f32.mrf.mxu1 }
 0x88c   :  { %v6748_v13 = vpop.f32.mrf.mxu0 }
 0x88e   :  { %v6418_v46 = vpop.f32.mrf.mxu2 }
 0x890   :  { %v6594_v9 = vpop.f32.mrf.mxu3 }
 0x892   :  { %v6220_v55 = vpop.f32.mrf.mxu1 }
 0x894   :  { %v6752_v24 = vpop.f32.mrf.mxu0 }
 0x896   :  { %v6424_v7 = vpop.f32.mrf.mxu2 }
 0x898   :  { %v6598_v45 = vpop.f32.mrf.mxu3 }
 0x89a   :  { %v6225_v3 = vpop.f32.mrf.mxu1 }
 0x89c   :  { %v6756_v32 = vpop.f32.mrf.mxu0 }
 0x89e   :  { %v6430_v27 = vpop.f32.mrf.mxu2 }
 0x8a0   :  { %v6602_v58 = vpop.f32.mrf.mxu3 }
 0x8a2   :  { %v6230_v29 = vpop.f32.mrf.mxu1 }
 0x8a4   :  { %v6760_v0 = vpop.f32.mrf.mxu0 }
 0x8a6   :  { %v6436_v50 = vpop.f32.mrf.mxu2 }
 0x8a8   :  { %v6606_v12 = vpop.f32.mrf.mxu3 }
 0x8aa   :  { %v6235_v36 = vpop.f32.mrf.mxu1 }
 0x8ac   :  { %v6764_v61 = vpop.f32.mrf.mxu0 }
 0x8ae   :  { %v6442_v33 = vpop.f32.mrf.mxu2 }
 0x8b0   :  { %v6610_v23 = vpop.f32.mrf.mxu3 }
 0x8b2   :  { %v6240_v44 = vpop.f32.mrf.mxu1 }
 0x8b4   :  { %v6768_v62 = vpop.f32.mrf.mxu0 }
 0x8b6   :  { %v6448_v10 = vpop.f32.mrf.mxu2 }
 0x8b8   :  { %v6614_v15 = vpop.f32.mrf.mxu3 }
 0x8ba   :  { %v6245_v38 = vpop.f32.mrf.mxu1 }
 0x8bc   :  { %v6772_v53 = vpop.f32.mrf.mxu0 }
 0x8be   :  { %v6454_v4 = vpop.f32.mrf.mxu2 }
 0x8c0   :  { %v6618_v48 = vpop.f32.mrf.mxu3 }
 0x8c2   :  { %v6250_v2 = vpop.f32.mrf.mxu1 }
 0x8c4   :  { %v6776_v18 = vpop.f32.mrf.mxu0 }
 0x8c6   :  { %v6460_v59 = vpop.f32.mrf.mxu2 }
 0x8c8   :  { %v6622_v41 = vpop.f32.mrf.mxu3 }
 0x8ca   :  { %v6255_v37 = vpop.f32.mrf.mxu1 }
 0x8cc   :  { %v6780_v40 = vpop.f32.mrf.mxu0 }
 0x8ce   :  { %v6466_v54 = vpop.f32.mrf.mxu2 }
 0x8d0   :  { %v6626_v49 = vpop.f32.mrf.mxu3 }
 0x8d2   :  { %v6260_v26 = vpop.f32.mrf.mxu1 }
 0x8d4   :  { %v6784_v11 = vpop.f32.mrf.mxu0 }
 0x8d6   :  { %v6472_v60 = vpop.f32.mrf.mxu2 }
 0x8d8   :  { %v6630_v20 = vpop.f32.mrf.mxu3 }
 0x8da   :  { %v6265_v39 = vpop.f32.mrf.mxu1 }
 0x8de   :  { %v6478_v52 = vpop.f32.mrf.mxu2 }
 0x8e0   :  { %v6634_v56 = vpop.f32.mrf.mxu3 }
 0x8e2   :  { %v6270_v63 = vpop.f32.mrf.mxu1 }
 0x8e6   :  { %v6484_v14 = vpop.f32.mrf.mxu2 }
 0x8e8   :  { %v6638_v25 = vpop.f32.mrf.mxu3 }
 0x8ea   :  { %v6275_v51 = vpop.f32.mrf.mxu1 }
 0x8ee   :  { %v6490_v1 = vpop.f32.mrf.mxu2 }
 0x8f2   :  { %v6280_v57 = vpop.f32.mrf.mxu1 }

</bundles_post_ra>
